<compile_context>
chip_gen: v7x
topology: tpu7x:2x2x1
jax: 0.10.0
libtpu: 0.0.40
codegen_flags: <defaults>
</compile_context>

<pallas_src>
import jax
import jax.numpy as jnp
import numpy as np
from jax.experimental import pallas as pl
from jax.experimental.pallas import tpu as pltpu

FILTER = 256
NUM_X_FREQ = 6
NUM_D_FREQ = 3
X_IN = 3 * (1 + 2 * NUM_X_FREQ)   # 39
D_IN = 3 * (1 + 2 * NUM_D_FREQ)   # 21
XD_PAD = 64                       # packed [x | d | zeros] lane width
XD_OUT = 2 * FILTER + FILTER // 2  # 640 merged xd-matmul output columns

LAYERS = [
    ("layer_1", X_IN, FILTER),
    ("layer_2", FILTER, FILTER),
    ("layer_3", FILTER, FILTER),
    ("layer_4", FILTER, FILTER),
    ("layer_5", FILTER, FILTER),
    ("layer_6", FILTER + X_IN, FILTER),
    ("layer_7", FILTER, FILTER),
    ("layer_8", FILTER, FILTER),
    ("layer_s", FILTER, 1),
    ("layer_9", FILTER, FILTER),
    ("layer_10", FILTER + D_IN, FILTER // 2),
    ("layer_11", FILTER // 2, 3),
]


def nerf_kernel(
    xd_ref,
    w_xd, b1, w2, b2, w3, b3, w4, b4, w5, b5,
    w6y, b6, w7, b7, w8, b8,
    wfs, bfs, w11, b11,
    out_ref,
):
    bf16 = jnp.bfloat16

    def dot32(a, w_ref):
        # bf16 operands on the MXU, f32 accumulation.
        return jnp.dot(a, w_ref[...], preferred_element_type=jnp.float32)

    def layer(a, w_ref, b_ref):
        # bf16 epilogue: cast accumulator once, bias-add + ReLU in bf16.
        return jnp.maximum(dot32(a, w_ref).astype(bf16) + b_ref[...], 0)

    xd = xd_ref[...]                                      # (tm, 64) bf16

    # One matmul for every consumer of the raw [x | d] block.
    xd_all = dot32(xd, w_xd).astype(bf16)                 # (tm, 640)
    x1 = xd_all[:, 0 * FILTER:1 * FILTER]                 # layer_1 pre-bias
    x6 = xd_all[:, 1 * FILTER:2 * FILTER]                 # layer_6 x-part
    d10 = xd_all[:, 2 * FILTER:2 * FILTER + FILTER // 2]  # layer_10 d-part

    y = jnp.maximum(x1 + b1[...], 0)                      # layer_1
    y = layer(y, w2, b2)
    y = layer(y, w3, b3)
    y = layer(y, w4, b4)
    y = layer(y, w5, b5)
    # layer_6(cat(y, x)) -> split matmul (x part came from xd_all)
    y = jnp.maximum(dot32(y, w6y).astype(bf16) + x6 + b6[...], 0)
    y = layer(y, w7, b7)
    y = layer(y, w8, b8)

    # Fused [layer_9 folded into layer_10 y-path | sigma head]:
    #   cols 0..127 : y8 @ (W9 @ W10y) + (b9 @ W10y + b10)
    #   col  128    : y8 @ Ws + bs   (sigma, no activation)
    yall = dot32(y, wfs) + bfs[...]                       # (tm, 256) f32
    sigma = yall[:, FILTER // 2:FILTER // 2 + 1]          # (tm, 1)
    y10 = jnp.maximum(yall[:, :FILTER // 2].astype(bf16) + d10, 0)

    # layer_11 padded to 4 output lanes; col 3 is a dummy, replaced by sigma.
    rgbp = jax.nn.sigmoid(dot32(y10, w11) + b11[...])     # (tm, 4) f32
    lane = jax.lax.broadcasted_iota(jnp.int32, rgbp.shape, 1)
    packed = jnp.where(lane < 3, rgbp, jnp.broadcast_to(sigma, rgbp.shape))
    # TODO(synk): output block is 4 lanes wide (masked vst); a transposed
    # (4, n_pad) lane-dense layout would shave a few % once MXU-bound.
    out_ref[...] = packed.astype(out_ref.dtype)


def pack_params(params):
    """Convert raw (in, out) layer params into fused/padded kernel params."""
    bf = lambda a: a.astype(jnp.bfloat16)
    f32 = jnp.float32

    def w_of(name):
        return params[name][0].astype(f32)

    def b_of(name):
        return params[name][1].astype(f32)

    def brow(name):
        return bf(b_of(name).reshape(1, -1))

    # Merged xd weight (64, 640): [W1 | W6x | W10d], zero-padded rows.
    w1 = w_of("layer_1")                        # (39, 256)
    w6 = w_of("layer_6")
    w6y, w6x = w6[:FILTER], w6[FILTER:]         # (256,256), (39,256)
    w10 = w_of("layer_10")
    w10y, w10d = w10[:FILTER], w10[FILTER:]     # (256,128), (21,128)

    w_xd = jnp.zeros((XD_PAD, XD_OUT), f32)
    w_xd = w_xd.at[:X_IN, 0:FILTER].set(w1)
    w_xd = w_xd.at[:X_IN, FILTER:2 * FILTER].set(w6x)
    w_xd = w_xd.at[X_IN:X_IN + D_IN, 2 * FILTER:].set(w10d)

    # Fold activation-free layer_9 into layer_10's y-path (f32 precompute),
    # pack sigma head (Ws, bs) as column 128 of the same (256, 256) weight.
    w9, b9 = w_of("layer_9"), b_of("layer_9")
    ws, bs = w_of("layer_s"), b_of("layer_s")
    w_fold = w9 @ w10y                          # (256, 128)
    b_fold = b9 @ w10y + b_of("layer_10")       # (128,)
    wfs = jnp.zeros((FILTER, FILTER), f32)
    wfs = wfs.at[:, :FILTER // 2].set(w_fold)
    wfs = wfs.at[:, FILTER // 2:FILTER // 2 + 1].set(ws)
    bfs = jnp.zeros((1, FILTER), f32)
    bfs = bfs.at[0, :FILTER // 2].set(b_fold)
    bfs = bfs.at[0, FILTER // 2].set(bs[0])

    # layer_11 padded to 4 output lanes (col 3 dummy, replaced by sigma).
    w11 = jnp.zeros((FILTER // 2, 4), f32).at[:, :3].set(w_of("layer_11"))
    b11 = jnp.zeros((1, 4), f32).at[:, :3].set(b_of("layer_11"))

    return [
        bf(w_xd), brow("layer_1"),
        bf(w_of("layer_2")), brow("layer_2"),
        bf(w_of("layer_3")), brow("layer_3"),
        bf(w_of("layer_4")), brow("layer_4"),
        bf(w_of("layer_5")), brow("layer_5"),
        bf(w6y), brow("layer_6"),
        bf(w_of("layer_7")), brow("layer_7"),
        bf(w_of("layer_8")), brow("layer_8"),
        bf(wfs), bfs,            # bfs kept f32 (sigma path + folded biases)
        bf(w11), b11,            # b11 kept f32 (4-lane epilogue is trivial)
    ]


def nerf_forward(x, d, params, *, tile_m=2048):
    N = x.shape[0]
    # Fewest large row tiles: amortizes ~0.35 us/step overhead and MXU weight
    # reloads.  Rows split evenly across steps (keeps 2-TC chips balanced);
    # tile_m capped at 2048 so live VMEM stays well under the 48 MiB limit.
    steps = max(1, int(pl.cdiv(N, tile_m)))
    tm = int(pl.cdiv(max(1, int(pl.cdiv(N, steps))), 256)) * 256
    tm = min(tm, tile_m)
    n_pad = steps * tm

    # Pack [x | d | zeros] into one lane-aligned bf16 input block.
    xd = jnp.zeros((n_pad, XD_PAD), jnp.bfloat16)
    xd = xd.at[:N, :X_IN].set(x.astype(jnp.bfloat16))
    xd = xd.at[:N, X_IN:X_IN + D_IN].set(d.astype(jnp.bfloat16))

    kparams = pack_params(params)
    param_specs = [pl.BlockSpec(p.shape, lambda i: (0, 0)) for p in kparams]

    flops = 2 * n_pad * sum(int(p.shape[0]) * int(p.shape[1])
                            for p in kparams if p.shape[0] > 1)
    bytes_accessed = (sum(p.size * p.dtype.itemsize for p in kparams)
                      + xd.size * xd.dtype.itemsize + n_pad * 4 * 4)
    cost = pl.CostEstimate(flops=int(flops), transcendentals=int(4 * n_pad),
                           bytes_accessed=int(bytes_accessed))

    out = pl.pallas_call(
        nerf_kernel,
        grid_spec=pltpu.PrefetchScalarGridSpec(
            num_scalar_prefetch=0,
            grid=(steps,),
            in_specs=[pl.BlockSpec((tm, XD_PAD), lambda i: (i, 0))] + param_specs,
            out_specs=pl.BlockSpec((tm, 4), lambda i: (i, 0)),
        ),
        out_shape=jax.ShapeDtypeStruct((n_pad, 4), jnp.float32),
        compiler_params=pltpu.CompilerParams(
            dimension_semantics=("parallel",),
            vmem_limit_bytes=48 * 1024 * 1024,
        ),
        cost_estimate=cost,
    )(xd, *kparams)

    return out[:N, :3], out[:N, 3:4]


def init_params(key):
    """Deterministic PyTorch-Linear-style init; weights stored (in, out)."""
    params = {}
    keys = jax.random.split(key, len(LAYERS))
    for k, (name, fan_in, fan_out) in zip(keys, LAYERS):
        kw, kb = jax.random.split(k)
        bound = 1.0 / np.sqrt(fan_in)
        w = jax.random.uniform(kw, (fan_in, fan_out), jnp.float32, -bound, bound)
        b = jax.random.uniform(kb, (fan_out,), jnp.float32, -bound, bound)
        params[name] = (w, b)
    return params


def nerf_reference(x, d, params, *, mixed_precision=False):
    """Pure-JAX reference mirroring the PyTorch forward.

    mixed_precision=True approximately mirrors the kernel numerics (bf16
    matmul operands, f32 accumulation, bf16 bias-add/ReLU epilogue) without
    the layer_9 fold, for a tight-ish correctness check.
    """
    def lin(name, v):
        w, b = params[name]
        if mixed_precision:
            acc = jnp.dot(v.astype(jnp.bfloat16), w.astype(jnp.bfloat16),
                          preferred_element_type=jnp.float32)
            return acc.astype(jnp.bfloat16) + b.astype(jnp.bfloat16)
        return jnp.dot(v, w) + b

    relu = lambda v: jnp.maximum(v, 0)
    y = relu(lin("layer_1", x))
    y = relu(lin("layer_2", y))
    y = relu(lin("layer_3", y))
    y = relu(lin("layer_4", y))
    y = relu(lin("layer_5", y))
    y = relu(lin("layer_6", jnp.concatenate([y, x], axis=-1)))
    y = relu(lin("layer_7", y))
    y = relu(lin("layer_8", y))
    sigma = lin("layer_s", y).astype(jnp.float32)
    y = lin("layer_9", y)
    y = relu(lin("layer_10", jnp.concatenate([y, d], axis=-1)))
    rgb = jax.nn.sigmoid(lin("layer_11", y).astype(jnp.float32))
    return rgb, sigma


if __name__ == "__main__":
    key = jax.random.PRNGKey(0)
    kx, kd, kp = jax.random.split(key, 3)

    N = 512  # number of (ray, sample) points
    x = jax.random.normal(kx, (N, X_IN), jnp.float32)
    d = jax.random.normal(kd, (N, D_IN), jnp.float32)
    params = init_params(kp)

    rgb, sigma = nerf_forward(x, d, params)
    jax.block_until_ready((rgb, sigma))

    # Check against a numerics-matched (bf16 operand / f32 accumulate, bf16
    # epilogue) reference; small slack covers the exact layer_9 fold.
    rgb_mp, sigma_mp = nerf_reference(x, d, params, mixed_precision=True)
    np.testing.assert_allclose(np.asarray(rgb), np.asarray(rgb_mp),
                               atol=1e-2, rtol=1e-2)
    np.testing.assert_allclose(np.asarray(sigma), np.asarray(sigma_mp),
                               atol=1e-2, rtol=1e-2)

    # Loose sanity check against the pure-f32 reference (bf16 MXU math).
    rgb_f32, sigma_f32 = nerf_reference(x, d, params)
    np.testing.assert_allclose(np.asarray(rgb), np.asarray(rgb_f32),
                               atol=1e-1, rtol=1e-1)
    np.testing.assert_allclose(np.asarray(sigma), np.asarray(sigma_f32),
                               atol=1e-1, rtol=1e-1)

    print("KERNEL_OK")
</pallas_src>

<mosaic_0001>
module attributes {stable_mosaic.version = 11 : i64} {
  func.func @nerf_kernel(%arg0: i32, %arg1: memref<512x64xbf16, #tpu.memory_space<vmem>>, %arg2: memref<64x640xbf16, #tpu.memory_space<vmem>>, %arg3: memref<1x256xbf16, #tpu.memory_space<vmem>>, %arg4: memref<256x256xbf16, #tpu.memory_space<vmem>>, %arg5: memref<1x256xbf16, #tpu.memory_space<vmem>>, %arg6: memref<256x256xbf16, #tpu.memory_space<vmem>>, %arg7: memref<1x256xbf16, #tpu.memory_space<vmem>>, %arg8: memref<256x256xbf16, #tpu.memory_space<vmem>>, %arg9: memref<1x256xbf16, #tpu.memory_space<vmem>>, %arg10: memref<256x256xbf16, #tpu.memory_space<vmem>>, %arg11: memref<1x256xbf16, #tpu.memory_space<vmem>>, %arg12: memref<256x256xbf16, #tpu.memory_space<vmem>>, %arg13: memref<1x256xbf16, #tpu.memory_space<vmem>>, %arg14: memref<256x256xbf16, #tpu.memory_space<vmem>>, %arg15: memref<1x256xbf16, #tpu.memory_space<vmem>>, %arg16: memref<256x256xbf16, #tpu.memory_space<vmem>>, %arg17: memref<1x256xbf16, #tpu.memory_space<vmem>>, %arg18: memref<256x256xbf16, #tpu.memory_space<vmem>>, %arg19: memref<1x256xf32, #tpu.memory_space<vmem>>, %arg20: memref<128x4xbf16, #tpu.memory_space<vmem>>, %arg21: memref<1x4xf32, #tpu.memory_space<vmem>>, %arg22: memref<512x4xf32, #tpu.memory_space<vmem>>) attributes {dimension_semantics = [#tpu.dimension_semantics<parallel>], iteration_bounds = array<i64: 1>, scalar_prefetch = 0 : i64, scratch_operands = 0 : i64, tpu.core_type = #tpu.core_type<tc>, window_params = [{transform_indices = @transform_0, window_bounds = array<i64: 512, 64>}, {pipeline_mode = #tpu.pipeline_mode<synchronous>, transform_indices = @transform_1, window_bounds = array<i64: 64, 640>}, {pipeline_mode = #tpu.pipeline_mode<synchronous>, transform_indices = @transform_2, window_bounds = array<i64: 1, 256>}, {pipeline_mode = #tpu.pipeline_mode<synchronous>, transform_indices = @transform_3, window_bounds = array<i64: 256, 256>}, {pipeline_mode = #tpu.pipeline_mode<synchronous>, transform_indices = @transform_4, window_bounds = array<i64: 1, 256>}, {pipeline_mode = #tpu.pipeline_mode<synchronous>, transform_indices = @transform_5, window_bounds = array<i64: 256, 256>}, {pipeline_mode = #tpu.pipeline_mode<synchronous>, transform_indices = @transform_6, window_bounds = array<i64: 1, 256>}, {pipeline_mode = #tpu.pipeline_mode<synchronous>, transform_indices = @transform_7, window_bounds = array<i64: 256, 256>}, {pipeline_mode = #tpu.pipeline_mode<synchronous>, transform_indices = @transform_8, window_bounds = array<i64: 1, 256>}, {pipeline_mode = #tpu.pipeline_mode<synchronous>, transform_indices = @transform_9, window_bounds = array<i64: 256, 256>}, {pipeline_mode = #tpu.pipeline_mode<synchronous>, transform_indices = @transform_10, window_bounds = array<i64: 1, 256>}, {pipeline_mode = #tpu.pipeline_mode<synchronous>, transform_indices = @transform_11, window_bounds = array<i64: 256, 256>}, {pipeline_mode = #tpu.pipeline_mode<synchronous>, transform_indices = @transform_12, window_bounds = array<i64: 1, 256>}, {pipeline_mode = #tpu.pipeline_mode<synchronous>, transform_indices = @transform_13, window_bounds = array<i64: 256, 256>}, {pipeline_mode = #tpu.pipeline_mode<synchronous>, transform_indices = @transform_14, window_bounds = array<i64: 1, 256>}, {pipeline_mode = #tpu.pipeline_mode<synchronous>, transform_indices = @transform_15, window_bounds = array<i64: 256, 256>}, {pipeline_mode = #tpu.pipeline_mode<synchronous>, transform_indices = @transform_16, window_bounds = array<i64: 1, 256>}, {pipeline_mode = #tpu.pipeline_mode<synchronous>, transform_indices = @transform_17, window_bounds = array<i64: 256, 256>}, {pipeline_mode = #tpu.pipeline_mode<synchronous>, transform_indices = @transform_18, window_bounds = array<i64: 1, 256>}, {pipeline_mode = #tpu.pipeline_mode<synchronous>, transform_indices = @transform_19, window_bounds = array<i64: 128, 4>}, {pipeline_mode = #tpu.pipeline_mode<synchronous>, transform_indices = @transform_20, window_bounds = array<i64: 1, 4>}, {transform_indices = @transform_21, window_bounds = array<i64: 512, 4>}]} {
    %c0 = arith.constant 0 : index
    %c0_0 = arith.constant 0 : index
    %0 = vector.load %arg1[%c0, %c0_0] : memref<512x64xbf16, #tpu.memory_space<vmem>>, vector<512x64xbf16>
    %c0_1 = arith.constant 0 : index
    %c0_2 = arith.constant 0 : index
    %1 = vector.load %arg2[%c0_1, %c0_2] : memref<64x640xbf16, #tpu.memory_space<vmem>>, vector<64x640xbf16>
    %cst = arith.constant dense<0.000000e+00> : vector<512x640xf32>
    %2 = tpu.matmul %0, %1, %cst {dimension_numbers = #tpu.dot_dimension_numbers<[1], [0], [0], [1], [0, 0, 1, 1], [], []>} : vector<512x64xbf16>, vector<64x640xbf16>, vector<512x640xf32> -> vector<512x640xf32>
    %3 = arith.truncf %2 : vector<512x640xf32> to vector<512x640xbf16>
    %4 = vector.extract_strided_slice %3 {offsets = [0, 0], sizes = [512, 256], strides = [1, 1]} : vector<512x640xbf16> to vector<512x256xbf16>
    %5 = vector.extract_strided_slice %3 {offsets = [0, 256], sizes = [512, 256], strides = [1, 1]} : vector<512x640xbf16> to vector<512x256xbf16>
    %6 = vector.extract_strided_slice %3 {offsets = [0, 512], sizes = [512, 128], strides = [1, 1]} : vector<512x640xbf16> to vector<512x128xbf16>
    %c0_3 = arith.constant 0 : index
    %c0_4 = arith.constant 0 : index
    %7 = vector.load %arg3[%c0_3, %c0_4] : memref<1x256xbf16, #tpu.memory_space<vmem>>, vector<1x256xbf16>
    %8 = vector.broadcast %7 : vector<1x256xbf16> to vector<512x256xbf16>
    %9 = arith.addf %4, %8 : vector<512x256xbf16>
    %cst_5 = arith.constant 0.000000e+00 : bf16
    %10 = vector.broadcast %cst_5 : bf16 to vector<512x256xbf16>
    %11 = arith.maximumf %9, %10 : vector<512x256xbf16>
    %c0_6 = arith.constant 0 : index
    %c0_7 = arith.constant 0 : index
    %12 = vector.load %arg4[%c0_6, %c0_7] : memref<256x256xbf16, #tpu.memory_space<vmem>>, vector<256x256xbf16>
    %cst_8 = arith.constant dense<0.000000e+00> : vector<512x256xf32>
    %13 = tpu.matmul %11, %12, %cst_8 {dimension_numbers = #tpu.dot_dimension_numbers<[1], [0], [0], [1], [0, 0, 1, 1], [], []>} : vector<512x256xbf16>, vector<256x256xbf16>, vector<512x256xf32> -> vector<512x256xf32>
    %14 = arith.truncf %13 : vector<512x256xf32> to vector<512x256xbf16>
    %c0_9 = arith.constant 0 : index
    %c0_10 = arith.constant 0 : index
    %15 = vector.load %arg5[%c0_9, %c0_10] : memref<1x256xbf16, #tpu.memory_space<vmem>>, vector<1x256xbf16>
    %16 = vector.broadcast %15 : vector<1x256xbf16> to vector<512x256xbf16>
    %17 = arith.addf %14, %16 : vector<512x256xbf16>
    %cst_11 = arith.constant 0.000000e+00 : bf16
    %18 = vector.broadcast %cst_11 : bf16 to vector<512x256xbf16>
    %19 = arith.maximumf %17, %18 : vector<512x256xbf16>
    %c0_12 = arith.constant 0 : index
    %c0_13 = arith.constant 0 : index
    %20 = vector.load %arg6[%c0_12, %c0_13] : memref<256x256xbf16, #tpu.memory_space<vmem>>, vector<256x256xbf16>
    %cst_14 = arith.constant dense<0.000000e+00> : vector<512x256xf32>
    %21 = tpu.matmul %19, %20, %cst_14 {dimension_numbers = #tpu.dot_dimension_numbers<[1], [0], [0], [1], [0, 0, 1, 1], [], []>} : vector<512x256xbf16>, vector<256x256xbf16>, vector<512x256xf32> -> vector<512x256xf32>
    %22 = arith.truncf %21 : vector<512x256xf32> to vector<512x256xbf16>
    %c0_15 = arith.constant 0 : index
    %c0_16 = arith.constant 0 : index
    %23 = vector.load %arg7[%c0_15, %c0_16] : memref<1x256xbf16, #tpu.memory_space<vmem>>, vector<1x256xbf16>
    %24 = vector.broadcast %23 : vector<1x256xbf16> to vector<512x256xbf16>
    %25 = arith.addf %22, %24 : vector<512x256xbf16>
    %cst_17 = arith.constant 0.000000e+00 : bf16
    %26 = vector.broadcast %cst_17 : bf16 to vector<512x256xbf16>
    %27 = arith.maximumf %25, %26 : vector<512x256xbf16>
    %c0_18 = arith.constant 0 : index
    %c0_19 = arith.constant 0 : index
    %28 = vector.load %arg8[%c0_18, %c0_19] : memref<256x256xbf16, #tpu.memory_space<vmem>>, vector<256x256xbf16>
    %cst_20 = arith.constant dense<0.000000e+00> : vector<512x256xf32>
    %29 = tpu.matmul %27, %28, %cst_20 {dimension_numbers = #tpu.dot_dimension_numbers<[1], [0], [0], [1], [0, 0, 1, 1], [], []>} : vector<512x256xbf16>, vector<256x256xbf16>, vector<512x256xf32> -> vector<512x256xf32>
    %30 = arith.truncf %29 : vector<512x256xf32> to vector<512x256xbf16>
    %c0_21 = arith.constant 0 : index
    %c0_22 = arith.constant 0 : index
    %31 = vector.load %arg9[%c0_21, %c0_22] : memref<1x256xbf16, #tpu.memory_space<vmem>>, vector<1x256xbf16>
    %32 = vector.broadcast %31 : vector<1x256xbf16> to vector<512x256xbf16>
    %33 = arith.addf %30, %32 : vector<512x256xbf16>
    %cst_23 = arith.constant 0.000000e+00 : bf16
    %34 = vector.broadcast %cst_23 : bf16 to vector<512x256xbf16>
    %35 = arith.maximumf %33, %34 : vector<512x256xbf16>
    %c0_24 = arith.constant 0 : index
    %c0_25 = arith.constant 0 : index
    %36 = vector.load %arg10[%c0_24, %c0_25] : memref<256x256xbf16, #tpu.memory_space<vmem>>, vector<256x256xbf16>
    %cst_26 = arith.constant dense<0.000000e+00> : vector<512x256xf32>
    %37 = tpu.matmul %35, %36, %cst_26 {dimension_numbers = #tpu.dot_dimension_numbers<[1], [0], [0], [1], [0, 0, 1, 1], [], []>} : vector<512x256xbf16>, vector<256x256xbf16>, vector<512x256xf32> -> vector<512x256xf32>
    %38 = arith.truncf %37 : vector<512x256xf32> to vector<512x256xbf16>
    %c0_27 = arith.constant 0 : index
    %c0_28 = arith.constant 0 : index
    %39 = vector.load %arg11[%c0_27, %c0_28] : memref<1x256xbf16, #tpu.memory_space<vmem>>, vector<1x256xbf16>
    %40 = vector.broadcast %39 : vector<1x256xbf16> to vector<512x256xbf16>
    %41 = arith.addf %38, %40 : vector<512x256xbf16>
    %cst_29 = arith.constant 0.000000e+00 : bf16
    %42 = vector.broadcast %cst_29 : bf16 to vector<512x256xbf16>
    %43 = arith.maximumf %41, %42 : vector<512x256xbf16>
    %c0_30 = arith.constant 0 : index
    %c0_31 = arith.constant 0 : index
    %44 = vector.load %arg12[%c0_30, %c0_31] : memref<256x256xbf16, #tpu.memory_space<vmem>>, vector<256x256xbf16>
    %cst_32 = arith.constant dense<0.000000e+00> : vector<512x256xf32>
    %45 = tpu.matmul %43, %44, %cst_32 {dimension_numbers = #tpu.dot_dimension_numbers<[1], [0], [0], [1], [0, 0, 1, 1], [], []>} : vector<512x256xbf16>, vector<256x256xbf16>, vector<512x256xf32> -> vector<512x256xf32>
    %46 = arith.truncf %45 : vector<512x256xf32> to vector<512x256xbf16>
    %47 = arith.addf %46, %5 : vector<512x256xbf16>
    %c0_33 = arith.constant 0 : index
    %c0_34 = arith.constant 0 : index
    %48 = vector.load %arg13[%c0_33, %c0_34] : memref<1x256xbf16, #tpu.memory_space<vmem>>, vector<1x256xbf16>
    %49 = vector.broadcast %48 : vector<1x256xbf16> to vector<512x256xbf16>
    %50 = arith.addf %47, %49 : vector<512x256xbf16>
    %cst_35 = arith.constant 0.000000e+00 : bf16
    %51 = vector.broadcast %cst_35 : bf16 to vector<512x256xbf16>
    %52 = arith.maximumf %50, %51 : vector<512x256xbf16>
    %c0_36 = arith.constant 0 : index
    %c0_37 = arith.constant 0 : index
    %53 = vector.load %arg14[%c0_36, %c0_37] : memref<256x256xbf16, #tpu.memory_space<vmem>>, vector<256x256xbf16>
    %cst_38 = arith.constant dense<0.000000e+00> : vector<512x256xf32>
    %54 = tpu.matmul %52, %53, %cst_38 {dimension_numbers = #tpu.dot_dimension_numbers<[1], [0], [0], [1], [0, 0, 1, 1], [], []>} : vector<512x256xbf16>, vector<256x256xbf16>, vector<512x256xf32> -> vector<512x256xf32>
    %55 = arith.truncf %54 : vector<512x256xf32> to vector<512x256xbf16>
    %c0_39 = arith.constant 0 : index
    %c0_40 = arith.constant 0 : index
    %56 = vector.load %arg15[%c0_39, %c0_40] : memref<1x256xbf16, #tpu.memory_space<vmem>>, vector<1x256xbf16>
    %57 = vector.broadcast %56 : vector<1x256xbf16> to vector<512x256xbf16>
    %58 = arith.addf %55, %57 : vector<512x256xbf16>
    %cst_41 = arith.constant 0.000000e+00 : bf16
    %59 = vector.broadcast %cst_41 : bf16 to vector<512x256xbf16>
    %60 = arith.maximumf %58, %59 : vector<512x256xbf16>
    %c0_42 = arith.constant 0 : index
    %c0_43 = arith.constant 0 : index
    %61 = vector.load %arg16[%c0_42, %c0_43] : memref<256x256xbf16, #tpu.memory_space<vmem>>, vector<256x256xbf16>
    %cst_44 = arith.constant dense<0.000000e+00> : vector<512x256xf32>
    %62 = tpu.matmul %60, %61, %cst_44 {dimension_numbers = #tpu.dot_dimension_numbers<[1], [0], [0], [1], [0, 0, 1, 1], [], []>} : vector<512x256xbf16>, vector<256x256xbf16>, vector<512x256xf32> -> vector<512x256xf32>
    %63 = arith.truncf %62 : vector<512x256xf32> to vector<512x256xbf16>
    %c0_45 = arith.constant 0 : index
    %c0_46 = arith.constant 0 : index
    %64 = vector.load %arg17[%c0_45, %c0_46] : memref<1x256xbf16, #tpu.memory_space<vmem>>, vector<1x256xbf16>
    %65 = vector.broadcast %64 : vector<1x256xbf16> to vector<512x256xbf16>
    %66 = arith.addf %63, %65 : vector<512x256xbf16>
    %cst_47 = arith.constant 0.000000e+00 : bf16
    %67 = vector.broadcast %cst_47 : bf16 to vector<512x256xbf16>
    %68 = arith.maximumf %66, %67 : vector<512x256xbf16>
    %c0_48 = arith.constant 0 : index
    %c0_49 = arith.constant 0 : index
    %69 = vector.load %arg18[%c0_48, %c0_49] : memref<256x256xbf16, #tpu.memory_space<vmem>>, vector<256x256xbf16>
    %cst_50 = arith.constant dense<0.000000e+00> : vector<512x256xf32>
    %70 = tpu.matmul %68, %69, %cst_50 {dimension_numbers = #tpu.dot_dimension_numbers<[1], [0], [0], [1], [0, 0, 1, 1], [], []>} : vector<512x256xbf16>, vector<256x256xbf16>, vector<512x256xf32> -> vector<512x256xf32>
    %c0_51 = arith.constant 0 : index
    %c0_52 = arith.constant 0 : index
    %71 = vector.load %arg19[%c0_51, %c0_52] : memref<1x256xf32, #tpu.memory_space<vmem>>, vector<1x256xf32>
    %72 = vector.broadcast %71 : vector<1x256xf32> to vector<512x256xf32>
    %73 = arith.addf %70, %72 : vector<512x256xf32>
    %74 = vector.extract_strided_slice %73 {offsets = [0, 128], sizes = [512, 1], strides = [1, 1]} : vector<512x256xf32> to vector<512x1xf32>
    %75 = vector.extract_strided_slice %73 {offsets = [0, 0], sizes = [512, 128], strides = [1, 1]} : vector<512x256xf32> to vector<512x128xf32>
    %76 = arith.truncf %75 : vector<512x128xf32> to vector<512x128xbf16>
    %77 = arith.addf %76, %6 : vector<512x128xbf16>
    %cst_53 = arith.constant 0.000000e+00 : bf16
    %78 = vector.broadcast %cst_53 : bf16 to vector<512x128xbf16>
    %79 = arith.maximumf %77, %78 : vector<512x128xbf16>
    %c0_54 = arith.constant 0 : index
    %c0_55 = arith.constant 0 : index
    %80 = vector.load %arg20[%c0_54, %c0_55] : memref<128x4xbf16, #tpu.memory_space<vmem>>, vector<128x4xbf16>
    %cst_56 = arith.constant dense<0.000000e+00> : vector<512x4xf32>
    %81 = tpu.matmul %79, %80, %cst_56 {dimension_numbers = #tpu.dot_dimension_numbers<[1], [0], [0], [1], [0, 0, 1, 1], [], []>} : vector<512x128xbf16>, vector<128x4xbf16>, vector<512x4xf32> -> vector<512x4xf32>
    %c0_57 = arith.constant 0 : index
    %c0_58 = arith.constant 0 : index
    %82 = vector.load %arg21[%c0_57, %c0_58] : memref<1x4xf32, #tpu.memory_space<vmem>>, vector<1x4xf32>
    %83 = vector.broadcast %82 : vector<1x4xf32> to vector<512x4xf32>
    %84 = arith.addf %81, %83 : vector<512x4xf32>
    %85 = arith.negf %84 : vector<512x4xf32>
    %86 = math.exp %85 : vector<512x4xf32>
    %cst_59 = arith.constant 1.000000e+00 : f32
    %87 = vector.broadcast %cst_59 : f32 to vector<512x4xf32>
    %88 = arith.addf %87, %86 : vector<512x4xf32>
    %89 = arith.divf %87, %88 : vector<512x4xf32>
    %90 = tpu.iota {dimensions = array<i32: 1>} : vector<512x4xi32>
    %c3_i32 = arith.constant 3 : i32
    %91 = vector.broadcast %c3_i32 : i32 to vector<512x4xi32>
    %92 = arith.cmpi slt, %90, %91 : vector<512x4xi32>
    %93 = vector.shape_cast %74 : vector<512x1xf32> to vector<512x1xf32>
    %94 = vector.broadcast %93 : vector<512x1xf32> to vector<512x4xf32>
    %95 = arith.select %92, %89, %94 : vector<512x4xi1>, vector<512x4xf32>
    %c0_60 = arith.constant 0 : index
    %c0_61 = arith.constant 0 : index
    %96 = vector.load %arg22[%c0_60, %c0_61] : memref<512x4xf32, #tpu.memory_space<vmem>>, vector<512x4xf32>
    tpu.vector_store %arg22[%c0_60, %c0_61], %95 {strides = array<i32>} : memref<512x4xf32, #tpu.memory_space<vmem>>, vector<512x4xf32>,
    return
  }
  func.func @transform_0(%arg0: i32) -> (i32, i32) {
    %c0_i32 = arith.constant 0 : i32
    %c0_i32_0 = arith.constant 0 : i32
    return %arg0, %c0_i32 : i32, i32
  }
  func.func @transform_1(%arg0: i32) -> (i32, i32) {
    %c0_i32 = arith.constant 0 : i32
    %c0_i32_0 = arith.constant 0 : i32
    %c0_i32_1 = arith.constant 0 : i32
    return %c0_i32, %c0_i32_0 : i32, i32
  }
  func.func @transform_2(%arg0: i32) -> (i32, i32) {
    %c0_i32 = arith.constant 0 : i32
    %c0_i32_0 = arith.constant 0 : i32
    %c0_i32_1 = arith.constant 0 : i32
    return %c0_i32, %c0_i32_0 : i32, i32
  }
  func.func @transform_3(%arg0: i32) -> (i32, i32) {
    %c0_i32 = arith.constant 0 : i32
    %c0_i32_0 = arith.constant 0 : i32
    %c0_i32_1 = arith.constant 0 : i32
    return %c0_i32, %c0_i32_0 : i32, i32
  }
  func.func @transform_4(%arg0: i32) -> (i32, i32) {
    %c0_i32 = arith.constant 0 : i32
    %c0_i32_0 = arith.constant 0 : i32
    %c0_i32_1 = arith.constant 0 : i32
    return %c0_i32, %c0_i32_0 : i32, i32
  }
  func.func @transform_5(%arg0: i32) -> (i32, i32) {
    %c0_i32 = arith.constant 0 : i32
    %c0_i32_0 = arith.constant 0 : i32
    %c0_i32_1 = arith.constant 0 : i32
    return %c0_i32, %c0_i32_0 : i32, i32
  }
  func.func @transform_6(%arg0: i32) -> (i32, i32) {
    %c0_i32 = arith.constant 0 : i32
    %c0_i32_0 = arith.constant 0 : i32
    %c0_i32_1 = arith.constant 0 : i32
    return %c0_i32, %c0_i32_0 : i32, i32
  }
  func.func @transform_7(%arg0: i32) -> (i32, i32) {
    %c0_i32 = arith.constant 0 : i32
    %c0_i32_0 = arith.constant 0 : i32
    %c0_i32_1 = arith.constant 0 : i32
    return %c0_i32, %c0_i32_0 : i32, i32
  }
  func.func @transform_8(%arg0: i32) -> (i32, i32) {
    %c0_i32 = arith.constant 0 : i32
    %c0_i32_0 = arith.constant 0 : i32
    %c0_i32_1 = arith.constant 0 : i32
    return %c0_i32, %c0_i32_0 : i32, i32
  }
  func.func @transform_9(%arg0: i32) -> (i32, i32) {
    %c0_i32 = arith.constant 0 : i32
    %c0_i32_0 = arith.constant 0 : i32
    %c0_i32_1 = arith.constant 0 : i32
    return %c0_i32, %c0_i32_0 : i32, i32
  }
  func.func @transform_10(%arg0: i32) -> (i32, i32) {
    %c0_i32 = arith.constant 0 : i32
    %c0_i32_0 = arith.constant 0 : i32
    %c0_i32_1 = arith.constant 0 : i32
    return %c0_i32, %c0_i32_0 : i32, i32
  }
  func.func @transform_11(%arg0: i32) -> (i32, i32) {
    %c0_i32 = arith.constant 0 : i32
    %c0_i32_0 = arith.constant 0 : i32
    %c0_i32_1 = arith.constant 0 : i32
    return %c0_i32, %c0_i32_0 : i32, i32
  }
  func.func @transform_12(%arg0: i32) -> (i32, i32) {
    %c0_i32 = arith.constant 0 : i32
    %c0_i32_0 = arith.constant 0 : i32
    %c0_i32_1 = arith.constant 0 : i32
    return %c0_i32, %c0_i32_0 : i32, i32
  }
  func.func @transform_13(%arg0: i32) -> (i32, i32) {
    %c0_i32 = arith.constant 0 : i32
    %c0_i32_0 = arith.constant 0 : i32
    %c0_i32_1 = arith.constant 0 : i32
    return %c0_i32, %c0_i32_0 : i32, i32
  }
  func.func @transform_14(%arg0: i32) -> (i32, i32) {
    %c0_i32 = arith.constant 0 : i32
    %c0_i32_0 = arith.constant 0 : i32
    %c0_i32_1 = arith.constant 0 : i32
    return %c0_i32, %c0_i32_0 : i32, i32
  }
  func.func @transform_15(%arg0: i32) -> (i32, i32) {
    %c0_i32 = arith.constant 0 : i32
    %c0_i32_0 = arith.constant 0 : i32
    %c0_i32_1 = arith.constant 0 : i32
    return %c0_i32, %c0_i32_0 : i32, i32
  }
  func.func @transform_16(%arg0: i32) -> (i32, i32) {
    %c0_i32 = arith.constant 0 : i32
    %c0_i32_0 = arith.constant 0 : i32
    %c0_i32_1 = arith.constant 0 : i32
    return %c0_i32, %c0_i32_0 : i32, i32
  }
  func.func @transform_17(%arg0: i32) -> (i32, i32) {
    %c0_i32 = arith.constant 0 : i32
    %c0_i32_0 = arith.constant 0 : i32
    %c0_i32_1 = arith.constant 0 : i32
    return %c0_i32, %c0_i32_0 : i32, i32
  }
  func.func @transform_18(%arg0: i32) -> (i32, i32) {
    %c0_i32 = arith.constant 0 : i32
    %c0_i32_0 = arith.constant 0 : i32
    %c0_i32_1 = arith.constant 0 : i32
    return %c0_i32, %c0_i32_0 : i32, i32
  }
  func.func @transform_19(%arg0: i32) -> (i32, i32) {
    %c0_i32 = arith.constant 0 : i32
    %c0_i32_0 = arith.constant 0 : i32
    %c0_i32_1 = arith.constant 0 : i32
    return %c0_i32, %c0_i32_0 : i32, i32
  }
  func.func @transform_20(%arg0: i32) -> (i32, i32) {
    %c0_i32 = arith.constant 0 : i32
    %c0_i32_0 = arith.constant 0 : i32
    %c0_i32_1 = arith.constant 0 : i32
    return %c0_i32, %c0_i32_0 : i32, i32
  }
  func.func @transform_21(%arg0: i32) -> (i32, i32) {
    %c0_i32 = arith.constant 0 : i32
    %c0_i32_0 = arith.constant 0 : i32
    return %arg0, %c0_i32 : i32, i32
  }
}

</mosaic_0001>

<bundles_post_ra>
// kernel: tpu_custom_call.1
= control target key start
LH: loop header
LB: loop body
LE: loop exit
PB: predicated region body
PF: predicated region fallthrough
CT: control target
= control target key end

     0   :  { %s14615_s0 = inlined_call_operand.vmem [shape: bf16[512,64], index: 0, kind: input, shape index: {}]   ;;  %s14616_s1 = inlined_call_operand.vmem [shape: bf16[64,640], index: 1, kind: input, shape index: {}]   ;;  %s14617_s2 = inlined_call_operand.vmem [shape: bf16[1,256], index: 2, kind: input, shape index: {}]   ;;  %s14618_s3 = inlined_call_operand.vmem [shape: bf16[256,256], index: 3, kind: input, shape index: {}]   ;;  %s14619_s4 = inlined_call_operand.vmem [shape: bf16[1,256], index: 4, kind: input, shape index: {}]   ;;  %s14620_s5 = inlined_call_operand.hbm [shape: bf16[256,256], index: 5, kind: input, shape index: {}]   ;;  %s14621_s6 = inlined_call_operand.vmem [shape: bf16[1,256], index: 6, kind: input, shape index: {}]   ;;  %s14622_s7 = inlined_call_operand.hbm [shape: bf16[256,256], index: 7, kind: input, shape index: {}]   ;;  %s14623_s8 = inlined_call_operand.vmem [shape: bf16[1,256], index: 8, kind: input, shape index: {}]   ;;  %s14624_s9 = inlined_call_operand.hbm [shape: bf16[256,256], index: 9, kind: input, shape index: {}]   ;;  %s14625_s10 = inlined_call_operand.vmem [shape: bf16[1,256], index: 10, kind: input, shape index: {}]   ;;  %s14626_s11 = inlined_call_operand.hbm [shape: bf16[256,256], index: 11, kind: input, shape index: {}]   ;;  %s14627_s12 = inlined_call_operand.vmem [shape: bf16[1,256], index: 12, kind: input, shape index: {}]   ;;  %s14628_s13 = inlined_call_operand.hbm [shape: bf16[256,256], index: 13, kind: input, shape index: {}]   ;;  %s14629_s14 = inlined_call_operand.vmem [shape: bf16[1,256], index: 14, kind: input, shape index: {}]   ;;  %s14630_s15 = inlined_call_operand.hbm [shape: bf16[256,256], index: 15, kind: input, shape index: {}]   ;;  %s14631_s16 = inlined_call_operand.vmem [shape: bf16[1,256], index: 16, kind: input, shape index: {}]   ;;  %s14632_s17 = inlined_call_operand.hbm [shape: bf16[256,256], index: 17, kind: input, shape index: {}]   ;;  %s14633_s18 = inlined_call_operand.vmem [shape: f32[1,256], index: 18, kind: input, shape index: {}]   ;;  %s14634_s19 = inlined_call_operand.vmem [shape: bf16[128,4], index: 19, kind: input, shape index: {}]   ;;  %s14635_s20 = inlined_call_operand.vmem [shape: f32[1,4], index: 20, kind: input, shape index: {}]   ;;  %s14636_s21 = inlined_call_operand.vmem [shape: f32[512,4], index: 21, kind: output, shape index: {}]  }
   0x1   :  { %14801 = sst [smem:[#allocation174_spill]] %s14615_s0 }
   0x2   :  { %14802 = sst [smem:[#allocation175_spill]] %s14616_s1 }
   0x3   :  { %14803 = sst [smem:[#allocation176_spill]] %s14617_s2 }
   0x4   :  { %14804 = sst [smem:[#allocation177_spill]] %s14618_s3 }
   0x5   :  { %14805 = sst [smem:[#allocation178_spill]] %s14619_s4 }
   0x6   :  { %14806 = sst [smem:[#allocation179_spill]] %s14620_s5 }
   0x7   :  { %26 = vsyncpa [#allocation3], 0 }
   0x8   :  { %27 = vsyncpa [#allocation5], 0 }
   0x9   :  { %28 = vsyncpa [#allocation8], 0 }
   0xa   :  { %29 = vsyncpa [#allocation11], 0  ;;  %s10888_s2 = smov [#allocation4]   ;;  %s10889_s26 = smov [#allocation7]  }
   0xb   :  { %s59_s25 = sshll.u32 %s10888_s2, 4  ;;  %s87_s27 = sshll.u32 %s10889_s26, 4  ;;  %s60_s25 = int_to_ptr.vmem [resolvable:$true] %s59_s25  ;;  %s11009_s27 = int_to_ptr.vmem [resolvable:$true] %s87_s27 }
   0xc   :  { %s10726_s29 = scalar_lea.hbm %s14622_s7, 4096 }
   0xd   :  { %p10727_p0 = scmp.ne.s32.totalorder %s14622_s7, %s10726_s29  ;;  %p10730_p1 = scmp.lt.u32.totalorder %s10726_s29, %s14622_s7 }
   0xf   :  { %p10732_p2 = pnand %p10730_p1, %p10727_p0 }
  0x11   :  { %10735 = shalt.err (!%p10732_p2)
}
  0x12   :  { %s10736_s22 = scalar_lea.vmem %s60_s25, 4096  ;;  %p10741_p4 = scmp.lt.s32.totalorder %s60_s25, %s60_s25 }
  0x13   :  { %p10737_p3 = scmp.ne.s32.totalorder %s60_s25, %s10736_s22  ;;  %p10742_p5 = scmp.lt.s32.totalorder %s10736_s22, %s10736_s22 }
  0x15   :  { %p10743_p6 = por %p10742_p5, %p10741_p4 }
  0x17   :  { %p10744_p7 = pnand %p10743_p6, %p10737_p3 }
  0x19   :  { %10747 = shalt.err (!%p10744_p7)
}
  0x1a   :  { %s10890_s23 = smov 128   ;;  %s10891_s1 = smov 8  }
  0x1b   :  { %65 = dma.hbm_to_vmem [thread:$0]  %s14622_s7, 4096, %s60_s25, [#allocation5], %s10890_s23, %s10890_s23, %s10891_s1  }
  0x1c   :  { %s10748_s28 = scalar_lea.hbm %s14626_s11, 4096 }
  0x1d   :  { %p10749_p8 = scmp.ne.s32.totalorder %s14626_s11, %s10748_s28  ;;  %p10752_p9 = scmp.lt.u32.totalorder %s10748_s28, %s14626_s11 }
  0x1f   :  { %p10754_p10 = pnand %p10752_p9, %p10749_p8 }
  0x21   :  { %10757 = shalt.err (!%p10754_p10)
}
  0x22   :  { %s10758_s5 = scalar_lea.vmem %s11009_s27, 4096  ;;  %p10763_p12 = scmp.lt.s32.totalorder %s11009_s27, %s11009_s27 }
  0x23   :  { %p10759_p11 = scmp.ne.s32.totalorder %s11009_s27, %s10758_s5  ;;  %p10764_p13 = scmp.lt.s32.totalorder %s10758_s5, %s10758_s5 }
  0x25   :  { %p10765_p0 = por %p10764_p13, %p10763_p12 }
  0x27   :  { %p10766_p1 = pnand %p10765_p0, %p10759_p11 }
  0x29   :  { %10769 = shalt.err (!%p10766_p1)
}
  0x2a   :  { %93 = dma.hbm_to_vmem [thread:$0]  %s14626_s11, 4096, %s11009_s27, [#allocation8], %s10890_s23, %s10890_s23, %s10891_s1  }
  0x2b   :  { %s10892_s22 = smov [#allocation10]   ;;  %s10893_s2 = smov [#allocation2]  }
  0x2c   :  { %s115_s24 = sshll.u32 %s10892_s22, 4  ;;  %s45_s26 = sshll.u32 %s10893_s2, 4  ;;  %s116_s24 = int_to_ptr.vmem [resolvable:$true] %s115_s24  ;;  %s11046_s26 = int_to_ptr.vmem [resolvable:$true] %s45_s26 }
  0x2d   :  { %s10770_s29 = scalar_lea.hbm %s14630_s15, 4096 }
  0x2e   :  { %p10771_p2 = scmp.ne.s32.totalorder %s14630_s15, %s10770_s29  ;;  %p10774_p3 = scmp.lt.u32.totalorder %s10770_s29, %s14630_s15 }
  0x30   :  { %p10776_p4 = pnand %p10774_p3, %p10771_p2 }
  0x32   :  { %10779 = shalt.err (!%p10776_p4)
}
  0x33   :  { %s10780_s11 = scalar_lea.vmem %s116_s24, 4096  ;;  %p10785_p6 = scmp.lt.s32.totalorder %s116_s24, %s116_s24 }
  0x34   :  { %p10781_p5 = scmp.ne.s32.totalorder %s116_s24, %s10780_s11  ;;  %p10786_p7 = scmp.lt.s32.totalorder %s10780_s11, %s10780_s11 }
  0x36   :  { %p10787_p8 = por %p10786_p7, %p10785_p6 }
  0x38   :  { %p10788_p9 = pnand %p10787_p8, %p10781_p5 }
  0x3a   :  { %10791 = shalt.err (!%p10788_p9)
}
  0x3b   :  { %121 = dma.hbm_to_vmem [thread:$0]  %s14630_s15, 4096, %s116_s24, [#allocation11], %s10890_s23, %s10890_s23, %s10891_s1  }
  0x3c   :  { %s14807_s2 = sld [smem:[#allocation179_spill]] }
  0x42   :  { %s10792_s3 = scalar_lea.hbm %s14807_s2, 4096 }
  0x43   :  { %p10793_p10 = scmp.ne.s32.totalorder %s14807_s2, %s10792_s3  ;;  %p10796_p11 = scmp.lt.u32.totalorder %s10792_s3, %s14807_s2 }
  0x45   :  { %p10798_p12 = pnand %p10796_p11, %p10793_p10 }
  0x47   :  { %10801 = shalt.err (!%p10798_p12)
}
  0x48   :  { %s10802_s30 = scalar_lea.vmem %s11046_s26, 4096  ;;  %p10807_p0 = scmp.lt.s32.totalorder %s11046_s26, %s11046_s26 }
  0x49   :  { %p10803_p13 = scmp.ne.s32.totalorder %s11046_s26, %s10802_s30  ;;  %p10808_p1 = scmp.lt.s32.totalorder %s10802_s30, %s10802_s30 }
  0x4b   :  { %p10809_p2 = por %p10808_p1, %p10807_p0 }
  0x4d   :  { %p10810_p3 = pnand %p10809_p2, %p10803_p13 }
  0x4f   :  { %10813 = shalt.err (!%p10810_p3)
}
  0x50   :  { %51 = dma.hbm_to_vmem [thread:$0]  %s14807_s2, 4096, %s11046_s26, [#allocation3], %s10890_s23, %s10890_s23, %s10891_s1  }
  0x51   :  { %s10894_s5 = smov [#allocation6]   ;;  %s10895_s27 = smov [#allocation9]  }
  0x52   :  { %s73_s11 = sshll.u32 %s10894_s5, 4  ;;  %s101_s7 = sshll.u32 %s10895_s27, 4  ;;  %s74_s11 = int_to_ptr.vmem [resolvable:$true] %s73_s11  ;;  %s11083_s7 = int_to_ptr.vmem [resolvable:$true] %s101_s7 }
  0x53   :  { %s10814_s3 = scalar_lea.hbm %s14624_s9, 4096 }
  0x54   :  { %p10815_p4 = scmp.ne.s32.totalorder %s14624_s9, %s10814_s3  ;;  %p10818_p5 = scmp.lt.u32.totalorder %s10814_s3, %s14624_s9 }
  0x56   :  { %p10820_p6 = pnand %p10818_p5, %p10815_p4 }
  0x58   :  { %10823 = shalt.err (!%p10820_p6)
}
  0x59   :  { %s10824_s26 = scalar_lea.vmem %s74_s11, 4096  ;;  %p10829_p8 = scmp.lt.s32.totalorder %s74_s11, %s74_s11 }
  0x5a   :  { %p10825_p7 = scmp.ne.s32.totalorder %s74_s11, %s10824_s26  ;;  %p10830_p9 = scmp.lt.s32.totalorder %s10824_s26, %s10824_s26 }
  0x5c   :  { %p10831_p10 = por %p10830_p9, %p10829_p8 }
  0x5e   :  { %p10832_p11 = pnand %p10831_p10, %p10825_p7 }
  0x60   :  { %10835 = shalt.err (!%p10832_p11)
}
  0x61   :  { %79 = dma.hbm_to_vmem [thread:$0]  %s14624_s9, 4096, %s74_s11, [#allocation5], %s10890_s23, %s10890_s23, %s10891_s1  }
  0x62   :  { %s10836_s5 = scalar_lea.hbm %s14628_s13, 4096 }
  0x63   :  { %p10837_p12 = scmp.ne.s32.totalorder %s14628_s13, %s10836_s5  ;;  %p10840_p13 = scmp.lt.u32.totalorder %s10836_s5, %s14628_s13 }
  0x65   :  { %p10842_p0 = pnand %p10840_p13, %p10837_p12 }
  0x67   :  { %10845 = shalt.err (!%p10842_p0)
}
  0x68   :  { %s10846_s28 = scalar_lea.vmem %s11083_s7, 4096  ;;  %p10851_p2 = scmp.lt.s32.totalorder %s11083_s7, %s11083_s7 }
  0x69   :  { %p10847_p1 = scmp.ne.s32.totalorder %s11083_s7, %s10846_s28  ;;  %p10852_p3 = scmp.lt.s32.totalorder %s10846_s28, %s10846_s28 }
  0x6b   :  { %p10853_p4 = por %p10852_p3, %p10851_p2 }
  0x6d   :  { %p10854_p5 = pnand %p10853_p4, %p10847_p1 }
  0x6f   :  { %10857 = shalt.err (!%p10854_p5)
}
  0x70   :  { %107 = dma.hbm_to_vmem [thread:$0]  %s14628_s13, 4096, %s11083_s7, [#allocation8], %s10890_s23, %s10890_s23, %s10891_s1  }
  0x71   :  { %s10896_s29 = smov [#allocation12]   ;;  %s10858_s2 = scalar_lea.hbm %s14632_s17, 4096 }
  0x72   :  { %s129_s0 = sshll.u32 %s10896_s29, 4  ;;  %p10859_p6 = scmp.ne.s32.totalorder %s14632_s17, %s10858_s2  ;;  %s130_s0 = int_to_ptr.vmem [resolvable:$true] %s129_s0 }
  0x73   :  { %p10862_p7 = scmp.lt.u32.totalorder %s10858_s2, %s14632_s17 }
  0x75   :  { %p10864_p8 = pnand %p10862_p7, %p10859_p6 }
  0x77   :  { %10867 = shalt.err (!%p10864_p8)
}
  0x78   :  { %s10868_s27 = scalar_lea.vmem %s130_s0, 4096  ;;  %p10873_p10 = scmp.lt.s32.totalorder %s130_s0, %s130_s0 }
  0x79   :  { %p10869_p9 = scmp.ne.s32.totalorder %s130_s0, %s10868_s27  ;;  %p10874_p11 = scmp.lt.s32.totalorder %s10868_s27, %s10868_s27 }
  0x7b   :  { %p10875_p12 = por %p10874_p11, %p10873_p10 }
  0x7d   :  { %p10876_p13 = pnand %p10875_p12, %p10869_p9 }
  0x7f   :  { %10879 = shalt.err (!%p10876_p13)
}
  0x80   :  { %135 = dma.hbm_to_vmem [thread:$0]  %s14632_s17, 4096, %s130_s0, [#allocation11], %s10890_s23, %s10890_s23, %s10891_s1  }
  0x81   :  { %10880 = dma.done.wait [#allocation3], 4096  }
  0x82   :  { %10881 = vsyncadd [#allocation3], 4294963200 }
  0x83   :  { %10882 = dma.done.wait [#allocation5], 8192  }
  0x84   :  { %10883 = vsyncadd [#allocation5], 4294959104 }
  0x85   :  { %10884 = dma.done.wait [#allocation8], 8192  }
  0x86   :  { %10885 = vsyncadd [#allocation8], 4294959104 }
  0x87   :  { %10886 = dma.done.wait [#allocation11], 8192  }
  0x88   :  { %10887 = vsyncadd [#allocation11], 4294959104  ;;  %v14642_v0 = vmov 0   ;;  %s14808_s17 = sld [smem:[#allocation175_spill]]  ;;  %s14809_s25 = sld [smem:[#allocation177_spill]]  ;;  %vm516_vm0 = vcmask 523264  }
  0x89   :  { %998 = vmatprep.mubr.bf16.mxu1 %v14642_v0  ;;  %645 = vmatprep.mubr.bf16.mxu0 %v14642_v0  ;;  %s14810_s28 = sld [smem:[#allocation174_spill]]  ;;  %s14812_s27 = sld [smem:[#allocation176_spill]]  ;;  %vm9207_vm2 = vcmask 31744  }
  0x8a   :  { %10004 = vset.pattern.permute.xlu0 %v14642_v0  ;;  %10005 = vset.pattern.permute.xlu1 %v14642_v0 }
  0x8e   :  { %v10006_v1 = vld [vmem:[%s14808_s17 + $0xc] ss:$20 sps:$4 sm:$0xff]   ;;  %v10008_v2 = vld [vmem:[%s14808_s17 + $0x8] ss:$20 sps:$4 sm:$0xff]   ;;  %v10011_v4 = vld [vmem:[%s14808_s17 + $0x30] ss:$20 sps:$4 sm:$0xff]  }
  0x8f   :  { %966 = vmatprep.subr.bf16.mxu1 %v10006_v1  ;;  %v10009_v3 = vld [vmem:[%s14808_s17 + $0x34] ss:$20 sps:$4 sm:$0xff]   ;;  %v10012_v5 = vld [vmem:[%s14808_s17 + $0x5c] ss:$20 sps:$4 sm:$0xff]   ;;  %v10014_v6 = vld [vmem:[%s14808_s17 + $0x58] ss:$20 sps:$4 sm:$0xff]  }
  0x90   :  { %967 = vmatpush1.bf16.msra.mxu1 %v10008_v2  ;;  %v10015_v7 = vld [vmem:[%s14808_s17 + $0x84] ss:$20 sps:$4 sm:$0xff]   ;;  %v10017_v9 = vld [vmem:[%s14808_s17 + $0x80] ss:$20 sps:$4 sm:$0xff]   ;;  %v10032_v14 = vld [vmem:[%s14808_s17 + $0x28] ss:$20 sps:$4 sm:$0xff]  }
  0x91   :  { %968 = vmatprep.subr.bf16.mxu1 %v10009_v3  ;;  %v10023_v8 = vld [vmem:[%s14808_s17 + $0x4] ss:$20 sps:$4 sm:$0xff]   ;;  %v10029_v11 = vld [vmem:[%s14808_s17] ss:$20 sps:$4 sm:$0xff]   ;;  %v10037_v20 = vld [vmem:[%s14808_s17 + $0x7c] ss:$20 sps:$4 sm:$0xff]  }
  0x92   :  { %v10021_v10 = vld [vmem:[%s14809_s25 + $0x4] ss:$8 sps:$4 sm:$0xff]   ;;  %613 = vmatprep.subr.bf16.mxu0 %v10023_v8  ;;  %v10019_v15 = vld [vmem:[%s14809_s25] ss:$8 sps:$4 sm:$0xff]   ;;  %v10028_v16 = vld [vmem:[%s14809_s25 + $0x14] ss:$8 sps:$4 sm:$0xff]  }
  0x93   :  { %v10018_v12 = vld [vmem:[%s14810_s28] sm:$0xff]   ;;  %614 = vmatpush1.bf16.msra.mxu0 %v10029_v11  ;;  %v10033_v17 = vld [vmem:[%s14808_s17 + $0x54] ss:$20 sps:$4 sm:$0xff]   ;;  %v10026_v19 = vld [vmem:[%s14809_s25 + $0x10] ss:$8 sps:$4 sm:$0xff]  }
  0x94   :  { %969 = vmatpush1.bf16.msra.mxu1 %v10011_v4  ;;  %v10030_v13 = vld [vmem:[%s14808_s17 + $0x2c] ss:$20 sps:$4 sm:$0xff]   ;;  %v10036_v18 = vld [vmem:[%s14808_s17 + $0x50] ss:$20 sps:$4 sm:$0xff]   ;;  %v10048_v25 = vld [vmem:[%s14809_s25 + $0x34] ss:$8 sps:$4 sm:$0xff]  }
  0x95   :  { %970 = vmatprep.subr.bf16.mxu1 %v10012_v5  ;;  %615 = vmatprep.subr.bf16.mxu0 %v10030_v13  ;;  %v10043_v21 = vld [vmem:[%s14809_s25 + $0x24] ss:$8 sps:$4 sm:$0xff]   ;;  %v10041_v24 = vld [vmem:[%s14809_s25 + $0x20] ss:$8 sps:$4 sm:$0xff]   ;;  %v10046_v26 = vld [vmem:[%s14809_s25 + $0x30] ss:$8 sps:$4 sm:$0xff]  }
  0x96   :  { %v10022_v22 = vld [vmem:[%s14810_s28 + $0x8] sm:$0xff]   ;;  %v10025_v28 = vld [vmem:[%s14810_s28 + $0x10] sm:$0xff]   ;;  %v10035_v34 = vld [vmem:[%s14810_s28 + $0x18] sm:$0xff]  }
  0x97   :  { %616 = vmatpush1.bf16.msra.mxu0 %v10032_v14  ;;  %v10039_v23 = vld [vmem:[%s14808_s17 + $0x78] ss:$20 sps:$4 sm:$0xff]   ;;  %v10051_v29 = vld [vmem:[%s14809_s25 + $0x40] ss:$8 sps:$4 sm:$0xff]   ;;  %v10060_v30 = vld [vmem:[%s14808_s17 + $0x10] ss:$20 sps:$4 sm:$0xff]  }
  0x98   :  { %971 = vmatpush1.bf16.msra.mxu1 %v10014_v6  ;;  %617 = vmatprep.subr.bf16.mxu0 %v10033_v17  ;;  %v10053_v27 = vld [vmem:[%s14809_s25 + $0x44] ss:$8 sps:$4 sm:$0xff]   ;;  %v10058_v31 = vld [vmem:[%s14809_s25 + $0x54] ss:$8 sps:$4 sm:$0xff]   ;;  %v10056_v32 = vld [vmem:[%s14809_s25 + $0x50] ss:$8 sps:$4 sm:$0xff]  }
  0x99   :  { %972 = vmatprep.subr.bf16.mxu1 %v10015_v7  ;;  %v10064_v33 = vld [vmem:[%s14809_s25 + $0x64] ss:$8 sps:$4 sm:$0xff]   ;;  %v10062_v35 = vld [vmem:[%s14809_s25 + $0x60] ss:$8 sps:$4 sm:$0xff]   ;;  %v10069_v36 = vld [vmem:[%s14809_s25 + $0x74] ss:$8 sps:$4 sm:$0xff]  }
  0x9a   :  { %v10067_v37 = vld [vmem:[%s14809_s25 + $0x70] ss:$8 sps:$4 sm:$0xff]   ;;  %v10040_v38 = vld [vmem:[%s14810_s28 + $0x20] sm:$0xff]   ;;  %v10079_v42 = vld [vmem:[%s14809_s25 + $0x94] ss:$8 sps:$4 sm:$0xff]  }
  0x9b   :  { %618 = vmatpush1.bf16.msra.mxu0 %v10036_v18  ;;  %v10074_v39 = vld [vmem:[%s14809_s25 + $0x84] ss:$8 sps:$4 sm:$0xff]   ;;  %v10072_v40 = vld [vmem:[%s14809_s25 + $0x80] ss:$8 sps:$4 sm:$0xff]   ;;  %v10077_v43 = vld [vmem:[%s14809_s25 + $0x90] ss:$8 sps:$4 sm:$0xff]  }
  0x9c   :  { %973 = vmatpush1.bf16.msra.mxu1 %v10017_v9  ;;  %619 = vmatprep.subr.bf16.mxu0 %v10037_v20  ;;  %v10081_v41 = vld [vmem:[%s14808_s17 + $0x38] ss:$20 sps:$4 sm:$0xff]   ;;  %v10083_v46 = vld [vmem:[%s14809_s25 + $0xa0] ss:$8 sps:$4 sm:$0xff]   ;;  %v10045_v47 = vld [vmem:[%s14810_s28 + $0x30] sm:$0xff]  }
  0x9d   :  { %2126 = vmatprep.subr.bf16.mxu1 %v10021_v10  ;;  %v10085_v44 = vld [vmem:[%s14809_s25 + $0xa4] ss:$8 sps:$4 sm:$0xff]   ;;  %v10088_v48 = vld [vmem:[%s14809_s25 + $0xb0] ss:$8 sps:$4 sm:$0xff]   ;;  %v10090_v49 = vld [vmem:[%s14809_s25 + $0xb4] ss:$8 sps:$4 sm:$0xff]  }
  0x9e   :  { %v10044_v45 = vld [vmem:[%s14810_s28 + $0x28] sm:$0xff]   ;;  %v10049_v50 = vld [vmem:[%s14810_s28 + $0x38] sm:$0xff]   ;;  %v10050_v51 = vld [vmem:[%s14810_s28 + $0x40] sm:$0xff]  }
  0x9f   :  { %9364 = vmatmul.mubr.msk.bf16.vlgmr.msra.gmra.mrb[0].mxu1 %vm516_vm0, %v10018_v12  ;;  %620 = vmatpush1.bf16.msra.mxu0 %v10039_v23  ;;  %v10093_v52 = vld [vmem:[%s14809_s25 + $0xc0] ss:$8 sps:$4 sm:$0xff]   ;;  %v10095_v53 = vld [vmem:[%s14809_s25 + $0xc4] ss:$8 sps:$4 sm:$0xff]   ;;  %v10055_v55 = vld [vmem:[%s14810_s28 + $0x50] sm:$0xff]  }
  0xa0   :  { %2127 = vmatpush1.bf16.msra.mxu1 %v10019_v15  ;;  %1008 = vmatprep.mubr.bf16.mxu1 %v14642_v0  ;;  %v10054_v54 = vld [vmem:[%s14810_s28 + $0x48] sm:$0xff]   ;;  %v10098_v56 = vld [vmem:[%s14809_s25 + $0xd0] ss:$8 sps:$4 sm:$0xff]   ;;  %v10100_v57 = vld [vmem:[%s14809_s25 + $0xd4] ss:$8 sps:$4 sm:$0xff]  }
  0xa1   :  { %2128 = vmatprep.subr.bf16.mxu1 %v10028_v16  ;;  %9841 = vmatprep.subr.bf16.mxu0 %v10060_v30  ;;  %v11353_v58 = vld [vmem:[%s14810_s28 + $0x58] sm:$0xff]   ;;  %v11363_v59 = vld [vmem:[%s14810_s28 + $0x60] sm:$0xff]   ;;  %v11382_v63 = vld [vmem:[%s14810_s28 + $0x68] sm:$0xff]  }
  0xa2   :  { %9332 = vmatmul.mubr.msk.bf16.vlgmr.msra.gmra.mrb[0].mxu0 %vm516_vm0, %v10018_v12  ;;  %v10102_v60 = vld [vmem:[%s14808_s17 + $0x60] ss:$20 sps:$4 sm:$0xff]   ;;  %v10106_v62 = vld [vmem:[%s14809_s25 + $0xe4] ss:$8 sps:$4 sm:$0xff]   ;;  %v10109_v2 = vld [vmem:[%s14809_s25 + $0xf0] ss:$8 sps:$4 sm:$0xff]  }
  0xa3   :  { %655 = vmatprep.mubr.bf16.mxu0 %v14642_v0  ;;  %9842 = vmatpush3.bf16.msra.mxu0 %v10060_v30  ;;  %v10104_v61 = vld [vmem:[%s14809_s25 + $0xe0] ss:$8 sps:$4 sm:$0xff]   ;;  %v11393_v1 = vld [vmem:[%s14810_s28 + $0x70] sm:$0xff]   ;;  %v11410_v4 = vld [vmem:[%s14810_s28 + $0x78] sm:$0xff]  }
  0xa4   :  { %2129 = vmatpush1.bf16.msra.mxu1 %v10026_v19  ;;  %9843 = vmatprep.subr.bf16.mxu0 %v10081_v41  ;;  %v10111_v3 = vld [vmem:[%s14809_s25 + $0xf4] ss:$8 sps:$4 sm:$0xff]   ;;  %v11421_v5 = vld [vmem:[%s14810_s28 + $0x80] sm:$0xff]   ;;  %v11434_v6 = vld [vmem:[%s14810_s28 + $0x88] sm:$0xff]   ;;  %s14930_s25 = sld [smem:[#allocation178_spill]] }
  0xa5   :  { %2130 = vmatprep.subr.bf16.mxu1 %v10043_v21  ;;  %v11445_v7 = vld [vmem:[%s14810_s28 + $0x90] sm:$0xff]   ;;  %v11456_v8 = vld [vmem:[%s14810_s28 + $0x98] sm:$0xff]   ;;  %v11467_v9 = vld [vmem:[%s14810_s28 + $0xa0] sm:$0xff]  }
  0xa6   :  { %v10113_v10 = vld [vmem:[%s14808_s17 + $0x88] ss:$20 sps:$4 sm:$0xff]   ;;  %v11492_v12 = vld [vmem:[%s14810_s28 + $0xb0] sm:$0xff]   ;;  %v11514_v14 = vld [vmem:[%s14810_s28 + $0xc0] sm:$0xff]  }
  0xa7   :  { %9365 = vmatmul.mubr.msk.bf16.gmra.mrb[4].mxu1 %vm516_vm0, %v10022_v22  ;;  %9844 = vmatpush3.bf16.msra.mxu0 %v10081_v41  ;;  %v11481_v11 = vld [vmem:[%s14810_s28 + $0xa8] sm:$0xff]   ;;  %v11503_v13 = vld [vmem:[%s14810_s28 + $0xb8] sm:$0xff]   ;;  %v11536_v16 = vld [vmem:[%s14810_s28 + $0xd0] sm:$0xff]  }
  0xa8   :  { %1018 = vmatprep.mubr.bf16.mxu1 %v14642_v0  ;;  %2131 = vmatpush1.bf16.msra.mxu1 %v10041_v24  ;;  %v11525_v15 = vld [vmem:[%s14810_s28 + $0xc8] sm:$0xff]   ;;  %v11551_v19 = vld [vmem:[%s14810_s28 + $0xd8] sm:$0xff]   ;;  %v10898_v24 = vmov 1966171168  }
  0xa9   :  { %2132 = vmatprep.subr.bf16.mxu1 %v10048_v25  ;;  %9845 = vmatprep.subr.bf16.mxu0 %v10102_v60  ;;  %v1779_v25 = vunpack.c.l.s4 %v10898_v24  ;;  %v11645_v24 = vld [vmem:[%s14810_s28 + $0xf0] sm:$0xff]  }
  0xaa   :  { %9333 = vmatmul.mubr.msk.bf16.gmra.mrb[4].mxu0 %vm516_vm0, %v10022_v22 }
  0xab   :  { %665 = vmatprep.mubr.bf16.mxu0 %v14642_v0  ;;  %9846 = vmatpush3.bf16.msra.mxu0 %v10102_v60 }
  0xac   :  { %2133 = vmatpush1.bf16.msra.mxu1 %v10046_v26  ;;  %9847 = vmatprep.subr.bf16.mxu0 %v10113_v10  ;;  %v14641_v26 = vlaneseq }
  0xad   :  { %2134 = vmatprep.subr.bf16.mxu1 %v10053_v27 }
  0xaf   :  { %9366 = vmatmul.mubr.msk.bf16.gmra.mrb[8].mxu1 %vm516_vm0, %v10025_v28  ;;  %9848 = vmatpush3.bf16.msra.mxu0 %v10113_v10 }
  0xb0   :  { %1028 = vmatprep.mubr.bf16.mxu1 %v14642_v0  ;;  %2135 = vmatpush1.bf16.msra.mxu1 %v10051_v29  ;;  %v11574_v29 = vld [vmem:[%s14810_s28 + $0xe0] sm:$0xff]  }
  0xb1   :  { %2136 = vmatprep.subr.bf16.mxu1 %v10058_v31  ;;  %v1780_v31 = vunpack.c.0.s8 %v1779_v25 }
  0xb2   :  { %9334 = vmatmul.mubr.msk.bf16.gmra.mrb[8].mxu0 %vm516_vm0, %v10025_v28 }
  0xb3   :  { %675 = vmatprep.mubr.bf16.mxu0 %v14642_v0 }
  0xb4   :  { %2137 = vmatpush1.bf16.msra.mxu1 %v10056_v32  ;;  %v11580_v32 = vshrl.u32 %v14641_v26, 7 }
  0xb5   :  { %2138 = vmatprep.subr.bf16.mxu1 %v10064_v33 }
  0xb6   :  { %14811 = vst [vmem:[#allocation17_spill] sm:$0xff] %v11580_v32 }
  0xb7   :  { %9367 = vmatmul.mubr.msk.bf16.gmra.mrb[12].mxu1 %vm516_vm0, %v10035_v34 }
  0xb8   :  { %1038 = vmatprep.mubr.bf16.mxu1 %v14642_v0  ;;  %2139 = vmatpush1.bf16.msra.mxu1 %v10062_v35 }
  0xb9   :  { %2140 = vmatprep.subr.bf16.mxu1 %v10069_v36  ;;  %v9428_v36 = vld.sshfl [vmem:[%s14812_s27] sm:$0x11 pattern:$0x75316420] }
  0xba   :  { %9335 = vmatmul.mubr.msk.bf16.gmra.mrb[12].mxu0 %vm516_vm0, %v10035_v34 }
  0xbb   :  { %685 = vmatprep.mubr.bf16.mxu0 %v14642_v0 }
  0xbc   :  { %2141 = vmatpush1.bf16.msra.mxu1 %v10067_v37  ;;  %v11679_v37 = vld [vmem:[%s14810_s28 + $0xf8] sm:$0xff]  }
  0xbd   :  { %2142 = vmatprep.subr.bf16.mxu1 %v10074_v39  ;;  %v10116_v39 = vld [vmem:[#allocation2 + $0x4] ss:$8 sps:$4 sm:$0xff]  }
  0xbe   :  { %2901 = vmatprep.subr.bf16.mxu0 %v10116_v39 }
  0xbf   :  { %9368 = vmatmul.mubr.msk.bf16.gmra.mrb[16].mxu1 %vm516_vm0, %v10040_v38 }
  0xc0   :  { %1048 = vmatprep.mubr.bf16.mxu1 %v14642_v0  ;;  %2143 = vmatpush1.bf16.msra.mxu1 %v10072_v40 }
  0xc1   :  { %2144 = vmatprep.subr.bf16.mxu1 %v10079_v42  ;;  %v11601_v42 = vsub.s32 %v1780_v31, %v11580_v32 }
  0xc2   :  { %9336 = vmatmul.mubr.msk.bf16.gmra.mrb[16].mxu0 %vm516_vm0, %v10040_v38 }
  0xc3   :  { %695 = vmatprep.mubr.bf16.mxu0 %v14642_v0 }
  0xc4   :  { %2145 = vmatpush1.bf16.msra.mxu1 %v10077_v43 }
  0xc5   :  { %2146 = vmatprep.subr.bf16.mxu1 %v10085_v44  ;;  %v1777_v44 = vcombine.high %v9428_v36, %v9428_v36 }
  0xc7   :  { %9369 = vmatmul.mubr.msk.bf16.gmra.mrb[20].mxu1 %vm516_vm0, %v10044_v45 }
  0xc8   :  { %1058 = vmatprep.mubr.bf16.mxu1 %v14642_v0  ;;  %2147 = vmatpush1.bf16.msra.mxu1 %v10083_v46 }
  0xc9   :  { %2148 = vmatprep.subr.bf16.mxu1 %v10090_v49 }
  0xca   :  { %9337 = vmatmul.mubr.msk.bf16.gmra.mrb[20].mxu0 %vm516_vm0, %v10044_v45 }
  0xcb   :  { %705 = vmatprep.mubr.bf16.mxu0 %v14642_v0 }
  0xcc   :  { %2149 = vmatpush1.bf16.msra.mxu1 %v10088_v48  ;;  %v11612_v48 = vld [vmem:[%s14810_s28 + $0xe8] sm:$0xff]  }
  0xcd   :  { %2150 = vmatprep.subr.bf16.mxu1 %v10095_v53 }
  0xcf   :  { %9370 = vmatmul.mubr.msk.bf16.gmra.mrb[24].mxu1 %vm516_vm0, %v10045_v47 }
  0xd0   :  { %1068 = vmatprep.mubr.bf16.mxu1 %v14642_v0  ;;  %2151 = vmatpush1.bf16.msra.mxu1 %v10093_v52 }
  0xd1   :  { %2152 = vmatprep.subr.bf16.mxu1 %v10100_v57  ;;  %v11632_v57 = vsub.s32 0, %v11580_v32 }
  0xd2   :  { %9338 = vmatmul.mubr.msk.bf16.gmra.mrb[24].mxu0 %vm516_vm0, %v10045_v47 }
  0xd3   :  { %715 = vmatprep.mubr.bf16.mxu0 %v14642_v0 }
  0xd4   :  { %2153 = vmatpush1.bf16.msra.mxu1 %v10098_v56 }
  0xd5   :  { %2154 = vmatprep.subr.bf16.mxu1 %v10106_v62 }
  0xd7   :  { %9371 = vmatmul.mubr.msk.bf16.gmra.mrb[28].mxu1 %vm516_vm0, %v10049_v50 }
  0xd8   :  { %1078 = vmatprep.mubr.bf16.mxu1 %v14642_v0  ;;  %2155 = vmatpush1.bf16.msra.mxu1 %v10104_v61 }
  0xd9   :  { %2156 = vmatprep.subr.bf16.mxu1 %v10111_v3 }
  0xda   :  { %9339 = vmatmul.mubr.msk.bf16.gmra.mrb[28].mxu0 %vm516_vm0, %v10049_v50  ;;  %v1791_v50 = vrot.slane %v1777_v44, %v11601_v42 }
  0xdb   :  { %725 = vmatprep.mubr.bf16.mxu0 %v14642_v0 }
  0xdc   :  { %2157 = vmatpush1.bf16.msra.mxu1 %v10109_v2  ;;  %v1800_v60 = vpack.i.b16 %v1791_v50, %v1791_v50 }
  0xde   :  { %v11651_v31 = vrot.slane %v1800_v60, %v11632_v57 }
  0xdf   :  { %9372 = vmatmul.mubr.msk.bf16.gmra.mrb[32].mxu1 %vm516_vm0, %v10050_v51 }
  0xe0   :  { %1088 = vmatprep.mubr.bf16.mxu1 %v14642_v0 }
  0xe2   :  { %9340 = vmatmul.mubr.msk.bf16.gmra.mrb[32].mxu0 %vm516_vm0, %v10050_v51 }
  0xe3   :  { %735 = vmatprep.mubr.bf16.mxu0 %v14642_v0 }
  0xe7   :  { %9373 = vmatmul.mubr.msk.bf16.gmra.mrb[36].mxu1 %vm516_vm0, %v10054_v54 }
  0xe8   :  { %1098 = vmatprep.mubr.bf16.mxu1 %v14642_v0 }
  0xea   :  { %9341 = vmatmul.mubr.msk.bf16.gmra.mrb[36].mxu0 %vm516_vm0, %v10054_v54 }
  0xeb   :  { %745 = vmatprep.mubr.bf16.mxu0 %v14642_v0 }
  0xef   :  { %9374 = vmatmul.mubr.msk.bf16.gmra.mrb[40].mxu1 %vm516_vm0, %v10055_v55 }
  0xf0   :  { %1108 = vmatprep.mubr.bf16.mxu1 %v14642_v0 }
  0xf2   :  { %9342 = vmatmul.mubr.msk.bf16.gmra.mrb[40].mxu0 %vm516_vm0, %v10055_v55 }
  0xf3   :  { %755 = vmatprep.mubr.bf16.mxu0 %v14642_v0 }
  0xf7   :  { %9375 = vmatmul.mubr.msk.bf16.gmra.mrb[44].mxu1 %vm516_vm0, %v11353_v58 }
  0xf8   :  { %1118 = vmatprep.mubr.bf16.mxu1 %v14642_v0 }
  0xfa   :  { %9343 = vmatmul.mubr.msk.bf16.gmra.mrb[44].mxu0 %vm516_vm0, %v11353_v58 }
  0xfb   :  { %765 = vmatprep.mubr.bf16.mxu0 %v14642_v0 }
  0xff   :  { %9376 = vmatmul.mubr.msk.bf16.gmra.mrb[48].mxu1 %vm516_vm0, %v11363_v59 }
 0x100   :  { %1128 = vmatprep.mubr.bf16.mxu1 %v14642_v0 }
 0x102   :  { %9344 = vmatmul.mubr.msk.bf16.gmra.mrb[48].mxu0 %vm516_vm0, %v11363_v59 }
 0x103   :  { %775 = vmatprep.mubr.bf16.mxu0 %v14642_v0 }
 0x107   :  { %9377 = vmatmul.mubr.msk.bf16.gmra.mrb[52].mxu1 %vm516_vm0, %v11382_v63 }
 0x108   :  { %1138 = vmatprep.mubr.bf16.mxu1 %v14642_v0 }
 0x10a   :  { %9345 = vmatmul.mubr.msk.bf16.gmra.mrb[52].mxu0 %vm516_vm0, %v11382_v63 }
 0x10b   :  { %785 = vmatprep.mubr.bf16.mxu0 %v14642_v0 }
 0x10f   :  { %9378 = vmatmul.mubr.msk.bf16.gmra.mrb[56].mxu1 %vm516_vm0, %v11393_v1 }
 0x110   :  { %1148 = vmatprep.mubr.bf16.mxu1 %v14642_v0 }
 0x112   :  { %9346 = vmatmul.mubr.msk.bf16.gmra.mrb[56].mxu0 %vm516_vm0, %v11393_v1 }
 0x113   :  { %795 = vmatprep.mubr.bf16.mxu0 %v14642_v0 }
 0x117   :  { %9379 = vmatmul.mubr.msk.bf16.gmra.mrb[60].mxu1 %vm516_vm0, %v11410_v4 }
 0x118   :  { %1158 = vmatprep.mubr.bf16.mxu1 %v14642_v0 }
 0x11a   :  { %9347 = vmatmul.mubr.msk.bf16.gmra.mrb[60].mxu0 %vm516_vm0, %v11410_v4 }
 0x11b   :  { %805 = vmatprep.mubr.bf16.mxu0 %v14642_v0 }
 0x11f   :  { %9380 = vmatmul.mubr.msk.bf16.gmra.mrb[64].mxu1 %vm516_vm0, %v11421_v5 }
 0x120   :  { %1168 = vmatprep.mubr.bf16.mxu1 %v14642_v0 }
 0x122   :  { %9348 = vmatmul.mubr.msk.bf16.gmra.mrb[64].mxu0 %vm516_vm0, %v11421_v5 }
 0x123   :  { %815 = vmatprep.mubr.bf16.mxu0 %v14642_v0 }
 0x127   :  { %9381 = vmatmul.mubr.msk.bf16.gmra.mrb[68].mxu1 %vm516_vm0, %v11434_v6 }
 0x128   :  { %1178 = vmatprep.mubr.bf16.mxu1 %v14642_v0 }
 0x12a   :  { %9349 = vmatmul.mubr.msk.bf16.gmra.mrb[68].mxu0 %vm516_vm0, %v11434_v6 }
 0x12b   :  { %825 = vmatprep.mubr.bf16.mxu0 %v14642_v0 }
 0x12f   :  { %9382 = vmatmul.mubr.msk.bf16.gmra.mrb[72].mxu1 %vm516_vm0, %v11445_v7 }
 0x130   :  { %1188 = vmatprep.mubr.bf16.mxu1 %v14642_v0 }
 0x132   :  { %9350 = vmatmul.mubr.msk.bf16.gmra.mrb[72].mxu0 %vm516_vm0, %v11445_v7 }
 0x133   :  { %835 = vmatprep.mubr.bf16.mxu0 %v14642_v0 }
 0x137   :  { %9383 = vmatmul.mubr.msk.bf16.gmra.mrb[76].mxu1 %vm516_vm0, %v11456_v8 }
 0x138   :  { %1198 = vmatprep.mubr.bf16.mxu1 %v14642_v0 }
 0x13a   :  { %9351 = vmatmul.mubr.msk.bf16.gmra.mrb[76].mxu0 %vm516_vm0, %v11456_v8 }
 0x13b   :  { %845 = vmatprep.mubr.bf16.mxu0 %v14642_v0 }
 0x13f   :  { %9384 = vmatmul.mubr.msk.bf16.gmra.mrb[80].mxu1 %vm516_vm0, %v11467_v9 }
 0x140   :  { %1208 = vmatprep.mubr.bf16.mxu1 %v14642_v0 }
 0x142   :  { %9352 = vmatmul.mubr.msk.bf16.gmra.mrb[80].mxu0 %vm516_vm0, %v11467_v9 }
 0x143   :  { %855 = vmatprep.mubr.bf16.mxu0 %v14642_v0 }
 0x147   :  { %9385 = vmatmul.mubr.msk.bf16.gmra.mrb[84].mxu1 %vm516_vm0, %v11481_v11 }
 0x148   :  { %1218 = vmatprep.mubr.bf16.mxu1 %v14642_v0 }
 0x14a   :  { %9353 = vmatmul.mubr.msk.bf16.gmra.mrb[84].mxu0 %vm516_vm0, %v11481_v11 }
 0x14b   :  { %865 = vmatprep.mubr.bf16.mxu0 %v14642_v0 }
 0x14f   :  { %9386 = vmatmul.mubr.msk.bf16.gmra.mrb[88].mxu1 %vm516_vm0, %v11492_v12 }
 0x150   :  { %1228 = vmatprep.mubr.bf16.mxu1 %v14642_v0 }
 0x152   :  { %9354 = vmatmul.mubr.msk.bf16.gmra.mrb[88].mxu0 %vm516_vm0, %v11492_v12 }
 0x153   :  { %875 = vmatprep.mubr.bf16.mxu0 %v14642_v0 }
 0x157   :  { %9387 = vmatmul.mubr.msk.bf16.gmra.mrb[92].mxu1 %vm516_vm0, %v11503_v13 }
 0x158   :  { %1238 = vmatprep.mubr.bf16.mxu1 %v14642_v0 }
 0x15a   :  { %9355 = vmatmul.mubr.msk.bf16.gmra.mrb[92].mxu0 %vm516_vm0, %v11503_v13 }
 0x15b   :  { %885 = vmatprep.mubr.bf16.mxu0 %v14642_v0 }
 0x15f   :  { %9388 = vmatmul.mubr.msk.bf16.gmra.mrb[96].mxu1 %vm516_vm0, %v11514_v14 }
 0x160   :  { %1248 = vmatprep.mubr.bf16.mxu1 %v14642_v0 }
 0x162   :  { %9356 = vmatmul.mubr.msk.bf16.gmra.mrb[96].mxu0 %vm516_vm0, %v11514_v14 }
 0x163   :  { %895 = vmatprep.mubr.bf16.mxu0 %v14642_v0 }
 0x167   :  { %9389 = vmatmul.mubr.msk.bf16.gmra.mrb[100].mxu1 %vm516_vm0, %v11525_v15 }
 0x168   :  { %1258 = vmatprep.mubr.bf16.mxu1 %v14642_v0 }
 0x16a   :  { %9357 = vmatmul.mubr.msk.bf16.gmra.mrb[100].mxu0 %vm516_vm0, %v11525_v15 }
 0x16b   :  { %905 = vmatprep.mubr.bf16.mxu0 %v14642_v0 }
 0x16f   :  { %9390 = vmatmul.mubr.msk.bf16.gmra.mrb[104].mxu1 %vm516_vm0, %v11536_v16 }
 0x170   :  { %1268 = vmatprep.mubr.bf16.mxu1 %v14642_v0 }
 0x172   :  { %v11542_v17 = vpop.f32.mrb[0].mxu1  ;;  %9358 = vmatmul.mubr.msk.bf16.gmra.mrb[104].mxu0 %vm516_vm0, %v11536_v16 }
 0x173   :  { %v11546_v18 = vpop.f32.mrb[1].mxu1  ;;  %915 = vmatprep.mubr.bf16.mxu0 %v14642_v0 }
 0x174   :  { %v11554_v20 = vpop.f32.mrb[2].mxu1 }
 0x175   :  { %v11558_v22 = vpop.f32.mrb[3].mxu1  ;;  %v11586_v35 = vpop.f32.mrb[0].mxu0 }
 0x176   :  { %v649_v38 = vpop.f32.mrb[1].mxu0 }
 0x177   :  { %9391 = vmatmul.mubr.msk.bf16.gmra.mrb[108].mxu1 %vm516_vm0, %v11551_v19  ;;  %v11595_v40 = vpop.f32.mrb[2].mxu0 }
 0x178   :  { %1278 = vmatprep.mubr.bf16.mxu1 %v14642_v0  ;;  %v1608_v41 = vpack.c.bf16 %v11595_v40, %v11586_v35  ;;  %v653_v43 = vpop.f32.mrb[3].mxu0 }
 0x179   :  { %v1609_v45 = vpack.c.bf16 %v653_v43, %v649_v38  ;;  %v1784_v43 = vrot.slane %v9428_v36, %v11601_v42 }
 0x17a   :  { %v11565_v27 = vpop.f32.mrb[4].mxu1  ;;  %9359 = vmatmul.mubr.msk.bf16.gmra.mrb[108].mxu0 %vm516_vm0, %v11551_v19 }
 0x17b   :  { %v11569_v28 = vpop.f32.mrb[5].mxu1  ;;  %925 = vmatprep.mubr.bf16.mxu0 %v14642_v0  ;;  %v1807_v60 = vadd.bf16 %v11651_v31, %v1609_v45  ;;  %v1793_v36 = vpack.i.b16 %v1784_v43, %v1784_v43 }
 0x17c   :  { %v11577_v30 = vpop.f32.mrb[6].mxu1 }
 0x17d   :  { %v11584_v34 = vpop.f32.mrb[7].mxu1  ;;  %v11622_v53 = vpop.f32.mrb[4].mxu0  ;;  %v1871_v33 = vmax.bf16 %v14642_v0, %v1807_v60 }
 0x17e   :  { %v659_v55 = vpop.f32.mrb[5].mxu0 }
 0x17f   :  { %9392 = vmatmul.mubr.msk.bf16.gmra.mrb[112].mxu1 %vm516_vm0, %v11574_v29  ;;  %v11628_v56 = vpop.f32.mrb[6].mxu0 }
 0x180   :  { %1288 = vmatprep.mubr.bf16.mxu1 %v14642_v0  ;;  %v663_v62 = vpop.f32.mrb[7].mxu0  ;;  %v14824_v35 = vpack.c.bf16 %v11628_v56, %v11622_v53 }
 0x181   :  { %v1614_v2 = vpack.c.bf16 %v663_v62, %v659_v55 }
 0x182   :  { %v11603_v46 = vpop.f32.mrb[8].mxu1  ;;  %9360 = vmatmul.mubr.msk.bf16.gmra.mrb[112].mxu0 %vm516_vm0, %v11574_v29 }
 0x183   :  { %v11607_v47 = vpop.f32.mrb[9].mxu1  ;;  %935 = vmatprep.mubr.bf16.mxu0 %v14642_v0  ;;  %v1809_v60 = vadd.bf16 %v11651_v31, %v1614_v2 }
 0x184   :  { %v11615_v49 = vpop.f32.mrb[10].mxu1 }
 0x185   :  { %v11620_v52 = vpop.f32.mrb[11].mxu1  ;;  %v11658_v44 = vpop.f32.mrb[8].mxu0 }
 0x186   :  { %v669_v55 = vpop.f32.mrb[9].mxu0 }
 0x187   :  { %9393 = vmatmul.mubr.msk.bf16.gmra.mrb[116].mxu1 %vm516_vm0, %v11612_v48  ;;  %v11664_v62 = vpop.f32.mrb[10].mxu0 }
 0x188   :  { %1298 = vmatprep.mubr.bf16.mxu1 %v14642_v0  ;;  %v673_v38 = vpop.f32.mrb[11].mxu0 }
 0x189   :  { %v1619_v54 = vpack.c.bf16 %v673_v38, %v669_v55  ;;  %v11686_v38 = vrot.slane %v1793_v36, %v11632_v57 }
 0x18a   :  { %v11636_v3 = vpop.f32.mrb[12].mxu1  ;;  %9361 = vmatmul.mubr.msk.bf16.gmra.mrb[116].mxu0 %vm516_vm0, %v11612_v48 }
 0x18b   :  { %v11640_v10 = vpop.f32.mrb[13].mxu1  ;;  %945 = vmatprep.mubr.bf16.mxu0 %v14642_v0 }
 0x18c   :  { %14813 = vst [vmem:[#allocation18_spill] sm:$0xff] %v11640_v10  ;;  %v11648_v25 = vpop.f32.mrb[14].mxu1 }
 0x18d   :  { %v11655_v39 = vpop.f32.mrb[15].mxu1  ;;  %v11692_v23 = vpop.f32.mrb[12].mxu0 }
 0x18e   :  { %14814 = vst [vmem:[#allocation19_spill] sm:$0xff] %v11655_v39  ;;  %v679_v26 = vpop.f32.mrb[13].mxu0 }
 0x18f   :  { %9394 = vmatmul.mubr.msk.bf16.gmra.mrb[120].mxu1 %vm516_vm0, %v11645_v24  ;;  %v11698_v61 = vpop.f32.mrb[14].mxu0 }
 0x190   :  { %1308 = vmatprep.mubr.bf16.mxu1 %v14642_v0  ;;  %v683_v43 = vpop.f32.mrb[15].mxu0  ;;  %v1806_v0 = vadd.bf16 %v11686_v38, %v1608_v41 }
 0x191   :  { %v1624_v32 = vpack.c.bf16 %v683_v43, %v679_v26 }
 0x192   :  { %v11670_v51 = vpop.f32.mrb[16].mxu1  ;;  %9362 = vmatmul.mubr.msk.bf16.gmra.mrb[120].mxu0 %vm516_vm0, %v11645_v24 }
 0x193   :  { %14815 = vst [vmem:[#allocation20_spill] sm:$0xff] %v11670_v51  ;;  %v11674_v50 = vpop.f32.mrb[17].mxu1 }
 0x194   :  { %14816 = vst [vmem:[#allocation21_spill] sm:$0xff] %v11674_v50  ;;  %v11682_v45 = vpop.f32.mrb[18].mxu1 }
 0x195   :  { %14817 = vst [vmem:[#allocation22_spill] sm:$0xff] %v11682_v45  ;;  %v11690_v55 = vpop.f32.mrb[19].mxu1  ;;  %v11722_v26 = vpop.f32.mrb[16].mxu0  ;;  %v1811_v45 = vadd.bf16 %v11651_v31, %v1619_v54  ;;  %v10714_v54 = vld [vmem:[%s14810_s28] sm:$0xff]  }
 0x196   :  { %14818 = vst [vmem:[#allocation23_spill] sm:$0xff] %v11690_v55  ;;  %v689_v43 = vpop.f32.mrb[17].mxu0 }
 0x197   :  { %9395 = vmatmul.mubr.msk.bf16.gmra.mrb[124].mxu1 %vm516_vm0, %v11679_v37  ;;  %v11726_v51 = vpop.f32.mrb[18].mxu0 }
 0x198   :  { %2158 = vmatprep.mubr.bf16.mxu1 %v1871_v33  ;;  %v14821_v33 = vmov 0  }
 0x199   :  { %955 = vmatprep.mubr.bf16.mxu0 %v14821_v33  ;;  %v1873_v36 = vmax.bf16 %v14821_v33, %v1809_v60  ;;  %v1870_v55 = vmax.bf16 %v14821_v33, %v1806_v0  ;;  %v693_v60 = vpop.f32.mrb[19].mxu0  ;;  %v1875_v53 = vmax.bf16 %v14821_v33, %v1811_v45  ;;  %v1813_v45 = vadd.bf16 %v11651_v31, %v1624_v32 }
 0x19a   :  { %v11707_v21 = vpop.f32.mrb[20].mxu1  ;;  %9363 = vmatmul.mubr.msk.bf16.gmra.mrb[124].mxu0 %vm516_vm0, %v11679_v37 }
 0x19b   :  { %14819 = vst [vmem:[#allocation24_spill] sm:$0xff] %v11707_v21  ;;  %v11711_v50 = vpop.f32.mrb[21].mxu1  ;;  %v1808_v21 = vadd.bf16 %v11686_v38, %v14824_v35  ;;  %9849 = vmatprep.mubr.msk.bf16.mxu0 %vm516_vm0, %v10714_v54 }
 0x19c   :  { %14820 = vst [vmem:[#allocation25_spill] sm:$0xff] %v11711_v50  ;;  %v11714_v2 = vpop.f32.mrb[22].mxu1  ;;  %v10114_v50 = vld [vmem:[#allocation2] ss:$8 sps:$4 sm:$0xff]  }
 0x19d   :  { %14822 = vst [vmem:[#allocation26_spill] sm:$0xff] %v11714_v2  ;;  %v11720_v40 = vpop.f32.mrb[23].mxu1  ;;  %v1629_v2 = vpack.c.bf16 %v693_v60, %v689_v43  ;;  %v1872_v43 = vmax.bf16 %v14821_v33, %v1808_v21  ;;  %v11753_v60 = vpop.f32.mrb[20].mxu0  ;;  %v14829_v21 = vpack.c.bf16 %v11664_v62, %v11658_v44  ;;  %v10117_v44 = vld [vmem:[#allocation2 + $0x10] ss:$8 sps:$4 sm:$0xff]  }
 0x19e   :  { %14823 = vst [vmem:[#allocation27_spill] sm:$0xff] %v11720_v40  ;;  %v11757_v0 = vpop.f32.mrb[21].mxu0 }
 0x19f   :  { %2159 = vmatmul.mubr.bf16.vlgmr.msra.gmra.mrb[128].mxu1 %v1870_v55  ;;  %v11759_v54 = vpop.f32.mrb[22].mxu0  ;;  %v1810_v40 = vadd.bf16 %v11686_v38, %v14829_v21 }
 0x1a0   :  { %2168 = vmatprep.mubr.bf16.mxu1 %v1873_v36 }
 0x1a2   :  { %v11735_v10 = vpop.f32.mrb[24].mxu1 }
 0x1a3   :  { %14825 = vst [vmem:[#allocation28_spill] sm:$0xff] %v11735_v10  ;;  %v11739_v55 = vpop.f32.mrb[25].mxu1  ;;  %v703_v10 = vpop.f32.mrb[23].mxu0 }
 0x1a4   :  { %14826 = vst [vmem:[#allocation29_spill] sm:$0xff] %v11739_v55  ;;  %v11745_v36 = vpop.f32.mrb[26].mxu1  ;;  %v1634_v41 = vpack.c.bf16 %v703_v10, %v11757_v0  ;;  %v1877_v10 = vmax.bf16 %v14821_v33, %v1813_v45  ;;  %v10122_v0 = vld [vmem:[#allocation2 + $0x24] ss:$8 sps:$4 sm:$0xff]   ;;  %v1815_v45 = vadd.bf16 %v11651_v31, %v1629_v2 }
 0x1a5   :  { %14827 = vst [vmem:[#allocation30_spill] sm:$0xff] %v11745_v36  ;;  %v11750_v35 = vpop.f32.mrb[27].mxu1  ;;  %v10119_v36 = vld [vmem:[#allocation2 + $0x14] ss:$8 sps:$4 sm:$0xff]   ;;  %v11789_v56 = vpop.f32.mrb[24].mxu0 }
 0x1a6   :  { %14828 = vst [vmem:[#allocation31_spill] sm:$0xff] %v11750_v35 }
 0x1a7   :  { %2169 = vmatmul.mubr.bf16.gmra.mrb[132].mxu1 %v1872_v43  ;;  %v10716_v43 = vld [vmem:[%s14810_s28 + $0x10] sm:$0xff]  }
 0x1a8   :  { %2178 = vmatprep.mubr.bf16.mxu1 %v1875_v53  ;;  %v10715_v53 = vld [vmem:[%s14810_s28 + $0x8] sm:$0xff]  }
 0x1a9   :  { %9850 = vmatmul.mubr.msk.bf16.vlgmr.msra.gmra.mrb[128].mxu0 %vm516_vm0, %v10715_v53 }
 0x1aa   :  { %v11769_v55 = vpop.f32.mrb[28].mxu1  ;;  %2902 = vmatpush1.bf16.msra.mxu0 %v10114_v50  ;;  %9853 = vmatprep.mubr.msk.bf16.mxu0 %vm516_vm0, %v10716_v43  ;;  %v1874_v50 = vmax.bf16 %v14821_v33, %v1810_v40  ;;  %v11793_v43 = vpop.f32.mrb[25].mxu0  ;;  %v10125_v40 = vld [vmem:[#allocation2 + $0x34] ss:$8 sps:$4 sm:$0xff]  }
 0x1ab   :  { %14830 = vst [vmem:[#allocation32_spill] sm:$0xff] %v11769_v55  ;;  %v11775_v32 = vpop.f32.mrb[29].mxu1  ;;  %2903 = vmatprep.subr.bf16.mxu0 %v10119_v36  ;;  %v11795_v39 = vpop.f32.mrb[26].mxu0  ;;  %v10120_v36 = vld [vmem:[#allocation2 + $0x20] ss:$8 sps:$4 sm:$0xff]  }
 0x1ac   :  { %14831 = vst [vmem:[#allocation33_spill] sm:$0xff] %v11775_v32  ;;  %v11781_v62 = vpop.f32.mrb[30].mxu1  ;;  %v713_v55 = vpop.f32.mrb[27].mxu0 }
 0x1ad   :  { %14832 = vst [vmem:[#allocation34_spill] sm:$0xff] %v11781_v62  ;;  %v11786_v53 = vpop.f32.mrb[31].mxu1  ;;  %v14834_v62 = vpack.c.bf16 %v11698_v61, %v11692_v23  ;;  %v10123_v23 = vld [vmem:[#allocation2 + $0x30] ss:$8 sps:$4 sm:$0xff]   ;;  %v11825_v21 = vpop.f32.mrb[28].mxu0 }
 0x1ae   :  { %14833 = vst [vmem:[#allocation35_spill] sm:$0xff] %v11786_v53  ;;  %2904 = vmatpush1.bf16.msra.mxu0 %v10117_v44  ;;  %v10717_v44 = vld [vmem:[%s14810_s28 + $0x18] sm:$0xff]  }
 0x1af   :  { %2179 = vmatmul.mubr.bf16.gmra.mrb[136].mxu1 %v1874_v50  ;;  %2905 = vmatprep.subr.bf16.mxu0 %v10122_v0  ;;  %v1812_v35 = vadd.bf16 %v11686_v38, %v14834_v62  ;;  %v1639_v50 = vpack.c.bf16 %v713_v55, %v11793_v43  ;;  %v1879_v55 = vmax.bf16 %v14821_v33, %v1815_v45  ;;  %v10128_v62 = vld [vmem:[#allocation2 + $0x44] ss:$8 sps:$4 sm:$0xff]   ;;  %v10126_v45 = vld [vmem:[#allocation2 + $0x40] ss:$8 sps:$4 sm:$0xff]  }
 0x1b0   :  { %2188 = vmatprep.mubr.bf16.mxu1 %v1877_v10  ;;  %v10718_v10 = vld [vmem:[%s14810_s28 + $0x20] sm:$0xff]  }
 0x1b1   :  { %9854 = vmatmul.mubr.msk.bf16.gmra.mrb[132].mxu0 %vm516_vm0, %v10717_v44  ;;  %v1876_v44 = vmax.bf16 %v14821_v33, %v1812_v35  ;;  %v10131_v35 = vld [vmem:[#allocation2 + $0x54] ss:$8 sps:$4 sm:$0xff]  }
 0x1b2   :  { %v11805_v32 = vpop.f32.mrb[32].mxu1  ;;  %9857 = vmatprep.mubr.msk.bf16.mxu0 %vm516_vm0, %v10718_v10  ;;  %2906 = vmatpush1.bf16.msra.mxu0 %v10120_v36  ;;  %v11829_v36 = vpop.f32.mrb[29].mxu0 }
 0x1b3   :  { %14835 = vst [vmem:[#allocation36_spill] sm:$0xff] %v11805_v32  ;;  %v11811_v2 = vpop.f32.mrb[33].mxu1  ;;  %2907 = vmatprep.subr.bf16.mxu0 %v10125_v40  ;;  %v11831_v53 = vpop.f32.mrb[30].mxu0  ;;  %v1817_v40 = vadd.bf16 %v11651_v31, %v1634_v41 }
 0x1b4   :  { %14836 = vst [vmem:[#allocation37_spill] sm:$0xff] %v11811_v2  ;;  %v11817_v61 = vpop.f32.mrb[34].mxu1  ;;  %v723_v32 = vpop.f32.mrb[31].mxu0 }
 0x1b5   :  { %14837 = vst [vmem:[#allocation38_spill] sm:$0xff] %v11817_v61  ;;  %v11822_v43 = vpop.f32.mrb[35].mxu1  ;;  %v14839_v61 = vpack.c.bf16 %v11726_v51, %v11722_v26  ;;  %v10129_v51 = vld [vmem:[#allocation2 + $0x50] ss:$8 sps:$4 sm:$0xff]   ;;  %v11861_v0 = vpop.f32.mrb[32].mxu0 }
 0x1b6   :  { %14838 = vst [vmem:[#allocation39_spill] sm:$0xff] %v11822_v43  ;;  %2908 = vmatpush1.bf16.msra.mxu0 %v10123_v23  ;;  %v10719_v23 = vld [vmem:[%s14810_s28 + $0x28] sm:$0xff]  }
 0x1b7   :  { %2189 = vmatmul.mubr.bf16.gmra.mrb[140].mxu1 %v1876_v44  ;;  %2909 = vmatprep.subr.bf16.mxu0 %v10128_v62  ;;  %v1814_v10 = vadd.bf16 %v11686_v38, %v14839_v61  ;;  %v1644_v44 = vpack.c.bf16 %v723_v32, %v11829_v36  ;;  %v1881_v32 = vmax.bf16 %v14821_v33, %v1817_v40  ;;  %v10134_v61 = vld [vmem:[#allocation2 + $0x64] ss:$8 sps:$4 sm:$0xff]   ;;  %v10132_v40 = vld [vmem:[#allocation2 + $0x60] ss:$8 sps:$4 sm:$0xff]  }
 0x1b8   :  { %2198 = vmatprep.mubr.bf16.mxu1 %v1879_v55  ;;  %v10720_v55 = vld [vmem:[%s14810_s28 + $0x30] sm:$0xff]  }
 0x1b9   :  { %9858 = vmatmul.mubr.msk.bf16.gmra.mrb[136].mxu0 %vm516_vm0, %v10719_v23  ;;  %v1878_v23 = vmax.bf16 %v14821_v33, %v1814_v10  ;;  %v10137_v10 = vld [vmem:[#allocation2 + $0x74] ss:$8 sps:$4 sm:$0xff]  }
 0x1ba   :  { %v11841_v2 = vpop.f32.mrb[36].mxu1  ;;  %9861 = vmatprep.mubr.msk.bf16.mxu0 %vm516_vm0, %v10720_v55  ;;  %2910 = vmatpush1.bf16.msra.mxu0 %v10126_v45  ;;  %v11865_v45 = vpop.f32.mrb[33].mxu0 }
 0x1bb   :  { %14840 = vst [vmem:[#allocation40_spill] sm:$0xff] %v11841_v2  ;;  %v11847_v41 = vpop.f32.mrb[37].mxu1  ;;  %2911 = vmatprep.subr.bf16.mxu0 %v10131_v35  ;;  %v11867_v43 = vpop.f32.mrb[34].mxu0  ;;  %v1819_v35 = vadd.bf16 %v11651_v31, %v1639_v50 }
 0x1bc   :  { %14841 = vst [vmem:[#allocation41_spill] sm:$0xff] %v11847_v41  ;;  %v11853_v26 = vpop.f32.mrb[38].mxu1  ;;  %v733_v2 = vpop.f32.mrb[35].mxu0 }
 0x1bd   :  { %14842 = vst [vmem:[#allocation42_spill] sm:$0xff] %v11853_v26  ;;  %v11858_v36 = vpop.f32.mrb[39].mxu1  ;;  %v14844_v26 = vpack.c.bf16 %v11759_v54, %v11753_v60  ;;  %v10135_v60 = vld [vmem:[#allocation2 + $0x70] ss:$8 sps:$4 sm:$0xff]   ;;  %v11897_v62 = vpop.f32.mrb[36].mxu0 }
 0x1be   :  { %14843 = vst [vmem:[#allocation43_spill] sm:$0xff] %v11858_v36  ;;  %2912 = vmatpush1.bf16.msra.mxu0 %v10129_v51  ;;  %v10721_v51 = vld [vmem:[%s14810_s28 + $0x38] sm:$0xff]  }
 0x1bf   :  { %2199 = vmatmul.mubr.bf16.gmra.mrb[144].mxu1 %v1878_v23  ;;  %2913 = vmatprep.subr.bf16.mxu0 %v10134_v61  ;;  %v1816_v55 = vadd.bf16 %v11686_v38, %v14844_v26  ;;  %v1649_v23 = vpack.c.bf16 %v733_v2, %v11865_v45  ;;  %v1883_v2 = vmax.bf16 %v14821_v33, %v1819_v35  ;;  %v10140_v26 = vld [vmem:[#allocation2 + $0x84] ss:$8 sps:$4 sm:$0xff]   ;;  %v10138_v35 = vld [vmem:[#allocation2 + $0x80] ss:$8 sps:$4 sm:$0xff]  }
 0x1c0   :  { %2208 = vmatprep.mubr.bf16.mxu1 %v1881_v32  ;;  %v10722_v32 = vld [vmem:[%s14810_s28 + $0x40] sm:$0xff]  }
 0x1c1   :  { %9862 = vmatmul.mubr.msk.bf16.gmra.mrb[140].mxu0 %vm516_vm0, %v10721_v51  ;;  %v1880_v51 = vmax.bf16 %v14821_v33, %v1816_v55  ;;  %v10143_v55 = vld [vmem:[#allocation2 + $0x94] ss:$8 sps:$4 sm:$0xff]  }
 0x1c2   :  { %v11877_v41 = vpop.f32.mrb[40].mxu1  ;;  %9865 = vmatprep.mubr.msk.bf16.mxu0 %vm516_vm0, %v10722_v32  ;;  %2914 = vmatpush1.bf16.msra.mxu0 %v10132_v40  ;;  %v739_v40 = vpop.f32.mrb[37].mxu0 }
 0x1c3   :  { %14845 = vst [vmem:[#allocation44_spill] sm:$0xff] %v11877_v41  ;;  %v11883_v50 = vpop.f32.mrb[41].mxu1  ;;  %2915 = vmatprep.subr.bf16.mxu0 %v10137_v10  ;;  %v11901_v36 = vpop.f32.mrb[38].mxu0  ;;  %v1821_v10 = vadd.bf16 %v11651_v31, %v1644_v44 }
 0x1c4   :  { %14846 = vst [vmem:[#allocation45_spill] sm:$0xff] %v11883_v50  ;;  %v11889_v54 = vpop.f32.mrb[42].mxu1  ;;  %v743_v41 = vpop.f32.mrb[39].mxu0 }
 0x1c5   :  { %14847 = vst [vmem:[#allocation46_spill] sm:$0xff] %v11889_v54  ;;  %v11894_v45 = vpop.f32.mrb[43].mxu1  ;;  %v14849_v54 = vpack.c.bf16 %v11795_v39, %v11789_v56  ;;  %v1654_v50 = vpack.c.bf16 %v743_v41, %v739_v40  ;;  %v10141_v39 = vld [vmem:[#allocation2 + $0x90] ss:$8 sps:$4 sm:$0xff]   ;;  %v1885_v41 = vmax.bf16 %v14821_v33, %v1821_v10  ;;  %v10144_v10 = vld [vmem:[#allocation2 + $0xa0] ss:$8 sps:$4 sm:$0xff]  }
 0x1c6   :  { %14848 = vst [vmem:[#allocation47_spill] sm:$0xff] %v11894_v45  ;;  %2916 = vmatpush1.bf16.msra.mxu0 %v10135_v60  ;;  %v10723_v60 = vld [vmem:[%s14810_s28 + $0x48] sm:$0xff]  }
 0x1c7   :  { %2209 = vmatmul.mubr.bf16.gmra.mrb[148].mxu1 %v1880_v51  ;;  %2917 = vmatprep.subr.bf16.mxu0 %v10140_v26  ;;  %v1818_v32 = vadd.bf16 %v11686_v38, %v14849_v54 }
 0x1c8   :  { %2218 = vmatprep.mubr.bf16.mxu1 %v1883_v2  ;;  %v10724_v2 = vld [vmem:[%s14810_s28 + $0x50] sm:$0xff]  }
 0x1c9   :  { %9866 = vmatmul.mubr.msk.bf16.gmra.mrb[144].mxu0 %vm516_vm0, %v10723_v60  ;;  %v1882_v40 = vmax.bf16 %v14821_v33, %v1818_v32  ;;  %v11930_v60 = vpop.f32.mrb[40].mxu0  ;;  %v14853_v32 = vpack.c.bf16 %v11831_v53, %v11825_v21 }
 0x1ca   :  { %v11910_v51 = vpop.f32.mrb[44].mxu1  ;;  %9869 = vmatprep.mubr.msk.bf16.mxu0 %vm516_vm0, %v10724_v2  ;;  %2918 = vmatpush1.bf16.msra.mxu0 %v10138_v35  ;;  %v749_v2 = vpop.f32.mrb[41].mxu0  ;;  %v10146_v35 = vld [vmem:[#allocation2 + $0xa4] ss:$8 sps:$4 sm:$0xff]  }
 0x1cb   :  { %14850 = vst [vmem:[#allocation48_spill] sm:$0xff] %v11910_v51  ;;  %v11916_v44 = vpop.f32.mrb[45].mxu1  ;;  %2919 = vmatprep.subr.bf16.mxu0 %v10143_v55  ;;  %v11934_v45 = vpop.f32.mrb[42].mxu0  ;;  %v1823_v55 = vadd.bf16 %v11651_v31, %v1649_v23  ;;  %v1820_v61 = vadd.bf16 %v11686_v38, %v14853_v32  ;;  %v10155_v32 = vld [vmem:[#allocation2 + $0xc4] ss:$8 sps:$4 sm:$0xff]  }
 0x1cc   :  { %14851 = vst [vmem:[#allocation49_spill] sm:$0xff] %v11916_v44  ;;  %v11922_v56 = vpop.f32.mrb[46].mxu1  ;;  %v753_v51 = vpop.f32.mrb[43].mxu0 }
 0x1cd   :  { %v11927_v26 = vpop.f32.mrb[47].mxu1  ;;  %v1659_v44 = vpack.c.bf16 %v753_v51, %v749_v2  ;;  %v1884_v51 = vmax.bf16 %v14821_v33, %v1820_v61  ;;  %v14856_v61 = vpack.c.bf16 %v11867_v43, %v11861_v0 }
 0x1ce   :  { %14852 = vst [vmem:[#allocation50_spill] sm:$0xff] %v11927_v26  ;;  %2920 = vmatpush1.bf16.msra.mxu0 %v10141_v39 }
 0x1cf   :  { %2219 = vmatmul.mubr.bf16.gmra.mrb[152].mxu1 %v1882_v40  ;;  %2921 = vmatprep.subr.bf16.mxu0 %v10146_v35  ;;  %v11959_v40 = vpop.f32.mrb[44].mxu0  ;;  %v10147_v35 = vld [vmem:[#allocation2 + $0xb0] ss:$8 sps:$4 sm:$0xff]   ;;  %v1822_v54 = vadd.bf16 %v11686_v38, %v14856_v61  ;;  %v10153_v61 = vld [vmem:[#allocation2 + $0xc0] ss:$8 sps:$4 sm:$0xff]  }
 0x1d0   :  { %2228 = vmatprep.mubr.bf16.mxu1 %v1885_v41  ;;  %v1887_v41 = vmax.bf16 %v14821_v33, %v1823_v55  ;;  %v759_v2 = vpop.f32.mrb[45].mxu0  ;;  %v1825_v55 = vadd.bf16 %v11651_v31, %v1654_v50  ;;  %v10150_v50 = vld [vmem:[#allocation4] ss:$8 sps:$4 sm:$0xff]  }
 0x1d1   :  { %9870 = vmatmul.mubr.msk.bf16.gmra.mrb[148].mxu0 %vm516_vm0, %v11353_v58 }
 0x1d2   :  { %v11943_v26 = vpop.f32.mrb[48].mxu1  ;;  %9873 = vmatprep.mubr.msk.bf16.mxu0 %vm516_vm0, %v11363_v59  ;;  %2922 = vmatpush1.bf16.msra.mxu0 %v10144_v10  ;;  %v10149_v59 = vld [vmem:[#allocation2 + $0xb4] ss:$8 sps:$4 sm:$0xff]   ;;  %v11963_v10 = vpop.f32.mrb[46].mxu0  ;;  %v1889_v0 = vmax.bf16 %v14821_v33, %v1825_v55  ;;  %v1827_v55 = vadd.bf16 %v11651_v31, %v1659_v44 }
 0x1d3   :  { %v11947_v39 = vpop.f32.mrb[49].mxu1  ;;  %v763_v21 = vpop.f32.mrb[47].mxu0  ;;  %2923 = vmatprep.subr.bf16.mxu0 %v10149_v59 }
 0x1d4   :  { %14854 = vst [vmem:[#allocation51_spill] sm:$0xff] %v11947_v39  ;;  %v11951_v23 = vpop.f32.mrb[50].mxu1  ;;  %v1664_v58 = vpack.c.bf16 %v763_v21, %v759_v2  ;;  %v1886_v2 = vmax.bf16 %v14821_v33, %v1822_v54 }
 0x1d5   :  { %v11956_v53 = vpop.f32.mrb[51].mxu1 }
 0x1d6   :  { %14855 = vst [vmem:[#allocation52_spill] sm:$0xff] %v11956_v53  ;;  %2924 = vmatpush1.bf16.msra.mxu0 %v10147_v35  ;;  %v11988_v35 = vpop.f32.mrb[48].mxu0 }
 0x1d7   :  { %2229 = vmatmul.mubr.bf16.gmra.mrb[156].mxu1 %v1884_v51  ;;  %v10152_v51 = vld [vmem:[#allocation4 + $0x4] ss:$8 sps:$4 sm:$0xff]   ;;  %2925 = vmatprep.subr.bf16.mxu0 %v10155_v32  ;;  %v1891_v32 = vmax.bf16 %v14821_v33, %v1827_v55  ;;  %v1829_v55 = vadd.bf16 %v11651_v31, %v1664_v58  ;;  %v10159_v58 = vld [vmem:[#allocation4 + $0x10] ss:$8 sps:$4 sm:$0xff]  }
 0x1d8   :  { %2238 = vmatprep.mubr.bf16.mxu1 %v1887_v41  ;;  %3676 = vmatprep.subr.bf16.mxu1 %v10152_v51  ;;  %v14858_v51 = vpack.c.bf16 %v11901_v36, %v11897_v62  ;;  %v10164_v62 = vld [vmem:[#allocation2 + $0xe4] ss:$8 sps:$4 sm:$0xff]  }
 0x1d9   :  { %9874 = vmatmul.mubr.msk.bf16.gmra.mrb[152].mxu0 %vm516_vm0, %v11382_v63  ;;  %3677 = vmatpush1.bf16.msra.mxu1 %v10150_v50 }
 0x1da   :  { %v11972_v39 = vpop.f32.mrb[52].mxu1  ;;  %9877 = vmatprep.mubr.msk.bf16.mxu0 %vm516_vm0, %v11393_v1  ;;  %v769_v1 = vpop.f32.mrb[49].mxu0  ;;  %v1824_v63 = vadd.bf16 %v11686_v38, %v14858_v51  ;;  %2926 = vmatpush1.bf16.msra.mxu0 %v10153_v61  ;;  %v10158_v51 = vld [vmem:[#allocation2 + $0xd4] ss:$8 sps:$4 sm:$0xff]  }
 0x1db   :  { %v11976_v41 = vpop.f32.mrb[53].mxu1  ;;  %v11992_v53 = vpop.f32.mrb[50].mxu0  ;;  %2927 = vmatprep.subr.bf16.mxu0 %v10158_v51 }
 0x1dc   :  { %14857 = vst [vmem:[#allocation53_spill] sm:$0xff] %v11976_v41  ;;  %v11980_v59 = vpop.f32.mrb[54].mxu1  ;;  %v773_v54 = vpop.f32.mrb[51].mxu0 }
 0x1dd   :  { %v11985_v21 = vpop.f32.mrb[55].mxu1  ;;  %v1669_v41 = vpack.c.bf16 %v773_v54, %v769_v1  ;;  %v12017_v1 = vpop.f32.mrb[52].mxu0  ;;  %v10156_v54 = vld [vmem:[#allocation2 + $0xd0] ss:$8 sps:$4 sm:$0xff]  }
 0x1de   :  { %v779_v61 = vpop.f32.mrb[53].mxu0  ;;  %2928 = vmatpush1.bf16.msra.mxu0 %v10156_v54 }
 0x1df   :  { %2239 = vmatmul.mubr.bf16.gmra.mrb[160].mxu1 %v1886_v2  ;;  %v1888_v2 = vmax.bf16 %v14821_v33, %v1824_v63  ;;  %v14862_v63 = vpack.c.bf16 %v11934_v45, %v11930_v60  ;;  %v1893_v45 = vmax.bf16 %v14821_v33, %v1829_v55  ;;  %v1831_v55 = vadd.bf16 %v11651_v31, %v1669_v41  ;;  %v10165_v60 = vld [vmem:[#allocation2 + $0xf0] ss:$8 sps:$4 sm:$0xff]  }
 0x1e0   :  { %2248 = vmatprep.mubr.bf16.mxu1 %v1889_v0  ;;  %2929 = vmatprep.subr.bf16.mxu0 %v10164_v62 }
 0x1e1   :  { %9878 = vmatmul.mubr.msk.bf16.gmra.mrb[156].mxu0 %vm516_vm0, %v11410_v4  ;;  %v1895_v62 = vmax.bf16 %v14821_v33, %v1831_v55 }
 0x1e2   :  { %v12001_v50 = vpop.f32.mrb[56].mxu1  ;;  %9881 = vmatprep.mubr.msk.bf16.mxu0 %vm516_vm0, %v11421_v5  ;;  %v12021_v5 = vpop.f32.mrb[54].mxu0 }
 0x1e3   :  { %14859 = vst [vmem:[#allocation54_spill] sm:$0xff] %v12001_v50  ;;  %v12005_v0 = vpop.f32.mrb[57].mxu1  ;;  %v783_v43 = vpop.f32.mrb[55].mxu0  ;;  %v1826_v50 = vadd.bf16 %v11686_v38, %v14862_v63  ;;  %v10162_v63 = vld [vmem:[#allocation2 + $0xe0] ss:$8 sps:$4 sm:$0xff]  }
 0x1e4   :  { %14860 = vst [vmem:[#allocation55_spill] sm:$0xff] %v12005_v0  ;;  %v12009_v44 = vpop.f32.mrb[58].mxu1  ;;  %v1674_v4 = vpack.c.bf16 %v783_v43, %v779_v61  ;;  %2930 = vmatpush1.bf16.msra.mxu0 %v10162_v63 }
 0x1e5   :  { %v12014_v36 = vpop.f32.mrb[59].mxu1  ;;  %v1890_v61 = vmax.bf16 %v14821_v33, %v1826_v50  ;;  %v12046_v54 = vpop.f32.mrb[56].mxu0 }
 0x1e6   :  { %14861 = vst [vmem:[#allocation56_spill] sm:$0xff] %v12014_v36  ;;  %v1833_v55 = vadd.bf16 %v11651_v31, %v1674_v4  ;;  %v10168_v4 = vld [vmem:[#allocation4 + $0x20] ss:$8 sps:$4 sm:$0xff]  }
 0x1e7   :  { %2249 = vmatmul.mubr.bf16.gmra.mrb[164].mxu1 %v1888_v2  ;;  %v10161_v2 = vld [vmem:[#allocation4 + $0x14] ss:$8 sps:$4 sm:$0xff]  }
 0x1e8   :  { %2258 = vmatprep.mubr.bf16.mxu1 %v1891_v32  ;;  %3678 = vmatprep.subr.bf16.mxu1 %v10161_v2  ;;  %v14864_v2 = vpack.c.bf16 %v11963_v10, %v11959_v40 }
 0x1e9   :  { %9882 = vmatmul.mubr.msk.bf16.gmra.mrb[160].mxu0 %vm516_vm0, %v11434_v6  ;;  %3679 = vmatpush1.bf16.msra.mxu1 %v10159_v58 }
 0x1ea   :  { %v12030_v0 = vpop.f32.mrb[60].mxu1  ;;  %9885 = vmatprep.mubr.msk.bf16.mxu0 %vm516_vm0, %v11445_v7  ;;  %v789_v7 = vpop.f32.mrb[57].mxu0  ;;  %v1828_v6 = vadd.bf16 %v11686_v38, %v14864_v2 }
 0x1eb   :  { %v12034_v32 = vpop.f32.mrb[61].mxu1  ;;  %v12050_v36 = vpop.f32.mrb[58].mxu0 }
 0x1ec   :  { %14863 = vst [vmem:[#allocation57_spill] sm:$0xff] %v12034_v32  ;;  %v12038_v51 = vpop.f32.mrb[62].mxu1  ;;  %v793_v50 = vpop.f32.mrb[59].mxu0 }
 0x1ed   :  { %v12043_v43 = vpop.f32.mrb[63].mxu1  ;;  %v1679_v32 = vpack.c.bf16 %v793_v50, %v789_v7  ;;  %v12075_v7 = vpop.f32.mrb[60].mxu0 }
 0x1ee   :  { %v799_v63 = vpop.f32.mrb[61].mxu0 }
 0x1ef   :  { %2259 = vmatmul.mubr.bf16.gmra.mrb[168].mxu1 %v1890_v61  ;;  %v1892_v61 = vmax.bf16 %v14821_v33, %v1828_v6  ;;  %v12079_v50 = vpop.f32.mrb[62].mxu0  ;;  %v14867_v6 = vpack.c.bf16 %v11992_v53, %v11988_v35  ;;  %v1897_v53 = vmax.bf16 %v14821_v33, %v1833_v55  ;;  %v1835_v55 = vadd.bf16 %v11651_v31, %v1679_v32 }
 0x1f0   :  { %2268 = vmatprep.mubr.bf16.mxu1 %v1893_v45  ;;  %v803_v40 = vpop.f32.mrb[63].mxu0 }
 0x1f1   :  { %9886 = vmatmul.mubr.msk.bf16.gmra.mrb[164].mxu0 %vm516_vm0, %v11456_v8 }
 0x1f2   :  { %v12059_v58 = vpop.f32.mrb[64].mxu1  ;;  %9889 = vmatprep.mubr.msk.bf16.mxu0 %vm516_vm0, %v11467_v9  ;;  %v10167_v9 = vld [vmem:[#allocation2 + $0xf4] ss:$8 sps:$4 sm:$0xff]  }
 0x1f3   :  { %14865 = vst [vmem:[#allocation58_spill] sm:$0xff] %v12059_v58  ;;  %v12063_v45 = vpop.f32.mrb[65].mxu1  ;;  %v1830_v58 = vadd.bf16 %v11686_v38, %v14867_v6  ;;  %2931 = vmatprep.subr.bf16.mxu0 %v10167_v9 }
 0x1f4   :  { %v12067_v41 = vpop.f32.mrb[66].mxu1  ;;  %2932 = vmatpush1.bf16.msra.mxu0 %v10165_v60 }
 0x1f5   :  { %14866 = vst [vmem:[#allocation59_spill] sm:$0xff] %v12067_v41  ;;  %v12072_v10 = vpop.f32.mrb[67].mxu1  ;;  %v1684_v41 = vpack.c.bf16 %v803_v40, %v799_v63  ;;  %v1894_v63 = vmax.bf16 %v14821_v33, %v1830_v58  ;;  %v14870_v58 = vpack.c.bf16 %v12021_v5, %v12017_v1 }
 0x1f7   :  { %2269 = vmatmul.mubr.bf16.gmra.mrb[172].mxu1 %v1892_v61  ;;  %v10170_v61 = vld [vmem:[#allocation4 + $0x24] ss:$8 sps:$4 sm:$0xff]  }
 0x1f8   :  { %2278 = vmatprep.mubr.bf16.mxu1 %v1895_v62  ;;  %3680 = vmatprep.subr.bf16.mxu1 %v10170_v61  ;;  %v1832_v61 = vadd.bf16 %v11686_v38, %v14870_v58 }
 0x1f9   :  { %9890 = vmatmul.mubr.msk.bf16.gmra.mrb[168].mxu0 %vm516_vm0, %v11481_v11  ;;  %v12104_v11 = vpop.f32.mrb[64].mxu0  ;;  %3681 = vmatpush1.bf16.msra.mxu1 %v10168_v4 }
 0x1fa   :  { %v12088_v8 = vpop.f32.mrb[68].mxu1  ;;  %9893 = vmatprep.mubr.msk.bf16.mxu0 %vm516_vm0, %v11492_v12  ;;  %v809_v60 = vpop.f32.mrb[65].mxu0  ;;  %v14873_v12 = vpack.c.bf16 %v12050_v36, %v12046_v54 }
 0x1fb   :  { %14868 = vst [vmem:[#allocation60_spill] sm:$0xff] %v12088_v8  ;;  %v12092_v62 = vpop.f32.mrb[69].mxu1  ;;  %v12108_v9 = vpop.f32.mrb[66].mxu0 }
 0x1fc   :  { %v12096_v2 = vpop.f32.mrb[70].mxu1  ;;  %v813_v35 = vpop.f32.mrb[67].mxu0 }
 0x1fd   :  { %14869 = vst [vmem:[#allocation61_spill] sm:$0xff] %v12096_v2  ;;  %v12101_v40 = vpop.f32.mrb[71].mxu1  ;;  %v1689_v8 = vpack.c.bf16 %v813_v35, %v809_v60  ;;  %v1896_v35 = vmax.bf16 %v14821_v33, %v1832_v61  ;;  %v1834_v61 = vadd.bf16 %v11686_v38, %v14873_v12 }
 0x1ff   :  { %2279 = vmatmul.mubr.bf16.gmra.mrb[176].mxu1 %v1894_v63  ;;  %v12133_v63 = vpop.f32.mrb[68].mxu0  ;;  %v1898_v12 = vmax.bf16 %v14821_v33, %v1834_v61  ;;  %v14878_v61 = vpack.c.bf16 %v12079_v50, %v12075_v7 }
 0x200   :  { %2288 = vmatprep.mubr.bf16.mxu1 %v1897_v53  ;;  %v1899_v53 = vmax.bf16 %v14821_v33, %v1835_v55  ;;  %v819_v60 = vpop.f32.mrb[69].mxu0 }
 0x201   :  { %9894 = vmatmul.mubr.msk.bf16.gmra.mrb[172].mxu0 %vm516_vm0, %v11503_v13  ;;  %v12137_v58 = vpop.f32.mrb[70].mxu0 }
 0x202   :  { %v12117_v2 = vpop.f32.mrb[72].mxu1  ;;  %9897 = vmatprep.mubr.msk.bf16.mxu0 %vm516_vm0, %v11514_v14  ;;  %v1837_v14 = vadd.bf16 %v11651_v31, %v1684_v41  ;;  %v823_v1 = vpop.f32.mrb[71].mxu0  ;;  %v10171_v41 = vld [vmem:[#allocation4 + $0x30] ss:$8 sps:$4 sm:$0xff]  }
 0x203   :  { %14871 = vst [vmem:[#allocation62_spill] sm:$0xff] %v12117_v2  ;;  %v12121_v4 = vpop.f32.mrb[73].mxu1  ;;  %v1694_v6 = vpack.c.bf16 %v823_v1, %v819_v60 }
 0x204   :  { %14872 = vst [vmem:[#allocation63_spill] sm:$0xff] %v12121_v4  ;;  %v12125_v32 = vpop.f32.mrb[74].mxu1  ;;  %v1901_v55 = vmax.bf16 %v14821_v33, %v1837_v14  ;;  %v1839_v14 = vadd.bf16 %v11651_v31, %v1689_v8 }
 0x205   :  { %v12130_v5 = vpop.f32.mrb[75].mxu1  ;;  %v12162_v1 = vpop.f32.mrb[72].mxu0 }
 0x207   :  { %2289 = vmatmul.mubr.bf16.gmra.mrb[180].mxu1 %v1896_v35 }
 0x208   :  { %2298 = vmatprep.mubr.bf16.mxu1 %v1899_v53  ;;  %v10173_v53 = vld [vmem:[#allocation4 + $0x34] ss:$8 sps:$4 sm:$0xff]  }
 0x209   :  { %9898 = vmatmul.mubr.msk.bf16.gmra.mrb[176].mxu0 %vm516_vm0, %v11525_v15  ;;  %3682 = vmatprep.subr.bf16.mxu1 %v10173_v53  ;;  %v1836_v53 = vadd.bf16 %v11686_v38, %v14878_v61  ;;  %v14883_v15 = vpack.c.bf16 %v12108_v9, %v12104_v11 }
 0x20a   :  { %v12146_v2 = vpop.f32.mrb[76].mxu1  ;;  %9901 = vmatprep.mubr.msk.bf16.mxu0 %vm516_vm0, %v11536_v16  ;;  %v829_v16 = vpop.f32.mrb[73].mxu0  ;;  %3683 = vmatpush1.bf16.msra.mxu1 %v10171_v41 }
 0x20b   :  { %14874 = vst [vmem:[#allocation64_spill] sm:$0xff] %v12146_v2  ;;  %v12150_v35 = vpop.f32.mrb[77].mxu1  ;;  %v12166_v60 = vpop.f32.mrb[74].mxu0 }
 0x20c   :  { %14875 = vst [vmem:[#allocation65_spill] sm:$0xff] %v12150_v35  ;;  %v12154_v13 = vpop.f32.mrb[78].mxu1  ;;  %v833_v2 = vpop.f32.mrb[75].mxu0 }
 0x20d   :  { %14876 = vst [vmem:[#allocation66_spill] sm:$0xff] %v12154_v13  ;;  %v12159_v54 = vpop.f32.mrb[79].mxu1  ;;  %v1699_v13 = vpack.c.bf16 %v833_v2, %v829_v16  ;;  %v1900_v2 = vmax.bf16 %v14821_v33, %v1836_v53  ;;  %v1838_v53 = vadd.bf16 %v11686_v38, %v14883_v15 }
 0x20e   :  { %14877 = vst [vmem:[#allocation67_spill] sm:$0xff] %v12159_v54 }
 0x20f   :  { %2299 = vmatmul.mubr.bf16.gmra.mrb[184].mxu1 %v1898_v12  ;;  %v12191_v12 = vpop.f32.mrb[76].mxu0  ;;  %v1902_v15 = vmax.bf16 %v14821_v33, %v1838_v53  ;;  %v14888_v53 = vpack.c.bf16 %v12137_v58, %v12133_v63 }
 0x210   :  { %2308 = vmatprep.mubr.bf16.mxu1 %v1901_v55  ;;  %v1903_v55 = vmax.bf16 %v14821_v33, %v1839_v14  ;;  %v839_v16 = vpop.f32.mrb[77].mxu0 }
 0x211   :  { %9902 = vmatmul.mubr.msk.bf16.gmra.mrb[180].mxu0 %vm516_vm0, %v11551_v19  ;;  %v12195_v61 = vpop.f32.mrb[78].mxu0 }
 0x212   :  { %v12175_v4 = vpop.f32.mrb[80].mxu1  ;;  %9905 = vmatprep.mubr.msk.bf16.mxu0 %vm516_vm0, %v11574_v29  ;;  %v1841_v29 = vadd.bf16 %v11651_v31, %v1694_v6  ;;  %v843_v7 = vpop.f32.mrb[79].mxu0  ;;  %v10174_v6 = vld [vmem:[#allocation4 + $0x40] ss:$8 sps:$4 sm:$0xff]  }
 0x213   :  { %14879 = vst [vmem:[#allocation68_spill] sm:$0xff] %v12175_v4  ;;  %v12179_v41 = vpop.f32.mrb[81].mxu1  ;;  %v1704_v36 = vpack.c.bf16 %v843_v7, %v839_v16 }
 0x214   :  { %14880 = vst [vmem:[#allocation69_spill] sm:$0xff] %v12179_v41  ;;  %v12183_v8 = vpop.f32.mrb[82].mxu1  ;;  %v1905_v14 = vmax.bf16 %v14821_v33, %v1841_v29  ;;  %v1843_v29 = vadd.bf16 %v11651_v31, %v1699_v13 }
 0x215   :  { %14881 = vst [vmem:[#allocation70_spill] sm:$0xff] %v12183_v8  ;;  %v12188_v50 = vpop.f32.mrb[83].mxu1  ;;  %v12220_v7 = vpop.f32.mrb[80].mxu0 }
 0x216   :  { %14882 = vst [vmem:[#allocation71_spill] sm:$0xff] %v12188_v50  ;;  %v1907_v13 = vmax.bf16 %v14821_v33, %v1843_v29 }
 0x217   :  { %2309 = vmatmul.mubr.bf16.gmra.mrb[188].mxu1 %v1900_v2 }
 0x218   :  { %2318 = vmatprep.mubr.bf16.mxu1 %v1903_v55  ;;  %v10176_v55 = vld [vmem:[#allocation4 + $0x44] ss:$8 sps:$4 sm:$0xff]  }
 0x219   :  { %9906 = vmatmul.mubr.msk.bf16.gmra.mrb[184].mxu0 %vm516_vm0, %v11612_v48  ;;  %3684 = vmatprep.subr.bf16.mxu1 %v10176_v55  ;;  %v1840_v55 = vadd.bf16 %v11686_v38, %v14888_v53 }
 0x21a   :  { %v12204_v4 = vpop.f32.mrb[84].mxu1  ;;  %9909 = vmatprep.mubr.msk.bf16.mxu0 %vm516_vm0, %v11645_v24  ;;  %v849_v24 = vpop.f32.mrb[81].mxu0  ;;  %3685 = vmatpush1.bf16.msra.mxu1 %v10174_v6 }
 0x21b   :  { %14884 = vst [vmem:[#allocation72_spill] sm:$0xff] %v12204_v4  ;;  %v12208_v2 = vpop.f32.mrb[85].mxu1  ;;  %v12224_v16 = vpop.f32.mrb[82].mxu0  ;;  %v1904_v63 = vmax.bf16 %v14821_v33, %v1840_v55 }
 0x21c   :  { %14885 = vst [vmem:[#allocation73_spill] sm:$0xff] %v12208_v2  ;;  %v12212_v19 = vpop.f32.mrb[86].mxu1  ;;  %v1708_v11 = vpack.c.bf16 %v12224_v16, %v12220_v7  ;;  %v853_v4 = vpop.f32.mrb[83].mxu0  ;;  %v1845_v16 = vadd.bf16 %v11651_v31, %v1704_v36 }
 0x21d   :  { %14886 = vst [vmem:[#allocation74_spill] sm:$0xff] %v12212_v19  ;;  %v12217_v9 = vpop.f32.mrb[87].mxu1  ;;  %v1709_v19 = vpack.c.bf16 %v853_v4, %v849_v24  ;;  %v12247_v58 = vpop.f32.mrb[84].mxu0 }
 0x21e   :  { %14887 = vst [vmem:[#allocation75_spill] sm:$0xff] %v12217_v9  ;;  %v859_v24 = vpop.f32.mrb[85].mxu0  ;;  %v1909_v36 = vmax.bf16 %v14821_v33, %v1845_v16 }
 0x21f   :  { %2319 = vmatmul.mubr.bf16.gmra.mrb[192].mxu1 %v1902_v15  ;;  %v14893_v15 = vpack.c.bf16 %v12166_v60, %v12162_v1  ;;  %v1847_v16 = vadd.bf16 %v11651_v31, %v1709_v19  ;;  %v1846_v19 = vadd.bf16 %v11686_v38, %v1708_v11 }
 0x220   :  { %2328 = vmatprep.mubr.bf16.mxu1 %v1905_v14 }
 0x221   :  { %9910 = vmatmul.mubr.msk.bf16.gmra.mrb[188].mxu0 %vm516_vm0, %v11679_v37  ;;  %v12251_v37 = vpop.f32.mrb[86].mxu0  ;;  %v1842_v55 = vadd.bf16 %v11686_v38, %v14893_v15 }
 0x222   :  { %v12233_v41 = vpop.f32.mrb[88].mxu1  ;;  %v863_v53 = vpop.f32.mrb[87].mxu0 }
 0x223   :  { %14889 = vst [vmem:[#allocation76_spill] sm:$0xff] %v12233_v41  ;;  %v12237_v6 = vpop.f32.mrb[89].mxu1  ;;  %v1714_v48 = vpack.c.bf16 %v863_v53, %v859_v24  ;;  %v1906_v1 = vmax.bf16 %v14821_v33, %v1842_v55  ;;  %v14898_v55 = vpack.c.bf16 %v12195_v61, %v12191_v12 }
 0x224   :  { %14890 = vst [vmem:[#allocation77_spill] sm:$0xff] %v12237_v6  ;;  %v12239_v14 = vpop.f32.mrb[90].mxu1  ;;  %v10179_v6 = vld [vmem:[#allocation4 + $0x54] ss:$8 sps:$4 sm:$0xff]  }
 0x225   :  { %14891 = vst [vmem:[#allocation78_spill] sm:$0xff] %v12239_v14  ;;  %v12244_v7 = vpop.f32.mrb[91].mxu1  ;;  %v12272_v60 = vpop.f32.mrb[88].mxu0  ;;  %3686 = vmatprep.subr.bf16.mxu1 %v10179_v6  ;;  %v1844_v6 = vadd.bf16 %v11686_v38, %v14898_v55 }
 0x226   :  { %14892 = vst [vmem:[#allocation79_spill] sm:$0xff] %v12244_v7  ;;  %v869_v24 = vpop.f32.mrb[89].mxu0 }
 0x227   :  { %2329 = vmatmul.mubr.bf16.gmra.mrb[196].mxu1 %v1904_v63  ;;  %v10177_v63 = vld [vmem:[#allocation4 + $0x50] ss:$8 sps:$4 sm:$0xff]   ;;  %v12276_v53 = vpop.f32.mrb[90].mxu0 }
 0x228   :  { %2338 = vmatprep.mubr.bf16.mxu1 %v1907_v13  ;;  %3687 = vmatpush1.bf16.msra.mxu1 %v10177_v63  ;;  %v1718_v13 = vpack.c.bf16 %v12276_v53, %v12272_v60  ;;  %v1908_v60 = vmax.bf16 %v14821_v33, %v1844_v6 }
 0x22a   :  { %v12260_v41 = vpop.f32.mrb[92].mxu1 }
 0x22b   :  { %14894 = vst [vmem:[#allocation80_spill] sm:$0xff] %v12260_v41  ;;  %v12262_v4 = vpop.f32.mrb[93].mxu1  ;;  %v873_v41 = vpop.f32.mrb[91].mxu0 }
 0x22c   :  { %14895 = vst [vmem:[#allocation81_spill] sm:$0xff] %v12262_v4  ;;  %v12264_v7 = vpop.f32.mrb[94].mxu1  ;;  %v10180_v4 = vld [vmem:[#allocation4 + $0x60] ss:$8 sps:$4 sm:$0xff]  }
 0x22d   :  { %14896 = vst [vmem:[#allocation82_spill] sm:$0xff] %v12264_v7  ;;  %v12269_v29 = vpop.f32.mrb[95].mxu1  ;;  %v1719_v7 = vpack.c.bf16 %v873_v41, %v869_v24  ;;  %v12297_v53 = vpop.f32.mrb[92].mxu0  ;;  %v1849_v24 = vadd.bf16 %v11651_v31, %v1714_v48  ;;  %v10182_v41 = vld [vmem:[#allocation4 + $0x64] ss:$8 sps:$4 sm:$0xff]  }
 0x22e   :  { %14897 = vst [vmem:[#allocation83_spill] sm:$0xff] %v12269_v29  ;;  %v879_v12 = vpop.f32.mrb[93].mxu0  ;;  %3688 = vmatprep.subr.bf16.mxu1 %v10182_v41 }
 0x22f   :  { %2339 = vmatmul.mubr.bf16.gmra.mrb[200].mxu1 %v1906_v1  ;;  %v12301_v61 = vpop.f32.mrb[94].mxu0 }
 0x230   :  { %2348 = vmatprep.mubr.bf16.mxu1 %v1909_v36  ;;  %v1911_v36 = vmax.bf16 %v14821_v33, %v1847_v16  ;;  %v883_v55 = vpop.f32.mrb[95].mxu0  ;;  %v1910_v16 = vmax.bf16 %v14821_v33, %v1846_v19  ;;  %3689 = vmatpush1.bf16.msra.mxu1 %v10180_v4  ;;  %v14907_v19 = vpack.c.bf16 %v12251_v37, %v12247_v58  ;;  %v10185_v58 = vld [vmem:[#allocation4 + $0x74] ss:$8 sps:$4 sm:$0xff]  }
 0x231   :  { %3690 = vmatprep.subr.bf16.mxu1 %v10185_v58 }
 0x232   :  { %v12285_v14 = vpop.f32.mrb[96].mxu1  ;;  %v1848_v41 = vadd.bf16 %v11686_v38, %v14907_v19 }
 0x233   :  { %14899 = vst [vmem:[#allocation84_spill] sm:$0xff] %v12285_v14  ;;  %v12287_v15 = vpop.f32.mrb[97].mxu1  ;;  %v1724_v14 = vpack.c.bf16 %v883_v55, %v879_v12 }
 0x234   :  { %14900 = vst [vmem:[#allocation85_spill] sm:$0xff] %v12287_v15  ;;  %v12289_v63 = vpop.f32.mrb[98].mxu1 }
 0x235   :  { %14901 = vst [vmem:[#allocation86_spill] sm:$0xff] %v12289_v63  ;;  %v12294_v1 = vpop.f32.mrb[99].mxu1 }
 0x236   :  { %14902 = vst [vmem:[#allocation87_spill] sm:$0xff] %v12294_v1  ;;  %v12319_v1 = vpop.f32.mrb[96].mxu0 }
 0x237   :  { %2349 = vmatmul.mubr.bf16.gmra.mrb[204].mxu1 %v1908_v60  ;;  %v1913_v60 = vmax.bf16 %v14821_v33, %v1849_v24  ;;  %v889_v12 = vpop.f32.mrb[97].mxu0  ;;  %v1851_v24 = vadd.bf16 %v11651_v31, %v1719_v7  ;;  %v1850_v7 = vadd.bf16 %v11686_v38, %v1718_v13 }
 0x238   :  { %2358 = vmatprep.mubr.bf16.mxu1 %v1911_v36  ;;  %v12323_v55 = vpop.f32.mrb[98].mxu0 }
 0x239   :  { %v1728_v48 = vpack.c.bf16 %v12323_v55, %v12319_v1  ;;  %v1912_v1 = vmax.bf16 %v14821_v33, %v1848_v41 }
 0x23a   :  { %v12307_v6 = vpop.f32.mrb[100].mxu1 }
 0x23b   :  { %14903 = vst [vmem:[#allocation88_spill] sm:$0xff] %v12307_v6  ;;  %v12309_v63 = vpop.f32.mrb[101].mxu1  ;;  %v893_v6 = vpop.f32.mrb[99].mxu0 }
 0x23c   :  { %14904 = vst [vmem:[#allocation89_spill] sm:$0xff] %v12309_v63  ;;  %v12311_v15 = vpop.f32.mrb[102].mxu1  ;;  %v10183_v63 = vld [vmem:[#allocation4 + $0x70] ss:$8 sps:$4 sm:$0xff]  }
 0x23d   :  { %14905 = vst [vmem:[#allocation90_spill] sm:$0xff] %v12311_v15  ;;  %v12316_v36 = vpop.f32.mrb[103].mxu1  ;;  %v1729_v15 = vpack.c.bf16 %v893_v6, %v889_v12  ;;  %v12344_v55 = vpop.f32.mrb[100].mxu0  ;;  %v1853_v12 = vadd.bf16 %v11651_v31, %v1724_v14  ;;  %3691 = vmatpush1.bf16.msra.mxu1 %v10183_v63 }
 0x23e   :  { %14906 = vst [vmem:[#allocation91_spill] sm:$0xff] %v12316_v36  ;;  %v899_v37 = vpop.f32.mrb[101].mxu0 }
 0x23f   :  { %2359 = vmatmul.mubr.bf16.gmra.mrb[208].mxu1 %v1910_v16  ;;  %v1915_v16 = vmax.bf16 %v14821_v33, %v1851_v24  ;;  %v12348_v6 = vpop.f32.mrb[102].mxu0  ;;  %v1914_v24 = vmax.bf16 %v14821_v33, %v1850_v7  ;;  %v14916_v7 = vpack.c.bf16 %v12301_v61, %v12297_v53  ;;  %v10188_v53 = vld [vmem:[#allocation4 + $0x84] ss:$8 sps:$4 sm:$0xff]  }
 0x240   :  { %2368 = vmatprep.mubr.bf16.mxu1 %v1913_v60  ;;  %v903_v19 = vpop.f32.mrb[103].mxu0  ;;  %3692 = vmatprep.subr.bf16.mxu1 %v10188_v53 }
 0x241   :  { %v1852_v58 = vadd.bf16 %v11686_v38, %v14916_v7 }
 0x242   :  { %v12332_v29 = vpop.f32.mrb[104].mxu1 }
 0x243   :  { %14908 = vst [vmem:[#allocation92_spill] sm:$0xff] %v12332_v29  ;;  %v12334_v11 = vpop.f32.mrb[105].mxu1  ;;  %v1734_v29 = vpack.c.bf16 %v903_v19, %v899_v37 }
 0x244   :  { %14909 = vst [vmem:[#allocation93_spill] sm:$0xff] %v12334_v11  ;;  %v12336_v4 = vpop.f32.mrb[106].mxu1 }
 0x245   :  { %14910 = vst [vmem:[#allocation94_spill] sm:$0xff] %v12336_v4  ;;  %v12341_v60 = vpop.f32.mrb[107].mxu1 }
 0x246   :  { %14911 = vst [vmem:[#allocation95_spill] sm:$0xff] %v12341_v60  ;;  %v12366_v60 = vpop.f32.mrb[104].mxu0 }
 0x247   :  { %2369 = vmatmul.mubr.bf16.gmra.mrb[212].mxu1 %v1912_v1  ;;  %v1917_v1 = vmax.bf16 %v14821_v33, %v1853_v12  ;;  %v909_v37 = vpop.f32.mrb[105].mxu0  ;;  %v1855_v12 = vadd.bf16 %v11651_v31, %v1729_v15  ;;  %v1854_v15 = vadd.bf16 %v11686_v38, %v1728_v48 }
 0x248   :  { %2378 = vmatprep.mubr.bf16.mxu1 %v1915_v16  ;;  %v12370_v19 = vpop.f32.mrb[106].mxu0 }
 0x249   :  { %v1738_v14 = vpack.c.bf16 %v12370_v19, %v12366_v60  ;;  %v1916_v60 = vmax.bf16 %v14821_v33, %v1852_v58 }
 0x24a   :  { %v12354_v41 = vpop.f32.mrb[108].mxu1 }
 0x24b   :  { %14912 = vst [vmem:[#allocation96_spill] sm:$0xff] %v12354_v41  ;;  %v12356_v4 = vpop.f32.mrb[109].mxu1  ;;  %v913_v41 = vpop.f32.mrb[107].mxu0 }
 0x24c   :  { %14913 = vst [vmem:[#allocation97_spill] sm:$0xff] %v12356_v4  ;;  %v12358_v11 = vpop.f32.mrb[110].mxu1  ;;  %v10186_v4 = vld [vmem:[#allocation4 + $0x80] ss:$8 sps:$4 sm:$0xff]  }
 0x24d   :  { %14914 = vst [vmem:[#allocation98_spill] sm:$0xff] %v12358_v11  ;;  %v12363_v16 = vpop.f32.mrb[111].mxu1  ;;  %v1739_v11 = vpack.c.bf16 %v913_v41, %v909_v37  ;;  %v12391_v19 = vpop.f32.mrb[108].mxu0  ;;  %v1857_v37 = vadd.bf16 %v11651_v31, %v1734_v29  ;;  %3693 = vmatpush1.bf16.msra.mxu1 %v10186_v4 }
 0x24e   :  { %14915 = vst [vmem:[#allocation99_spill] sm:$0xff] %v12363_v16  ;;  %v919_v61 = vpop.f32.mrb[109].mxu0 }
 0x24f   :  { %2379 = vmatmul.mubr.bf16.gmra.mrb[216].mxu1 %v1914_v24  ;;  %v1919_v24 = vmax.bf16 %v14821_v33, %v1855_v12  ;;  %v12395_v41 = vpop.f32.mrb[110].mxu0  ;;  %v1918_v12 = vmax.bf16 %v14821_v33, %v1854_v15  ;;  %v14925_v15 = vpack.c.bf16 %v12348_v6, %v12344_v55  ;;  %v9461_v55 = vld.sshfl [vmem:[%s14930_s25] sm:$0x11 pattern:$0x75316420] }
 0x250   :  { %2388 = vmatprep.mubr.bf16.mxu1 %v1917_v1  ;;  %v923_v7 = vpop.f32.mrb[111].mxu0 }
 0x251   :  { %v1856_v53 = vadd.bf16 %v11686_v38, %v14925_v15 }
 0x252   :  { %v12379_v36 = vpop.f32.mrb[112].mxu1 }
 0x253   :  { %14917 = vst [vmem:[#allocation100_spill] sm:$0xff] %v12379_v36  ;;  %v12381_v13 = vpop.f32.mrb[113].mxu1  ;;  %v1744_v36 = vpack.c.bf16 %v923_v7, %v919_v61  ;;  %v1920_v29 = vmax.bf16 %v14821_v33, %v1856_v53 }
 0x254   :  { %14918 = vst [vmem:[#allocation101_spill] sm:$0xff] %v12381_v13  ;;  %v12383_v63 = vpop.f32.mrb[114].mxu1 }
 0x255   :  { %14919 = vst [vmem:[#allocation102_spill] sm:$0xff] %v12383_v63  ;;  %v12388_v1 = vpop.f32.mrb[115].mxu1 }
 0x256   :  { %14920 = vst [vmem:[#allocation103_spill] sm:$0xff] %v12388_v1  ;;  %v12413_v1 = vpop.f32.mrb[112].mxu0 }
 0x257   :  { %2389 = vmatmul.mubr.bf16.gmra.mrb[220].mxu1 %v1916_v60  ;;  %v1921_v60 = vmax.bf16 %v14821_v33, %v1857_v37  ;;  %v929_v61 = vpop.f32.mrb[113].mxu0  ;;  %v1859_v37 = vadd.bf16 %v11651_v31, %v1739_v11  ;;  %v2552_v11 = vcombine.high %v9461_v55, %v9461_v55 }
 0x258   :  { %2398 = vmatprep.mubr.bf16.mxu1 %v1919_v24  ;;  %v12417_v7 = vpop.f32.mrb[114].mxu0 }
 0x25a   :  { %v12401_v58 = vpop.f32.mrb[116].mxu1 }
 0x25b   :  { %14921 = vst [vmem:[#allocation104_spill] sm:$0xff] %v12401_v58  ;;  %v12403_v63 = vpop.f32.mrb[117].mxu1  ;;  %v933_v58 = vpop.f32.mrb[115].mxu0 }
 0x25c   :  { %14922 = vst [vmem:[#allocation105_spill] sm:$0xff] %v12403_v63  ;;  %v12405_v13 = vpop.f32.mrb[118].mxu1 }
 0x25d   :  { %14923 = vst [vmem:[#allocation106_spill] sm:$0xff] %v12405_v13  ;;  %v12410_v24 = vpop.f32.mrb[119].mxu1  ;;  %v1749_v13 = vpack.c.bf16 %v933_v58, %v929_v61  ;;  %v12441_v6 = vpop.f32.mrb[116].mxu0  ;;  %v2559_v58 = vrot.slane %v9461_v55, %v11601_v42 }
 0x25e   :  { %14924 = vst [vmem:[#allocation107_spill] sm:$0xff] %v12410_v24  ;;  %v939_v61 = vpop.f32.mrb[117].mxu0 }
 0x25f   :  { %2399 = vmatmul.mubr.bf16.gmra.mrb[224].mxu1 %v1918_v12  ;;  %v1923_v12 = vmax.bf16 %v14821_v33, %v1859_v37  ;;  %v12445_v15 = vpop.f32.mrb[118].mxu0  ;;  %v1861_v37 = vadd.bf16 %v11651_v31, %v1744_v36  ;;  %v2568_v50 = vpack.i.b16 %v2559_v58, %v2559_v58 }
 0x260   :  { %2408 = vmatprep.mubr.bf16.mxu1 %v1921_v60 }
 0x261   :  { %v1925_v36 = vmax.bf16 %v14821_v33, %v1861_v37  ;;  %v12479_v58 = vrot.slane %v2568_v50, %v11632_v57 }
 0x262   :  { %v12426_v16 = vpop.f32.mrb[120].mxu1 }
 0x263   :  { %14926 = vst [vmem:[#allocation108_spill] sm:$0xff] %v12426_v16  ;;  %v12428_v48 = vpop.f32.mrb[121].mxu1  ;;  %v943_v16 = vpop.f32.mrb[119].mxu0 }
 0x264   :  { %14927 = vst [vmem:[#allocation109_spill] sm:$0xff] %v12428_v48  ;;  %v12430_v4 = vpop.f32.mrb[122].mxu1  ;;  %v1754_v63 = vpack.c.bf16 %v943_v16, %v939_v61  ;;  %v10191_v48 = vld [vmem:[#allocation4 + $0x94] ss:$8 sps:$4 sm:$0xff]  }
 0x265   :  { %14928 = vst [vmem:[#allocation110_spill] sm:$0xff] %v12430_v4  ;;  %v12435_v60 = vpop.f32.mrb[123].mxu1  ;;  %v1858_v4 = vadd.bf16 %v11686_v38, %v1738_v14  ;;  %v12465_v16 = vpop.f32.mrb[120].mxu0  ;;  %3694 = vmatprep.subr.bf16.mxu1 %v10191_v48  ;;  %v14935_v48 = vpack.c.bf16 %v12395_v41, %v12391_v19 }
 0x266   :  { %14929 = vst [vmem:[#allocation111_spill] sm:$0xff] %v12435_v60  ;;  %v949_v61 = vpop.f32.mrb[121].mxu0 }
 0x267   :  { %2409 = vmatmul.mubr.bf16.gmra.mrb[228].mxu1 %v1920_v29  ;;  %v10189_v29 = vld [vmem:[#allocation4 + $0x90] ss:$8 sps:$4 sm:$0xff]   ;;  %v1922_v14 = vmax.bf16 %v14821_v33, %v1858_v4  ;;  %v12469_v37 = vpop.f32.mrb[122].mxu0 }
 0x268   :  { %2418 = vmatprep.mubr.bf16.mxu1 %v1923_v12  ;;  %v2566_v12 = vrot.slane %v2552_v11, %v11601_v42  ;;  %3695 = vmatpush1.bf16.msra.mxu1 %v10189_v29  ;;  %v1863_v11 = vadd.bf16 %v11651_v31, %v1749_v13  ;;  %v953_v4 = vpop.f32.mrb[123].mxu0 }
 0x269   :  { %v1759_v55 = vpack.c.bf16 %v953_v4, %v949_v61 }
 0x26a   :  { %v12451_v24 = vpop.f32.mrb[124].mxu1  ;;  %v2575_v53 = vpack.i.b16 %v2566_v12, %v2566_v12  ;;  %v1927_v13 = vmax.bf16 %v14821_v33, %v1863_v11 }
 0x26b   :  { %14931 = vst [vmem:[#allocation112_spill] sm:$0xff] %v12451_v24  ;;  %v12453_v2 = vpop.f32.mrb[125].mxu1 }
 0x26c   :  { %14932 = vst [vmem:[#allocation113_spill] sm:$0xff] %v12453_v2  ;;  %v12456_v60 = vpop.f32.mrb[126].mxu1 }
 0x26d   :  { %14933 = vst [vmem:[#allocation114_spill] sm:$0xff] %v12456_v60  ;;  %v12462_v9 = vpop.f32.mrb[127].mxu1  ;;  %v1860_v60 = vadd.bf16 %v11686_v38, %v14935_v48  ;;  %v12486_v8 = vpop.f32.mrb[124].mxu0 }
 0x26e   :  { %14934 = vst [vmem:[#allocation115_spill] sm:$0xff] %v12462_v9  ;;  %v959_v41 = vpop.f32.mrb[125].mxu0 }
 0x26f   :  { %2419 = vmatmul.mubr.bf16.gmra.mrb[232].mxu1 %v1922_v14  ;;  %v1924_v9 = vmax.bf16 %v14821_v33, %v1860_v60  ;;  %v12489_v4 = vpop.f32.mrb[126].mxu0  ;;  %v14936_v60 = vpack.c.bf16 %v12417_v7, %v12413_v1 }
 0x270   :  { %2428 = vmatprep.mubr.bf16.mxu1 %v1925_v36  ;;  %v12482_v36 = vrot.slane %v2575_v53, %v11632_v57  ;;  %v1865_v53 = vadd.bf16 %v11651_v31, %v1754_v63  ;;  %v963_v11 = vpop.f32.mrb[127].mxu0 }
 0x271   :  { %v1764_v48 = vpack.c.bf16 %v963_v11, %v959_v41 }
 0x272   :  { %v2160_v2 = vpop.f32.mrb[128].mxu1  ;;  %v1929_v63 = vmax.bf16 %v14821_v33, %v1865_v53 }
 0x273   :  { %v2162_v29 = vpop.f32.mrb[129].mxu1 }
 0x274   :  { %v2164_v14 = vpop.f32.mrb[130].mxu1 }
 0x275   :  { %v2479_v12 = vpack.c.bf16 %v2164_v14, %v2160_v2  ;;  %v2166_v24 = vpop.f32.mrb[131].mxu1 }
 0x276   :  { %v2480_v19 = vpack.c.bf16 %v2166_v24, %v2162_v29  ;;  %v1862_v24 = vadd.bf16 %v11686_v38, %v14936_v60 }
 0x277   :  { %v2581_v61 = vadd.bf16 %v12479_v58, %v2479_v12  ;;  %2429 = vmatmul.mubr.bf16.gmra.mrb[236].mxu1 %v1924_v9 }
 0x278   :  { %v2582_v50 = vadd.bf16 %v12482_v36, %v2480_v19  ;;  %2438 = vmatprep.mubr.bf16.mxu1 %v1927_v13  ;;  %v10192_v19 = vld [vmem:[#allocation4 + $0xa0] ss:$8 sps:$4 sm:$0xff]   ;;  %v10194_v13 = vld [vmem:[#allocation4 + $0xa4] ss:$8 sps:$4 sm:$0xff]   ;;  %v1926_v1 = vmax.bf16 %v14821_v33, %v1862_v24 }
 0x279   :  { %v2645_v14 = vmax.bf16 %v14821_v33, %v2581_v61  ;;  %3696 = vmatprep.subr.bf16.mxu1 %v10194_v13 }
 0x27a   :  { %v2170_v29 = vpop.f32.mrb[132].mxu1  ;;  %v2646_v9 = vmax.bf16 %v14821_v33, %v2582_v50  ;;  %3697 = vmatpush1.bf16.msra.mxu1 %v10192_v19 }
 0x27b   :  { %v2172_v12 = vpop.f32.mrb[133].mxu1 }
 0x27c   :  { %v2174_v35 = vpop.f32.mrb[134].mxu1  ;;  %2933 = vmatprep.mubr.bf16.mxu0 %v2646_v9  ;;  %v12503_v7 = vpop.f32.mrb[128].mxu0 }
 0x27d   :  { %v2481_v2 = vpack.c.bf16 %v2174_v35, %v2170_v29  ;;  %v2176_v54 = vpop.f32.mrb[135].mxu1  ;;  %2934 = vmatmul.mubr.bf16.vlgmr.msra.gmra.mrb[192].mxu0 %v2645_v14  ;;  %v12505_v11 = vpop.f32.mrb[129].mxu0  ;;  %v1867_v35 = vadd.bf16 %v11651_v31, %v1759_v55 }
 0x27e   :  { %v2482_v41 = vpack.c.bf16 %v2176_v54, %v2172_v12  ;;  %v12508_v50 = vpop.f32.mrb[130].mxu0  ;;  %v14937_v54 = vpack.c.bf16 %v12445_v15, %v12441_v6 }
 0x27f   :  { %v2583_v61 = vadd.bf16 %v12479_v58, %v2481_v2  ;;  %2439 = vmatmul.mubr.bf16.gmra.mrb[240].mxu1 %v1926_v1  ;;  %v12514_v24 = vpop.f32.mrb[131].mxu0  ;;  %v1931_v13 = vmax.bf16 %v14821_v33, %v1867_v35  ;;  %v1869_v35 = vadd.bf16 %v11651_v31, %v1764_v48  ;;  %v10195_v31 = vld [vmem:[#allocation4 + $0xb0] ss:$8 sps:$4 sm:$0xff]   ;;  %v10197_v48 = vld [vmem:[#allocation4 + $0xb4] ss:$8 sps:$4 sm:$0xff]  }
 0x280   :  { %v2584_v60 = vadd.bf16 %v12482_v36, %v2482_v41  ;;  %2448 = vmatprep.mubr.bf16.mxu1 %v1929_v63  ;;  %v1864_v29 = vadd.bf16 %v11686_v38, %v14937_v54  ;;  %3698 = vmatprep.subr.bf16.mxu1 %v10197_v48 }
 0x281   :  { %v2647_v19 = vmax.bf16 %v14821_v33, %v2583_v61  ;;  %3699 = vmatpush1.bf16.msra.mxu1 %v10195_v31 }
 0x282   :  { %v2180_v9 = vpop.f32.mrb[136].mxu1  ;;  %v2648_v14 = vmax.bf16 %v14821_v33, %v2584_v60  ;;  %v1928_v6 = vmax.bf16 %v14821_v33, %v1864_v29  ;;  %v14940_v29 = vpack.c.bf16 %v12469_v37, %v12465_v16 }
 0x283   :  { %v2182_v12 = vpop.f32.mrb[137].mxu1 }
 0x284   :  { %v2184_v55 = vpop.f32.mrb[138].mxu1  ;;  %2943 = vmatprep.mubr.bf16.mxu0 %v2648_v14  ;;  %v12526_v15 = vpop.f32.mrb[132].mxu0 }
 0x285   :  { %v2483_v63 = vpack.c.bf16 %v2184_v55, %v2180_v9  ;;  %v2186_v1 = vpop.f32.mrb[139].mxu1  ;;  %2944 = vmatmul.mubr.bf16.gmra.mrb[196].mxu0 %v2647_v19  ;;  %14938 = vst [vmem:[#allocation116_spill] sm:$0xff] %v12526_v15  ;;  %v12528_v54 = vpop.f32.mrb[133].mxu0 }
 0x286   :  { %v2484_v41 = vpack.c.bf16 %v2186_v1, %v2182_v12  ;;  %v12531_v60 = vpop.f32.mrb[134].mxu0  ;;  %v1866_v12 = vadd.bf16 %v11686_v38, %v14940_v29 }
 0x287   :  { %v2585_v53 = vadd.bf16 %v12479_v58, %v2483_v63  ;;  %2449 = vmatmul.mubr.bf16.gmra.mrb[244].mxu1 %v1928_v6  ;;  %14939 = vst [vmem:[#allocation117_spill] sm:$0xff] %v12531_v60  ;;  %v12537_v14 = vpop.f32.mrb[135].mxu0 }
 0x288   :  { %v2586_v61 = vadd.bf16 %v12482_v36, %v2484_v41  ;;  %2458 = vmatprep.mubr.bf16.mxu1 %v1931_v13  ;;  %v1933_v41 = vmax.bf16 %v14821_v33, %v1869_v35  ;;  %v1930_v16 = vmax.bf16 %v14821_v33, %v1866_v12  ;;  %v14945_v12 = vpack.c.bf16 %v12489_v4, %v12486_v8 }
 0x289   :  { %v2649_v13 = vmax.bf16 %v14821_v33, %v2585_v53 }
 0x28a   :  { %v2190_v55 = vpop.f32.mrb[140].mxu1  ;;  %v2650_v63 = vmax.bf16 %v14821_v33, %v2586_v61 }
 0x28b   :  { %v2192_v1 = vpop.f32.mrb[141].mxu1 }
 0x28c   :  { %v2194_v6 = vpop.f32.mrb[142].mxu1  ;;  %2953 = vmatprep.mubr.bf16.mxu0 %v2650_v63  ;;  %v12549_v37 = vpop.f32.mrb[136].mxu0 }
 0x28d   :  { %v2485_v9 = vpack.c.bf16 %v2194_v6, %v2190_v55  ;;  %v2196_v2 = vpop.f32.mrb[143].mxu1  ;;  %2954 = vmatmul.mubr.bf16.gmra.mrb[200].mxu0 %v2649_v13  ;;  %14941 = vst [vmem:[#allocation118_spill] sm:$0xff] %v12549_v37  ;;  %v12551_v19 = vpop.f32.mrb[137].mxu0 }
 0x28e   :  { %v2486_v29 = vpack.c.bf16 %v2196_v2, %v2192_v1  ;;  %14942 = vst [vmem:[#allocation119_spill] sm:$0xff] %v12551_v19  ;;  %v12554_v61 = vpop.f32.mrb[138].mxu0  ;;  %v1868_v2 = vadd.bf16 %v11686_v38, %v14945_v12 }
 0x28f   :  { %v2587_v53 = vadd.bf16 %v12479_v58, %v2485_v9  ;;  %2459 = vmatmul.mubr.bf16.gmra.mrb[248].mxu1 %v1930_v16  ;;  %14943 = vst [vmem:[#allocation120_spill] sm:$0xff] %v12554_v61  ;;  %v12559_v55 = vpop.f32.mrb[139].mxu0 }
 0x290   :  { %v2588_v63 = vadd.bf16 %v12482_v36, %v2486_v29  ;;  %2468 = vmatprep.mubr.bf16.mxu1 %v1933_v41  ;;  %14944 = vst [vmem:[#allocation121_spill] sm:$0xff] %v12559_v55  ;;  %v1932_v29 = vmax.bf16 %v14821_v33, %v1868_v2 }
 0x291   :  { %v2651_v48 = vmax.bf16 %v14821_v33, %v2587_v53 }
 0x292   :  { %v2200_v9 = vpop.f32.mrb[144].mxu1  ;;  %v2652_v13 = vmax.bf16 %v14821_v33, %v2588_v63 }
 0x293   :  { %v2202_v31 = vpop.f32.mrb[145].mxu1 }
 0x294   :  { %v2204_v6 = vpop.f32.mrb[146].mxu1  ;;  %2963 = vmatprep.mubr.bf16.mxu0 %v2652_v13  ;;  %v12570_v35 = vpop.f32.mrb[140].mxu0 }
 0x295   :  { %v2487_v41 = vpack.c.bf16 %v2204_v6, %v2200_v9  ;;  %v2206_v16 = vpop.f32.mrb[147].mxu1  ;;  %2964 = vmatmul.mubr.bf16.gmra.mrb[204].mxu0 %v2651_v48  ;;  %14946 = vst [vmem:[#allocation122_spill] sm:$0xff] %v12570_v35  ;;  %v12572_v38 = vpop.f32.mrb[141].mxu0 }
 0x296   :  { %v2488_v8 = vpack.c.bf16 %v2206_v16, %v2202_v31  ;;  %14947 = vst [vmem:[#allocation123_spill] sm:$0xff] %v12572_v38  ;;  %v12575_v12 = vpop.f32.mrb[142].mxu0  ;;  %v10200_v16 = vld [vmem:[#allocation4 + $0xc4] ss:$8 sps:$4 sm:$0xff]  }
 0x297   :  { %v2589_v4 = vadd.bf16 %v12479_v58, %v2487_v41  ;;  %2469 = vmatmul.mubr.bf16.gmra.mrb[252].mxu1 %v1932_v29  ;;  %14948 = vst [vmem:[#allocation124_spill] sm:$0xff] %v12575_v12  ;;  %v12580_v9 = vpop.f32.mrb[143].mxu0  ;;  %v10198_v41 = vld [vmem:[#allocation4 + $0xc0] ss:$8 sps:$4 sm:$0xff]   ;;  %3700 = vmatprep.subr.bf16.mxu1 %v10200_v16 }
 0x298   :  { %v2590_v63 = vadd.bf16 %v12482_v36, %v2488_v8  ;;  %14949 = vst [vmem:[#allocation125_spill] sm:$0xff] %v12580_v9  ;;  %3701 = vmatpush1.bf16.msra.mxu1 %v10198_v41 }
 0x299   :  { %v2653_v6 = vmax.bf16 %v14821_v33, %v2589_v4 }
 0x29a   :  { %v2210_v13 = vpop.f32.mrb[148].mxu1  ;;  %v2654_v31 = vmax.bf16 %v14821_v33, %v2590_v63 }
 0x29b   :  { %v2212_v48 = vpop.f32.mrb[149].mxu1 }
 0x29c   :  { %v2214_v29 = vpop.f32.mrb[150].mxu1  ;;  %2973 = vmatprep.mubr.bf16.mxu0 %v2654_v31  ;;  %v12586_v37 = vpop.f32.mrb[144].mxu0 }
 0x29d   :  { %v2489_v1 = vpack.c.bf16 %v2214_v29, %v2210_v13  ;;  %v2216_v8 = vpop.f32.mrb[151].mxu1  ;;  %2974 = vmatmul.mubr.bf16.gmra.mrb[208].mxu0 %v2653_v6  ;;  %14950 = vst [vmem:[#allocation126_spill] sm:$0xff] %v12586_v37  ;;  %v12588_v35 = vpop.f32.mrb[145].mxu0 }
 0x29e   :  { %v2490_v53 = vpack.c.bf16 %v2216_v8, %v2212_v48  ;;  %14951 = vst [vmem:[#allocation127_spill] sm:$0xff] %v12588_v35  ;;  %v12591_v63 = vpop.f32.mrb[146].mxu0 }
 0x29f   :  { %v2591_v2 = vadd.bf16 %v12479_v58, %v2489_v1  ;;  %14952 = vst [vmem:[#allocation128_spill] sm:$0xff] %v12591_v63  ;;  %v12596_v31 = vpop.f32.mrb[147].mxu0 }
 0x2a0   :  { %v2592_v4 = vadd.bf16 %v12482_v36, %v2490_v53  ;;  %14953 = vst [vmem:[#allocation129_spill] sm:$0xff] %v12596_v31 }
 0x2a1   :  { %v2655_v41 = vmax.bf16 %v14821_v33, %v2591_v2 }
 0x2a2   :  { %v2220_v6 = vpop.f32.mrb[152].mxu1  ;;  %v2656_v48 = vmax.bf16 %v14821_v33, %v2592_v4 }
 0x2a3   :  { %v2222_v16 = vpop.f32.mrb[153].mxu1 }
 0x2a4   :  { %v2224_v29 = vpop.f32.mrb[154].mxu1  ;;  %2983 = vmatprep.mubr.bf16.mxu0 %v2656_v48  ;;  %v12602_v53 = vpop.f32.mrb[148].mxu0 }
 0x2a5   :  { %v2491_v1 = vpack.c.bf16 %v2224_v29, %v2220_v6  ;;  %v2226_v8 = vpop.f32.mrb[155].mxu1  ;;  %2984 = vmatmul.mubr.bf16.gmra.mrb[212].mxu0 %v2655_v41  ;;  %14954 = vst [vmem:[#allocation130_spill] sm:$0xff] %v12602_v53  ;;  %v12604_v12 = vpop.f32.mrb[149].mxu0 }
 0x2a6   :  { %v2492_v38 = vpack.c.bf16 %v2226_v8, %v2222_v16  ;;  %14955 = vst [vmem:[#allocation131_spill] sm:$0xff] %v12604_v12  ;;  %v12607_v63 = vpop.f32.mrb[150].mxu0  ;;  %v10201_v8 = vld [vmem:[#allocation4 + $0xd0] ss:$8 sps:$4 sm:$0xff]  }
 0x2a7   :  { %v2593_v37 = vadd.bf16 %v12479_v58, %v2491_v1  ;;  %14956 = vst [vmem:[#allocation132_spill] sm:$0xff] %v12607_v63  ;;  %v12612_v2 = vpop.f32.mrb[151].mxu0  ;;  %v10203_v1 = vld [vmem:[#allocation4 + $0xd4] ss:$8 sps:$4 sm:$0xff]  }
 0x2a8   :  { %v2594_v13 = vadd.bf16 %v12482_v36, %v2492_v38  ;;  %14957 = vst [vmem:[#allocation133_spill] sm:$0xff] %v12612_v2  ;;  %3702 = vmatprep.subr.bf16.mxu1 %v10203_v1 }
 0x2a9   :  { %v2657_v29 = vmax.bf16 %v14821_v33, %v2593_v37  ;;  %3703 = vmatpush1.bf16.msra.mxu1 %v10201_v8 }
 0x2aa   :  { %v2230_v48 = vpop.f32.mrb[156].mxu1  ;;  %v2658_v41 = vmax.bf16 %v14821_v33, %v2594_v13 }
 0x2ab   :  { %v2232_v16 = vpop.f32.mrb[157].mxu1 }
 0x2ac   :  { %v2234_v35 = vpop.f32.mrb[158].mxu1  ;;  %2993 = vmatprep.mubr.bf16.mxu0 %v2658_v41  ;;  %v12618_v9 = vpop.f32.mrb[152].mxu0 }
 0x2ad   :  { %v2493_v31 = vpack.c.bf16 %v2234_v35, %v2230_v48  ;;  %v2236_v38 = vpop.f32.mrb[159].mxu1  ;;  %2994 = vmatmul.mubr.bf16.gmra.mrb[216].mxu0 %v2657_v29  ;;  %14958 = vst [vmem:[#allocation134_spill] sm:$0xff] %v12618_v9  ;;  %v12620_v53 = vpop.f32.mrb[153].mxu0 }
 0x2ae   :  { %v2494_v4 = vpack.c.bf16 %v2236_v38, %v2232_v16  ;;  %14959 = vst [vmem:[#allocation135_spill] sm:$0xff] %v12620_v53  ;;  %v12623_v13 = vpop.f32.mrb[154].mxu0  ;;  %v10207_v53 = vld [vmem:[#allocation4 + $0xe0] ss:$8 sps:$4 sm:$0xff]  }
 0x2af   :  { %v2595_v6 = vadd.bf16 %v12479_v58, %v2493_v31  ;;  %14960 = vst [vmem:[#allocation136_spill] sm:$0xff] %v12623_v13  ;;  %v12628_v41 = vpop.f32.mrb[155].mxu0 }
 0x2b0   :  { %v2596_v37 = vadd.bf16 %v12482_v36, %v2494_v4  ;;  %14961 = vst [vmem:[#allocation137_spill] sm:$0xff] %v12628_v41  ;;  %v10209_v41 = vld [vmem:[#allocation4 + $0xe4] ss:$8 sps:$4 sm:$0xff]  }
 0x2b1   :  { %v2659_v8 = vmax.bf16 %v14821_v33, %v2595_v6  ;;  %3704 = vmatprep.subr.bf16.mxu1 %v10209_v41 }
 0x2b2   :  { %v2240_v48 = vpop.f32.mrb[160].mxu1  ;;  %v2660_v16 = vmax.bf16 %v14821_v33, %v2596_v37  ;;  %3705 = vmatpush1.bf16.msra.mxu1 %v10207_v53 }
 0x2b3   :  { %v2242_v29 = vpop.f32.mrb[161].mxu1 }
 0x2b4   :  { %v2244_v1 = vpop.f32.mrb[162].mxu1  ;;  %3003 = vmatprep.mubr.bf16.mxu0 %v2660_v16  ;;  %v12634_v4 = vpop.f32.mrb[156].mxu0  ;;  %v10204_v16 = vld [vmem:[#allocation6] ss:$8 sps:$4 sm:$0xff]  }
 0x2b5   :  { %v2495_v31 = vpack.c.bf16 %v2244_v1, %v2240_v48  ;;  %v2246_v38 = vpop.f32.mrb[163].mxu1  ;;  %3004 = vmatmul.mubr.bf16.gmra.mrb[220].mxu0 %v2659_v8  ;;  %14962 = vst [vmem:[#allocation138_spill] sm:$0xff] %v12634_v4  ;;  %v12636_v63 = vpop.f32.mrb[157].mxu0  ;;  %v10206_v8 = vld [vmem:[#allocation6 + $0x4] ss:$8 sps:$4 sm:$0xff]  }
 0x2b6   :  { %v2496_v12 = vpack.c.bf16 %v2246_v38, %v2242_v29  ;;  %14963 = vst [vmem:[#allocation139_spill] sm:$0xff] %v12636_v63  ;;  %v12639_v13 = vpop.f32.mrb[158].mxu0  ;;  %4451 = vmatprep.subr.bf16.mxu0 %v10206_v8 }
 0x2b7   :  { %v2597_v9 = vadd.bf16 %v12479_v58, %v2495_v31  ;;  %14964 = vst [vmem:[#allocation140_spill] sm:$0xff] %v12639_v13  ;;  %v12644_v6 = vpop.f32.mrb[159].mxu0  ;;  %4452 = vmatpush1.bf16.msra.mxu0 %v10204_v16 }
 0x2b8   :  { %v2598_v35 = vadd.bf16 %v12482_v36, %v2496_v12  ;;  %14965 = vst [vmem:[#allocation141_spill] sm:$0xff] %v12644_v6 }
 0x2b9   :  { %v2661_v31 = vmax.bf16 %v14821_v33, %v2597_v9 }
 0x2ba   :  { %v2250_v1 = vpop.f32.mrb[164].mxu1  ;;  %v2662_v29 = vmax.bf16 %v14821_v33, %v2598_v35 }
 0x2bb   :  { %v2252_v38 = vpop.f32.mrb[165].mxu1 }
 0x2bc   :  { %v2254_v12 = vpop.f32.mrb[166].mxu1  ;;  %3013 = vmatprep.mubr.bf16.mxu0 %v2662_v29  ;;  %v12650_v13 = vpop.f32.mrb[160].mxu0 }
 0x2bd   :  { %v2497_v37 = vpack.c.bf16 %v2254_v12, %v2250_v1  ;;  %v2256_v4 = vpop.f32.mrb[167].mxu1  ;;  %3014 = vmatmul.mubr.bf16.gmra.mrb[224].mxu0 %v2661_v31  ;;  %14966 = vst [vmem:[#allocation142_spill] sm:$0xff] %v12650_v13  ;;  %v12652_v63 = vpop.f32.mrb[161].mxu0 }
 0x2be   :  { %v2498_v48 = vpack.c.bf16 %v2256_v4, %v2252_v38  ;;  %14967 = vst [vmem:[#allocation143_spill] sm:$0xff] %v12652_v63  ;;  %v12655_v6 = vpop.f32.mrb[162].mxu0  ;;  %v10213_v63 = vld [vmem:[#allocation4 + $0xf0] ss:$8 sps:$4 sm:$0xff]  }
 0x2bf   :  { %v2599_v35 = vadd.bf16 %v12479_v58, %v2497_v37  ;;  %14968 = vst [vmem:[#allocation144_spill] sm:$0xff] %v12655_v6  ;;  %v12660_v16 = vpop.f32.mrb[163].mxu0 }
 0x2c0   :  { %v2600_v9 = vadd.bf16 %v12482_v36, %v2498_v48  ;;  %14969 = vst [vmem:[#allocation145_spill] sm:$0xff] %v12660_v16  ;;  %v10215_v16 = vld [vmem:[#allocation4 + $0xf4] ss:$8 sps:$4 sm:$0xff]  }
 0x2c1   :  { %v2663_v53 = vmax.bf16 %v14821_v33, %v2599_v35  ;;  %3706 = vmatprep.subr.bf16.mxu1 %v10215_v16 }
 0x2c2   :  { %v2260_v29 = vpop.f32.mrb[168].mxu1  ;;  %v2664_v41 = vmax.bf16 %v14821_v33, %v2600_v9  ;;  %3707 = vmatpush1.bf16.msra.mxu1 %v10213_v63 }
 0x2c3   :  { %v2262_v4 = vpop.f32.mrb[169].mxu1 }
 0x2c4   :  { %v2264_v38 = vpop.f32.mrb[170].mxu1  ;;  %3023 = vmatprep.mubr.bf16.mxu0 %v2664_v41  ;;  %v12666_v48 = vpop.f32.mrb[164].mxu0  ;;  %v10210_v41 = vld [vmem:[#allocation6 + $0x10] ss:$8 sps:$4 sm:$0xff]  }
 0x2c5   :  { %v2499_v37 = vpack.c.bf16 %v2264_v38, %v2260_v29  ;;  %v2266_v31 = vpop.f32.mrb[171].mxu1  ;;  %3024 = vmatmul.mubr.bf16.gmra.mrb[228].mxu0 %v2663_v53  ;;  %14970 = vst [vmem:[#allocation146_spill] sm:$0xff] %v12666_v48  ;;  %v12668_v8 = vpop.f32.mrb[165].mxu0  ;;  %v10212_v53 = vld [vmem:[#allocation6 + $0x14] ss:$8 sps:$4 sm:$0xff]  }
 0x2c6   :  { %v2500_v12 = vpack.c.bf16 %v2266_v31, %v2262_v4  ;;  %14971 = vst [vmem:[#allocation147_spill] sm:$0xff] %v12668_v8  ;;  %v12671_v6 = vpop.f32.mrb[166].mxu0  ;;  %4453 = vmatprep.subr.bf16.mxu0 %v10212_v53 }
 0x2c7   :  { %v2601_v13 = vadd.bf16 %v12479_v58, %v2499_v37  ;;  %14972 = vst [vmem:[#allocation148_spill] sm:$0xff] %v12671_v6  ;;  %v12676_v35 = vpop.f32.mrb[167].mxu0  ;;  %4454 = vmatpush1.bf16.msra.mxu0 %v10210_v41 }
 0x2c8   :  { %v2602_v1 = vadd.bf16 %v12482_v36, %v2500_v12  ;;  %14973 = vst [vmem:[#allocation149_spill] sm:$0xff] %v12676_v35 }
 0x2c9   :  { %v2665_v37 = vmax.bf16 %v14821_v33, %v2601_v13 }
 0x2ca   :  { %v2270_v38 = vpop.f32.mrb[172].mxu1  ;;  %v2666_v4 = vmax.bf16 %v14821_v33, %v2602_v1 }
 0x2cb   :  { %v2272_v31 = vpop.f32.mrb[173].mxu1 }
 0x2cc   :  { %v2274_v12 = vpop.f32.mrb[174].mxu1  ;;  %3033 = vmatprep.mubr.bf16.mxu0 %v2666_v4  ;;  %v12682_v6 = vpop.f32.mrb[168].mxu0 }
 0x2cd   :  { %v2501_v9 = vpack.c.bf16 %v2274_v12, %v2270_v38  ;;  %v2276_v48 = vpop.f32.mrb[175].mxu1  ;;  %3034 = vmatmul.mubr.bf16.gmra.mrb[232].mxu0 %v2665_v37  ;;  %14974 = vst [vmem:[#allocation150_spill] sm:$0xff] %v12682_v6  ;;  %v12684_v8 = vpop.f32.mrb[169].mxu0 }
 0x2ce   :  { %v2502_v29 = vpack.c.bf16 %v2276_v48, %v2272_v31  ;;  %14975 = vst [vmem:[#allocation151_spill] sm:$0xff] %v12684_v8  ;;  %v12687_v35 = vpop.f32.mrb[170].mxu0 }
 0x2cf   :  { %v2603_v1 = vadd.bf16 %v12479_v58, %v2501_v9  ;;  %14976 = vst [vmem:[#allocation152_spill] sm:$0xff] %v12687_v35  ;;  %v12692_v41 = vpop.f32.mrb[171].mxu0 }
 0x2d0   :  { %v2604_v13 = vadd.bf16 %v12482_v36, %v2502_v29  ;;  %14977 = vst [vmem:[#allocation153_spill] sm:$0xff] %v12692_v41 }
 0x2d1   :  { %v2667_v63 = vmax.bf16 %v14821_v33, %v2603_v1 }
 0x2d2   :  { %v2280_v4 = vpop.f32.mrb[176].mxu1  ;;  %v2668_v16 = vmax.bf16 %v14821_v33, %v2604_v13 }
 0x2d3   :  { %v2282_v48 = vpop.f32.mrb[177].mxu1 }
 0x2d4   :  { %v2284_v31 = vpop.f32.mrb[178].mxu1  ;;  %3043 = vmatprep.mubr.bf16.mxu0 %v2668_v16  ;;  %v12698_v29 = vpop.f32.mrb[172].mxu0  ;;  %v10216_v16 = vld [vmem:[#allocation6 + $0x20] ss:$8 sps:$4 sm:$0xff]  }
 0x2d5   :  { %v2503_v9 = vpack.c.bf16 %v2284_v31, %v2280_v4  ;;  %v2286_v37 = vpop.f32.mrb[179].mxu1  ;;  %3044 = vmatmul.mubr.bf16.gmra.mrb[236].mxu0 %v2667_v63  ;;  %14978 = vst [vmem:[#allocation154_spill] sm:$0xff] %v12698_v29  ;;  %v12700_v53 = vpop.f32.mrb[173].mxu0  ;;  %v10218_v63 = vld [vmem:[#allocation6 + $0x24] ss:$8 sps:$4 sm:$0xff]  }
 0x2d6   :  { %v2504_v12 = vpack.c.bf16 %v2286_v37, %v2282_v48  ;;  %14979 = vst [vmem:[#allocation155_spill] sm:$0xff] %v12700_v53  ;;  %v12703_v35 = vpop.f32.mrb[174].mxu0  ;;  %4455 = vmatprep.subr.bf16.mxu0 %v10218_v63 }
 0x2d7   :  { %v2605_v6 = vadd.bf16 %v12479_v58, %v2503_v9  ;;  %14980 = vst [vmem:[#allocation156_spill] sm:$0xff] %v12703_v35  ;;  %v12708_v1 = vpop.f32.mrb[175].mxu0  ;;  %4456 = vmatpush1.bf16.msra.mxu0 %v10216_v16 }
 0x2d8   :  { %v2606_v38 = vadd.bf16 %v12482_v36, %v2504_v12  ;;  %14981 = vst [vmem:[#allocation157_spill] sm:$0xff] %v12708_v1 }
 0x2d9   :  { %v2669_v9 = vmax.bf16 %v14821_v33, %v2605_v6 }
 0x2da   :  { %v2290_v31 = vpop.f32.mrb[180].mxu1  ;;  %v2670_v48 = vmax.bf16 %v14821_v33, %v2606_v38 }
 0x2db   :  { %v2292_v37 = vpop.f32.mrb[181].mxu1 }
 0x2dc   :  { %v2294_v8 = vpop.f32.mrb[182].mxu1  ;;  %3053 = vmatprep.mubr.bf16.mxu0 %v2670_v48  ;;  %v12714_v13 = vpop.f32.mrb[176].mxu0 }
 0x2dd   :  { %v2505_v12 = vpack.c.bf16 %v2294_v8, %v2290_v31  ;;  %v2296_v41 = vpop.f32.mrb[183].mxu1  ;;  %3054 = vmatmul.mubr.bf16.gmra.mrb[240].mxu0 %v2669_v9  ;;  %14982 = vst [vmem:[#allocation158_spill] sm:$0xff] %v12714_v13  ;;  %v12716_v35 = vpop.f32.mrb[177].mxu0 }
 0x2de   :  { %v2506_v29 = vpack.c.bf16 %v2296_v41, %v2292_v37  ;;  %14983 = vst [vmem:[#allocation159_spill] sm:$0xff] %v12716_v35  ;;  %v12719_v53 = vpop.f32.mrb[178].mxu0 }
 0x2df   :  { %v2607_v4 = vadd.bf16 %v12479_v58, %v2505_v12  ;;  %14984 = vst [vmem:[#allocation160_spill] sm:$0xff] %v12719_v53  ;;  %v12724_v63 = vpop.f32.mrb[179].mxu0 }
 0x2e0   :  { %v2608_v38 = vadd.bf16 %v12482_v36, %v2506_v29  ;;  %14985 = vst [vmem:[#allocation161_spill] sm:$0xff] %v12724_v63 }
 0x2e1   :  { %v2671_v48 = vmax.bf16 %v14821_v33, %v2607_v4 }
 0x2e2   :  { %v2300_v16 = vpop.f32.mrb[184].mxu1  ;;  %v2672_v31 = vmax.bf16 %v14821_v33, %v2608_v38 }
 0x2e3   :  { %v2302_v41 = vpop.f32.mrb[185].mxu1 }
 0x2e4   :  { %v2304_v37 = vpop.f32.mrb[186].mxu1  ;;  %3063 = vmatprep.mubr.bf16.mxu0 %v2672_v31  ;;  %v12730_v29 = vpop.f32.mrb[180].mxu0  ;;  %v10219_v31 = vld [vmem:[#allocation6 + $0x30] ss:$8 sps:$4 sm:$0xff]  }
 0x2e5   :  { %v2507_v9 = vpack.c.bf16 %v2304_v37, %v2300_v16  ;;  %v2306_v12 = vpop.f32.mrb[187].mxu1  ;;  %3064 = vmatmul.mubr.bf16.gmra.mrb[244].mxu0 %v2671_v48  ;;  %14986 = vst [vmem:[#allocation162_spill] sm:$0xff] %v12730_v29  ;;  %v12732_v6 = vpop.f32.mrb[181].mxu0  ;;  %v10221_v48 = vld [vmem:[#allocation6 + $0x34] ss:$8 sps:$4 sm:$0xff]  }
 0x2e6   :  { %v2508_v1 = vpack.c.bf16 %v2306_v12, %v2302_v41  ;;  %14987 = vst [vmem:[#allocation163_spill] sm:$0xff] %v12732_v6  ;;  %v12735_v53 = vpop.f32.mrb[182].mxu0  ;;  %4457 = vmatprep.subr.bf16.mxu0 %v10221_v48 }
 0x2e7   :  { %v2609_v13 = vadd.bf16 %v12479_v58, %v2507_v9  ;;  %14988 = vst [vmem:[#allocation164_spill] sm:$0xff] %v12735_v53  ;;  %v12740_v4 = vpop.f32.mrb[183].mxu0  ;;  %4458 = vmatpush1.bf16.msra.mxu0 %v10219_v31 }
 0x2e8   :  { %v2610_v8 = vadd.bf16 %v12482_v36, %v2508_v1  ;;  %14989 = vst [vmem:[#allocation165_spill] sm:$0xff] %v12740_v4 }
 0x2e9   :  { %v2673_v9 = vmax.bf16 %v14821_v33, %v2609_v13 }
 0x2ea   :  { %v2310_v37 = vpop.f32.mrb[188].mxu1  ;;  %v2674_v41 = vmax.bf16 %v14821_v33, %v2610_v8 }
 0x2eb   :  { %v2312_v12 = vpop.f32.mrb[189].mxu1 }
 0x2ec   :  { %v2314_v35 = vpop.f32.mrb[190].mxu1  ;;  %3073 = vmatprep.mubr.bf16.mxu0 %v2674_v41  ;;  %v12746_v38 = vpop.f32.mrb[184].mxu0 }
 0x2ed   :  { %v2509_v1 = vpack.c.bf16 %v2314_v35, %v2310_v37  ;;  %v2316_v63 = vpop.f32.mrb[191].mxu1  ;;  %3074 = vmatmul.mubr.bf16.gmra.mrb[248].mxu0 %v2673_v9  ;;  %14990 = vst [vmem:[#allocation166_spill] sm:$0xff] %v12746_v38  ;;  %v12748_v53 = vpop.f32.mrb[185].mxu0 }
 0x2ee   :  { %v2510_v29 = vpack.c.bf16 %v2316_v63, %v2312_v12  ;;  %14991 = vst [vmem:[#allocation167_spill] sm:$0xff] %v12748_v53  ;;  %v12751_v6 = vpop.f32.mrb[186].mxu0 }
 0x2ef   :  { %v2611_v16 = vadd.bf16 %v12479_v58, %v2509_v1  ;;  %14992 = vst [vmem:[#allocation168_spill] sm:$0xff] %v12751_v6  ;;  %v12756_v48 = vpop.f32.mrb[187].mxu0 }
 0x2f0   :  { %v2612_v8 = vadd.bf16 %v12482_v36, %v2510_v29  ;;  %14993 = vst [vmem:[#allocation169_spill] sm:$0xff] %v12756_v48 }
 0x2f1   :  { %v2675_v41 = vmax.bf16 %v14821_v33, %v2611_v16 }
 0x2f2   :  { %v2320_v31 = vpop.f32.mrb[192].mxu1  ;;  %v2676_v37 = vmax.bf16 %v14821_v33, %v2612_v8 }
 0x2f3   :  { %v2322_v63 = vpop.f32.mrb[193].mxu1 }
 0x2f4   :  { %v2324_v12 = vpop.f32.mrb[194].mxu1  ;;  %3083 = vmatprep.mubr.bf16.mxu0 %v2676_v37  ;;  %v12762_v29 = vpop.f32.mrb[188].mxu0  ;;  %v10222_v37 = vld [vmem:[#allocation6 + $0x40] ss:$8 sps:$4 sm:$0xff]  }
 0x2f5   :  { %v2511_v9 = vpack.c.bf16 %v2324_v12, %v2320_v31  ;;  %v2326_v1 = vpop.f32.mrb[195].mxu1  ;;  %3084 = vmatmul.mubr.bf16.gmra.mrb[252].mxu0 %v2675_v41  ;;  %14994 = vst [vmem:[#allocation170_spill] sm:$0xff] %v12762_v29  ;;  %v12764_v13 = vpop.f32.mrb[189].mxu0  ;;  %v10224_v41 = vld [vmem:[#allocation6 + $0x44] ss:$8 sps:$4 sm:$0xff]  }
 0x2f6   :  { %v2512_v4 = vpack.c.bf16 %v2326_v1, %v2322_v63  ;;  %14995 = vst [vmem:[#allocation171_spill] sm:$0xff] %v12764_v13  ;;  %v12767_v6 = vpop.f32.mrb[190].mxu0  ;;  %4459 = vmatprep.subr.bf16.mxu0 %v10224_v41 }
 0x2f7   :  { %v2613_v38 = vadd.bf16 %v12479_v58, %v2511_v9  ;;  %14996 = vst [vmem:[#allocation172_spill] sm:$0xff] %v12767_v6  ;;  %v12772_v16 = vpop.f32.mrb[191].mxu0  ;;  %4460 = vmatpush1.bf16.msra.mxu0 %v10222_v37 }
 0x2f8   :  { %v2614_v35 = vadd.bf16 %v12482_v36, %v2512_v4  ;;  %14997 = vst [vmem:[#allocation173_spill] sm:$0xff] %v12772_v16 }
 0x2f9   :  { %v2677_v1 = vmax.bf16 %v14821_v33, %v2613_v38 }
 0x2fa   :  { %v2330_v12 = vpop.f32.mrb[196].mxu1  ;;  %v2678_v63 = vmax.bf16 %v14821_v33, %v2614_v35 }
 0x2fb   :  { %v2332_v9 = vpop.f32.mrb[197].mxu1 }
 0x2fc   :  { %v2334_v53 = vpop.f32.mrb[198].mxu1  ;;  %3093 = vmatprep.mubr.bf16.mxu0 %v2678_v63  ;;  %v10227_v63 = vld [vmem:[#allocation6 + $0x54] ss:$8 sps:$4 sm:$0xff]  }
 0x2fd   :  { %v2513_v4 = vpack.c.bf16 %v2334_v53, %v2330_v12  ;;  %v2336_v48 = vpop.f32.mrb[199].mxu1  ;;  %3094 = vmatmul.mubr.bf16.gmra.mrb[0].mxu0 %v2677_v1  ;;  %v10225_v12 = vld [vmem:[#allocation6 + $0x50] ss:$8 sps:$4 sm:$0xff]   ;;  %4461 = vmatprep.subr.bf16.mxu0 %v10227_v63 }
 0x2fe   :  { %v2514_v8 = vpack.c.bf16 %v2336_v48, %v2332_v9  ;;  %4462 = vmatpush1.bf16.msra.mxu0 %v10225_v12 }
 0x2ff   :  { %v2615_v29 = vadd.bf16 %v12479_v58, %v2513_v4 }
 0x300   :  { %v2616_v31 = vadd.bf16 %v12482_v36, %v2514_v8 }
 0x301   :  { %v2679_v35 = vmax.bf16 %v14821_v33, %v2615_v29 }
 0x302   :  { %v2340_v6 = vpop.f32.mrb[200].mxu1  ;;  %v2680_v13 = vmax.bf16 %v14821_v33, %v2616_v31 }
 0x303   :  { %v2342_v16 = vpop.f32.mrb[201].mxu1 }
 0x304   :  { %v2344_v38 = vpop.f32.mrb[202].mxu1  ;;  %3103 = vmatprep.mubr.bf16.mxu0 %v2680_v13 }
 0x305   :  { %v2515_v41 = vpack.c.bf16 %v2344_v38, %v2340_v6  ;;  %v2346_v2 = vpop.f32.mrb[203].mxu1  ;;  %3104 = vmatmul.mubr.bf16.gmra.mrb[4].mxu0 %v2679_v35 }
 0x306   :  { %v2516_v37 = vpack.c.bf16 %v2346_v2, %v2342_v16 }
 0x307   :  { %v2617_v53 = vadd.bf16 %v12479_v58, %v2515_v41 }
 0x308   :  { %v2618_v48 = vadd.bf16 %v12482_v36, %v2516_v37 }
 0x309   :  { %v2681_v31 = vmax.bf16 %v14821_v33, %v2617_v53 }
 0x30a   :  { %v2350_v1 = vpop.f32.mrb[204].mxu1  ;;  %v2682_v8 = vmax.bf16 %v14821_v33, %v2618_v48 }
 0x30b   :  { %v2352_v9 = vpop.f32.mrb[205].mxu1 }
 0x30c   :  { %v2354_v29 = vpop.f32.mrb[206].mxu1  ;;  %3113 = vmatprep.mubr.bf16.mxu0 %v2682_v8 }
 0x30d   :  { %v2517_v6 = vpack.c.bf16 %v2354_v29, %v2350_v1  ;;  %v2356_v13 = vpop.f32.mrb[207].mxu1  ;;  %3114 = vmatmul.mubr.bf16.gmra.mrb[8].mxu0 %v2681_v31  ;;  %v10228_v31 = vld [vmem:[#allocation6 + $0x60] ss:$8 sps:$4 sm:$0xff]  }
 0x30e   :  { %v2518_v2 = vpack.c.bf16 %v2356_v13, %v2352_v9  ;;  %v10230_v9 = vld [vmem:[#allocation6 + $0x64] ss:$8 sps:$4 sm:$0xff]  }
 0x30f   :  { %v2619_v16 = vadd.bf16 %v12479_v58, %v2517_v6  ;;  %4463 = vmatprep.subr.bf16.mxu0 %v10230_v9 }
 0x310   :  { %v2620_v4 = vadd.bf16 %v12482_v36, %v2518_v2  ;;  %4464 = vmatpush1.bf16.msra.mxu0 %v10228_v31 }
 0x311   :  { %v2683_v41 = vmax.bf16 %v14821_v33, %v2619_v16 }
 0x312   :  { %v2360_v35 = vpop.f32.mrb[208].mxu1  ;;  %v2684_v38 = vmax.bf16 %v14821_v33, %v2620_v4 }
 0x313   :  { %v2362_v37 = vpop.f32.mrb[209].mxu1 }
 0x314   :  { %v2364_v53 = vpop.f32.mrb[210].mxu1  ;;  %3123 = vmatprep.mubr.bf16.mxu0 %v2684_v38 }
 0x315   :  { %v2519_v48 = vpack.c.bf16 %v2364_v53, %v2360_v35  ;;  %v2366_v63 = vpop.f32.mrb[211].mxu1  ;;  %3124 = vmatmul.mubr.bf16.gmra.mrb[12].mxu0 %v2683_v41 }
 0x316   :  { %v2520_v12 = vpack.c.bf16 %v2366_v63, %v2362_v37 }
 0x317   :  { %v2621_v1 = vadd.bf16 %v12479_v58, %v2519_v48 }
 0x318   :  { %v2622_v8 = vadd.bf16 %v12482_v36, %v2520_v12 }
 0x319   :  { %v2685_v13 = vmax.bf16 %v14821_v33, %v2621_v1 }
 0x31a   :  { %v2370_v29 = vpop.f32.mrb[212].mxu1  ;;  %v2686_v6 = vmax.bf16 %v14821_v33, %v2622_v8 }
 0x31b   :  { %v2372_v2 = vpop.f32.mrb[213].mxu1 }
 0x31c   :  { %v2374_v16 = vpop.f32.mrb[214].mxu1  ;;  %3133 = vmatprep.mubr.bf16.mxu0 %v2686_v6 }
 0x31d   :  { %v2521_v4 = vpack.c.bf16 %v2374_v16, %v2370_v29  ;;  %v2376_v35 = vpop.f32.mrb[215].mxu1  ;;  %3134 = vmatmul.mubr.bf16.gmra.mrb[16].mxu0 %v2685_v13  ;;  %v10231_v13 = vld [vmem:[#allocation6 + $0x70] ss:$8 sps:$4 sm:$0xff]  }
 0x31e   :  { %v2522_v38 = vpack.c.bf16 %v2376_v35, %v2372_v2  ;;  %v10233_v2 = vld [vmem:[#allocation6 + $0x74] ss:$8 sps:$4 sm:$0xff]  }
 0x31f   :  { %v2623_v41 = vadd.bf16 %v12479_v58, %v2521_v4  ;;  %4465 = vmatprep.subr.bf16.mxu0 %v10233_v2 }
 0x320   :  { %v2624_v37 = vadd.bf16 %v12482_v36, %v2522_v38  ;;  %4466 = vmatpush1.bf16.msra.mxu0 %v10231_v13 }
 0x321   :  { %v2687_v63 = vmax.bf16 %v14821_v33, %v2623_v41 }
 0x322   :  { %v2380_v53 = vpop.f32.mrb[216].mxu1  ;;  %v2688_v48 = vmax.bf16 %v14821_v33, %v2624_v37 }
 0x323   :  { %v2382_v12 = vpop.f32.mrb[217].mxu1 }
 0x324   :  { %v2384_v1 = vpop.f32.mrb[218].mxu1  ;;  %3143 = vmatprep.mubr.bf16.mxu0 %v2688_v48 }
 0x325   :  { %v2523_v8 = vpack.c.bf16 %v2384_v1, %v2380_v53  ;;  %v2386_v9 = vpop.f32.mrb[219].mxu1  ;;  %3144 = vmatmul.mubr.bf16.gmra.mrb[20].mxu0 %v2687_v63 }
 0x326   :  { %v2524_v31 = vpack.c.bf16 %v2386_v9, %v2382_v12 }
 0x327   :  { %v2625_v29 = vadd.bf16 %v12479_v58, %v2523_v8 }
 0x328   :  { %v2626_v6 = vadd.bf16 %v12482_v36, %v2524_v31 }
 0x329   :  { %v2689_v35 = vmax.bf16 %v14821_v33, %v2625_v29 }
 0x32a   :  { %v2390_v16 = vpop.f32.mrb[220].mxu1  ;;  %v2690_v4 = vmax.bf16 %v14821_v33, %v2626_v6 }
 0x32b   :  { %v2392_v38 = vpop.f32.mrb[221].mxu1 }
 0x32c   :  { %v2394_v41 = vpop.f32.mrb[222].mxu1  ;;  %3153 = vmatprep.mubr.bf16.mxu0 %v2690_v4 }
 0x32d   :  { %v2525_v37 = vpack.c.bf16 %v2394_v41, %v2390_v16  ;;  %v2396_v53 = vpop.f32.mrb[223].mxu1  ;;  %3154 = vmatmul.mubr.bf16.gmra.mrb[24].mxu0 %v2689_v35  ;;  %v10234_v35 = vld [vmem:[#allocation6 + $0x80] ss:$8 sps:$4 sm:$0xff]  }
 0x32e   :  { %v2526_v48 = vpack.c.bf16 %v2396_v53, %v2392_v38  ;;  %v10236_v38 = vld [vmem:[#allocation6 + $0x84] ss:$8 sps:$4 sm:$0xff]  }
 0x32f   :  { %v2627_v63 = vadd.bf16 %v12479_v58, %v2525_v37  ;;  %4467 = vmatprep.subr.bf16.mxu0 %v10236_v38 }
 0x330   :  { %v2628_v12 = vadd.bf16 %v12482_v36, %v2526_v48  ;;  %4468 = vmatpush1.bf16.msra.mxu0 %v10234_v35 }
 0x331   :  { %v2691_v9 = vmax.bf16 %v14821_v33, %v2627_v63 }
 0x332   :  { %v2400_v1 = vpop.f32.mrb[224].mxu1  ;;  %v2692_v8 = vmax.bf16 %v14821_v33, %v2628_v12 }
 0x333   :  { %v2402_v31 = vpop.f32.mrb[225].mxu1 }
 0x334   :  { %v2404_v29 = vpop.f32.mrb[226].mxu1  ;;  %3163 = vmatprep.mubr.bf16.mxu0 %v2692_v8 }
 0x335   :  { %v2527_v6 = vpack.c.bf16 %v2404_v29, %v2400_v1  ;;  %v2406_v2 = vpop.f32.mrb[227].mxu1  ;;  %3164 = vmatmul.mubr.bf16.gmra.mrb[28].mxu0 %v2691_v9 }
 0x336   :  { %v2528_v13 = vpack.c.bf16 %v2406_v2, %v2402_v31 }
 0x337   :  { %v2629_v16 = vadd.bf16 %v12479_v58, %v2527_v6 }
 0x338   :  { %v2630_v4 = vadd.bf16 %v12482_v36, %v2528_v13 }
 0x339   :  { %v2693_v53 = vmax.bf16 %v14821_v33, %v2629_v16  ;;  %v9494_v16 = vld.sshfl [vmem:[%s14621_s6] sm:$0x11 pattern:$0x75316420] }
 0x33a   :  { %v2410_v41 = vpop.f32.mrb[228].mxu1  ;;  %v2694_v37 = vmax.bf16 %v14821_v33, %v2630_v4 }
 0x33b   :  { %v2412_v48 = vpop.f32.mrb[229].mxu1 }
 0x33c   :  { %v2414_v63 = vpop.f32.mrb[230].mxu1  ;;  %3173 = vmatprep.mubr.bf16.mxu0 %v2694_v37  ;;  %v3327_v37 = vcombine.high %v9494_v16, %v9494_v16 }
 0x33d   :  { %v2529_v12 = vpack.c.bf16 %v2414_v63, %v2410_v41  ;;  %v2416_v1 = vpop.f32.mrb[231].mxu1  ;;  %3174 = vmatmul.mubr.bf16.gmra.mrb[32].mxu0 %v2693_v53  ;;  %v3334_v63 = vrot.slane %v9494_v16, %v11601_v42 }
 0x33e   :  { %v2530_v8 = vpack.c.bf16 %v2416_v1, %v2412_v48  ;;  %v10239_v1 = vld [vmem:[#allocation6 + $0x94] ss:$8 sps:$4 sm:$0xff]  }
 0x33f   :  { %v2631_v9 = vadd.bf16 %v12479_v58, %v2529_v12  ;;  %v10237_v12 = vld [vmem:[#allocation6 + $0x90] ss:$8 sps:$4 sm:$0xff]   ;;  %4469 = vmatprep.subr.bf16.mxu0 %v10239_v1 }
 0x340   :  { %v2632_v31 = vadd.bf16 %v12482_v36, %v2530_v8  ;;  %4470 = vmatpush1.bf16.msra.mxu0 %v10237_v12 }
 0x341   :  { %v2695_v2 = vmax.bf16 %v14821_v33, %v2631_v9 }
 0x342   :  { %v2420_v29 = vpop.f32.mrb[232].mxu1  ;;  %v2696_v6 = vmax.bf16 %v14821_v33, %v2632_v31  ;;  %v3341_v31 = vrot.slane %v3327_v37, %v11601_v42 }
 0x343   :  { %v2422_v13 = vpop.f32.mrb[233].mxu1 }
 0x344   :  { %v2424_v4 = vpop.f32.mrb[234].mxu1  ;;  %3183 = vmatprep.mubr.bf16.mxu0 %v2696_v6  ;;  %v3350_v16 = vpack.i.b16 %v3341_v31, %v3341_v31 }
 0x345   :  { %v2531_v35 = vpack.c.bf16 %v2424_v4, %v2420_v29  ;;  %v2426_v38 = vpop.f32.mrb[235].mxu1  ;;  %3184 = vmatmul.mubr.bf16.gmra.mrb[36].mxu0 %v2695_v2 }
 0x346   :  { %v2532_v41 = vpack.c.bf16 %v2426_v38, %v2422_v13 }
 0x347   :  { %v2633_v53 = vadd.bf16 %v12479_v58, %v2531_v35  ;;  %v3343_v35 = vpack.i.b16 %v3334_v63, %v3334_v63 }
 0x348   :  { %v2634_v48 = vadd.bf16 %v12482_v36, %v2532_v41 }
 0x349   :  { %v2697_v6 = vmax.bf16 %v14821_v33, %v2633_v53  ;;  %v12826_v37 = vrot.slane %v3343_v35, %v11632_v57 }
 0x34a   :  { %v2430_v8 = vpop.f32.mrb[236].mxu1  ;;  %v2698_v9 = vmax.bf16 %v14821_v33, %v2634_v48 }
 0x34b   :  { %v2432_v29 = vpop.f32.mrb[237].mxu1 }
 0x34c   :  { %v2434_v2 = vpop.f32.mrb[238].mxu1  ;;  %3193 = vmatprep.mubr.bf16.mxu0 %v2698_v9  ;;  %v12829_v9 = vrot.slane %v3350_v16, %v11632_v57 }
 0x34d   :  { %v2533_v13 = vpack.c.bf16 %v2434_v2, %v2430_v8  ;;  %v2436_v4 = vpop.f32.mrb[239].mxu1  ;;  %3194 = vmatmul.mubr.bf16.gmra.mrb[40].mxu0 %v2697_v6 }
 0x34e   :  { %v2534_v38 = vpack.c.bf16 %v2436_v4, %v2432_v29 }
 0x34f   :  { %v2635_v41 = vadd.bf16 %v12479_v58, %v2533_v13 }
 0x350   :  { %v2636_v61 = vadd.bf16 %v12482_v36, %v2534_v38  ;;  %v2935_v48 = vpop.f32.mrb[192].mxu0 }
 0x351   :  { %v2937_v19 = vpop.f32.mrb[193].mxu0  ;;  %v2699_v63 = vmax.bf16 %v14821_v33, %v2635_v41 }
 0x352   :  { %v2440_v53 = vpop.f32.mrb[240].mxu1  ;;  %v2939_v1 = vpop.f32.mrb[194].mxu0  ;;  %v2700_v12 = vmax.bf16 %v14821_v33, %v2636_v61 }
 0x353   :  { %v3254_v8 = vpack.c.bf16 %v2939_v1, %v2935_v48  ;;  %v2442_v31 = vpop.f32.mrb[241].mxu1  ;;  %v2941_v6 = vpop.f32.mrb[195].mxu0  ;;  %v10240_v1 = vld [vmem:[#allocation6 + $0xa0] ss:$8 sps:$4 sm:$0xff]  }
 0x354   :  { %v3255_v29 = vpack.c.bf16 %v2941_v6, %v2937_v19  ;;  %v2444_v2 = vpop.f32.mrb[242].mxu1  ;;  %3203 = vmatprep.mubr.bf16.mxu0 %v2700_v12  ;;  %v10242_v12 = vld [vmem:[#allocation6 + $0xa4] ss:$8 sps:$4 sm:$0xff]  }
 0x355   :  { %v3356_v13 = vadd.bf16 %v12826_v37, %v3254_v8  ;;  %v2535_v4 = vpack.c.bf16 %v2444_v2, %v2440_v53  ;;  %v2446_v35 = vpop.f32.mrb[243].mxu1  ;;  %3204 = vmatmul.mubr.bf16.gmra.mrb[44].mxu0 %v2699_v63  ;;  %4471 = vmatprep.subr.bf16.mxu0 %v10242_v12 }
 0x356   :  { %v3357_v38 = vadd.bf16 %v12829_v9, %v3255_v29  ;;  %v2536_v55 = vpack.c.bf16 %v2446_v35, %v2442_v31  ;;  %4472 = vmatpush1.bf16.msra.mxu0 %v10240_v1 }
 0x357   :  { %v2637_v16 = vadd.bf16 %v12479_v58, %v2535_v4  ;;  %v3420_v48 = vmax.bf16 %v14821_v33, %v3356_v13 }
 0x358   :  { %v2638_v61 = vadd.bf16 %v12482_v36, %v2536_v55  ;;  %v2945_v15 = vpop.f32.mrb[196].mxu0  ;;  %v3421_v41 = vmax.bf16 %v14821_v33, %v3357_v38 }
 0x359   :  { %v2947_v19 = vpop.f32.mrb[197].mxu0  ;;  %v2701_v63 = vmax.bf16 %v14821_v33, %v2637_v16 }
 0x35a   :  { %v2450_v6 = vpop.f32.mrb[244].mxu1  ;;  %v2949_v8 = vpop.f32.mrb[198].mxu0  ;;  %3708 = vmatprep.mubr.bf16.mxu1 %v3421_v41  ;;  %v2702_v53 = vmax.bf16 %v14821_v33, %v2638_v61 }
 0x35b   :  { %v3256_v31 = vpack.c.bf16 %v2949_v8, %v2945_v15  ;;  %v2452_v29 = vpop.f32.mrb[245].mxu1  ;;  %v2951_v2 = vpop.f32.mrb[199].mxu0  ;;  %3709 = vmatmul.mubr.bf16.vlgmr.msra.gmra.mrb[0].mxu1 %v3420_v48 }
 0x35c   :  { %v3257_v55 = vpack.c.bf16 %v2951_v2, %v2947_v19  ;;  %v2454_v4 = vpop.f32.mrb[246].mxu1  ;;  %3213 = vmatprep.mubr.bf16.mxu0 %v2702_v53 }
 0x35d   :  { %v3358_v13 = vadd.bf16 %v12826_v37, %v3256_v31  ;;  %v2537_v35 = vpack.c.bf16 %v2454_v4, %v2450_v6  ;;  %v2456_v38 = vpop.f32.mrb[247].mxu1  ;;  %3214 = vmatmul.mubr.bf16.gmra.mrb[48].mxu0 %v2701_v63 }
 0x35e   :  { %v3359_v41 = vadd.bf16 %v12829_v9, %v3257_v55  ;;  %v2538_v60 = vpack.c.bf16 %v2456_v38, %v2452_v29 }
 0x35f   :  { %v2639_v61 = vadd.bf16 %v12479_v58, %v2537_v35  ;;  %v3422_v19 = vmax.bf16 %v14821_v33, %v3358_v13 }
 0x360   :  { %v2640_v15 = vadd.bf16 %v12482_v36, %v2538_v60  ;;  %v2955_v16 = vpop.f32.mrb[200].mxu0  ;;  %v3423_v48 = vmax.bf16 %v14821_v33, %v3359_v41 }
 0x361   :  { %v2957_v12 = vpop.f32.mrb[201].mxu0  ;;  %v2703_v53 = vmax.bf16 %v14821_v33, %v2639_v61 }
 0x362   :  { %v2460_v8 = vpop.f32.mrb[248].mxu1  ;;  %v2959_v1 = vpop.f32.mrb[202].mxu0  ;;  %3718 = vmatprep.mubr.bf16.mxu1 %v3423_v48  ;;  %v2704_v6 = vmax.bf16 %v14821_v33, %v2640_v15 }
 0x363   :  { %v3258_v63 = vpack.c.bf16 %v2959_v1, %v2955_v16  ;;  %v2462_v31 = vpop.f32.mrb[249].mxu1  ;;  %v2961_v29 = vpop.f32.mrb[203].mxu0  ;;  %3719 = vmatmul.mubr.bf16.gmra.mrb[4].mxu1 %v3422_v19  ;;  %v10245_v1 = vld [vmem:[#allocation6 + $0xb4] ss:$8 sps:$4 sm:$0xff]  }
 0x364   :  { %v3259_v2 = vpack.c.bf16 %v2961_v29, %v2957_v12  ;;  %v2464_v55 = vpop.f32.mrb[250].mxu1  ;;  %3223 = vmatprep.mubr.bf16.mxu0 %v2704_v6  ;;  %v10243_v12 = vld [vmem:[#allocation6 + $0xb0] ss:$8 sps:$4 sm:$0xff]   ;;  %4473 = vmatprep.subr.bf16.mxu0 %v10245_v1 }
 0x365   :  { %v3360_v60 = vadd.bf16 %v12826_v37, %v3258_v63  ;;  %v2539_v4 = vpack.c.bf16 %v2464_v55, %v2460_v8  ;;  %v2466_v35 = vpop.f32.mrb[251].mxu1  ;;  %3224 = vmatmul.mubr.bf16.gmra.mrb[52].mxu0 %v2703_v53 }
 0x366   :  { %v3361_v13 = vadd.bf16 %v12829_v9, %v3259_v2  ;;  %v2540_v38 = vpack.c.bf16 %v2466_v35, %v2462_v31  ;;  %4474 = vmatpush1.bf16.msra.mxu0 %v10243_v12 }
 0x367   :  { %v2641_v41 = vadd.bf16 %v12479_v58, %v2539_v4  ;;  %v3424_v48 = vmax.bf16 %v14821_v33, %v3360_v60 }
 0x368   :  { %v2642_v15 = vadd.bf16 %v12482_v36, %v2540_v38  ;;  %v2965_v61 = vpop.f32.mrb[204].mxu0  ;;  %v3425_v16 = vmax.bf16 %v14821_v33, %v3361_v13 }
 0x369   :  { %v2967_v19 = vpop.f32.mrb[205].mxu0  ;;  %v2705_v53 = vmax.bf16 %v14821_v33, %v2641_v41 }
 0x36a   :  { %v2470_v6 = vpop.f32.mrb[252].mxu1  ;;  %v2969_v63 = vpop.f32.mrb[206].mxu0  ;;  %3728 = vmatprep.mubr.bf16.mxu1 %v3425_v16  ;;  %v2706_v8 = vmax.bf16 %v14821_v33, %v2642_v15 }
 0x36b   :  { %v3260_v31 = vpack.c.bf16 %v2969_v63, %v2965_v61  ;;  %v2472_v29 = vpop.f32.mrb[253].mxu1  ;;  %v2971_v2 = vpop.f32.mrb[207].mxu0  ;;  %3729 = vmatmul.mubr.bf16.gmra.mrb[8].mxu1 %v3424_v48 }
 0x36c   :  { %v3261_v55 = vpack.c.bf16 %v2971_v2, %v2967_v19  ;;  %v2474_v4 = vpop.f32.mrb[254].mxu1  ;;  %3233 = vmatprep.mubr.bf16.mxu0 %v2706_v8 }
 0x36d   :  { %v3362_v60 = vadd.bf16 %v12826_v37, %v3260_v31  ;;  %v2541_v35 = vpack.c.bf16 %v2474_v4, %v2470_v6  ;;  %v2476_v13 = vpop.f32.mrb[255].mxu1  ;;  %3234 = vmatmul.mubr.bf16.gmra.mrb[56].mxu0 %v2705_v53 }
 0x36e   :  { %v3363_v38 = vadd.bf16 %v12829_v9, %v3261_v55  ;;  %v2542_v16 = vpack.c.bf16 %v2476_v13, %v2472_v29 }
 0x36f   :  { %v2643_v15 = vadd.bf16 %v12479_v58, %v2541_v35  ;;  %v3426_v19 = vmax.bf16 %v14821_v33, %v3362_v60  ;;  %v10246_v60 = vld [vmem:[#allocation6 + $0xc0] ss:$8 sps:$4 sm:$0xff]   ;;  %v10248_v35 = vld [vmem:[#allocation6 + $0xc4] ss:$8 sps:$4 sm:$0xff]  }
 0x370   :  { %v2644_v41 = vadd.bf16 %v12482_v36, %v2542_v16  ;;  %v2975_v61 = vpop.f32.mrb[208].mxu0  ;;  %v3427_v48 = vmax.bf16 %v14821_v33, %v3363_v38  ;;  %4475 = vmatprep.subr.bf16.mxu0 %v10248_v35 }
 0x371   :  { %v2977_v1 = vpop.f32.mrb[209].mxu0  ;;  %v2707_v6 = vmax.bf16 %v14821_v33, %v2643_v15  ;;  %4476 = vmatpush1.bf16.msra.mxu0 %v10246_v60  ;;  %v10251_v60 = vld [vmem:[#allocation6 + $0xd4] ss:$8 sps:$4 sm:$0xff]  }
 0x372   :  { %v2979_v63 = vpop.f32.mrb[210].mxu0  ;;  %3738 = vmatprep.mubr.bf16.mxu1 %v3427_v48  ;;  %v2708_v12 = vmax.bf16 %v14821_v33, %v2644_v41  ;;  %4477 = vmatprep.subr.bf16.mxu0 %v10251_v60  ;;  %v10255_v60 = vld [vmem:[#allocation6 + $0xe0] ss:$8 sps:$4 sm:$0xff]  }
 0x373   :  { %v3262_v8 = vpack.c.bf16 %v2979_v63, %v2975_v61  ;;  %v2981_v53 = vpop.f32.mrb[211].mxu0  ;;  %3739 = vmatmul.mubr.bf16.gmra.mrb[12].mxu1 %v3426_v19 }
 0x374   :  { %v3263_v31 = vpack.c.bf16 %v2981_v53, %v2977_v1  ;;  %3243 = vmatprep.mubr.bf16.mxu0 %v2708_v12 }
 0x375   :  { %v3364_v58 = vadd.bf16 %v12826_v37, %v3262_v8  ;;  %3244 = vmatmul.mubr.bf16.gmra.mrb[60].mxu0 %v2707_v6 }
 0x376   :  { %v3365_v36 = vadd.bf16 %v12829_v9, %v3263_v31 }
 0x377   :  { %v3428_v55 = vmax.bf16 %v14821_v33, %v3364_v58 }
 0x378   :  { %v2985_v29 = vpop.f32.mrb[212].mxu0  ;;  %v3429_v2 = vmax.bf16 %v14821_v33, %v3365_v36 }
 0x379   :  { %v2987_v4 = vpop.f32.mrb[213].mxu0 }
 0x37a   :  { %v2989_v13 = vpop.f32.mrb[214].mxu0  ;;  %3748 = vmatprep.mubr.bf16.mxu1 %v3429_v2 }
 0x37b   :  { %v3264_v38 = vpack.c.bf16 %v2989_v13, %v2985_v29  ;;  %v2991_v16 = vpop.f32.mrb[215].mxu0  ;;  %3749 = vmatmul.mubr.bf16.gmra.mrb[16].mxu1 %v3428_v55 }
 0x37c   :  { %v3265_v15 = vpack.c.bf16 %v2991_v16, %v2987_v4  ;;  %v10249_v4 = vld [vmem:[#allocation6 + $0xd0] ss:$8 sps:$4 sm:$0xff]  }
 0x37d   :  { %v3366_v41 = vadd.bf16 %v12826_v37, %v3264_v38  ;;  %4478 = vmatpush1.bf16.msra.mxu0 %v10249_v4 }
 0x37e   :  { %v3367_v61 = vadd.bf16 %v12829_v9, %v3265_v15 }
 0x37f   :  { %v3430_v1 = vmax.bf16 %v14821_v33, %v3366_v41 }
 0x380   :  { %v2995_v48 = vpop.f32.mrb[216].mxu0  ;;  %v3431_v19 = vmax.bf16 %v14821_v33, %v3367_v61 }
 0x381   :  { %v2997_v63 = vpop.f32.mrb[217].mxu0 }
 0x382   :  { %v2999_v12 = vpop.f32.mrb[218].mxu0  ;;  %3758 = vmatprep.mubr.bf16.mxu1 %v3431_v19 }
 0x383   :  { %v3266_v6 = vpack.c.bf16 %v2999_v12, %v2995_v48  ;;  %v3001_v8 = vpop.f32.mrb[219].mxu0  ;;  %3759 = vmatmul.mubr.bf16.gmra.mrb[20].mxu1 %v3430_v1 }
 0x384   :  { %v3267_v53 = vpack.c.bf16 %v3001_v8, %v2997_v63 }
 0x385   :  { %v3368_v31 = vadd.bf16 %v12826_v37, %v3266_v6 }
 0x386   :  { %v3369_v58 = vadd.bf16 %v12829_v9, %v3267_v53 }
 0x387   :  { %v3432_v2 = vmax.bf16 %v14821_v33, %v3368_v31 }
 0x388   :  { %v3005_v36 = vpop.f32.mrb[220].mxu0  ;;  %v3433_v29 = vmax.bf16 %v14821_v33, %v3369_v58  ;;  %v10252_v58 = vld [vmem:[#allocation7] ss:$8 sps:$4 sm:$0xff]  }
 0x389   :  { %v3007_v55 = vpop.f32.mrb[221].mxu0 }
 0x38a   :  { %v3009_v35 = vpop.f32.mrb[222].mxu0  ;;  %3768 = vmatprep.mubr.bf16.mxu1 %v3433_v29 }
 0x38b   :  { %v3268_v13 = vpack.c.bf16 %v3009_v35, %v3005_v36  ;;  %v3011_v38 = vpop.f32.mrb[223].mxu0  ;;  %3769 = vmatmul.mubr.bf16.gmra.mrb[24].mxu1 %v3432_v2  ;;  %v10254_v36 = vld [vmem:[#allocation7 + $0x4] ss:$8 sps:$4 sm:$0xff]  }
 0x38c   :  { %v3269_v16 = vpack.c.bf16 %v3011_v38, %v3007_v55  ;;  %5226 = vmatprep.subr.bf16.mxu1 %v10254_v36  ;;  %v10257_v35 = vld [vmem:[#allocation6 + $0xe4] ss:$8 sps:$4 sm:$0xff]   ;;  %v10258_v36 = vld [vmem:[#allocation7 + $0x10] ss:$8 sps:$4 sm:$0xff]  }
 0x38d   :  { %v3370_v15 = vadd.bf16 %v12826_v37, %v3268_v13  ;;  %5227 = vmatpush1.bf16.msra.mxu1 %v10252_v58  ;;  %4479 = vmatprep.subr.bf16.mxu0 %v10257_v35  ;;  %v10261_v35 = vld [vmem:[#allocation6 + $0xf0] ss:$8 sps:$4 sm:$0xff]  }
 0x38e   :  { %v3371_v41 = vadd.bf16 %v12829_v9, %v3269_v16  ;;  %4480 = vmatpush1.bf16.msra.mxu0 %v10255_v60 }
 0x38f   :  { %v3434_v19 = vmax.bf16 %v14821_v33, %v3370_v15 }
 0x390   :  { %v3015_v61 = vpop.f32.mrb[224].mxu0  ;;  %v3435_v48 = vmax.bf16 %v14821_v33, %v3371_v41 }
 0x391   :  { %v3017_v1 = vpop.f32.mrb[225].mxu0 }
 0x392   :  { %v3019_v63 = vpop.f32.mrb[226].mxu0  ;;  %3778 = vmatprep.mubr.bf16.mxu1 %v3435_v48 }
 0x393   :  { %v3270_v12 = vpack.c.bf16 %v3019_v63, %v3015_v61  ;;  %v3021_v6 = vpop.f32.mrb[227].mxu0  ;;  %3779 = vmatmul.mubr.bf16.gmra.mrb[28].mxu1 %v3434_v19 }
 0x394   :  { %v3271_v8 = vpack.c.bf16 %v3021_v6, %v3017_v1 }
 0x395   :  { %v3372_v53 = vadd.bf16 %v12826_v37, %v3270_v12 }
 0x396   :  { %v3373_v31 = vadd.bf16 %v12829_v9, %v3271_v8 }
 0x397   :  { %v3436_v55 = vmax.bf16 %v14821_v33, %v3372_v53 }
 0x398   :  { %v3025_v29 = vpop.f32.mrb[228].mxu0  ;;  %v3437_v2 = vmax.bf16 %v14821_v33, %v3373_v31 }
 0x399   :  { %v3027_v4 = vpop.f32.mrb[229].mxu0 }
 0x39a   :  { %v3029_v13 = vpop.f32.mrb[230].mxu0  ;;  %3788 = vmatprep.mubr.bf16.mxu1 %v3437_v2 }
 0x39b   :  { %v3272_v38 = vpack.c.bf16 %v3029_v13, %v3025_v29  ;;  %v3031_v16 = vpop.f32.mrb[231].mxu0  ;;  %3789 = vmatmul.mubr.bf16.gmra.mrb[32].mxu1 %v3436_v55  ;;  %v10260_v29 = vld [vmem:[#allocation7 + $0x14] ss:$8 sps:$4 sm:$0xff]  }
 0x39c   :  { %v3273_v15 = vpack.c.bf16 %v3031_v16, %v3027_v4  ;;  %5228 = vmatprep.subr.bf16.mxu1 %v10260_v29  ;;  %v10263_v13 = vld [vmem:[#allocation6 + $0xf4] ss:$8 sps:$4 sm:$0xff]   ;;  %v10264_v29 = vld [vmem:[#allocation7 + $0x20] ss:$8 sps:$4 sm:$0xff]  }
 0x39d   :  { %v3374_v41 = vadd.bf16 %v12826_v37, %v3272_v38  ;;  %5229 = vmatpush1.bf16.msra.mxu1 %v10258_v36  ;;  %4481 = vmatprep.subr.bf16.mxu0 %v10263_v13 }
 0x39e   :  { %v3375_v61 = vadd.bf16 %v12829_v9, %v3273_v15  ;;  %4482 = vmatpush1.bf16.msra.mxu0 %v10261_v35 }
 0x39f   :  { %v3438_v1 = vmax.bf16 %v14821_v33, %v3374_v41 }
 0x3a0   :  { %v3035_v48 = vpop.f32.mrb[232].mxu0  ;;  %v3439_v19 = vmax.bf16 %v14821_v33, %v3375_v61 }
 0x3a1   :  { %v3037_v63 = vpop.f32.mrb[233].mxu0 }
 0x3a2   :  { %v3039_v12 = vpop.f32.mrb[234].mxu0  ;;  %3798 = vmatprep.mubr.bf16.mxu1 %v3439_v19 }
 0x3a3   :  { %v3274_v6 = vpack.c.bf16 %v3039_v12, %v3035_v48  ;;  %v3041_v8 = vpop.f32.mrb[235].mxu0  ;;  %3799 = vmatmul.mubr.bf16.gmra.mrb[36].mxu1 %v3438_v1 }
 0x3a4   :  { %v3275_v53 = vpack.c.bf16 %v3041_v8, %v3037_v63 }
 0x3a5   :  { %v3376_v31 = vadd.bf16 %v12826_v37, %v3274_v6 }
 0x3a6   :  { %v3377_v58 = vadd.bf16 %v12829_v9, %v3275_v53 }
 0x3a7   :  { %v3440_v4 = vmax.bf16 %v14821_v33, %v3376_v31 }
 0x3a8   :  { %v3045_v2 = vpop.f32.mrb[236].mxu0  ;;  %v3441_v55 = vmax.bf16 %v14821_v33, %v3377_v58 }
 0x3a9   :  { %v3047_v60 = vpop.f32.mrb[237].mxu0 }
 0x3aa   :  { %v3049_v38 = vpop.f32.mrb[238].mxu0  ;;  %3808 = vmatprep.mubr.bf16.mxu1 %v3441_v55 }
 0x3ab   :  { %v3276_v16 = vpack.c.bf16 %v3049_v38, %v3045_v2  ;;  %v3051_v15 = vpop.f32.mrb[239].mxu0  ;;  %3809 = vmatmul.mubr.bf16.gmra.mrb[40].mxu1 %v3440_v4  ;;  %v10266_v2 = vld [vmem:[#allocation7 + $0x24] ss:$8 sps:$4 sm:$0xff]  }
 0x3ac   :  { %v3277_v41 = vpack.c.bf16 %v3051_v15, %v3047_v60  ;;  %5230 = vmatprep.subr.bf16.mxu1 %v10266_v2 }
 0x3ad   :  { %v3378_v61 = vadd.bf16 %v12826_v37, %v3276_v16  ;;  %5231 = vmatpush1.bf16.msra.mxu1 %v10264_v29  ;;  %v10269_v29 = vld [vmem:[#allocation7 + $0x34] ss:$8 sps:$4 sm:$0xff]  }
 0x3ae   :  { %v3379_v48 = vadd.bf16 %v12829_v9, %v3277_v41  ;;  %5232 = vmatprep.subr.bf16.mxu1 %v10269_v29 }
 0x3af   :  { %v3442_v63 = vmax.bf16 %v14821_v33, %v3378_v61 }
 0x3b0   :  { %v3055_v19 = vpop.f32.mrb[240].mxu0  ;;  %v3443_v1 = vmax.bf16 %v14821_v33, %v3379_v48 }
 0x3b1   :  { %v3057_v12 = vpop.f32.mrb[241].mxu0 }
 0x3b2   :  { %v3059_v6 = vpop.f32.mrb[242].mxu0  ;;  %3818 = vmatprep.mubr.bf16.mxu1 %v3443_v1 }
 0x3b3   :  { %v3278_v8 = vpack.c.bf16 %v3059_v6, %v3055_v19  ;;  %v3061_v53 = vpop.f32.mrb[243].mxu0  ;;  %3819 = vmatmul.mubr.bf16.gmra.mrb[44].mxu1 %v3442_v63 }
 0x3b4   :  { %v3279_v31 = vpack.c.bf16 %v3061_v53, %v3057_v12 }
 0x3b5   :  { %v3380_v58 = vadd.bf16 %v12826_v37, %v3278_v8 }
 0x3b6   :  { %v3381_v36 = vadd.bf16 %v12829_v9, %v3279_v31 }
 0x3b7   :  { %v3444_v60 = vmax.bf16 %v14821_v33, %v3380_v58 }
 0x3b8   :  { %v3065_v55 = vpop.f32.mrb[244].mxu0  ;;  %v3445_v4 = vmax.bf16 %v14821_v33, %v3381_v36  ;;  %v10267_v36 = vld [vmem:[#allocation7 + $0x30] ss:$8 sps:$4 sm:$0xff]  }
 0x3b9   :  { %v3067_v35 = vpop.f32.mrb[245].mxu0  ;;  %5233 = vmatpush1.bf16.msra.mxu1 %v10267_v36  ;;  %v10272_v36 = vld [vmem:[#allocation7 + $0x44] ss:$8 sps:$4 sm:$0xff]  }
 0x3ba   :  { %v3069_v13 = vpop.f32.mrb[246].mxu0  ;;  %3828 = vmatprep.mubr.bf16.mxu1 %v3445_v4  ;;  %5234 = vmatprep.subr.bf16.mxu1 %v10272_v36 }
 0x3bb   :  { %v3280_v38 = vpack.c.bf16 %v3069_v13, %v3065_v55  ;;  %v3071_v16 = vpop.f32.mrb[247].mxu0  ;;  %3829 = vmatmul.mubr.bf16.gmra.mrb[48].mxu1 %v3444_v60 }
 0x3bc   :  { %v3281_v15 = vpack.c.bf16 %v3071_v16, %v3067_v35 }
 0x3bd   :  { %v3382_v41 = vadd.bf16 %v12826_v37, %v3280_v38 }
 0x3be   :  { %v3383_v61 = vadd.bf16 %v12829_v9, %v3281_v15 }
 0x3bf   :  { %v3446_v1 = vmax.bf16 %v14821_v33, %v3382_v41 }
 0x3c0   :  { %v3075_v48 = vpop.f32.mrb[248].mxu0  ;;  %v3447_v19 = vmax.bf16 %v14821_v33, %v3383_v61 }
 0x3c1   :  { %v3077_v63 = vpop.f32.mrb[249].mxu0 }
 0x3c2   :  { %v3079_v12 = vpop.f32.mrb[250].mxu0  ;;  %3838 = vmatprep.mubr.bf16.mxu1 %v3447_v19 }
 0x3c3   :  { %v3282_v6 = vpack.c.bf16 %v3079_v12, %v3075_v48  ;;  %v3081_v8 = vpop.f32.mrb[251].mxu0  ;;  %3839 = vmatmul.mubr.bf16.gmra.mrb[52].mxu1 %v3446_v1 }
 0x3c4   :  { %v3283_v53 = vpack.c.bf16 %v3081_v8, %v3077_v63 }
 0x3c5   :  { %v3384_v31 = vadd.bf16 %v12826_v37, %v3282_v6 }
 0x3c6   :  { %v3385_v58 = vadd.bf16 %v12829_v9, %v3283_v53 }
 0x3c7   :  { %v3448_v4 = vmax.bf16 %v14821_v33, %v3384_v31 }
 0x3c8   :  { %v3085_v2 = vpop.f32.mrb[252].mxu0  ;;  %v3449_v55 = vmax.bf16 %v14821_v33, %v3385_v58  ;;  %v10270_v58 = vld [vmem:[#allocation7 + $0x40] ss:$8 sps:$4 sm:$0xff]  }
 0x3c9   :  { %v3087_v60 = vpop.f32.mrb[253].mxu0  ;;  %5235 = vmatpush1.bf16.msra.mxu1 %v10270_v58  ;;  %v10275_v58 = vld [vmem:[#allocation7 + $0x54] ss:$8 sps:$4 sm:$0xff]  }
 0x3ca   :  { %v3089_v35 = vpop.f32.mrb[254].mxu0  ;;  %3848 = vmatprep.mubr.bf16.mxu1 %v3449_v55  ;;  %5236 = vmatprep.subr.bf16.mxu1 %v10275_v58 }
 0x3cb   :  { %v3284_v13 = vpack.c.bf16 %v3089_v35, %v3085_v2  ;;  %v3091_v38 = vpop.f32.mrb[255].mxu0  ;;  %3849 = vmatmul.mubr.bf16.gmra.mrb[56].mxu1 %v3448_v4 }
 0x3cc   :  { %v3285_v16 = vpack.c.bf16 %v3091_v38, %v3087_v60 }
 0x3cd   :  { %v3386_v15 = vadd.bf16 %v12826_v37, %v3284_v13 }
 0x3ce   :  { %v3387_v41 = vadd.bf16 %v12829_v9, %v3285_v16 }
 0x3cf   :  { %v3450_v19 = vmax.bf16 %v14821_v33, %v3386_v15 }
 0x3d0   :  { %v3095_v61 = vpop.f32.mrb[0].mxu0  ;;  %v3451_v48 = vmax.bf16 %v14821_v33, %v3387_v41 }
 0x3d1   :  { %v3097_v1 = vpop.f32.mrb[1].mxu0 }
 0x3d2   :  { %v3099_v63 = vpop.f32.mrb[2].mxu0  ;;  %3858 = vmatprep.mubr.bf16.mxu1 %v3451_v48 }
 0x3d3   :  { %v3286_v12 = vpack.c.bf16 %v3099_v63, %v3095_v61  ;;  %v3101_v6 = vpop.f32.mrb[3].mxu0  ;;  %3859 = vmatmul.mubr.bf16.gmra.mrb[60].mxu1 %v3450_v19 }
 0x3d4   :  { %v3287_v8 = vpack.c.bf16 %v3101_v6, %v3097_v1 }
 0x3d5   :  { %v3388_v53 = vadd.bf16 %v12826_v37, %v3286_v12 }
 0x3d6   :  { %v3389_v31 = vadd.bf16 %v12829_v9, %v3287_v8 }
 0x3d7   :  { %v3452_v55 = vmax.bf16 %v14821_v33, %v3388_v53 }
 0x3d8   :  { %v3105_v29 = vpop.f32.mrb[4].mxu0  ;;  %v3453_v2 = vmax.bf16 %v14821_v33, %v3389_v31  ;;  %v10273_v31 = vld [vmem:[#allocation7 + $0x50] ss:$8 sps:$4 sm:$0xff]  }
 0x3d9   :  { %v3107_v4 = vpop.f32.mrb[5].mxu0  ;;  %5237 = vmatpush1.bf16.msra.mxu1 %v10273_v31  ;;  %v10278_v31 = vld [vmem:[#allocation7 + $0x64] ss:$8 sps:$4 sm:$0xff]  }
 0x3da   :  { %v3109_v60 = vpop.f32.mrb[6].mxu0  ;;  %3868 = vmatprep.mubr.bf16.mxu1 %v3453_v2  ;;  %5238 = vmatprep.subr.bf16.mxu1 %v10278_v31 }
 0x3db   :  { %v3288_v35 = vpack.c.bf16 %v3109_v60, %v3105_v29  ;;  %v3111_v13 = vpop.f32.mrb[7].mxu0  ;;  %3869 = vmatmul.mubr.bf16.gmra.mrb[64].mxu1 %v3452_v55 }
 0x3dc   :  { %v3289_v38 = vpack.c.bf16 %v3111_v13, %v3107_v4 }
 0x3dd   :  { %v3390_v16 = vadd.bf16 %v12826_v37, %v3288_v35 }
 0x3de   :  { %v3391_v15 = vadd.bf16 %v12829_v9, %v3289_v38 }
 0x3df   :  { %v3454_v48 = vmax.bf16 %v14821_v33, %v3390_v16 }
 0x3e0   :  { %v3115_v41 = vpop.f32.mrb[8].mxu0  ;;  %v3455_v61 = vmax.bf16 %v14821_v33, %v3391_v15 }
 0x3e1   :  { %v3117_v19 = vpop.f32.mrb[9].mxu0 }
 0x3e2   :  { %v3119_v1 = vpop.f32.mrb[10].mxu0  ;;  %3878 = vmatprep.mubr.bf16.mxu1 %v3455_v61 }
 0x3e3   :  { %v3290_v63 = vpack.c.bf16 %v3119_v1, %v3115_v41  ;;  %v3121_v12 = vpop.f32.mrb[11].mxu0  ;;  %3879 = vmatmul.mubr.bf16.gmra.mrb[68].mxu1 %v3454_v48 }
 0x3e4   :  { %v3291_v6 = vpack.c.bf16 %v3121_v12, %v3117_v19 }
 0x3e5   :  { %v3392_v8 = vadd.bf16 %v12826_v37, %v3290_v63 }
 0x3e6   :  { %v3393_v53 = vadd.bf16 %v12829_v9, %v3291_v6 }
 0x3e7   :  { %v3456_v2 = vmax.bf16 %v14821_v33, %v3392_v8 }
 0x3e8   :  { %v3125_v36 = vpop.f32.mrb[12].mxu0  ;;  %v3457_v29 = vmax.bf16 %v14821_v33, %v3393_v53  ;;  %v10276_v53 = vld [vmem:[#allocation7 + $0x60] ss:$8 sps:$4 sm:$0xff]  }
 0x3e9   :  { %v3127_v55 = vpop.f32.mrb[13].mxu0  ;;  %5239 = vmatpush1.bf16.msra.mxu1 %v10276_v53  ;;  %v10281_v53 = vld [vmem:[#allocation7 + $0x74] ss:$8 sps:$4 sm:$0xff]  }
 0x3ea   :  { %v3129_v4 = vpop.f32.mrb[14].mxu0  ;;  %3888 = vmatprep.mubr.bf16.mxu1 %v3457_v29  ;;  %5240 = vmatprep.subr.bf16.mxu1 %v10281_v53 }
 0x3eb   :  { %v3292_v60 = vpack.c.bf16 %v3129_v4, %v3125_v36  ;;  %v3131_v35 = vpop.f32.mrb[15].mxu0  ;;  %3889 = vmatmul.mubr.bf16.gmra.mrb[72].mxu1 %v3456_v2 }
 0x3ec   :  { %v3293_v13 = vpack.c.bf16 %v3131_v35, %v3127_v55 }
 0x3ed   :  { %v3394_v38 = vadd.bf16 %v12826_v37, %v3292_v60 }
 0x3ee   :  { %v3395_v16 = vadd.bf16 %v12829_v9, %v3293_v13 }
 0x3ef   :  { %v3458_v61 = vmax.bf16 %v14821_v33, %v3394_v38 }
 0x3f0   :  { %v3135_v15 = vpop.f32.mrb[16].mxu0  ;;  %v3459_v41 = vmax.bf16 %v14821_v33, %v3395_v16 }
 0x3f1   :  { %v3137_v48 = vpop.f32.mrb[17].mxu0 }
 0x3f2   :  { %v3139_v19 = vpop.f32.mrb[18].mxu0  ;;  %3898 = vmatprep.mubr.bf16.mxu1 %v3459_v41 }
 0x3f3   :  { %v3294_v1 = vpack.c.bf16 %v3139_v19, %v3135_v15  ;;  %v3141_v63 = vpop.f32.mrb[19].mxu0  ;;  %3899 = vmatmul.mubr.bf16.gmra.mrb[76].mxu1 %v3458_v61 }
 0x3f4   :  { %v3295_v12 = vpack.c.bf16 %v3141_v63, %v3137_v48 }
 0x3f5   :  { %v3396_v6 = vadd.bf16 %v12826_v37, %v3294_v1 }
 0x3f6   :  { %v3397_v8 = vadd.bf16 %v12829_v9, %v3295_v12 }
 0x3f7   :  { %v3460_v29 = vmax.bf16 %v14821_v33, %v3396_v6 }
 0x3f8   :  { %v3145_v58 = vpop.f32.mrb[20].mxu0  ;;  %v3461_v36 = vmax.bf16 %v14821_v33, %v3397_v8  ;;  %v10279_v8 = vld [vmem:[#allocation7 + $0x70] ss:$8 sps:$4 sm:$0xff]  }
 0x3f9   :  { %v3147_v2 = vpop.f32.mrb[21].mxu0  ;;  %5241 = vmatpush1.bf16.msra.mxu1 %v10279_v8  ;;  %v10284_v8 = vld [vmem:[#allocation7 + $0x84] ss:$8 sps:$4 sm:$0xff]  }
 0x3fa   :  { %v3149_v55 = vpop.f32.mrb[22].mxu0  ;;  %3908 = vmatprep.mubr.bf16.mxu1 %v3461_v36  ;;  %5242 = vmatprep.subr.bf16.mxu1 %v10284_v8 }
 0x3fb   :  { %v3296_v4 = vpack.c.bf16 %v3149_v55, %v3145_v58  ;;  %v3151_v60 = vpop.f32.mrb[23].mxu0  ;;  %3909 = vmatmul.mubr.bf16.gmra.mrb[80].mxu1 %v3460_v29 }
 0x3fc   :  { %v3297_v35 = vpack.c.bf16 %v3151_v60, %v3147_v2 }
 0x3fd   :  { %v3398_v13 = vadd.bf16 %v12826_v37, %v3296_v4 }
 0x3fe   :  { %v3399_v38 = vadd.bf16 %v12829_v9, %v3297_v35 }
 0x3ff   :  { %v3462_v41 = vmax.bf16 %v14821_v33, %v3398_v13 }
 0x400   :  { %v3155_v16 = vpop.f32.mrb[24].mxu0  ;;  %v3463_v15 = vmax.bf16 %v14821_v33, %v3399_v38 }
 0x401   :  { %v3157_v61 = vpop.f32.mrb[25].mxu0 }
 0x402   :  { %v3159_v48 = vpop.f32.mrb[26].mxu0  ;;  %3918 = vmatprep.mubr.bf16.mxu1 %v3463_v15 }
 0x403   :  { %v3298_v19 = vpack.c.bf16 %v3159_v48, %v3155_v16  ;;  %v3161_v1 = vpop.f32.mrb[27].mxu0  ;;  %3919 = vmatmul.mubr.bf16.gmra.mrb[84].mxu1 %v3462_v41 }
 0x404   :  { %v3299_v63 = vpack.c.bf16 %v3161_v1, %v3157_v61 }
 0x405   :  { %v3400_v12 = vadd.bf16 %v12826_v37, %v3298_v19 }
 0x406   :  { %v3401_v6 = vadd.bf16 %v12829_v9, %v3299_v63 }
 0x407   :  { %v3464_v36 = vmax.bf16 %v14821_v33, %v3400_v12 }
 0x408   :  { %v3165_v31 = vpop.f32.mrb[28].mxu0  ;;  %v3465_v58 = vmax.bf16 %v14821_v33, %v3401_v6  ;;  %v10282_v6 = vld [vmem:[#allocation7 + $0x80] ss:$8 sps:$4 sm:$0xff]  }
 0x409   :  { %v3167_v29 = vpop.f32.mrb[29].mxu0  ;;  %5243 = vmatpush1.bf16.msra.mxu1 %v10282_v6 }
 0x40a   :  { %v3169_v2 = vpop.f32.mrb[30].mxu0  ;;  %3928 = vmatprep.mubr.bf16.mxu1 %v3465_v58 }
 0x40b   :  { %v3300_v55 = vpack.c.bf16 %v3169_v2, %v3165_v31  ;;  %v3171_v4 = vpop.f32.mrb[31].mxu0  ;;  %3929 = vmatmul.mubr.bf16.gmra.mrb[88].mxu1 %v3464_v36 }
 0x40c   :  { %v3301_v60 = vpack.c.bf16 %v3171_v4, %v3167_v29 }
 0x40d   :  { %v3402_v35 = vadd.bf16 %v12826_v37, %v3300_v55 }
 0x40e   :  { %v3403_v13 = vadd.bf16 %v12829_v9, %v3301_v60 }
 0x40f   :  { %v3466_v15 = vmax.bf16 %v14821_v33, %v3402_v35 }
 0x410   :  { %v3175_v38 = vpop.f32.mrb[32].mxu0  ;;  %v3467_v16 = vmax.bf16 %v14821_v33, %v3403_v13 }
 0x411   :  { %v3177_v41 = vpop.f32.mrb[33].mxu0 }
 0x412   :  { %v3179_v61 = vpop.f32.mrb[34].mxu0  ;;  %3938 = vmatprep.mubr.bf16.mxu1 %v3467_v16 }
 0x413   :  { %v3302_v48 = vpack.c.bf16 %v3179_v61, %v3175_v38  ;;  %v3181_v19 = vpop.f32.mrb[35].mxu0  ;;  %3939 = vmatmul.mubr.bf16.gmra.mrb[92].mxu1 %v3466_v15 }
 0x414   :  { %v3303_v1 = vpack.c.bf16 %v3181_v19, %v3177_v41  ;;  %v9527_v41 = vld.sshfl [vmem:[%s14623_s8] sm:$0x11 pattern:$0x75316420] }
 0x415   :  { %v3404_v63 = vadd.bf16 %v12826_v37, %v3302_v48  ;;  %v4109_v8 = vrot.slane %v9527_v41, %v11601_v42 }
 0x416   :  { %v3405_v12 = vadd.bf16 %v12829_v9, %v3303_v1 }
 0x417   :  { %v3468_v58 = vmax.bf16 %v14821_v33, %v3404_v63  ;;  %v4102_v63 = vcombine.high %v9527_v41, %v9527_v41 }
 0x418   :  { %v3185_v53 = vpop.f32.mrb[36].mxu0  ;;  %v3469_v31 = vmax.bf16 %v14821_v33, %v3405_v12 }
 0x419   :  { %v3187_v36 = vpop.f32.mrb[37].mxu0 }
 0x41a   :  { %v3189_v29 = vpop.f32.mrb[38].mxu0  ;;  %3948 = vmatprep.mubr.bf16.mxu1 %v3469_v31  ;;  %v10287_v31 = vld [vmem:[#allocation7 + $0x94] ss:$8 sps:$4 sm:$0xff]  }
 0x41b   :  { %v3304_v2 = vpack.c.bf16 %v3189_v29, %v3185_v53  ;;  %v3191_v55 = vpop.f32.mrb[39].mxu0  ;;  %3949 = vmatmul.mubr.bf16.gmra.mrb[96].mxu1 %v3468_v58  ;;  %v10285_v53 = vld [vmem:[#allocation7 + $0x90] ss:$8 sps:$4 sm:$0xff]   ;;  %v4116_v29 = vrot.slane %v4102_v63, %v11601_v42  ;;  %5244 = vmatprep.subr.bf16.mxu1 %v10287_v31 }
 0x41c   :  { %v3305_v4 = vpack.c.bf16 %v3191_v55, %v3187_v36  ;;  %5245 = vmatpush1.bf16.msra.mxu1 %v10285_v53 }
 0x41d   :  { %v3406_v60 = vadd.bf16 %v12826_v37, %v3304_v2 }
 0x41e   :  { %v3407_v35 = vadd.bf16 %v12829_v9, %v3305_v4 }
 0x41f   :  { %v3470_v16 = vmax.bf16 %v14821_v33, %v3406_v60 }
 0x420   :  { %v3195_v13 = vpop.f32.mrb[40].mxu0  ;;  %v3471_v38 = vmax.bf16 %v14821_v33, %v3407_v35 }
 0x421   :  { %v3197_v15 = vpop.f32.mrb[41].mxu0 }
 0x422   :  { %v3199_v61 = vpop.f32.mrb[42].mxu0  ;;  %3958 = vmatprep.mubr.bf16.mxu1 %v3471_v38 }
 0x423   :  { %v3306_v48 = vpack.c.bf16 %v3199_v61, %v3195_v13  ;;  %v3201_v19 = vpop.f32.mrb[43].mxu0  ;;  %3959 = vmatmul.mubr.bf16.gmra.mrb[100].mxu1 %v3470_v16  ;;  %v4118_v13 = vpack.i.b16 %v4109_v8, %v4109_v8  ;;  %v4125_v16 = vpack.i.b16 %v4116_v29, %v4116_v29 }
 0x424   :  { %v3307_v1 = vpack.c.bf16 %v3201_v19, %v3197_v15 }
 0x425   :  { %v3408_v12 = vadd.bf16 %v12826_v37, %v3306_v48  ;;  %v12965_v19 = vrot.slane %v4118_v13, %v11632_v57 }
 0x426   :  { %v3409_v6 = vadd.bf16 %v12829_v9, %v3307_v1 }
 0x427   :  { %v3472_v2 = vmax.bf16 %v14821_v33, %v3408_v12  ;;  %v12968_v12 = vrot.slane %v4125_v16, %v11632_v57 }
 0x428   :  { %v3205_v58 = vpop.f32.mrb[44].mxu0  ;;  %v3473_v36 = vmax.bf16 %v14821_v33, %v3409_v6 }
 0x429   :  { %v3207_v55 = vpop.f32.mrb[45].mxu0 }
 0x42a   :  { %v3209_v4 = vpop.f32.mrb[46].mxu0  ;;  %3968 = vmatprep.mubr.bf16.mxu1 %v3473_v36 }
 0x42b   :  { %v3308_v60 = vpack.c.bf16 %v3209_v4, %v3205_v58  ;;  %v3211_v35 = vpop.f32.mrb[47].mxu0  ;;  %3969 = vmatmul.mubr.bf16.gmra.mrb[104].mxu1 %v3472_v2 }
 0x42c   :  { %v3309_v38 = vpack.c.bf16 %v3211_v35, %v3207_v55 }
 0x42d   :  { %v3410_v15 = vadd.bf16 %v12826_v37, %v3308_v60 }
 0x42e   :  { %v3411_v41 = vadd.bf16 %v12829_v9, %v3309_v38  ;;  %v3710_v61 = vpop.f32.mrb[0].mxu1 }
 0x42f   :  { %v3712_v48 = vpop.f32.mrb[1].mxu1  ;;  %v3474_v8 = vmax.bf16 %v14821_v33, %v3410_v15 }
 0x430   :  { %v3215_v1 = vpop.f32.mrb[48].mxu0  ;;  %v3714_v63 = vpop.f32.mrb[2].mxu1  ;;  %v3475_v6 = vmax.bf16 %v14821_v33, %v3411_v41 }
 0x431   :  { %v4029_v53 = vpack.c.bf16 %v3714_v63, %v3710_v61  ;;  %v3217_v31 = vpop.f32.mrb[49].mxu0  ;;  %v3716_v58 = vpop.f32.mrb[3].mxu1  ;;  %v10290_v63 = vld [vmem:[#allocation7 + $0xa4] ss:$8 sps:$4 sm:$0xff]  }
 0x432   :  { %v4030_v36 = vpack.c.bf16 %v3716_v58, %v3712_v48  ;;  %v3219_v29 = vpop.f32.mrb[50].mxu0  ;;  %3978 = vmatprep.mubr.bf16.mxu1 %v3475_v6  ;;  %v10288_v48 = vld [vmem:[#allocation7 + $0xa0] ss:$8 sps:$4 sm:$0xff]   ;;  %5246 = vmatprep.subr.bf16.mxu1 %v10290_v63 }
 0x433   :  { %v4131_v2 = vadd.bf16 %v12965_v19, %v4029_v53  ;;  %v3310_v55 = vpack.c.bf16 %v3219_v29, %v3215_v1  ;;  %v3221_v4 = vpop.f32.mrb[51].mxu0  ;;  %3979 = vmatmul.mubr.bf16.gmra.mrb[108].mxu1 %v3474_v8 }
 0x434   :  { %v4132_v60 = vadd.bf16 %v12968_v12, %v4030_v36  ;;  %v3311_v35 = vpack.c.bf16 %v3221_v4, %v3217_v31  ;;  %5247 = vmatpush1.bf16.msra.mxu1 %v10288_v48 }
 0x435   :  { %v3412_v13 = vadd.bf16 %v12826_v37, %v3310_v55  ;;  %v4195_v41 = vmax.bf16 %v14821_v33, %v4131_v2 }
 0x436   :  { %v3413_v38 = vadd.bf16 %v12829_v9, %v3311_v35  ;;  %v3720_v16 = vpop.f32.mrb[4].mxu1  ;;  %v4196_v15 = vmax.bf16 %v14821_v33, %v4132_v60 }
 0x437   :  { %v3722_v61 = vpop.f32.mrb[5].mxu1  ;;  %v3476_v8 = vmax.bf16 %v14821_v33, %v3412_v13 }
 0x438   :  { %v3225_v6 = vpop.f32.mrb[52].mxu0  ;;  %v3724_v53 = vpop.f32.mrb[6].mxu1  ;;  %4483 = vmatprep.mubr.bf16.mxu0 %v4196_v15  ;;  %v3477_v1 = vmax.bf16 %v14821_v33, %v3413_v38 }
 0x439   :  { %v4031_v31 = vpack.c.bf16 %v3724_v53, %v3720_v16  ;;  %v3227_v58 = vpop.f32.mrb[53].mxu0  ;;  %v3726_v36 = vpop.f32.mrb[7].mxu1  ;;  %4484 = vmatmul.mubr.bf16.vlgmr.msra.gmra.mrb[64].mxu0 %v4195_v41 }
 0x43a   :  { %v4032_v29 = vpack.c.bf16 %v3726_v36, %v3722_v61  ;;  %v3229_v55 = vpop.f32.mrb[54].mxu0  ;;  %3988 = vmatprep.mubr.bf16.mxu1 %v3477_v1 }
 0x43b   :  { %v4133_v2 = vadd.bf16 %v12965_v19, %v4031_v31  ;;  %v3312_v4 = vpack.c.bf16 %v3229_v55, %v3225_v6  ;;  %v3231_v60 = vpop.f32.mrb[55].mxu0  ;;  %3989 = vmatmul.mubr.bf16.gmra.mrb[112].mxu1 %v3476_v8 }
 0x43c   :  { %v4134_v35 = vadd.bf16 %v12968_v12, %v4032_v29  ;;  %v3313_v15 = vpack.c.bf16 %v3231_v60, %v3227_v58 }
 0x43d   :  { %v3414_v38 = vadd.bf16 %v12826_v37, %v3312_v4  ;;  %v4197_v61 = vmax.bf16 %v14821_v33, %v4133_v2 }
 0x43e   :  { %v3415_v13 = vadd.bf16 %v12829_v9, %v3313_v15  ;;  %v3730_v16 = vpop.f32.mrb[8].mxu1  ;;  %v4198_v41 = vmax.bf16 %v14821_v33, %v4134_v35 }
 0x43f   :  { %v3732_v63 = vpop.f32.mrb[9].mxu1  ;;  %v3478_v1 = vmax.bf16 %v14821_v33, %v3414_v38 }
 0x440   :  { %v3235_v53 = vpop.f32.mrb[56].mxu0  ;;  %v3734_v48 = vpop.f32.mrb[10].mxu1  ;;  %4493 = vmatprep.mubr.bf16.mxu0 %v4198_v41  ;;  %v3479_v6 = vmax.bf16 %v14821_v33, %v3415_v13 }
 0x441   :  { %v4033_v8 = vpack.c.bf16 %v3734_v48, %v3730_v16  ;;  %v3237_v31 = vpop.f32.mrb[57].mxu0  ;;  %v3736_v58 = vpop.f32.mrb[11].mxu1  ;;  %4494 = vmatmul.mubr.bf16.gmra.mrb[68].mxu0 %v4197_v61  ;;  %v10293_v48 = vld [vmem:[#allocation7 + $0xb4] ss:$8 sps:$4 sm:$0xff]  }
 0x442   :  { %v4034_v36 = vpack.c.bf16 %v3736_v58, %v3732_v63  ;;  %v3239_v29 = vpop.f32.mrb[58].mxu0  ;;  %3998 = vmatprep.mubr.bf16.mxu1 %v3479_v6  ;;  %v10291_v63 = vld [vmem:[#allocation7 + $0xb0] ss:$8 sps:$4 sm:$0xff]   ;;  %5248 = vmatprep.subr.bf16.mxu1 %v10293_v48 }
 0x443   :  { %v4135_v55 = vadd.bf16 %v12965_v19, %v4033_v8  ;;  %v3314_v4 = vpack.c.bf16 %v3239_v29, %v3235_v53  ;;  %v3241_v60 = vpop.f32.mrb[59].mxu0  ;;  %3999 = vmatmul.mubr.bf16.gmra.mrb[116].mxu1 %v3478_v1 }
 0x444   :  { %v4136_v2 = vadd.bf16 %v12968_v12, %v4034_v36  ;;  %v3315_v35 = vpack.c.bf16 %v3241_v60, %v3237_v31  ;;  %5249 = vmatpush1.bf16.msra.mxu1 %v10291_v63 }
 0x445   :  { %v3416_v15 = vadd.bf16 %v12826_v37, %v3314_v4  ;;  %v4199_v41 = vmax.bf16 %v14821_v33, %v4135_v55 }
 0x446   :  { %v3417_v13 = vadd.bf16 %v12829_v9, %v3315_v35  ;;  %v3740_v38 = vpop.f32.mrb[12].mxu1  ;;  %v4200_v16 = vmax.bf16 %v14821_v33, %v4136_v2 }
 0x447   :  { %v3742_v61 = vpop.f32.mrb[13].mxu1  ;;  %v3480_v1 = vmax.bf16 %v14821_v33, %v3416_v15 }
 0x448   :  { %v3245_v6 = vpop.f32.mrb[60].mxu0  ;;  %v3744_v8 = vpop.f32.mrb[14].mxu1  ;;  %4503 = vmatprep.mubr.bf16.mxu0 %v4200_v16  ;;  %v3481_v53 = vmax.bf16 %v14821_v33, %v3417_v13 }
 0x449   :  { %v4035_v31 = vpack.c.bf16 %v3744_v8, %v3740_v38  ;;  %v3247_v58 = vpop.f32.mrb[61].mxu0  ;;  %v3746_v36 = vpop.f32.mrb[15].mxu1  ;;  %4504 = vmatmul.mubr.bf16.gmra.mrb[72].mxu0 %v4199_v41 }
 0x44a   :  { %v4036_v29 = vpack.c.bf16 %v3746_v36, %v3742_v61  ;;  %v3249_v4 = vpop.f32.mrb[62].mxu0  ;;  %4008 = vmatprep.mubr.bf16.mxu1 %v3481_v53 }
 0x44b   :  { %v4137_v55 = vadd.bf16 %v12965_v19, %v4035_v31  ;;  %v3316_v60 = vpack.c.bf16 %v3249_v4, %v3245_v6  ;;  %v3251_v2 = vpop.f32.mrb[63].mxu0  ;;  %4009 = vmatmul.mubr.bf16.gmra.mrb[120].mxu1 %v3480_v1 }
 0x44c   :  { %v4138_v35 = vadd.bf16 %v12968_v12, %v4036_v29  ;;  %v3317_v16 = vpack.c.bf16 %v3251_v2, %v3247_v58 }
 0x44d   :  { %v3418_v13 = vadd.bf16 %v12826_v37, %v3316_v60  ;;  %v4201_v61 = vmax.bf16 %v14821_v33, %v4137_v55  ;;  %v10294_v55 = vld [vmem:[#allocation7 + $0xc0] ss:$8 sps:$4 sm:$0xff]   ;;  %v10296_v60 = vld [vmem:[#allocation7 + $0xc4] ss:$8 sps:$4 sm:$0xff]  }
 0x44e   :  { %v3419_v15 = vadd.bf16 %v12829_v9, %v3317_v16  ;;  %v3750_v38 = vpop.f32.mrb[16].mxu1  ;;  %v4202_v41 = vmax.bf16 %v14821_v33, %v4138_v35  ;;  %5250 = vmatprep.subr.bf16.mxu1 %v10296_v60 }
 0x44f   :  { %v3752_v48 = vpop.f32.mrb[17].mxu1  ;;  %v3482_v6 = vmax.bf16 %v14821_v33, %v3418_v13  ;;  %5251 = vmatpush1.bf16.msra.mxu1 %v10294_v55  ;;  %v10299_v55 = vld [vmem:[#allocation7 + $0xd4] ss:$8 sps:$4 sm:$0xff]  }
 0x450   :  { %v3754_v8 = vpop.f32.mrb[18].mxu1  ;;  %4513 = vmatprep.mubr.bf16.mxu0 %v4202_v41  ;;  %v3483_v63 = vmax.bf16 %v14821_v33, %v3419_v15  ;;  %5252 = vmatprep.subr.bf16.mxu1 %v10299_v55 }
 0x451   :  { %v4037_v53 = vpack.c.bf16 %v3754_v8, %v3750_v38  ;;  %v3756_v1 = vpop.f32.mrb[19].mxu1  ;;  %4514 = vmatmul.mubr.bf16.gmra.mrb[76].mxu0 %v4201_v61 }
 0x452   :  { %v4038_v31 = vpack.c.bf16 %v3756_v1, %v3752_v48  ;;  %4018 = vmatprep.mubr.bf16.mxu1 %v3483_v63 }
 0x453   :  { %v4139_v37 = vadd.bf16 %v12965_v19, %v4037_v53  ;;  %4019 = vmatmul.mubr.bf16.gmra.mrb[124].mxu1 %v3482_v6 }
 0x454   :  { %v4140_v9 = vadd.bf16 %v12968_v12, %v4038_v31 }
 0x455   :  { %v4203_v29 = vmax.bf16 %v14821_v33, %v4139_v37 }
 0x456   :  { %v3760_v58 = vpop.f32.mrb[20].mxu1  ;;  %v4204_v36 = vmax.bf16 %v14821_v33, %v4140_v9 }
 0x457   :  { %v3762_v4 = vpop.f32.mrb[21].mxu1 }
 0x458   :  { %v3764_v2 = vpop.f32.mrb[22].mxu1  ;;  %4523 = vmatprep.mubr.bf16.mxu0 %v4204_v36 }
 0x459   :  { %v4039_v35 = vpack.c.bf16 %v3764_v2, %v3760_v58  ;;  %v3766_v16 = vpop.f32.mrb[23].mxu1  ;;  %4524 = vmatmul.mubr.bf16.gmra.mrb[80].mxu0 %v4203_v29 }
 0x45a   :  { %v4040_v13 = vpack.c.bf16 %v3766_v16, %v3762_v4  ;;  %v10297_v4 = vld [vmem:[#allocation7 + $0xd0] ss:$8 sps:$4 sm:$0xff]  }
 0x45b   :  { %v4141_v15 = vadd.bf16 %v12965_v19, %v4039_v35  ;;  %5253 = vmatpush1.bf16.msra.mxu1 %v10297_v4  ;;  %v10302_v4 = vld [vmem:[#allocation7 + $0xe4] ss:$8 sps:$4 sm:$0xff]  }
 0x45c   :  { %v4142_v38 = vadd.bf16 %v12968_v12, %v4040_v13  ;;  %5254 = vmatprep.subr.bf16.mxu1 %v10302_v4  ;;  %v10306_v4 = vld [vmem:[#allocation7 + $0xf0] ss:$8 sps:$4 sm:$0xff]  }
 0x45d   :  { %v4205_v48 = vmax.bf16 %v14821_v33, %v4141_v15 }
 0x45e   :  { %v3770_v41 = vpop.f32.mrb[24].mxu1  ;;  %v4206_v61 = vmax.bf16 %v14821_v33, %v4142_v38 }
 0x45f   :  { %v3772_v8 = vpop.f32.mrb[25].mxu1 }
 0x460   :  { %v3774_v63 = vpop.f32.mrb[26].mxu1  ;;  %4533 = vmatprep.mubr.bf16.mxu0 %v4206_v61 }
 0x461   :  { %v4041_v6 = vpack.c.bf16 %v3774_v63, %v3770_v41  ;;  %v3776_v53 = vpop.f32.mrb[27].mxu1  ;;  %4534 = vmatmul.mubr.bf16.gmra.mrb[84].mxu0 %v4205_v48 }
 0x462   :  { %v4042_v1 = vpack.c.bf16 %v3776_v53, %v3772_v8 }
 0x463   :  { %v4143_v31 = vadd.bf16 %v12965_v19, %v4041_v6 }
 0x464   :  { %v4144_v37 = vadd.bf16 %v12968_v12, %v4042_v1 }
 0x465   :  { %v4207_v36 = vmax.bf16 %v14821_v33, %v4143_v31 }
 0x466   :  { %v3780_v9 = vpop.f32.mrb[28].mxu1  ;;  %v4208_v58 = vmax.bf16 %v14821_v33, %v4144_v37 }
 0x467   :  { %v3782_v29 = vpop.f32.mrb[29].mxu1 }
 0x468   :  { %v3784_v60 = vpop.f32.mrb[30].mxu1  ;;  %4543 = vmatprep.mubr.bf16.mxu0 %v4208_v58 }
 0x469   :  { %v4043_v2 = vpack.c.bf16 %v3784_v60, %v3780_v9  ;;  %v3786_v35 = vpop.f32.mrb[31].mxu1  ;;  %4544 = vmatmul.mubr.bf16.gmra.mrb[88].mxu0 %v4207_v36  ;;  %v10303_v60 = vld [vmem:[#allocation9] ss:$8 sps:$4 sm:$0xff]  }
 0x46a   :  { %v4044_v16 = vpack.c.bf16 %v3786_v35, %v3782_v29  ;;  %v10300_v29 = vld [vmem:[#allocation7 + $0xe0] ss:$8 sps:$4 sm:$0xff]  }
 0x46b   :  { %v4145_v13 = vadd.bf16 %v12965_v19, %v4043_v2  ;;  %v10305_v2 = vld [vmem:[#allocation9 + $0x4] ss:$8 sps:$4 sm:$0xff]   ;;  %5255 = vmatpush1.bf16.msra.mxu1 %v10300_v29 }
 0x46c   :  { %v4146_v15 = vadd.bf16 %v12968_v12, %v4044_v16  ;;  %6065 = vmatprep.subr.bf16.mxu0 %v10305_v2  ;;  %v10309_v2 = vld [vmem:[#allocation9 + $0x10] ss:$8 sps:$4 sm:$0xff]  }
 0x46d   :  { %v4209_v61 = vmax.bf16 %v14821_v33, %v4145_v13  ;;  %6066 = vmatpush1.bf16.msra.mxu0 %v10303_v60 }
 0x46e   :  { %v3790_v38 = vpop.f32.mrb[32].mxu1  ;;  %v4210_v41 = vmax.bf16 %v14821_v33, %v4146_v15 }
 0x46f   :  { %v3792_v48 = vpop.f32.mrb[33].mxu1 }
 0x470   :  { %v3794_v8 = vpop.f32.mrb[34].mxu1  ;;  %4553 = vmatprep.mubr.bf16.mxu0 %v4210_v41 }
 0x471   :  { %v4045_v63 = vpack.c.bf16 %v3794_v8, %v3790_v38  ;;  %v3796_v6 = vpop.f32.mrb[35].mxu1  ;;  %4554 = vmatmul.mubr.bf16.gmra.mrb[92].mxu0 %v4209_v61 }
 0x472   :  { %v4046_v53 = vpack.c.bf16 %v3796_v6, %v3792_v48 }
 0x473   :  { %v4147_v1 = vadd.bf16 %v12965_v19, %v4045_v63 }
 0x474   :  { %v4148_v31 = vadd.bf16 %v12968_v12, %v4046_v53 }
 0x475   :  { %v4211_v58 = vmax.bf16 %v14821_v33, %v4147_v1 }
 0x476   :  { %v3800_v37 = vpop.f32.mrb[36].mxu1  ;;  %v4212_v9 = vmax.bf16 %v14821_v33, %v4148_v31 }
 0x477   :  { %v3802_v36 = vpop.f32.mrb[37].mxu1 }
 0x478   :  { %v3804_v55 = vpop.f32.mrb[38].mxu1  ;;  %4563 = vmatprep.mubr.bf16.mxu0 %v4212_v9 }
 0x479   :  { %v4047_v35 = vpack.c.bf16 %v3804_v55, %v3800_v37  ;;  %v3806_v16 = vpop.f32.mrb[39].mxu1  ;;  %4564 = vmatmul.mubr.bf16.gmra.mrb[96].mxu0 %v4211_v58  ;;  %v10308_v55 = vld [vmem:[#allocation7 + $0xf4] ss:$8 sps:$4 sm:$0xff]  }
 0x47a   :  { %v4048_v13 = vpack.c.bf16 %v3806_v16, %v3802_v36  ;;  %5256 = vmatprep.subr.bf16.mxu1 %v10308_v55 }
 0x47b   :  { %v4149_v15 = vadd.bf16 %v12965_v19, %v4047_v35  ;;  %v10311_v35 = vld [vmem:[#allocation9 + $0x14] ss:$8 sps:$4 sm:$0xff]   ;;  %5257 = vmatpush1.bf16.msra.mxu1 %v10306_v4 }
 0x47c   :  { %v4150_v38 = vadd.bf16 %v12968_v12, %v4048_v13  ;;  %6067 = vmatprep.subr.bf16.mxu0 %v10311_v35 }
 0x47d   :  { %v4213_v48 = vmax.bf16 %v14821_v33, %v4149_v15  ;;  %6068 = vmatpush1.bf16.msra.mxu0 %v10309_v2 }
 0x47e   :  { %v3810_v41 = vpop.f32.mrb[40].mxu1  ;;  %v4214_v61 = vmax.bf16 %v14821_v33, %v4150_v38 }
 0x47f   :  { %v3812_v8 = vpop.f32.mrb[41].mxu1 }
 0x480   :  { %v3814_v63 = vpop.f32.mrb[42].mxu1  ;;  %4573 = vmatprep.mubr.bf16.mxu0 %v4214_v61 }
 0x481   :  { %v4049_v6 = vpack.c.bf16 %v3814_v63, %v3810_v41  ;;  %v3816_v53 = vpop.f32.mrb[43].mxu1  ;;  %4574 = vmatmul.mubr.bf16.gmra.mrb[100].mxu0 %v4213_v48 }
 0x482   :  { %v4050_v1 = vpack.c.bf16 %v3816_v53, %v3812_v8 }
 0x483   :  { %v4151_v31 = vadd.bf16 %v12965_v19, %v4049_v6 }
 0x484   :  { %v4152_v37 = vadd.bf16 %v12968_v12, %v4050_v1 }
 0x485   :  { %v4215_v36 = vmax.bf16 %v14821_v33, %v4151_v31 }
 0x486   :  { %v3820_v9 = vpop.f32.mrb[44].mxu1  ;;  %v4216_v58 = vmax.bf16 %v14821_v33, %v4152_v37 }
 0x487   :  { %v3822_v29 = vpop.f32.mrb[45].mxu1 }
 0x488   :  { %v3824_v60 = vpop.f32.mrb[46].mxu1  ;;  %4583 = vmatprep.mubr.bf16.mxu0 %v4216_v58 }
 0x489   :  { %v4051_v16 = vpack.c.bf16 %v3824_v60, %v3820_v9  ;;  %v3826_v13 = vpop.f32.mrb[47].mxu1  ;;  %4584 = vmatmul.mubr.bf16.gmra.mrb[104].mxu0 %v4215_v36 }
 0x48a   :  { %v4052_v15 = vpack.c.bf16 %v3826_v13, %v3822_v29  ;;  %v10312_v13 = vld [vmem:[#allocation9 + $0x20] ss:$8 sps:$4 sm:$0xff]  }
 0x48b   :  { %v4153_v38 = vadd.bf16 %v12965_v19, %v4051_v16 }
 0x48c   :  { %v4154_v41 = vadd.bf16 %v12968_v12, %v4052_v15  ;;  %v10314_v15 = vld [vmem:[#allocation9 + $0x24] ss:$8 sps:$4 sm:$0xff]  }
 0x48d   :  { %v4217_v8 = vmax.bf16 %v14821_v33, %v4153_v38  ;;  %6069 = vmatprep.subr.bf16.mxu0 %v10314_v15 }
 0x48e   :  { %v3830_v61 = vpop.f32.mrb[48].mxu1  ;;  %v4218_v48 = vmax.bf16 %v14821_v33, %v4154_v41  ;;  %6070 = vmatpush1.bf16.msra.mxu0 %v10312_v13  ;;  %v10317_v13 = vld [vmem:[#allocation9 + $0x34] ss:$8 sps:$4 sm:$0xff]  }
 0x48f   :  { %v3832_v63 = vpop.f32.mrb[49].mxu1  ;;  %6071 = vmatprep.subr.bf16.mxu0 %v10317_v13 }
 0x490   :  { %v3834_v6 = vpop.f32.mrb[50].mxu1  ;;  %4593 = vmatprep.mubr.bf16.mxu0 %v4218_v48 }
 0x491   :  { %v4053_v53 = vpack.c.bf16 %v3834_v6, %v3830_v61  ;;  %v3836_v1 = vpop.f32.mrb[51].mxu1  ;;  %4594 = vmatmul.mubr.bf16.gmra.mrb[108].mxu0 %v4217_v8 }
 0x492   :  { %v4054_v31 = vpack.c.bf16 %v3836_v1, %v3832_v63 }
 0x493   :  { %v4155_v37 = vadd.bf16 %v12965_v19, %v4053_v53 }
 0x494   :  { %v4156_v9 = vadd.bf16 %v12968_v12, %v4054_v31 }
 0x495   :  { %v4219_v29 = vmax.bf16 %v14821_v33, %v4155_v37 }
 0x496   :  { %v3840_v58 = vpop.f32.mrb[52].mxu1  ;;  %v4220_v36 = vmax.bf16 %v14821_v33, %v4156_v9 }
 0x497   :  { %v3842_v4 = vpop.f32.mrb[53].mxu1 }
 0x498   :  { %v3844_v55 = vpop.f32.mrb[54].mxu1  ;;  %4603 = vmatprep.mubr.bf16.mxu0 %v4220_v36 }
 0x499   :  { %v4055_v60 = vpack.c.bf16 %v3844_v55, %v3840_v58  ;;  %v3846_v2 = vpop.f32.mrb[55].mxu1  ;;  %4604 = vmatmul.mubr.bf16.gmra.mrb[112].mxu0 %v4219_v29 }
 0x49a   :  { %v4056_v35 = vpack.c.bf16 %v3846_v2, %v3842_v4 }
 0x49b   :  { %v4157_v16 = vadd.bf16 %v12965_v19, %v4055_v60 }
 0x49c   :  { %v4158_v38 = vadd.bf16 %v12968_v12, %v4056_v35 }
 0x49d   :  { %v4221_v48 = vmax.bf16 %v14821_v33, %v4157_v16  ;;  %v10315_v16 = vld [vmem:[#allocation9 + $0x30] ss:$8 sps:$4 sm:$0xff]  }
 0x49e   :  { %v3850_v41 = vpop.f32.mrb[56].mxu1  ;;  %v4222_v61 = vmax.bf16 %v14821_v33, %v4158_v38  ;;  %6072 = vmatpush1.bf16.msra.mxu0 %v10315_v16  ;;  %v10320_v16 = vld [vmem:[#allocation9 + $0x44] ss:$8 sps:$4 sm:$0xff]  }
 0x49f   :  { %v3852_v8 = vpop.f32.mrb[57].mxu1  ;;  %6073 = vmatprep.subr.bf16.mxu0 %v10320_v16 }
 0x4a0   :  { %v3854_v63 = vpop.f32.mrb[58].mxu1  ;;  %4613 = vmatprep.mubr.bf16.mxu0 %v4222_v61 }
 0x4a1   :  { %v4057_v6 = vpack.c.bf16 %v3854_v63, %v3850_v41  ;;  %v3856_v53 = vpop.f32.mrb[59].mxu1  ;;  %4614 = vmatmul.mubr.bf16.gmra.mrb[116].mxu0 %v4221_v48 }
 0x4a2   :  { %v4058_v1 = vpack.c.bf16 %v3856_v53, %v3852_v8 }
 0x4a3   :  { %v4159_v31 = vadd.bf16 %v12965_v19, %v4057_v6 }
 0x4a4   :  { %v4160_v37 = vadd.bf16 %v12968_v12, %v4058_v1 }
 0x4a5   :  { %v4223_v36 = vmax.bf16 %v14821_v33, %v4159_v31 }
 0x4a6   :  { %v3860_v9 = vpop.f32.mrb[60].mxu1  ;;  %v4224_v58 = vmax.bf16 %v14821_v33, %v4160_v37 }
 0x4a7   :  { %v3862_v29 = vpop.f32.mrb[61].mxu1 }
 0x4a8   :  { %v3864_v4 = vpop.f32.mrb[62].mxu1  ;;  %4623 = vmatprep.mubr.bf16.mxu0 %v4224_v58 }
 0x4a9   :  { %v4059_v55 = vpack.c.bf16 %v3864_v4, %v3860_v9  ;;  %v3866_v60 = vpop.f32.mrb[63].mxu1  ;;  %4624 = vmatmul.mubr.bf16.gmra.mrb[120].mxu0 %v4223_v36 }
 0x4aa   :  { %v4060_v2 = vpack.c.bf16 %v3866_v60, %v3862_v29 }
 0x4ab   :  { %v4161_v35 = vadd.bf16 %v12965_v19, %v4059_v55 }
 0x4ac   :  { %v4162_v15 = vadd.bf16 %v12968_v12, %v4060_v2 }
 0x4ad   :  { %v4225_v61 = vmax.bf16 %v14821_v33, %v4161_v35  ;;  %v10318_v35 = vld [vmem:[#allocation9 + $0x40] ss:$8 sps:$4 sm:$0xff]  }
 0x4ae   :  { %v3870_v38 = vpop.f32.mrb[64].mxu1  ;;  %v4226_v41 = vmax.bf16 %v14821_v33, %v4162_v15  ;;  %6074 = vmatpush1.bf16.msra.mxu0 %v10318_v35  ;;  %v10323_v35 = vld [vmem:[#allocation9 + $0x54] ss:$8 sps:$4 sm:$0xff]  }
 0x4af   :  { %v3872_v48 = vpop.f32.mrb[65].mxu1  ;;  %6075 = vmatprep.subr.bf16.mxu0 %v10323_v35 }
 0x4b0   :  { %v3874_v8 = vpop.f32.mrb[66].mxu1  ;;  %4633 = vmatprep.mubr.bf16.mxu0 %v4226_v41 }
 0x4b1   :  { %v4061_v63 = vpack.c.bf16 %v3874_v8, %v3870_v38  ;;  %v3876_v6 = vpop.f32.mrb[67].mxu1  ;;  %4634 = vmatmul.mubr.bf16.gmra.mrb[124].mxu0 %v4225_v61 }
 0x4b2   :  { %v4062_v53 = vpack.c.bf16 %v3876_v6, %v3872_v48 }
 0x4b3   :  { %v4163_v1 = vadd.bf16 %v12965_v19, %v4061_v63 }
 0x4b4   :  { %v4164_v31 = vadd.bf16 %v12968_v12, %v4062_v53 }
 0x4b5   :  { %v4227_v58 = vmax.bf16 %v14821_v33, %v4163_v1 }
 0x4b6   :  { %v3880_v37 = vpop.f32.mrb[68].mxu1  ;;  %v4228_v9 = vmax.bf16 %v14821_v33, %v4164_v31 }
 0x4b7   :  { %v3882_v36 = vpop.f32.mrb[69].mxu1 }
 0x4b8   :  { %v3884_v29 = vpop.f32.mrb[70].mxu1  ;;  %4643 = vmatprep.mubr.bf16.mxu0 %v4228_v9 }
 0x4b9   :  { %v4063_v4 = vpack.c.bf16 %v3884_v29, %v3880_v37  ;;  %v3886_v55 = vpop.f32.mrb[71].mxu1  ;;  %4644 = vmatmul.mubr.bf16.gmra.mrb[128].mxu0 %v4227_v58 }
 0x4ba   :  { %v4064_v60 = vpack.c.bf16 %v3886_v55, %v3882_v36 }
 0x4bb   :  { %v4165_v2 = vadd.bf16 %v12965_v19, %v4063_v4 }
 0x4bc   :  { %v4166_v13 = vadd.bf16 %v12968_v12, %v4064_v60 }
 0x4bd   :  { %v4229_v41 = vmax.bf16 %v14821_v33, %v4165_v2  ;;  %v10321_v2 = vld [vmem:[#allocation9 + $0x50] ss:$8 sps:$4 sm:$0xff]  }
 0x4be   :  { %v3890_v15 = vpop.f32.mrb[72].mxu1  ;;  %v4230_v38 = vmax.bf16 %v14821_v33, %v4166_v13  ;;  %6076 = vmatpush1.bf16.msra.mxu0 %v10321_v2  ;;  %v10326_v2 = vld [vmem:[#allocation9 + $0x64] ss:$8 sps:$4 sm:$0xff]  }
 0x4bf   :  { %v3892_v61 = vpop.f32.mrb[73].mxu1  ;;  %6077 = vmatprep.subr.bf16.mxu0 %v10326_v2 }
 0x4c0   :  { %v3894_v48 = vpop.f32.mrb[74].mxu1  ;;  %4653 = vmatprep.mubr.bf16.mxu0 %v4230_v38 }
 0x4c1   :  { %v4065_v8 = vpack.c.bf16 %v3894_v48, %v3890_v15  ;;  %v3896_v63 = vpop.f32.mrb[75].mxu1  ;;  %4654 = vmatmul.mubr.bf16.gmra.mrb[132].mxu0 %v4229_v41 }
 0x4c2   :  { %v4066_v6 = vpack.c.bf16 %v3896_v63, %v3892_v61 }
 0x4c3   :  { %v4167_v53 = vadd.bf16 %v12965_v19, %v4065_v8 }
 0x4c4   :  { %v4168_v1 = vadd.bf16 %v12968_v12, %v4066_v6 }
 0x4c5   :  { %v4231_v9 = vmax.bf16 %v14821_v33, %v4167_v53 }
 0x4c6   :  { %v3900_v31 = vpop.f32.mrb[76].mxu1  ;;  %v4232_v37 = vmax.bf16 %v14821_v33, %v4168_v1 }
 0x4c7   :  { %v3902_v58 = vpop.f32.mrb[77].mxu1 }
 0x4c8   :  { %v3904_v36 = vpop.f32.mrb[78].mxu1  ;;  %4663 = vmatprep.mubr.bf16.mxu0 %v4232_v37 }
 0x4c9   :  { %v4067_v29 = vpack.c.bf16 %v3904_v36, %v3900_v31  ;;  %v3906_v4 = vpop.f32.mrb[79].mxu1  ;;  %4664 = vmatmul.mubr.bf16.gmra.mrb[136].mxu0 %v4231_v9 }
 0x4ca   :  { %v4068_v55 = vpack.c.bf16 %v3906_v4, %v3902_v58 }
 0x4cb   :  { %v4169_v60 = vadd.bf16 %v12965_v19, %v4067_v29 }
 0x4cc   :  { %v4170_v16 = vadd.bf16 %v12968_v12, %v4068_v55 }
 0x4cd   :  { %v4233_v38 = vmax.bf16 %v14821_v33, %v4169_v60  ;;  %v10324_v60 = vld [vmem:[#allocation9 + $0x60] ss:$8 sps:$4 sm:$0xff]  }
 0x4ce   :  { %v3910_v13 = vpop.f32.mrb[80].mxu1  ;;  %v4234_v15 = vmax.bf16 %v14821_v33, %v4170_v16  ;;  %6078 = vmatpush1.bf16.msra.mxu0 %v10324_v60  ;;  %v10329_v60 = vld [vmem:[#allocation9 + $0x74] ss:$8 sps:$4 sm:$0xff]  }
 0x4cf   :  { %v3912_v41 = vpop.f32.mrb[81].mxu1  ;;  %6079 = vmatprep.subr.bf16.mxu0 %v10329_v60 }
 0x4d0   :  { %v3914_v61 = vpop.f32.mrb[82].mxu1  ;;  %4673 = vmatprep.mubr.bf16.mxu0 %v4234_v15 }
 0x4d1   :  { %v4069_v48 = vpack.c.bf16 %v3914_v61, %v3910_v13  ;;  %v3916_v8 = vpop.f32.mrb[83].mxu1  ;;  %4674 = vmatmul.mubr.bf16.gmra.mrb[140].mxu0 %v4233_v38 }
 0x4d2   :  { %v4070_v63 = vpack.c.bf16 %v3916_v8, %v3912_v41 }
 0x4d3   :  { %v4171_v6 = vadd.bf16 %v12965_v19, %v4069_v48 }
 0x4d4   :  { %v4172_v53 = vadd.bf16 %v12968_v12, %v4070_v63 }
 0x4d5   :  { %v4235_v37 = vmax.bf16 %v14821_v33, %v4171_v6 }
 0x4d6   :  { %v3920_v1 = vpop.f32.mrb[84].mxu1  ;;  %v4236_v31 = vmax.bf16 %v14821_v33, %v4172_v53 }
 0x4d7   :  { %v3922_v9 = vpop.f32.mrb[85].mxu1 }
 0x4d8   :  { %v3924_v58 = vpop.f32.mrb[86].mxu1  ;;  %4683 = vmatprep.mubr.bf16.mxu0 %v4236_v31 }
 0x4d9   :  { %v4071_v36 = vpack.c.bf16 %v3924_v58, %v3920_v1  ;;  %v3926_v29 = vpop.f32.mrb[87].mxu1  ;;  %4684 = vmatmul.mubr.bf16.gmra.mrb[144].mxu0 %v4235_v37 }
 0x4da   :  { %v4072_v4 = vpack.c.bf16 %v3926_v29, %v3922_v9 }
 0x4db   :  { %v4173_v55 = vadd.bf16 %v12965_v19, %v4071_v36 }
 0x4dc   :  { %v4174_v35 = vadd.bf16 %v12968_v12, %v4072_v4 }
 0x4dd   :  { %v4237_v15 = vmax.bf16 %v14821_v33, %v4173_v55  ;;  %v10327_v55 = vld [vmem:[#allocation9 + $0x70] ss:$8 sps:$4 sm:$0xff]  }
 0x4de   :  { %v3930_v16 = vpop.f32.mrb[88].mxu1  ;;  %v4238_v13 = vmax.bf16 %v14821_v33, %v4174_v35  ;;  %6080 = vmatpush1.bf16.msra.mxu0 %v10327_v55  ;;  %v10332_v55 = vld [vmem:[#allocation9 + $0x84] ss:$8 sps:$4 sm:$0xff]  }
 0x4df   :  { %v3932_v38 = vpop.f32.mrb[89].mxu1  ;;  %6081 = vmatprep.subr.bf16.mxu0 %v10332_v55 }
 0x4e0   :  { %v3934_v41 = vpop.f32.mrb[90].mxu1  ;;  %4693 = vmatprep.mubr.bf16.mxu0 %v4238_v13 }
 0x4e1   :  { %v4073_v61 = vpack.c.bf16 %v3934_v41, %v3930_v16  ;;  %v3936_v48 = vpop.f32.mrb[91].mxu1  ;;  %4694 = vmatmul.mubr.bf16.gmra.mrb[148].mxu0 %v4237_v15 }
 0x4e2   :  { %v4074_v8 = vpack.c.bf16 %v3936_v48, %v3932_v38 }
 0x4e3   :  { %v4175_v63 = vadd.bf16 %v12965_v19, %v4073_v61 }
 0x4e4   :  { %v4176_v6 = vadd.bf16 %v12968_v12, %v4074_v8 }
 0x4e5   :  { %v4239_v31 = vmax.bf16 %v14821_v33, %v4175_v63 }
 0x4e6   :  { %v3940_v53 = vpop.f32.mrb[92].mxu1  ;;  %v4240_v1 = vmax.bf16 %v14821_v33, %v4176_v6 }
 0x4e7   :  { %v3942_v37 = vpop.f32.mrb[93].mxu1 }
 0x4e8   :  { %v3944_v9 = vpop.f32.mrb[94].mxu1  ;;  %4703 = vmatprep.mubr.bf16.mxu0 %v4240_v1 }
 0x4e9   :  { %v4075_v58 = vpack.c.bf16 %v3944_v9, %v3940_v53  ;;  %v3946_v36 = vpop.f32.mrb[95].mxu1  ;;  %4704 = vmatmul.mubr.bf16.gmra.mrb[152].mxu0 %v4239_v31 }
 0x4ea   :  { %v4076_v29 = vpack.c.bf16 %v3946_v36, %v3942_v37 }
 0x4eb   :  { %v4177_v4 = vadd.bf16 %v12965_v19, %v4075_v58 }
 0x4ec   :  { %v4178_v2 = vadd.bf16 %v12968_v12, %v4076_v29 }
 0x4ed   :  { %v4241_v13 = vmax.bf16 %v14821_v33, %v4177_v4  ;;  %v10330_v4 = vld [vmem:[#allocation9 + $0x80] ss:$8 sps:$4 sm:$0xff]  }
 0x4ee   :  { %v3950_v35 = vpop.f32.mrb[96].mxu1  ;;  %v4242_v16 = vmax.bf16 %v14821_v33, %v4178_v2  ;;  %6082 = vmatpush1.bf16.msra.mxu0 %v10330_v4 }
 0x4ef   :  { %v3952_v15 = vpop.f32.mrb[97].mxu1 }
 0x4f0   :  { %v3954_v38 = vpop.f32.mrb[98].mxu1  ;;  %4713 = vmatprep.mubr.bf16.mxu0 %v4242_v16 }
 0x4f1   :  { %v4077_v41 = vpack.c.bf16 %v3954_v38, %v3950_v35  ;;  %v3956_v61 = vpop.f32.mrb[99].mxu1  ;;  %4714 = vmatmul.mubr.bf16.gmra.mrb[156].mxu0 %v4241_v13 }
 0x4f2   :  { %v4078_v48 = vpack.c.bf16 %v3956_v61, %v3952_v15  ;;  %v9560_v15 = vld.sshfl [vmem:[%s14625_s10] sm:$0x11 pattern:$0x75316420] }
 0x4f3   :  { %v4179_v8 = vadd.bf16 %v12965_v19, %v4077_v41 }
 0x4f4   :  { %v4180_v63 = vadd.bf16 %v12968_v12, %v4078_v48 }
 0x4f5   :  { %v4243_v1 = vmax.bf16 %v14821_v33, %v4179_v8  ;;  %v4877_v8 = vcombine.high %v9560_v15, %v9560_v15 }
 0x4f6   :  { %v3960_v6 = vpop.f32.mrb[100].mxu1  ;;  %v4244_v53 = vmax.bf16 %v14821_v33, %v4180_v63 }
 0x4f7   :  { %v3962_v31 = vpop.f32.mrb[101].mxu1 }
 0x4f8   :  { %v3964_v37 = vpop.f32.mrb[102].mxu1  ;;  %4723 = vmatprep.mubr.bf16.mxu0 %v4244_v53  ;;  %v4884_v53 = vrot.slane %v9560_v15, %v11601_v42 }
 0x4f9   :  { %v4079_v9 = vpack.c.bf16 %v3964_v37, %v3960_v6  ;;  %v3966_v58 = vpop.f32.mrb[103].mxu1  ;;  %4724 = vmatmul.mubr.bf16.gmra.mrb[160].mxu0 %v4243_v1  ;;  %v4891_v37 = vrot.slane %v4877_v8, %v11601_v42 }
 0x4fa   :  { %v4080_v36 = vpack.c.bf16 %v3966_v58, %v3962_v31  ;;  %v4893_v55 = vpack.i.b16 %v4884_v53, %v4884_v53 }
 0x4fb   :  { %v4181_v29 = vadd.bf16 %v12965_v19, %v4079_v9 }
 0x4fc   :  { %v4182_v60 = vadd.bf16 %v12968_v12, %v4080_v36 }
 0x4fd   :  { %v4245_v16 = vmax.bf16 %v14821_v33, %v4181_v29 }
 0x4fe   :  { %v3970_v2 = vpop.f32.mrb[104].mxu1  ;;  %v4246_v35 = vmax.bf16 %v14821_v33, %v4182_v60 }
 0x4ff   :  { %v3972_v13 = vpop.f32.mrb[105].mxu1 }
 0x500   :  { %v3974_v38 = vpop.f32.mrb[106].mxu1  ;;  %4733 = vmatprep.mubr.bf16.mxu0 %v4246_v35 }
 0x501   :  { %v4081_v41 = vpack.c.bf16 %v3974_v38, %v3970_v2  ;;  %v3976_v61 = vpop.f32.mrb[107].mxu1  ;;  %4734 = vmatmul.mubr.bf16.gmra.mrb[164].mxu0 %v4245_v16  ;;  %v4900_v2 = vpack.i.b16 %v4891_v37, %v4891_v37  ;;  %v10333_v16 = vld [vmem:[#allocation9 + $0x90] ss:$8 sps:$4 sm:$0xff]  }
 0x502   :  { %v4082_v48 = vpack.c.bf16 %v3976_v61, %v3972_v13  ;;  %v10335_v13 = vld [vmem:[#allocation9 + $0x94] ss:$8 sps:$4 sm:$0xff]   ;;  %v13104_v61 = vrot.slane %v4893_v55, %v11632_v57 }
 0x503   :  { %v4183_v63 = vadd.bf16 %v12965_v19, %v4081_v41  ;;  %6083 = vmatprep.subr.bf16.mxu0 %v10335_v13 }
 0x504   :  { %v4184_v6 = vadd.bf16 %v12968_v12, %v4082_v48  ;;  %6084 = vmatpush1.bf16.msra.mxu0 %v10333_v16 }
 0x505   :  { %v4247_v9 = vmax.bf16 %v14821_v33, %v4183_v63  ;;  %v13107_v63 = vrot.slane %v4900_v2, %v11632_v57 }
 0x506   :  { %v3980_v1 = vpop.f32.mrb[108].mxu1  ;;  %v4248_v31 = vmax.bf16 %v14821_v33, %v4184_v6 }
 0x507   :  { %v3982_v58 = vpop.f32.mrb[109].mxu1 }
 0x508   :  { %v3984_v36 = vpop.f32.mrb[110].mxu1  ;;  %4743 = vmatprep.mubr.bf16.mxu0 %v4248_v31 }
 0x509   :  { %v4083_v29 = vpack.c.bf16 %v3984_v36, %v3980_v1  ;;  %v3986_v4 = vpop.f32.mrb[111].mxu1  ;;  %4744 = vmatmul.mubr.bf16.gmra.mrb[168].mxu0 %v4247_v9 }
 0x50a   :  { %v4084_v60 = vpack.c.bf16 %v3986_v4, %v3982_v58 }
 0x50b   :  { %v4185_v35 = vadd.bf16 %v12965_v19, %v4083_v29 }
 0x50c   :  { %v4186_v15 = vadd.bf16 %v12968_v12, %v4084_v60  ;;  %v4485_v38 = vpop.f32.mrb[64].mxu0 }
 0x50d   :  { %v4487_v41 = vpop.f32.mrb[65].mxu0  ;;  %v4249_v53 = vmax.bf16 %v14821_v33, %v4185_v35 }
 0x50e   :  { %v3990_v48 = vpop.f32.mrb[112].mxu1  ;;  %v4489_v8 = vpop.f32.mrb[66].mxu0  ;;  %v4250_v6 = vmax.bf16 %v14821_v33, %v4186_v15 }
 0x50f   :  { %v4804_v1 = vpack.c.bf16 %v4489_v8, %v4485_v38  ;;  %v3992_v31 = vpop.f32.mrb[113].mxu1  ;;  %v4491_v37 = vpop.f32.mrb[67].mxu0 }
 0x510   :  { %v4805_v9 = vpack.c.bf16 %v4491_v37, %v4487_v41  ;;  %v3994_v58 = vpop.f32.mrb[114].mxu1  ;;  %4753 = vmatprep.mubr.bf16.mxu0 %v4250_v6 }
 0x511   :  { %v4906_v36 = vadd.bf16 %v13104_v61, %v4804_v1  ;;  %v4085_v29 = vpack.c.bf16 %v3994_v58, %v3990_v48  ;;  %v3996_v4 = vpop.f32.mrb[115].mxu1  ;;  %4754 = vmatmul.mubr.bf16.gmra.mrb[172].mxu0 %v4249_v53 }
 0x512   :  { %v4907_v55 = vadd.bf16 %v13107_v63, %v4805_v9  ;;  %v4086_v60 = vpack.c.bf16 %v3996_v4, %v3992_v31 }
 0x513   :  { %v4187_v2 = vadd.bf16 %v12965_v19, %v4085_v29  ;;  %v4970_v15 = vmax.bf16 %v14821_v33, %v4906_v36 }
 0x514   :  { %v4188_v16 = vadd.bf16 %v12968_v12, %v4086_v60  ;;  %v4495_v13 = vpop.f32.mrb[68].mxu0  ;;  %v4971_v35 = vmax.bf16 %v14821_v33, %v4907_v55 }
 0x515   :  { %v4497_v38 = vpop.f32.mrb[69].mxu0  ;;  %v4251_v6 = vmax.bf16 %v14821_v33, %v4187_v2 }
 0x516   :  { %v4000_v41 = vpop.f32.mrb[116].mxu1  ;;  %v4499_v8 = vpop.f32.mrb[70].mxu0  ;;  %5258 = vmatprep.mubr.bf16.mxu1 %v4971_v35  ;;  %v4252_v48 = vmax.bf16 %v14821_v33, %v4188_v16  ;;  %v10336_v16 = vld [vmem:[#allocation9 + $0xa0] ss:$8 sps:$4 sm:$0xff]   ;;  %v10338_v35 = vld [vmem:[#allocation9 + $0xa4] ss:$8 sps:$4 sm:$0xff]  }
 0x517   :  { %v4806_v53 = vpack.c.bf16 %v4499_v8, %v4495_v13  ;;  %v4002_v1 = vpop.f32.mrb[117].mxu1  ;;  %v4501_v31 = vpop.f32.mrb[71].mxu0  ;;  %5259 = vmatmul.mubr.bf16.vlgmr.msra.gmra.mrb[128].mxu1 %v4970_v15  ;;  %6085 = vmatprep.subr.bf16.mxu0 %v10338_v35 }
 0x518   :  { %v4807_v37 = vpack.c.bf16 %v4501_v31, %v4497_v38  ;;  %v4004_v9 = vpop.f32.mrb[118].mxu1  ;;  %4763 = vmatprep.mubr.bf16.mxu0 %v4252_v48  ;;  %6086 = vmatpush1.bf16.msra.mxu0 %v10336_v16 }
 0x519   :  { %v4908_v58 = vadd.bf16 %v13104_v61, %v4806_v53  ;;  %v4087_v29 = vpack.c.bf16 %v4004_v9, %v4000_v41  ;;  %v4006_v4 = vpop.f32.mrb[119].mxu1  ;;  %4764 = vmatmul.mubr.bf16.gmra.mrb[176].mxu0 %v4251_v6 }
 0x51a   :  { %v4909_v36 = vadd.bf16 %v13107_v63, %v4807_v37  ;;  %v4088_v55 = vpack.c.bf16 %v4006_v4, %v4002_v1 }
 0x51b   :  { %v4189_v60 = vadd.bf16 %v12965_v19, %v4087_v29  ;;  %v4972_v38 = vmax.bf16 %v14821_v33, %v4908_v58 }
 0x51c   :  { %v4190_v2 = vadd.bf16 %v12968_v12, %v4088_v55  ;;  %v4505_v13 = vpop.f32.mrb[72].mxu0  ;;  %v4973_v15 = vmax.bf16 %v14821_v33, %v4909_v36 }
 0x51d   :  { %v4507_v8 = vpop.f32.mrb[73].mxu0  ;;  %v4253_v53 = vmax.bf16 %v14821_v33, %v4189_v60 }
 0x51e   :  { %v4010_v48 = vpop.f32.mrb[120].mxu1  ;;  %v4509_v41 = vpop.f32.mrb[74].mxu0  ;;  %5268 = vmatprep.mubr.bf16.mxu1 %v4973_v15  ;;  %v4254_v6 = vmax.bf16 %v14821_v33, %v4190_v2 }
 0x51f   :  { %v4808_v1 = vpack.c.bf16 %v4509_v41, %v4505_v13  ;;  %v4012_v31 = vpop.f32.mrb[121].mxu1  ;;  %v4511_v37 = vpop.f32.mrb[75].mxu0  ;;  %5269 = vmatmul.mubr.bf16.gmra.mrb[132].mxu1 %v4972_v38 }
 0x520   :  { %v4809_v9 = vpack.c.bf16 %v4511_v37, %v4507_v8  ;;  %v4014_v29 = vpop.f32.mrb[122].mxu1  ;;  %4773 = vmatprep.mubr.bf16.mxu0 %v4254_v6 }
 0x521   :  { %v4910_v4 = vadd.bf16 %v13104_v61, %v4808_v1  ;;  %v4089_v58 = vpack.c.bf16 %v4014_v29, %v4010_v48  ;;  %v4016_v36 = vpop.f32.mrb[123].mxu1  ;;  %4774 = vmatmul.mubr.bf16.gmra.mrb[180].mxu0 %v4253_v53 }
 0x522   :  { %v4911_v55 = vadd.bf16 %v13107_v63, %v4809_v9  ;;  %v4090_v35 = vpack.c.bf16 %v4016_v36, %v4012_v31 }
 0x523   :  { %v4191_v2 = vadd.bf16 %v12965_v19, %v4089_v58  ;;  %v4974_v15 = vmax.bf16 %v14821_v33, %v4910_v4 }
 0x524   :  { %v4192_v16 = vadd.bf16 %v12968_v12, %v4090_v35  ;;  %v4515_v60 = vpop.f32.mrb[76].mxu0  ;;  %v4975_v13 = vmax.bf16 %v14821_v33, %v4911_v55 }
 0x525   :  { %v4517_v38 = vpop.f32.mrb[77].mxu0  ;;  %v4255_v6 = vmax.bf16 %v14821_v33, %v4191_v2 }
 0x526   :  { %v4020_v8 = vpop.f32.mrb[124].mxu1  ;;  %v4519_v41 = vpop.f32.mrb[78].mxu0  ;;  %5278 = vmatprep.mubr.bf16.mxu1 %v4975_v13  ;;  %v4256_v48 = vmax.bf16 %v14821_v33, %v4192_v16  ;;  %v10339_v16 = vld [vmem:[#allocation9 + $0xb0] ss:$8 sps:$4 sm:$0xff]   ;;  %v10341_v13 = vld [vmem:[#allocation9 + $0xb4] ss:$8 sps:$4 sm:$0xff]  }
 0x527   :  { %v4810_v53 = vpack.c.bf16 %v4519_v41, %v4515_v60  ;;  %v4022_v1 = vpop.f32.mrb[125].mxu1  ;;  %v4521_v31 = vpop.f32.mrb[79].mxu0  ;;  %5279 = vmatmul.mubr.bf16.gmra.mrb[136].mxu1 %v4974_v15  ;;  %6087 = vmatprep.subr.bf16.mxu0 %v10341_v13 }
 0x528   :  { %v4811_v37 = vpack.c.bf16 %v4521_v31, %v4517_v38  ;;  %v4024_v9 = vpop.f32.mrb[126].mxu1  ;;  %4783 = vmatprep.mubr.bf16.mxu0 %v4256_v48  ;;  %6088 = vmatpush1.bf16.msra.mxu0 %v10339_v16 }
 0x529   :  { %v4912_v29 = vadd.bf16 %v13104_v61, %v4810_v53  ;;  %v4091_v58 = vpack.c.bf16 %v4024_v9, %v4020_v8  ;;  %v4026_v36 = vpop.f32.mrb[127].mxu1  ;;  %4784 = vmatmul.mubr.bf16.gmra.mrb[184].mxu0 %v4255_v6 }
 0x52a   :  { %v4913_v4 = vadd.bf16 %v13107_v63, %v4811_v37  ;;  %v4092_v55 = vpack.c.bf16 %v4026_v36, %v4022_v1 }
 0x52b   :  { %v4193_v35 = vadd.bf16 %v12965_v19, %v4091_v58  ;;  %v4976_v38 = vmax.bf16 %v14821_v33, %v4912_v29 }
 0x52c   :  { %v4194_v2 = vadd.bf16 %v12968_v12, %v4092_v55  ;;  %v4525_v60 = vpop.f32.mrb[80].mxu0  ;;  %v4977_v15 = vmax.bf16 %v14821_v33, %v4913_v4 }
 0x52d   :  { %v4527_v41 = vpop.f32.mrb[81].mxu0  ;;  %v4257_v6 = vmax.bf16 %v14821_v33, %v4193_v35 }
 0x52e   :  { %v4529_v48 = vpop.f32.mrb[82].mxu0  ;;  %5288 = vmatprep.mubr.bf16.mxu1 %v4977_v15  ;;  %v4258_v8 = vmax.bf16 %v14821_v33, %v4194_v2  ;;  %v10342_v2 = vld [vmem:[#allocation9 + $0xc0] ss:$8 sps:$4 sm:$0xff]  }
 0x52f   :  { %v4812_v53 = vpack.c.bf16 %v4529_v48, %v4525_v60  ;;  %v4531_v19 = vpop.f32.mrb[83].mxu0  ;;  %5289 = vmatmul.mubr.bf16.gmra.mrb[140].mxu1 %v4976_v38  ;;  %v10344_v60 = vld [vmem:[#allocation9 + $0xc4] ss:$8 sps:$4 sm:$0xff]  }
 0x530   :  { %v4813_v1 = vpack.c.bf16 %v4531_v19, %v4527_v41  ;;  %4793 = vmatprep.mubr.bf16.mxu0 %v4258_v8  ;;  %6089 = vmatprep.subr.bf16.mxu0 %v10344_v60 }
 0x531   :  { %v4914_v12 = vadd.bf16 %v13104_v61, %v4812_v53  ;;  %4794 = vmatmul.mubr.bf16.gmra.mrb[188].mxu0 %v4257_v6 }
 0x532   :  { %v4915_v31 = vadd.bf16 %v13107_v63, %v4813_v1  ;;  %6090 = vmatpush1.bf16.msra.mxu0 %v10342_v2  ;;  %v10347_v2 = vld [vmem:[#allocation9 + $0xd4] ss:$8 sps:$4 sm:$0xff]  }
 0x533   :  { %v4978_v29 = vmax.bf16 %v14821_v33, %v4914_v12  ;;  %6091 = vmatprep.subr.bf16.mxu0 %v10347_v2  ;;  %v10351_v2 = vld [vmem:[#allocation9 + $0xe0] ss:$8 sps:$4 sm:$0xff]  }
 0x534   :  { %v4535_v37 = vpop.f32.mrb[84].mxu0  ;;  %v4979_v9 = vmax.bf16 %v14821_v33, %v4915_v31 }
 0x535   :  { %v4537_v58 = vpop.f32.mrb[85].mxu0 }
 0x536   :  { %v4539_v36 = vpop.f32.mrb[86].mxu0  ;;  %5298 = vmatprep.mubr.bf16.mxu1 %v4979_v9 }
 0x537   :  { %v4814_v4 = vpack.c.bf16 %v4539_v36, %v4535_v37  ;;  %v4541_v55 = vpop.f32.mrb[87].mxu0  ;;  %5299 = vmatmul.mubr.bf16.gmra.mrb[144].mxu1 %v4978_v29 }
 0x538   :  { %v4815_v35 = vpack.c.bf16 %v4541_v55, %v4537_v58 }
 0x539   :  { %v4916_v16 = vadd.bf16 %v13104_v61, %v4814_v4 }
 0x53a   :  { %v4917_v13 = vadd.bf16 %v13107_v63, %v4815_v35 }
 0x53b   :  { %v4980_v41 = vmax.bf16 %v14821_v33, %v4916_v16 }
 0x53c   :  { %v4545_v15 = vpop.f32.mrb[88].mxu0  ;;  %v4981_v38 = vmax.bf16 %v14821_v33, %v4917_v13  ;;  %v10345_v13 = vld [vmem:[#allocation9 + $0xd0] ss:$8 sps:$4 sm:$0xff]  }
 0x53d   :  { %v4547_v48 = vpop.f32.mrb[89].mxu0  ;;  %6092 = vmatpush1.bf16.msra.mxu0 %v10345_v13 }
 0x53e   :  { %v4549_v8 = vpop.f32.mrb[90].mxu0  ;;  %5308 = vmatprep.mubr.bf16.mxu1 %v4981_v38 }
 0x53f   :  { %v4816_v6 = vpack.c.bf16 %v4549_v8, %v4545_v15  ;;  %v4551_v53 = vpop.f32.mrb[91].mxu0  ;;  %5309 = vmatmul.mubr.bf16.gmra.mrb[148].mxu1 %v4980_v41 }
 0x540   :  { %v4817_v19 = vpack.c.bf16 %v4551_v53, %v4547_v48 }
 0x541   :  { %v4918_v1 = vadd.bf16 %v13104_v61, %v4816_v6 }
 0x542   :  { %v4919_v12 = vadd.bf16 %v13107_v63, %v4817_v19 }
 0x543   :  { %v4982_v9 = vmax.bf16 %v14821_v33, %v4918_v1 }
 0x544   :  { %v4555_v31 = vpop.f32.mrb[92].mxu0  ;;  %v4983_v37 = vmax.bf16 %v14821_v33, %v4919_v12 }
 0x545   :  { %v4557_v29 = vpop.f32.mrb[93].mxu0 }
 0x546   :  { %v4559_v58 = vpop.f32.mrb[94].mxu0  ;;  %5318 = vmatprep.mubr.bf16.mxu1 %v4983_v37 }
 0x547   :  { %v4818_v36 = vpack.c.bf16 %v4559_v58, %v4555_v31  ;;  %v4561_v4 = vpop.f32.mrb[95].mxu0  ;;  %5319 = vmatmul.mubr.bf16.gmra.mrb[152].mxu1 %v4982_v9  ;;  %v10350_v58 = vld [vmem:[#allocation10 + $0x4] ss:$8 sps:$4 sm:$0xff]  }
 0x548   :  { %v4819_v55 = vpack.c.bf16 %v4561_v4, %v4557_v29  ;;  %v10348_v29 = vld [vmem:[#allocation10] ss:$8 sps:$4 sm:$0xff]   ;;  %6840 = vmatprep.subr.bf16.mxu1 %v10350_v58  ;;  %v10354_v58 = vld [vmem:[#allocation10 + $0x10] ss:$8 sps:$4 sm:$0xff]  }
 0x549   :  { %v4920_v35 = vadd.bf16 %v13104_v61, %v4818_v36  ;;  %6841 = vmatpush1.bf16.msra.mxu1 %v10348_v29 }
 0x54a   :  { %v4921_v16 = vadd.bf16 %v13107_v63, %v4819_v55 }
 0x54b   :  { %v4984_v38 = vmax.bf16 %v14821_v33, %v4920_v35 }
 0x54c   :  { %v4565_v60 = vpop.f32.mrb[96].mxu0  ;;  %v4985_v15 = vmax.bf16 %v14821_v33, %v4921_v16 }
 0x54d   :  { %v4567_v41 = vpop.f32.mrb[97].mxu0 }
 0x54e   :  { %v4569_v48 = vpop.f32.mrb[98].mxu0  ;;  %5328 = vmatprep.mubr.bf16.mxu1 %v4985_v15 }
 0x54f   :  { %v4820_v8 = vpack.c.bf16 %v4569_v48, %v4565_v60  ;;  %v4571_v6 = vpop.f32.mrb[99].mxu0  ;;  %5329 = vmatmul.mubr.bf16.gmra.mrb[156].mxu1 %v4984_v38  ;;  %v10353_v60 = vld [vmem:[#allocation9 + $0xe4] ss:$8 sps:$4 sm:$0xff]  }
 0x550   :  { %v4821_v53 = vpack.c.bf16 %v4571_v6, %v4567_v41  ;;  %6093 = vmatprep.subr.bf16.mxu0 %v10353_v60  ;;  %v10357_v60 = vld [vmem:[#allocation9 + $0xf0] ss:$8 sps:$4 sm:$0xff]  }
 0x551   :  { %v4922_v19 = vadd.bf16 %v13104_v61, %v4820_v8  ;;  %6094 = vmatpush1.bf16.msra.mxu0 %v10351_v2 }
 0x552   :  { %v4923_v1 = vadd.bf16 %v13107_v63, %v4821_v53 }
 0x553   :  { %v4986_v37 = vmax.bf16 %v14821_v33, %v4922_v19 }
 0x554   :  { %v4575_v12 = vpop.f32.mrb[100].mxu0  ;;  %v4987_v31 = vmax.bf16 %v14821_v33, %v4923_v1 }
 0x555   :  { %v4577_v9 = vpop.f32.mrb[101].mxu0 }
 0x556   :  { %v4579_v36 = vpop.f32.mrb[102].mxu0  ;;  %5338 = vmatprep.mubr.bf16.mxu1 %v4987_v31 }
 0x557   :  { %v4822_v4 = vpack.c.bf16 %v4579_v36, %v4575_v12  ;;  %v4581_v55 = vpop.f32.mrb[103].mxu0  ;;  %5339 = vmatmul.mubr.bf16.gmra.mrb[160].mxu1 %v4986_v37  ;;  %v10356_v36 = vld [vmem:[#allocation10 + $0x14] ss:$8 sps:$4 sm:$0xff]  }
 0x558   :  { %v4823_v35 = vpack.c.bf16 %v4581_v55, %v4577_v9  ;;  %6842 = vmatprep.subr.bf16.mxu1 %v10356_v36 }
 0x559   :  { %v4924_v16 = vadd.bf16 %v13104_v61, %v4822_v4  ;;  %6843 = vmatpush1.bf16.msra.mxu1 %v10354_v58 }
 0x55a   :  { %v4925_v13 = vadd.bf16 %v13107_v63, %v4823_v35 }
 0x55b   :  { %v4988_v41 = vmax.bf16 %v14821_v33, %v4924_v16 }
 0x55c   :  { %v4585_v15 = vpop.f32.mrb[104].mxu0  ;;  %v4989_v38 = vmax.bf16 %v14821_v33, %v4925_v13 }
 0x55d   :  { %v4587_v48 = vpop.f32.mrb[105].mxu0 }
 0x55e   :  { %v4589_v8 = vpop.f32.mrb[106].mxu0  ;;  %5348 = vmatprep.mubr.bf16.mxu1 %v4989_v38 }
 0x55f   :  { %v4824_v6 = vpack.c.bf16 %v4589_v8, %v4585_v15  ;;  %v4591_v53 = vpop.f32.mrb[107].mxu0  ;;  %5349 = vmatmul.mubr.bf16.gmra.mrb[164].mxu1 %v4988_v41  ;;  %v10359_v15 = vld [vmem:[#allocation9 + $0xf4] ss:$8 sps:$4 sm:$0xff]  }
 0x560   :  { %v4825_v19 = vpack.c.bf16 %v4591_v53, %v4587_v48  ;;  %6095 = vmatprep.subr.bf16.mxu0 %v10359_v15 }
 0x561   :  { %v4926_v1 = vadd.bf16 %v13104_v61, %v4824_v6  ;;  %6096 = vmatpush1.bf16.msra.mxu0 %v10357_v60  ;;  %v10362_v60 = vld [vmem:[#allocation10 + $0x24] ss:$8 sps:$4 sm:$0xff]  }
 0x562   :  { %v4927_v12 = vadd.bf16 %v13107_v63, %v4825_v19  ;;  %6844 = vmatprep.subr.bf16.mxu1 %v10362_v60 }
 0x563   :  { %v4990_v9 = vmax.bf16 %v14821_v33, %v4926_v1 }
 0x564   :  { %v4595_v31 = vpop.f32.mrb[108].mxu0  ;;  %v4991_v37 = vmax.bf16 %v14821_v33, %v4927_v12 }
 0x565   :  { %v4597_v29 = vpop.f32.mrb[109].mxu0 }
 0x566   :  { %v4599_v4 = vpop.f32.mrb[110].mxu0  ;;  %5358 = vmatprep.mubr.bf16.mxu1 %v4991_v37 }
 0x567   :  { %v4826_v55 = vpack.c.bf16 %v4599_v4, %v4595_v31  ;;  %v4601_v35 = vpop.f32.mrb[111].mxu0  ;;  %5359 = vmatmul.mubr.bf16.gmra.mrb[168].mxu1 %v4990_v9 }
 0x568   :  { %v4827_v16 = vpack.c.bf16 %v4601_v35, %v4597_v29 }
 0x569   :  { %v4928_v13 = vadd.bf16 %v13104_v61, %v4826_v55 }
 0x56a   :  { %v4929_v2 = vadd.bf16 %v13107_v63, %v4827_v16 }
 0x56b   :  { %v4992_v48 = vmax.bf16 %v14821_v33, %v4928_v13 }
 0x56c   :  { %v4605_v38 = vpop.f32.mrb[112].mxu0  ;;  %v4993_v41 = vmax.bf16 %v14821_v33, %v4929_v2  ;;  %v10360_v2 = vld [vmem:[#allocation10 + $0x20] ss:$8 sps:$4 sm:$0xff]  }
 0x56d   :  { %v4607_v8 = vpop.f32.mrb[113].mxu0  ;;  %6845 = vmatpush1.bf16.msra.mxu1 %v10360_v2  ;;  %v10365_v2 = vld [vmem:[#allocation10 + $0x34] ss:$8 sps:$4 sm:$0xff]  }
 0x56e   :  { %v4609_v6 = vpop.f32.mrb[114].mxu0  ;;  %5368 = vmatprep.mubr.bf16.mxu1 %v4993_v41  ;;  %6846 = vmatprep.subr.bf16.mxu1 %v10365_v2 }
 0x56f   :  { %v4828_v53 = vpack.c.bf16 %v4609_v6, %v4605_v38  ;;  %v4611_v19 = vpop.f32.mrb[115].mxu0  ;;  %5369 = vmatmul.mubr.bf16.gmra.mrb[172].mxu1 %v4992_v48 }
 0x570   :  { %v4829_v1 = vpack.c.bf16 %v4611_v19, %v4607_v8 }
 0x571   :  { %v4930_v12 = vadd.bf16 %v13104_v61, %v4828_v53 }
 0x572   :  { %v4931_v31 = vadd.bf16 %v13107_v63, %v4829_v1 }
 0x573   :  { %v4994_v29 = vmax.bf16 %v14821_v33, %v4930_v12 }
 0x574   :  { %v4615_v37 = vpop.f32.mrb[116].mxu0  ;;  %v4995_v9 = vmax.bf16 %v14821_v33, %v4931_v31 }
 0x575   :  { %v4617_v58 = vpop.f32.mrb[117].mxu0 }
 0x576   :  { %v4619_v36 = vpop.f32.mrb[118].mxu0  ;;  %5378 = vmatprep.mubr.bf16.mxu1 %v4995_v9 }
 0x577   :  { %v4830_v4 = vpack.c.bf16 %v4619_v36, %v4615_v37  ;;  %v4621_v55 = vpop.f32.mrb[119].mxu0  ;;  %5379 = vmatmul.mubr.bf16.gmra.mrb[176].mxu1 %v4994_v29 }
 0x578   :  { %v4831_v35 = vpack.c.bf16 %v4621_v55, %v4617_v58 }
 0x579   :  { %v4932_v16 = vadd.bf16 %v13104_v61, %v4830_v4 }
 0x57a   :  { %v4933_v13 = vadd.bf16 %v13107_v63, %v4831_v35 }
 0x57b   :  { %v4996_v41 = vmax.bf16 %v14821_v33, %v4932_v16 }
 0x57c   :  { %v4625_v15 = vpop.f32.mrb[120].mxu0  ;;  %v4997_v38 = vmax.bf16 %v14821_v33, %v4933_v13  ;;  %v10363_v13 = vld [vmem:[#allocation10 + $0x30] ss:$8 sps:$4 sm:$0xff]  }
 0x57d   :  { %v4627_v48 = vpop.f32.mrb[121].mxu0  ;;  %6847 = vmatpush1.bf16.msra.mxu1 %v10363_v13  ;;  %v10368_v13 = vld [vmem:[#allocation10 + $0x44] ss:$8 sps:$4 sm:$0xff]  }
 0x57e   :  { %v4629_v8 = vpop.f32.mrb[122].mxu0  ;;  %5388 = vmatprep.mubr.bf16.mxu1 %v4997_v38  ;;  %6848 = vmatprep.subr.bf16.mxu1 %v10368_v13 }
 0x57f   :  { %v4832_v6 = vpack.c.bf16 %v4629_v8, %v4625_v15  ;;  %v4631_v53 = vpop.f32.mrb[123].mxu0  ;;  %5389 = vmatmul.mubr.bf16.gmra.mrb[180].mxu1 %v4996_v41 }
 0x580   :  { %v4833_v19 = vpack.c.bf16 %v4631_v53, %v4627_v48 }
 0x581   :  { %v4934_v1 = vadd.bf16 %v13104_v61, %v4832_v6 }
 0x582   :  { %v4935_v12 = vadd.bf16 %v13107_v63, %v4833_v19 }
 0x583   :  { %v4998_v9 = vmax.bf16 %v14821_v33, %v4934_v1 }
 0x584   :  { %v4635_v31 = vpop.f32.mrb[124].mxu0  ;;  %v4999_v37 = vmax.bf16 %v14821_v33, %v4935_v12 }
 0x585   :  { %v4637_v29 = vpop.f32.mrb[125].mxu0 }
 0x586   :  { %v4639_v58 = vpop.f32.mrb[126].mxu0  ;;  %5398 = vmatprep.mubr.bf16.mxu1 %v4999_v37 }
 0x587   :  { %v4834_v36 = vpack.c.bf16 %v4639_v58, %v4635_v31  ;;  %v4641_v4 = vpop.f32.mrb[127].mxu0  ;;  %5399 = vmatmul.mubr.bf16.gmra.mrb[184].mxu1 %v4998_v9 }
 0x588   :  { %v4835_v55 = vpack.c.bf16 %v4641_v4, %v4637_v29 }
 0x589   :  { %v4936_v35 = vadd.bf16 %v13104_v61, %v4834_v36 }
 0x58a   :  { %v4937_v16 = vadd.bf16 %v13107_v63, %v4835_v55 }
 0x58b   :  { %v5000_v38 = vmax.bf16 %v14821_v33, %v4936_v35 }
 0x58c   :  { %v4645_v60 = vpop.f32.mrb[128].mxu0  ;;  %v5001_v15 = vmax.bf16 %v14821_v33, %v4937_v16  ;;  %v10366_v16 = vld [vmem:[#allocation10 + $0x40] ss:$8 sps:$4 sm:$0xff]  }
 0x58d   :  { %v4647_v41 = vpop.f32.mrb[129].mxu0  ;;  %6849 = vmatpush1.bf16.msra.mxu1 %v10366_v16  ;;  %v10371_v16 = vld [vmem:[#allocation10 + $0x54] ss:$8 sps:$4 sm:$0xff]  }
 0x58e   :  { %v4649_v48 = vpop.f32.mrb[130].mxu0  ;;  %5408 = vmatprep.mubr.bf16.mxu1 %v5001_v15  ;;  %6850 = vmatprep.subr.bf16.mxu1 %v10371_v16 }
 0x58f   :  { %v4836_v8 = vpack.c.bf16 %v4649_v48, %v4645_v60  ;;  %v4651_v6 = vpop.f32.mrb[131].mxu0  ;;  %5409 = vmatmul.mubr.bf16.gmra.mrb[188].mxu1 %v5000_v38 }
 0x590   :  { %v4837_v53 = vpack.c.bf16 %v4651_v6, %v4647_v41 }
 0x591   :  { %v4938_v19 = vadd.bf16 %v13104_v61, %v4836_v8 }
 0x592   :  { %v4939_v1 = vadd.bf16 %v13107_v63, %v4837_v53 }
 0x593   :  { %v5002_v37 = vmax.bf16 %v14821_v33, %v4938_v19 }
 0x594   :  { %v4655_v12 = vpop.f32.mrb[132].mxu0  ;;  %v5003_v31 = vmax.bf16 %v14821_v33, %v4939_v1 }
 0x595   :  { %v4657_v9 = vpop.f32.mrb[133].mxu0 }
 0x596   :  { %v4659_v29 = vpop.f32.mrb[134].mxu0  ;;  %5418 = vmatprep.mubr.bf16.mxu1 %v5003_v31 }
 0x597   :  { %v4838_v58 = vpack.c.bf16 %v4659_v29, %v4655_v12  ;;  %v4661_v36 = vpop.f32.mrb[135].mxu0  ;;  %5419 = vmatmul.mubr.bf16.gmra.mrb[192].mxu1 %v5002_v37 }
 0x598   :  { %v4839_v4 = vpack.c.bf16 %v4661_v36, %v4657_v9 }
 0x599   :  { %v4940_v55 = vadd.bf16 %v13104_v61, %v4838_v58 }
 0x59a   :  { %v4941_v35 = vadd.bf16 %v13107_v63, %v4839_v4 }
 0x59b   :  { %v5004_v15 = vmax.bf16 %v14821_v33, %v4940_v55 }
 0x59c   :  { %v4665_v2 = vpop.f32.mrb[136].mxu0  ;;  %v5005_v60 = vmax.bf16 %v14821_v33, %v4941_v35  ;;  %v10369_v35 = vld [vmem:[#allocation10 + $0x50] ss:$8 sps:$4 sm:$0xff]  }
 0x59d   :  { %v4667_v38 = vpop.f32.mrb[137].mxu0  ;;  %6851 = vmatpush1.bf16.msra.mxu1 %v10369_v35  ;;  %v10374_v35 = vld [vmem:[#allocation10 + $0x64] ss:$8 sps:$4 sm:$0xff]  }
 0x59e   :  { %v4669_v41 = vpop.f32.mrb[138].mxu0  ;;  %5428 = vmatprep.mubr.bf16.mxu1 %v5005_v60  ;;  %6852 = vmatprep.subr.bf16.mxu1 %v10374_v35 }
 0x59f   :  { %v4840_v48 = vpack.c.bf16 %v4669_v41, %v4665_v2  ;;  %v4671_v8 = vpop.f32.mrb[139].mxu0  ;;  %5429 = vmatmul.mubr.bf16.gmra.mrb[196].mxu1 %v5004_v15 }
 0x5a0   :  { %v4841_v6 = vpack.c.bf16 %v4671_v8, %v4667_v38 }
 0x5a1   :  { %v4942_v53 = vadd.bf16 %v13104_v61, %v4840_v48 }
 0x5a2   :  { %v4943_v19 = vadd.bf16 %v13107_v63, %v4841_v6 }
 0x5a3   :  { %v5006_v31 = vmax.bf16 %v14821_v33, %v4942_v53 }
 0x5a4   :  { %v4675_v1 = vpop.f32.mrb[140].mxu0  ;;  %v5007_v12 = vmax.bf16 %v14821_v33, %v4943_v19 }
 0x5a5   :  { %v4677_v37 = vpop.f32.mrb[141].mxu0 }
 0x5a6   :  { %v4679_v9 = vpop.f32.mrb[142].mxu0  ;;  %5438 = vmatprep.mubr.bf16.mxu1 %v5007_v12 }
 0x5a7   :  { %v4842_v29 = vpack.c.bf16 %v4679_v9, %v4675_v1  ;;  %v4681_v58 = vpop.f32.mrb[143].mxu0  ;;  %5439 = vmatmul.mubr.bf16.gmra.mrb[200].mxu1 %v5006_v31 }
 0x5a8   :  { %v4843_v36 = vpack.c.bf16 %v4681_v58, %v4677_v37 }
 0x5a9   :  { %v4944_v4 = vadd.bf16 %v13104_v61, %v4842_v29 }
 0x5aa   :  { %v4945_v55 = vadd.bf16 %v13107_v63, %v4843_v36 }
 0x5ab   :  { %v5008_v60 = vmax.bf16 %v14821_v33, %v4944_v4 }
 0x5ac   :  { %v4685_v13 = vpop.f32.mrb[144].mxu0  ;;  %v5009_v2 = vmax.bf16 %v14821_v33, %v4945_v55  ;;  %v10372_v55 = vld [vmem:[#allocation10 + $0x60] ss:$8 sps:$4 sm:$0xff]  }
 0x5ad   :  { %v4687_v15 = vpop.f32.mrb[145].mxu0  ;;  %6853 = vmatpush1.bf16.msra.mxu1 %v10372_v55  ;;  %v10377_v55 = vld [vmem:[#allocation10 + $0x74] ss:$8 sps:$4 sm:$0xff]  }
 0x5ae   :  { %v4689_v38 = vpop.f32.mrb[146].mxu0  ;;  %5448 = vmatprep.mubr.bf16.mxu1 %v5009_v2  ;;  %6854 = vmatprep.subr.bf16.mxu1 %v10377_v55 }
 0x5af   :  { %v4844_v41 = vpack.c.bf16 %v4689_v38, %v4685_v13  ;;  %v4691_v48 = vpop.f32.mrb[147].mxu0  ;;  %5449 = vmatmul.mubr.bf16.gmra.mrb[204].mxu1 %v5008_v60 }
 0x5b0   :  { %v4845_v8 = vpack.c.bf16 %v4691_v48, %v4687_v15 }
 0x5b1   :  { %v4946_v6 = vadd.bf16 %v13104_v61, %v4844_v41 }
 0x5b2   :  { %v4947_v53 = vadd.bf16 %v13107_v63, %v4845_v8 }
 0x5b3   :  { %v5010_v12 = vmax.bf16 %v14821_v33, %v4946_v6 }
 0x5b4   :  { %v4695_v19 = vpop.f32.mrb[148].mxu0  ;;  %v5011_v1 = vmax.bf16 %v14821_v33, %v4947_v53 }
 0x5b5   :  { %v4697_v31 = vpop.f32.mrb[149].mxu0 }
 0x5b6   :  { %v4699_v37 = vpop.f32.mrb[150].mxu0  ;;  %5458 = vmatprep.mubr.bf16.mxu1 %v5011_v1 }
 0x5b7   :  { %v4846_v9 = vpack.c.bf16 %v4699_v37, %v4695_v19  ;;  %v4701_v29 = vpop.f32.mrb[151].mxu0  ;;  %5459 = vmatmul.mubr.bf16.gmra.mrb[208].mxu1 %v5010_v12 }
 0x5b8   :  { %v4847_v58 = vpack.c.bf16 %v4701_v29, %v4697_v31 }
 0x5b9   :  { %v4948_v36 = vadd.bf16 %v13104_v61, %v4846_v9 }
 0x5ba   :  { %v4949_v4 = vadd.bf16 %v13107_v63, %v4847_v58 }
 0x5bb   :  { %v5012_v2 = vmax.bf16 %v14821_v33, %v4948_v36 }
 0x5bc   :  { %v4705_v16 = vpop.f32.mrb[152].mxu0  ;;  %v5013_v13 = vmax.bf16 %v14821_v33, %v4949_v4  ;;  %v10375_v4 = vld [vmem:[#allocation10 + $0x70] ss:$8 sps:$4 sm:$0xff]  }
 0x5bd   :  { %v4707_v60 = vpop.f32.mrb[153].mxu0  ;;  %6855 = vmatpush1.bf16.msra.mxu1 %v10375_v4  ;;  %v10380_v4 = vld [vmem:[#allocation10 + $0x84] ss:$8 sps:$4 sm:$0xff]  }
 0x5be   :  { %v4709_v15 = vpop.f32.mrb[154].mxu0  ;;  %5468 = vmatprep.mubr.bf16.mxu1 %v5013_v13  ;;  %6856 = vmatprep.subr.bf16.mxu1 %v10380_v4 }
 0x5bf   :  { %v4848_v38 = vpack.c.bf16 %v4709_v15, %v4705_v16  ;;  %v4711_v41 = vpop.f32.mrb[155].mxu0  ;;  %5469 = vmatmul.mubr.bf16.gmra.mrb[212].mxu1 %v5012_v2 }
 0x5c0   :  { %v4849_v48 = vpack.c.bf16 %v4711_v41, %v4707_v60 }
 0x5c1   :  { %v4950_v8 = vadd.bf16 %v13104_v61, %v4848_v38 }
 0x5c2   :  { %v4951_v6 = vadd.bf16 %v13107_v63, %v4849_v48 }
 0x5c3   :  { %v5014_v1 = vmax.bf16 %v14821_v33, %v4950_v8 }
 0x5c4   :  { %v4715_v53 = vpop.f32.mrb[156].mxu0  ;;  %v5015_v19 = vmax.bf16 %v14821_v33, %v4951_v6 }
 0x5c5   :  { %v4717_v12 = vpop.f32.mrb[157].mxu0 }
 0x5c6   :  { %v4719_v31 = vpop.f32.mrb[158].mxu0  ;;  %5478 = vmatprep.mubr.bf16.mxu1 %v5015_v19 }
 0x5c7   :  { %v4850_v37 = vpack.c.bf16 %v4719_v31, %v4715_v53  ;;  %v4721_v9 = vpop.f32.mrb[159].mxu0  ;;  %5479 = vmatmul.mubr.bf16.gmra.mrb[216].mxu1 %v5014_v1 }
 0x5c8   :  { %v4851_v29 = vpack.c.bf16 %v4721_v9, %v4717_v12 }
 0x5c9   :  { %v4952_v58 = vadd.bf16 %v13104_v61, %v4850_v37 }
 0x5ca   :  { %v4953_v36 = vadd.bf16 %v13107_v63, %v4851_v29 }
 0x5cb   :  { %v5016_v13 = vmax.bf16 %v14821_v33, %v4952_v58 }
 0x5cc   :  { %v4725_v35 = vpop.f32.mrb[160].mxu0  ;;  %v5017_v16 = vmax.bf16 %v14821_v33, %v4953_v36  ;;  %v10378_v36 = vld [vmem:[#allocation10 + $0x80] ss:$8 sps:$4 sm:$0xff]  }
 0x5cd   :  { %v4727_v2 = vpop.f32.mrb[161].mxu0  ;;  %6857 = vmatpush1.bf16.msra.mxu1 %v10378_v36 }
 0x5ce   :  { %v4729_v60 = vpop.f32.mrb[162].mxu0  ;;  %5488 = vmatprep.mubr.bf16.mxu1 %v5017_v16 }
 0x5cf   :  { %v4852_v15 = vpack.c.bf16 %v4729_v60, %v4725_v35  ;;  %v4731_v38 = vpop.f32.mrb[163].mxu0  ;;  %5489 = vmatmul.mubr.bf16.gmra.mrb[220].mxu1 %v5016_v13 }
 0x5d0   :  { %v4853_v41 = vpack.c.bf16 %v4731_v38, %v4727_v2  ;;  %v9593_v38 = vld.sshfl [vmem:[%s14627_s12] sm:$0x11 pattern:$0x75316420] }
 0x5d1   :  { %v4954_v48 = vadd.bf16 %v13104_v61, %v4852_v15 }
 0x5d2   :  { %v4955_v8 = vadd.bf16 %v13107_v63, %v4853_v41 }
 0x5d3   :  { %v5018_v19 = vmax.bf16 %v14821_v33, %v4954_v48 }
 0x5d4   :  { %v4735_v6 = vpop.f32.mrb[164].mxu0  ;;  %v5019_v53 = vmax.bf16 %v14821_v33, %v4955_v8 }
 0x5d5   :  { %v4737_v1 = vpop.f32.mrb[165].mxu0 }
 0x5d6   :  { %v4739_v12 = vpop.f32.mrb[166].mxu0  ;;  %5498 = vmatprep.mubr.bf16.mxu1 %v5019_v53 }
 0x5d7   :  { %v4854_v31 = vpack.c.bf16 %v4739_v12, %v4735_v6  ;;  %v4741_v37 = vpop.f32.mrb[167].mxu0  ;;  %5499 = vmatmul.mubr.bf16.gmra.mrb[224].mxu1 %v5018_v19  ;;  %v5716_v6 = vcombine.high %v9593_v38, %v9593_v38 }
 0x5d8   :  { %v4855_v9 = vpack.c.bf16 %v4741_v37, %v4737_v1 }
 0x5d9   :  { %v4956_v29 = vadd.bf16 %v13104_v61, %v4854_v31  ;;  %v5723_v31 = vrot.slane %v9593_v38, %v11601_v42 }
 0x5da   :  { %v4957_v58 = vadd.bf16 %v13107_v63, %v4855_v9  ;;  %v5730_v9 = vrot.slane %v5716_v6, %v11601_v42 }
 0x5db   :  { %v5020_v16 = vmax.bf16 %v14821_v33, %v4956_v29 }
 0x5dc   :  { %v4745_v55 = vpop.f32.mrb[168].mxu0  ;;  %v5021_v35 = vmax.bf16 %v14821_v33, %v4957_v58 }
 0x5dd   :  { %v4747_v13 = vpop.f32.mrb[169].mxu0 }
 0x5de   :  { %v4749_v2 = vpop.f32.mrb[170].mxu0  ;;  %5508 = vmatprep.mubr.bf16.mxu1 %v5021_v35 }
 0x5df   :  { %v4856_v60 = vpack.c.bf16 %v4749_v2, %v4745_v55  ;;  %v4751_v15 = vpop.f32.mrb[171].mxu0  ;;  %5509 = vmatmul.mubr.bf16.gmra.mrb[228].mxu1 %v5020_v16  ;;  %v5732_v55 = vpack.i.b16 %v5723_v31, %v5723_v31 }
 0x5e0   :  { %v4857_v41 = vpack.c.bf16 %v4751_v15, %v4747_v13  ;;  %v5739_v13 = vpack.i.b16 %v5730_v9, %v5730_v9  ;;  %v10383_v15 = vld [vmem:[#allocation10 + $0x94] ss:$8 sps:$4 sm:$0xff]   ;;  %v14998_v9 = vpack.c.bf16 %v11554_v20, %v11542_v17 }
 0x5e1   :  { %v4958_v48 = vadd.bf16 %v13104_v61, %v4856_v60  ;;  %v10381_v60 = vld [vmem:[#allocation10 + $0x90] ss:$8 sps:$4 sm:$0xff]   ;;  %6858 = vmatprep.subr.bf16.mxu1 %v10383_v15 }
 0x5e2   :  { %v4959_v8 = vadd.bf16 %v13107_v63, %v4857_v41  ;;  %6859 = vmatpush1.bf16.msra.mxu1 %v10381_v60 }
 0x5e3   :  { %v5022_v1 = vmax.bf16 %v14821_v33, %v4958_v48 }
 0x5e4   :  { %v4755_v53 = vpop.f32.mrb[172].mxu0  ;;  %v5023_v19 = vmax.bf16 %v14821_v33, %v4959_v8 }
 0x5e5   :  { %v4757_v12 = vpop.f32.mrb[173].mxu0 }
 0x5e6   :  { %v4759_v37 = vpop.f32.mrb[174].mxu0  ;;  %5518 = vmatprep.mubr.bf16.mxu1 %v5023_v19 }
 0x5e7   :  { %v4858_v29 = vpack.c.bf16 %v4759_v37, %v4755_v53  ;;  %v4761_v58 = vpop.f32.mrb[175].mxu0  ;;  %5519 = vmatmul.mubr.bf16.gmra.mrb[232].mxu1 %v5022_v1  ;;  %v13245_v53 = vrot.slane %v5732_v55, %v11632_v57  ;;  %v13248_v37 = vrot.slane %v5739_v13, %v11632_v57 }
 0x5e8   :  { %v4859_v36 = vpack.c.bf16 %v4761_v58, %v4757_v12 }
 0x5e9   :  { %v4960_v4 = vadd.bf16 %v13104_v61, %v4858_v29 }
 0x5ea   :  { %v4961_v35 = vadd.bf16 %v13107_v63, %v4859_v36  ;;  %v5260_v16 = vpop.f32.mrb[128].mxu1 }
 0x5eb   :  { %v5262_v2 = vpop.f32.mrb[129].mxu1  ;;  %v5024_v8 = vmax.bf16 %v14821_v33, %v4960_v4  ;;  %v14999_v4 = vpack.c.bf16 %v11558_v22, %v11546_v18 }
 0x5ec   :  { %v4765_v41 = vpop.f32.mrb[176].mxu0  ;;  %v5264_v38 = vpop.f32.mrb[130].mxu1  ;;  %v5025_v48 = vmax.bf16 %v14821_v33, %v4961_v35 }
 0x5ed   :  { %v5579_v6 = vpack.c.bf16 %v5264_v38, %v5260_v16  ;;  %v4767_v19 = vpop.f32.mrb[177].mxu0  ;;  %v5266_v1 = vpop.f32.mrb[131].mxu1 }
 0x5ee   :  { %v5580_v12 = vpack.c.bf16 %v5266_v1, %v5262_v2  ;;  %v4769_v31 = vpop.f32.mrb[178].mxu0  ;;  %5528 = vmatprep.mubr.bf16.mxu1 %v5025_v48 }
 0x5ef   :  { %v5643_v29 = vadd.bf16 %v5579_v6, %v14998_v9  ;;  %v4860_v58 = vpack.c.bf16 %v4769_v31, %v4765_v41  ;;  %v4771_v36 = vpop.f32.mrb[179].mxu0  ;;  %5529 = vmatmul.mubr.bf16.gmra.mrb[236].mxu1 %v5024_v8  ;;  %v15000_v31 = vpack.c.bf16 %v11577_v30, %v11565_v27  ;;  %v10386_v30 = vld [vmem:[#allocation10 + $0xa4] ss:$8 sps:$4 sm:$0xff]  }
 0x5f0   :  { %v5644_v55 = vadd.bf16 %v5580_v12, %v14999_v4  ;;  %v4861_v35 = vpack.c.bf16 %v4771_v36, %v4767_v19  ;;  %v15001_v36 = vpack.c.bf16 %v11584_v34, %v11569_v28  ;;  %v10384_v28 = vld [vmem:[#allocation10 + $0xa0] ss:$8 sps:$4 sm:$0xff]   ;;  %6860 = vmatprep.subr.bf16.mxu1 %v10386_v30 }
 0x5f1   :  { %v5745_v16 = vadd.bf16 %v13245_v53, %v5643_v29  ;;  %v4962_v2 = vadd.bf16 %v13104_v61, %v4860_v58  ;;  %6861 = vmatpush1.bf16.msra.mxu1 %v10384_v28 }
 0x5f2   :  { %v4963_v13 = vadd.bf16 %v13107_v63, %v4861_v35  ;;  %v5270_v15 = vpop.f32.mrb[132].mxu1  ;;  %v5746_v60 = vadd.bf16 %v13248_v37, %v5644_v55 }
 0x5f3   :  { %v5272_v38 = vpop.f32.mrb[133].mxu1  ;;  %v5809_v18 = vmax.bf16 %v14821_v33, %v5745_v16  ;;  %v5026_v22 = vmax.bf16 %v14821_v33, %v4962_v2 }
 0x5f4   :  { %v4775_v17 = vpop.f32.mrb[180].mxu0  ;;  %v5274_v20 = vpop.f32.mrb[134].mxu1  ;;  %v5027_v41 = vmax.bf16 %v14821_v33, %v4963_v13  ;;  %v5810_v48 = vmax.bf16 %v14821_v33, %v5746_v60 }
 0x5f5   :  { %v5581_v8 = vpack.c.bf16 %v5274_v20, %v5270_v15  ;;  %v4777_v6 = vpop.f32.mrb[181].mxu0  ;;  %v5276_v19 = vpop.f32.mrb[135].mxu1 }
 0x5f6   :  { %v5582_v1 = vpack.c.bf16 %v5276_v19, %v5272_v38  ;;  %v4779_v12 = vpop.f32.mrb[182].mxu0  ;;  %5538 = vmatprep.mubr.bf16.mxu1 %v5027_v41  ;;  %6097 = vmatprep.mubr.bf16.mxu0 %v5810_v48  ;;  %v15002_v19 = vpack.c.bf16 %v11615_v49, %v11603_v46 }
 0x5f7   :  { %v5645_v9 = vadd.bf16 %v5581_v8, %v15000_v31  ;;  %v4862_v29 = vpack.c.bf16 %v4779_v12, %v4775_v17  ;;  %v4781_v58 = vpop.f32.mrb[183].mxu0  ;;  %5539 = vmatmul.mubr.bf16.gmra.mrb[240].mxu1 %v5026_v22  ;;  %6098 = vmatmul.mubr.bf16.vlgmr.msra.gmra.mrb[192].mxu0 %v5809_v18 }
 0x5f8   :  { %v5646_v4 = vadd.bf16 %v5582_v1, %v15001_v36  ;;  %v4863_v55 = vpack.c.bf16 %v4781_v58, %v4777_v6 }
 0x5f9   :  { %v5747_v35 = vadd.bf16 %v13245_v53, %v5645_v9  ;;  %v4964_v16 = vadd.bf16 %v13104_v61, %v4862_v29  ;;  %v15003_v9 = vpack.c.bf16 %v11620_v52, %v11607_v47 }
 0x5fa   :  { %v4965_v2 = vadd.bf16 %v13107_v63, %v4863_v55  ;;  %v5280_v13 = vpop.f32.mrb[136].mxu1  ;;  %v5748_v15 = vadd.bf16 %v13248_v37, %v5646_v4 }
 0x5fb   :  { %v5282_v27 = vpop.f32.mrb[137].mxu1  ;;  %v5811_v34 = vmax.bf16 %v14821_v33, %v5747_v35  ;;  %v5028_v41 = vmax.bf16 %v14821_v33, %v4964_v16 }
 0x5fc   :  { %v4785_v60 = vpop.f32.mrb[184].mxu0  ;;  %v5284_v38 = vpop.f32.mrb[138].mxu1  ;;  %v5029_v17 = vmax.bf16 %v14821_v33, %v4965_v2  ;;  %v5812_v20 = vmax.bf16 %v14821_v33, %v5748_v15 }
 0x5fd   :  { %v5583_v48 = vpack.c.bf16 %v5284_v38, %v5280_v13  ;;  %v4787_v18 = vpop.f32.mrb[185].mxu0  ;;  %v5286_v22 = vpop.f32.mrb[139].mxu1 }
 0x5fe   :  { %v5584_v8 = vpack.c.bf16 %v5286_v22, %v5282_v27  ;;  %v4789_v6 = vpop.f32.mrb[186].mxu0  ;;  %5548 = vmatprep.mubr.bf16.mxu1 %v5029_v17  ;;  %6107 = vmatprep.mubr.bf16.mxu0 %v5812_v20  ;;  %v15004_v20 = vpack.c.bf16 %v11648_v25, %v11636_v3  ;;  %v10389_v25 = vld [vmem:[#allocation10 + $0xb4] ss:$8 sps:$4 sm:$0xff]  }
 0x5ff   :  { %v5647_v1 = vadd.bf16 %v5583_v48, %v15002_v19  ;;  %v4864_v12 = vpack.c.bf16 %v4789_v6, %v4785_v60  ;;  %v4791_v31 = vpop.f32.mrb[187].mxu0  ;;  %5549 = vmatmul.mubr.bf16.gmra.mrb[244].mxu1 %v5028_v41  ;;  %6108 = vmatmul.mubr.bf16.gmra.mrb[196].mxu0 %v5811_v34  ;;  %v15005_v48 = vld [vmem:[#allocation19_spill] sm:$0xff] }
 0x600   :  { %v5648_v29 = vadd.bf16 %v5584_v8, %v15003_v9  ;;  %v4865_v58 = vpack.c.bf16 %v4791_v31, %v4787_v18  ;;  %v15006_v18 = vld [vmem:[#allocation18_spill] sm:$0xff]  ;;  %6862 = vmatprep.subr.bf16.mxu1 %v10389_v25 }
 0x601   :  { %v5749_v36 = vadd.bf16 %v13245_v53, %v5647_v1  ;;  %v4966_v4 = vadd.bf16 %v13104_v61, %v4864_v12  ;;  %v15007_v22 = vpack.c.bf16 %v15005_v48, %v15006_v18 }
 0x602   :  { %v4967_v55 = vadd.bf16 %v13107_v63, %v4865_v58  ;;  %v5290_v35 = vpop.f32.mrb[140].mxu1  ;;  %v5750_v46 = vadd.bf16 %v13248_v37, %v5648_v29 }
 0x603   :  { %v5292_v49 = vpop.f32.mrb[141].mxu1  ;;  %v5813_v47 = vmax.bf16 %v14821_v33, %v5749_v36  ;;  %v5030_v52 = vmax.bf16 %v14821_v33, %v4966_v4  ;;  %v10387_v4 = vld [vmem:[#allocation10 + $0xb0] ss:$8 sps:$4 sm:$0xff]  }
 0x604   :  { %v4795_v16 = vpop.f32.mrb[188].mxu0  ;;  %v5294_v2 = vpop.f32.mrb[142].mxu1  ;;  %v5031_v13 = vmax.bf16 %v14821_v33, %v4967_v55  ;;  %v5814_v15 = vmax.bf16 %v14821_v33, %v5750_v46  ;;  %6863 = vmatpush1.bf16.msra.mxu1 %v10387_v4  ;;  %v10392_v4 = vld [vmem:[#allocation10 + $0xc4] ss:$8 sps:$4 sm:$0xff]  }
 0x605   :  { %v5585_v27 = vpack.c.bf16 %v5294_v2, %v5290_v35  ;;  %v4797_v30 = vpop.f32.mrb[189].mxu0  ;;  %v5296_v60 = vpop.f32.mrb[143].mxu1  ;;  %6864 = vmatprep.subr.bf16.mxu1 %v10392_v4  ;;  %v10393_v4 = vld [vmem:[#allocation10 + $0xd0] ss:$8 sps:$4 sm:$0xff]  }
 0x606   :  { %v5586_v38 = vpack.c.bf16 %v5296_v60, %v5292_v49  ;;  %v4799_v17 = vpop.f32.mrb[190].mxu0  ;;  %5558 = vmatprep.mubr.bf16.mxu1 %v5031_v13  ;;  %6117 = vmatprep.mubr.bf16.mxu0 %v5814_v15  ;;  %v15011_v15 = vld [vmem:[#allocation23_spill] sm:$0xff] }
 0x607   :  { %v5649_v28 = vadd.bf16 %v5585_v27, %v15004_v20  ;;  %v4866_v34 = vpack.c.bf16 %v4799_v17, %v4795_v16  ;;  %v4801_v41 = vpop.f32.mrb[191].mxu0  ;;  %5559 = vmatmul.mubr.bf16.gmra.mrb[248].mxu1 %v5030_v52  ;;  %6118 = vmatmul.mubr.bf16.gmra.mrb[200].mxu0 %v5813_v47  ;;  %v15009_v16 = vld [vmem:[#allocation20_spill] sm:$0xff]  ;;  %v15012_v47 = vld [vmem:[#allocation21_spill] sm:$0xff] }
 0x608   :  { %v5650_v8 = vadd.bf16 %v5586_v38, %v15007_v22  ;;  %v4867_v6 = vpack.c.bf16 %v4801_v41, %v4797_v30  ;;  %v15013_v52 = vpack.c.bf16 %v15011_v15, %v15012_v47  ;;  %v15014_v22 = vld [vmem:[#allocation26_spill] sm:$0xff]  ;;  %v15023_v47 = vld [vmem:[#allocation31_spill] sm:$0xff] }
 0x609   :  { %v5751_v19 = vadd.bf16 %v13245_v53, %v5649_v28  ;;  %v4968_v1 = vadd.bf16 %v13104_v61, %v4866_v34 }
 0x60a   :  { %v4969_v12 = vadd.bf16 %v13107_v63, %v4867_v6  ;;  %v5300_v31 = vpop.f32.mrb[144].mxu1  ;;  %v5752_v9 = vadd.bf16 %v13248_v37, %v5650_v8  ;;  %v15008_v63 = vld [vmem:[#allocation22_spill] sm:$0xff]  ;;  %v15015_v8 = vld [vmem:[#allocation24_spill] sm:$0xff] }
 0x60b   :  { %v5302_v3 = vpop.f32.mrb[145].mxu1  ;;  %v5815_v55 = vmax.bf16 %v14821_v33, %v5751_v19  ;;  %v5032_v35 = vmax.bf16 %v14821_v33, %v4968_v1  ;;  %v15010_v2 = vpack.c.bf16 %v15008_v63, %v15009_v16  ;;  %v15016_v6 = vpack.c.bf16 %v15014_v22, %v15015_v8  ;;  %v15017_v1 = vld [vmem:[#allocation27_spill] sm:$0xff]  ;;  %v15020_v16 = vld [vmem:[#allocation30_spill] sm:$0xff] }
 0x60c   :  { %v5304_v29 = vpop.f32.mrb[146].mxu1  ;;  %v5033_v58 = vmax.bf16 %v14821_v33, %v4969_v12  ;;  %v5816_v36 = vmax.bf16 %v14821_v33, %v5752_v9  ;;  %v15018_v12 = vld [vmem:[#allocation25_spill] sm:$0xff]  ;;  %v15026_v8 = vld [vmem:[#allocation34_spill] sm:$0xff] }
 0x60d   :  { %v5587_v46 = vpack.c.bf16 %v5304_v29, %v5300_v31  ;;  %v5306_v49 = vpop.f32.mrb[147].mxu1  ;;  %v15019_v31 = vpack.c.bf16 %v15017_v1, %v15018_v12  ;;  %v15029_v12 = vld [vmem:[#allocation35_spill] sm:$0xff] }
 0x60e   :  { %v5588_v61 = vpack.c.bf16 %v5306_v49, %v5302_v3  ;;  %5568 = vmatprep.mubr.bf16.mxu1 %v5033_v58  ;;  %6127 = vmatprep.mubr.bf16.mxu0 %v5816_v36  ;;  %v10390_v36 = vld [vmem:[#allocation10 + $0xc0] ss:$8 sps:$4 sm:$0xff]  }
 0x60f   :  { %v5651_v13 = vadd.bf16 %v5587_v46, %v15010_v2  ;;  %5569 = vmatmul.mubr.bf16.gmra.mrb[252].mxu1 %v5032_v35  ;;  %6128 = vmatmul.mubr.bf16.gmra.mrb[204].mxu0 %v5815_v55  ;;  %v15021_v2 = vld [vmem:[#allocation28_spill] sm:$0xff] }
 0x610   :  { %v5652_v27 = vadd.bf16 %v5588_v61, %v15013_v52  ;;  %6865 = vmatpush1.bf16.msra.mxu1 %v10390_v36  ;;  %v15024_v52 = vld [vmem:[#allocation29_spill] sm:$0xff] }
 0x611   :  { %v5753_v30 = vadd.bf16 %v13245_v53, %v5651_v13  ;;  %v15022_v13 = vpack.c.bf16 %v15020_v16, %v15021_v2  ;;  %v15032_v2 = vld [vmem:[#allocation38_spill] sm:$0xff] }
 0x612   :  { %v5310_v60 = vpop.f32.mrb[148].mxu1  ;;  %v5754_v38 = vadd.bf16 %v13248_v37, %v5652_v27  ;;  %v15025_v27 = vpack.c.bf16 %v15023_v47, %v15024_v52  ;;  %v15035_v52 = vld [vmem:[#allocation39_spill] sm:$0xff] }
 0x613   :  { %v5312_v17 = vpop.f32.mrb[149].mxu1  ;;  %v5817_v34 = vmax.bf16 %v14821_v33, %v5753_v30 }
 0x614   :  { %v5314_v20 = vpop.f32.mrb[150].mxu1  ;;  %v5818_v28 = vmax.bf16 %v14821_v33, %v5754_v38 }
 0x615   :  { %v5589_v41 = vpack.c.bf16 %v5314_v20, %v5310_v60  ;;  %v5316_v48 = vpop.f32.mrb[151].mxu1 }
 0x616   :  { %v5590_v18 = vpack.c.bf16 %v5316_v48, %v5312_v17  ;;  %6137 = vmatprep.mubr.bf16.mxu0 %v5818_v28 }
 0x617   :  { %v5653_v19 = vadd.bf16 %v5589_v41, %v15016_v6  ;;  %6138 = vmatmul.mubr.bf16.gmra.mrb[208].mxu0 %v5817_v34  ;;  %v15027_v6 = vld [vmem:[#allocation32_spill] sm:$0xff] }
 0x618   :  { %v5654_v9 = vadd.bf16 %v5590_v18, %v15019_v31  ;;  %v15030_v31 = vld [vmem:[#allocation33_spill] sm:$0xff] }
 0x619   :  { %v5755_v3 = vadd.bf16 %v13245_v53, %v5653_v19  ;;  %v15028_v19 = vpack.c.bf16 %v15026_v8, %v15027_v6 }
 0x61a   :  { %v5320_v25 = vpop.f32.mrb[152].mxu1  ;;  %v5756_v29 = vadd.bf16 %v13248_v37, %v5654_v9  ;;  %v15031_v9 = vpack.c.bf16 %v15029_v12, %v15030_v31  ;;  %v15039_v12 = vld [vmem:[#allocation40_spill] sm:$0xff] }
 0x61b   :  { %v5322_v58 = vpop.f32.mrb[153].mxu1  ;;  %v5819_v46 = vmax.bf16 %v14821_v33, %v5755_v3 }
 0x61c   :  { %v5324_v55 = vpop.f32.mrb[154].mxu1  ;;  %v5820_v35 = vmax.bf16 %v14821_v33, %v5756_v29 }
 0x61d   :  { %v5591_v49 = vpack.c.bf16 %v5324_v55, %v5320_v25  ;;  %v5326_v61 = vpop.f32.mrb[155].mxu1  ;;  %v10395_v55 = vld [vmem:[#allocation10 + $0xd4] ss:$8 sps:$4 sm:$0xff]  }
 0x61e   :  { %v5592_v63 = vpack.c.bf16 %v5326_v61, %v5322_v58  ;;  %6147 = vmatprep.mubr.bf16.mxu0 %v5820_v35  ;;  %6866 = vmatprep.subr.bf16.mxu1 %v10395_v55 }
 0x61f   :  { %v5655_v15 = vadd.bf16 %v5591_v49, %v15022_v13  ;;  %6148 = vmatmul.mubr.bf16.gmra.mrb[212].mxu0 %v5819_v46  ;;  %6867 = vmatpush1.bf16.msra.mxu1 %v10393_v4  ;;  %v15033_v13 = vld [vmem:[#allocation36_spill] sm:$0xff] }
 0x620   :  { %v5656_v30 = vadd.bf16 %v5592_v63, %v15025_v27  ;;  %v15036_v27 = vld [vmem:[#allocation37_spill] sm:$0xff] }
 0x621   :  { %v5757_v60 = vadd.bf16 %v13245_v53, %v5655_v15  ;;  %v15034_v15 = vpack.c.bf16 %v15032_v2, %v15033_v13 }
 0x622   :  { %v5330_v38 = vpop.f32.mrb[156].mxu1  ;;  %v5758_v17 = vadd.bf16 %v13248_v37, %v5656_v30  ;;  %v15037_v30 = vpack.c.bf16 %v15035_v52, %v15036_v27  ;;  %v15045_v52 = vld [vmem:[#allocation44_spill] sm:$0xff] }
 0x623   :  { %v5332_v20 = vpop.f32.mrb[157].mxu1  ;;  %v5821_v41 = vmax.bf16 %v14821_v33, %v5757_v60 }
 0x624   :  { %v5334_v28 = vpop.f32.mrb[158].mxu1  ;;  %v5822_v34 = vmax.bf16 %v14821_v33, %v5758_v17 }
 0x625   :  { %v5593_v48 = vpack.c.bf16 %v5334_v28, %v5330_v38  ;;  %v5336_v18 = vpop.f32.mrb[159].mxu1 }
 0x626   :  { %v5594_v22 = vpack.c.bf16 %v5336_v18, %v5332_v20  ;;  %6157 = vmatprep.mubr.bf16.mxu0 %v5822_v34  ;;  %v10396_v34 = vld [vmem:[#allocation12] ss:$8 sps:$4 sm:$0xff]  }
 0x627   :  { %v5657_v1 = vadd.bf16 %v5593_v48, %v15028_v19  ;;  %6158 = vmatmul.mubr.bf16.gmra.mrb[216].mxu0 %v5821_v41  ;;  %v10398_v41 = vld [vmem:[#allocation12 + $0x4] ss:$8 sps:$4 sm:$0xff]  }
 0x628   :  { %v5658_v3 = vadd.bf16 %v5594_v22, %v15031_v9  ;;  %7627 = vmatprep.subr.bf16.mxu0 %v10398_v41 }
 0x629   :  { %v5759_v25 = vadd.bf16 %v13245_v53, %v5657_v1  ;;  %7628 = vmatpush1.bf16.msra.mxu0 %v10396_v34  ;;  %v15038_v1 = vld [vmem:[#allocation42_spill] sm:$0xff] }
 0x62a   :  { %v5340_v29 = vpop.f32.mrb[160].mxu1  ;;  %v5760_v58 = vadd.bf16 %v13248_v37, %v5658_v3  ;;  %v15040_v31 = vpack.c.bf16 %v15038_v1, %v15039_v12  ;;  %v15041_v3 = vld [vmem:[#allocation43_spill] sm:$0xff] }
 0x62b   :  { %v5342_v36 = vpop.f32.mrb[161].mxu1  ;;  %v5823_v49 = vmax.bf16 %v14821_v33, %v5759_v25  ;;  %v15042_v25 = vld [vmem:[#allocation41_spill] sm:$0xff] }
 0x62c   :  { %v5344_v35 = vpop.f32.mrb[162].mxu1  ;;  %v5824_v46 = vmax.bf16 %v14821_v33, %v5760_v58 }
 0x62d   :  { %v5595_v61 = vpack.c.bf16 %v5344_v35, %v5340_v29  ;;  %v5346_v63 = vpop.f32.mrb[163].mxu1  ;;  %v15043_v29 = vpack.c.bf16 %v15041_v3, %v15042_v25 }
 0x62e   :  { %v5596_v16 = vpack.c.bf16 %v5346_v63, %v5342_v36  ;;  %6167 = vmatprep.mubr.bf16.mxu0 %v5824_v46  ;;  %v10399_v46 = vld [vmem:[#allocation10 + $0xe0] ss:$8 sps:$4 sm:$0xff]  }
 0x62f   :  { %v5659_v47 = vadd.bf16 %v5595_v61, %v15034_v15  ;;  %6168 = vmatmul.mubr.bf16.gmra.mrb[220].mxu0 %v5823_v49  ;;  %v10401_v49 = vld [vmem:[#allocation10 + $0xe4] ss:$8 sps:$4 sm:$0xff]  }
 0x630   :  { %v5660_v60 = vadd.bf16 %v5596_v16, %v15037_v30  ;;  %6868 = vmatprep.subr.bf16.mxu1 %v10401_v49 }
 0x631   :  { %v5761_v38 = vadd.bf16 %v13245_v53, %v5659_v47  ;;  %6869 = vmatpush1.bf16.msra.mxu1 %v10399_v46  ;;  %v15044_v47 = vld [vmem:[#allocation46_spill] sm:$0xff] }
 0x632   :  { %v5350_v17 = vpop.f32.mrb[164].mxu1  ;;  %v5762_v20 = vadd.bf16 %v13248_v37, %v5660_v60  ;;  %v15046_v27 = vpack.c.bf16 %v15044_v47, %v15045_v52  ;;  %v15047_v60 = vld [vmem:[#allocation47_spill] sm:$0xff]  ;;  %v15055_v52 = vpack.c.bf16 %v11951_v23, %v11943_v26 }
 0x633   :  { %v5352_v28 = vpop.f32.mrb[165].mxu1  ;;  %v5825_v22 = vmax.bf16 %v14821_v33, %v5761_v38  ;;  %v15048_v38 = vld [vmem:[#allocation45_spill] sm:$0xff] }
 0x634   :  { %v5354_v48 = vpop.f32.mrb[166].mxu1  ;;  %v5826_v18 = vmax.bf16 %v14821_v33, %v5762_v20 }
 0x635   :  { %v5597_v8 = vpack.c.bf16 %v5354_v48, %v5350_v17  ;;  %v5356_v6 = vpop.f32.mrb[167].mxu1  ;;  %v15049_v17 = vpack.c.bf16 %v15047_v60, %v15048_v38  ;;  %v15057_v60 = vld [vmem:[#allocation51_spill] sm:$0xff] }
 0x636   :  { %v5598_v19 = vpack.c.bf16 %v5356_v6, %v5352_v28  ;;  %6177 = vmatprep.mubr.bf16.mxu0 %v5826_v18  ;;  %v10402_v18 = vld [vmem:[#allocation12 + $0x10] ss:$8 sps:$4 sm:$0xff]  }
 0x637   :  { %v5661_v9 = vadd.bf16 %v5597_v8, %v15040_v31  ;;  %6178 = vmatmul.mubr.bf16.gmra.mrb[224].mxu0 %v5825_v22  ;;  %v10404_v22 = vld [vmem:[#allocation12 + $0x14] ss:$8 sps:$4 sm:$0xff]  }
 0x638   :  { %v5662_v58 = vadd.bf16 %v5598_v19, %v15043_v29  ;;  %7629 = vmatprep.subr.bf16.mxu0 %v10404_v22  ;;  %v15052_v29 = vld [vmem:[#allocation50_spill] sm:$0xff] }
 0x639   :  { %v5763_v36 = vadd.bf16 %v13245_v53, %v5661_v9  ;;  %7630 = vmatpush1.bf16.msra.mxu0 %v10402_v18  ;;  %v15050_v9 = vld [vmem:[#allocation48_spill] sm:$0xff]  ;;  %v10410_v18 = vld [vmem:[#allocation12 + $0x24] ss:$8 sps:$4 sm:$0xff]  }
 0x63a   :  { %v5360_v4 = vpop.f32.mrb[168].mxu1  ;;  %v5764_v55 = vadd.bf16 %v13248_v37, %v5662_v58  ;;  %v15051_v3 = vpack.c.bf16 %v11922_v56, %v15050_v9  ;;  %v15053_v58 = vld [vmem:[#allocation49_spill] sm:$0xff]  ;;  %7631 = vmatprep.subr.bf16.mxu0 %v10410_v18 }
 0x63b   :  { %v5362_v35 = vpop.f32.mrb[169].mxu1  ;;  %v5827_v16 = vmax.bf16 %v14821_v33, %v5763_v36  ;;  %v15054_v36 = vpack.c.bf16 %v15052_v29, %v15053_v58 }
 0x63c   :  { %v5364_v61 = vpop.f32.mrb[170].mxu1  ;;  %v5828_v63 = vmax.bf16 %v14821_v33, %v5764_v55 }
 0x63d   :  { %v5599_v2 = vpack.c.bf16 %v5364_v61, %v5360_v4  ;;  %v5366_v13 = vpop.f32.mrb[171].mxu1  ;;  %v10405_v61 = vld [vmem:[#allocation10 + $0xf0] ss:$8 sps:$4 sm:$0xff]  }
 0x63e   :  { %v5600_v15 = vpack.c.bf16 %v5366_v13, %v5362_v35  ;;  %6187 = vmatprep.mubr.bf16.mxu0 %v5828_v63  ;;  %v10407_v63 = vld [vmem:[#allocation10 + $0xf4] ss:$8 sps:$4 sm:$0xff]  }
 0x63f   :  { %v5663_v30 = vadd.bf16 %v5599_v2, %v15046_v27  ;;  %6188 = vmatmul.mubr.bf16.gmra.mrb[228].mxu0 %v5827_v16  ;;  %6870 = vmatprep.subr.bf16.mxu1 %v10407_v63  ;;  %v15064_v63 = vld [vmem:[#allocation56_spill] sm:$0xff] }
 0x640   :  { %v5664_v20 = vadd.bf16 %v5600_v15, %v15049_v17  ;;  %6871 = vmatpush1.bf16.msra.mxu1 %v10405_v61 }
 0x641   :  { %v5765_v28 = vadd.bf16 %v13245_v53, %v5663_v30  ;;  %v15056_v30 = vld [vmem:[#allocation52_spill] sm:$0xff] }
 0x642   :  { %v5370_v34 = vpop.f32.mrb[172].mxu1  ;;  %v5766_v41 = vadd.bf16 %v13248_v37, %v5664_v20  ;;  %v15058_v38 = vpack.c.bf16 %v15056_v30, %v15057_v60  ;;  %v10413_v30 = vld [vmem:[#allocation12 + $0x34] ss:$8 sps:$4 sm:$0xff]  }
 0x643   :  { %v5372_v48 = vpop.f32.mrb[173].mxu1  ;;  %v5829_v19 = vmax.bf16 %v14821_v33, %v5765_v28 }
 0x644   :  { %v5374_v8 = vpop.f32.mrb[174].mxu1  ;;  %v5830_v6 = vmax.bf16 %v14821_v33, %v5766_v41 }
 0x645   :  { %v5601_v1 = vpack.c.bf16 %v5374_v8, %v5370_v34  ;;  %v5376_v12 = vpop.f32.mrb[175].mxu1 }
 0x646   :  { %v5602_v31 = vpack.c.bf16 %v5376_v12, %v5372_v48  ;;  %6197 = vmatprep.mubr.bf16.mxu0 %v5830_v6  ;;  %v10408_v48 = vld [vmem:[#allocation12 + $0x20] ss:$8 sps:$4 sm:$0xff]  }
 0x647   :  { %v5665_v25 = vadd.bf16 %v5601_v1, %v15051_v3  ;;  %6198 = vmatmul.mubr.bf16.gmra.mrb[232].mxu0 %v5829_v19  ;;  %v15059_v1 = vpack.c.bf16 %v11980_v59, %v11972_v39  ;;  %v15062_v59 = vld [vmem:[#allocation54_spill] sm:$0xff] }
 0x648   :  { %v5666_v4 = vadd.bf16 %v5602_v31, %v15054_v36  ;;  %7632 = vmatpush1.bf16.msra.mxu0 %v10408_v48  ;;  %v15060_v31 = vld [vmem:[#allocation53_spill] sm:$0xff]  ;;  %v15063_v61 = vpack.c.bf16 %v12009_v44, %v15062_v59 }
 0x649   :  { %v5767_v55 = vadd.bf16 %v13245_v53, %v5665_v25  ;;  %v15061_v9 = vpack.c.bf16 %v11985_v21, %v15060_v31  ;;  %7633 = vmatprep.subr.bf16.mxu0 %v10413_v30  ;;  %v15068_v48 = vld [vmem:[#allocation57_spill] sm:$0xff] }
 0x64a   :  { %v5380_v35 = vpop.f32.mrb[176].mxu1  ;;  %v5768_v46 = vadd.bf16 %v13248_v37, %v5666_v4  ;;  %v15069_v18 = vpack.c.bf16 %v12043_v43, %v15068_v48 }
 0x64b   :  { %v5382_v49 = vpop.f32.mrb[177].mxu1  ;;  %v5831_v13 = vmax.bf16 %v14821_v33, %v5767_v55 }
 0x64c   :  { %v5384_v16 = vpop.f32.mrb[178].mxu1  ;;  %v5832_v2 = vmax.bf16 %v14821_v33, %v5768_v46 }
 0x64d   :  { %v5603_v56 = vpack.c.bf16 %v5384_v16, %v5380_v35  ;;  %v5386_v15 = vpop.f32.mrb[179].mxu1  ;;  %v15065_v16 = vld [vmem:[#allocation55_spill] sm:$0xff] }
 0x64e   :  { %v5604_v47 = vpack.c.bf16 %v5386_v15, %v5382_v49  ;;  %6207 = vmatprep.mubr.bf16.mxu0 %v5832_v2  ;;  %v15066_v2 = vpack.c.bf16 %v15064_v63, %v15065_v16 }
 0x64f   :  { %v5667_v27 = vadd.bf16 %v5603_v56, %v15055_v52  ;;  %6208 = vmatmul.mubr.bf16.gmra.mrb[236].mxu0 %v5831_v13 }
 0x650   :  { %v5668_v17 = vadd.bf16 %v5604_v47, %v15058_v38 }
 0x651   :  { %v5769_v20 = vadd.bf16 %v13245_v53, %v5667_v27  ;;  %v10411_v27 = vld [vmem:[#allocation12 + $0x30] ss:$8 sps:$4 sm:$0xff]  }
 0x652   :  { %v5390_v28 = vpop.f32.mrb[180].mxu1  ;;  %v5770_v34 = vadd.bf16 %v13248_v37, %v5668_v17  ;;  %7634 = vmatpush1.bf16.msra.mxu0 %v10411_v27 }
 0x653   :  { %v5392_v41 = vpop.f32.mrb[181].mxu1  ;;  %v5833_v6 = vmax.bf16 %v14821_v33, %v5769_v20 }
 0x654   :  { %v5394_v22 = vpop.f32.mrb[182].mxu1  ;;  %v5834_v8 = vmax.bf16 %v14821_v33, %v5770_v34  ;;  %v15067_v34 = vpack.c.bf16 %v12038_v51, %v12030_v0  ;;  %v15070_v51 = vld [vmem:[#allocation59_spill] sm:$0xff] }
 0x655   :  { %v5605_v26 = vpack.c.bf16 %v5394_v22, %v5390_v28  ;;  %v5396_v23 = vpop.f32.mrb[183].mxu1 }
 0x656   :  { %v5606_v19 = vpack.c.bf16 %v5396_v23, %v5392_v41  ;;  %6217 = vmatprep.mubr.bf16.mxu0 %v5834_v8 }
 0x657   :  { %v5669_v12 = vadd.bf16 %v5605_v26, %v15059_v1  ;;  %6218 = vmatmul.mubr.bf16.gmra.mrb[240].mxu0 %v5833_v6 }
 0x658   :  { %v5670_v3 = vadd.bf16 %v5606_v19, %v15061_v9 }
 0x659   :  { %v5771_v25 = vadd.bf16 %v13245_v53, %v5669_v12 }
 0x65a   :  { %v5400_v29 = vpop.f32.mrb[184].mxu1  ;;  %v5772_v58 = vadd.bf16 %v13248_v37, %v5670_v3  ;;  %v15071_v3 = vld [vmem:[#allocation58_spill] sm:$0xff] }
 0x65b   :  { %v5402_v36 = vpop.f32.mrb[185].mxu1  ;;  %v5835_v35 = vmax.bf16 %v14821_v33, %v5771_v25  ;;  %v15072_v25 = vpack.c.bf16 %v15070_v51, %v15071_v3  ;;  %v15083_v51 = vld [vmem:[#allocation64_spill] sm:$0xff] }
 0x65c   :  { %v5404_v4 = vpop.f32.mrb[186].mxu1  ;;  %v5836_v55 = vmax.bf16 %v14821_v33, %v5772_v58 }
 0x65d   :  { %v5607_v46 = vpack.c.bf16 %v5404_v4, %v5400_v29  ;;  %v5406_v49 = vpop.f32.mrb[187].mxu1  ;;  %v15073_v29 = vpack.c.bf16 %v12072_v10, %v12063_v45  ;;  %v15074_v45 = vld [vmem:[#allocation61_spill] sm:$0xff]  ;;  %v15075_v10 = vld [vmem:[#allocation60_spill] sm:$0xff] }
 0x65e   :  { %v5608_v39 = vpack.c.bf16 %v5406_v49, %v5402_v36  ;;  %6227 = vmatprep.mubr.bf16.mxu0 %v5836_v55  ;;  %v10416_v49 = vld [vmem:[#allocation12 + $0x44] ss:$8 sps:$4 sm:$0xff]  }
 0x65f   :  { %v5671_v21 = vadd.bf16 %v5607_v46, %v15063_v61  ;;  %6228 = vmatmul.mubr.bf16.gmra.mrb[244].mxu0 %v5835_v35  ;;  %v10414_v46 = vld [vmem:[#allocation12 + $0x40] ss:$8 sps:$4 sm:$0xff]   ;;  %7635 = vmatprep.subr.bf16.mxu0 %v10416_v49 }
 0x660   :  { %v5672_v13 = vadd.bf16 %v5608_v39, %v15066_v2  ;;  %7636 = vmatpush1.bf16.msra.mxu0 %v10414_v46  ;;  %v15076_v2 = vpack.c.bf16 %v15074_v45, %v15075_v10  ;;  %v15089_v45 = vld [vmem:[#allocation68_spill] sm:$0xff] }
 0x661   :  { %v5773_v56 = vadd.bf16 %v13245_v53, %v5671_v21 }
 0x662   :  { %v5410_v15 = vpop.f32.mrb[188].mxu1  ;;  %v5774_v47 = vadd.bf16 %v13248_v37, %v5672_v13 }
 0x663   :  { %v5412_v52 = vpop.f32.mrb[189].mxu1  ;;  %v5837_v17 = vmax.bf16 %v14821_v33, %v5773_v56  ;;  %v15077_v56 = vpack.c.bf16 %v12101_v40, %v12092_v62  ;;  %v15080_v40 = vld [vmem:[#allocation63_spill] sm:$0xff] }
 0x664   :  { %v5414_v60 = vpop.f32.mrb[190].mxu1  ;;  %v5838_v38 = vmax.bf16 %v14821_v33, %v5774_v47  ;;  %v15081_v48 = vpack.c.bf16 %v12130_v5, %v15080_v40  ;;  %v15082_v5 = vld [vmem:[#allocation66_spill] sm:$0xff] }
 0x665   :  { %v5609_v44 = vpack.c.bf16 %v5414_v60, %v5410_v15  ;;  %v5416_v20 = vpop.f32.mrb[191].mxu1  ;;  %v15084_v3 = vpack.c.bf16 %v15082_v5, %v15083_v51  ;;  %v15094_v40 = vld [vmem:[#allocation74_spill] sm:$0xff] }
 0x666   :  { %v5610_v28 = vpack.c.bf16 %v5416_v20, %v5412_v52  ;;  %6237 = vmatprep.mubr.bf16.mxu0 %v5838_v38 }
 0x667   :  { %v5673_v41 = vadd.bf16 %v5609_v44, %v15067_v34  ;;  %6238 = vmatmul.mubr.bf16.gmra.mrb[248].mxu0 %v5837_v17  ;;  %v15078_v34 = vld [vmem:[#allocation62_spill] sm:$0xff] }
 0x668   :  { %v5674_v22 = vadd.bf16 %v5610_v28, %v15069_v18 }
 0x669   :  { %v5775_v8 = vadd.bf16 %v13245_v53, %v5673_v41  ;;  %v15079_v41 = vpack.c.bf16 %v12125_v32, %v15078_v34 }
 0x66a   :  { %v5420_v6 = vpop.f32.mrb[192].mxu1  ;;  %v5776_v26 = vadd.bf16 %v13248_v37, %v5674_v22 }
 0x66b   :  { %v5422_v23 = vpop.f32.mrb[193].mxu1  ;;  %v5839_v12 = vmax.bf16 %v14821_v33, %v5775_v8 }
 0x66c   :  { %v5424_v19 = vpop.f32.mrb[194].mxu1  ;;  %v5840_v1 = vmax.bf16 %v14821_v33, %v5776_v26 }
 0x66d   :  { %v5611_v31 = vpack.c.bf16 %v5424_v19, %v5420_v6  ;;  %v5426_v9 = vpop.f32.mrb[195].mxu1  ;;  %v10419_v19 = vld [vmem:[#allocation12 + $0x54] ss:$8 sps:$4 sm:$0xff]  }
 0x66e   :  { %v5612_v0 = vpack.c.bf16 %v5426_v9, %v5422_v23  ;;  %6247 = vmatprep.mubr.bf16.mxu0 %v5840_v1  ;;  %v10417_v23 = vld [vmem:[#allocation12 + $0x50] ss:$8 sps:$4 sm:$0xff]   ;;  %7637 = vmatprep.subr.bf16.mxu0 %v10419_v19 }
 0x66f   :  { %v5675_v43 = vadd.bf16 %v5611_v31, %v15072_v25  ;;  %6248 = vmatmul.mubr.bf16.gmra.mrb[252].mxu0 %v5839_v12 }
 0x670   :  { %v5676_v58 = vadd.bf16 %v5612_v0, %v15073_v29  ;;  %7638 = vmatpush1.bf16.msra.mxu0 %v10417_v23  ;;  %v15086_v29 = vld [vmem:[#allocation65_spill] sm:$0xff] }
 0x671   :  { %v5777_v36 = vadd.bf16 %v13245_v53, %v5675_v43  ;;  %v15085_v43 = vld [vmem:[#allocation67_spill] sm:$0xff] }
 0x672   :  { %v5778_v4 = vadd.bf16 %v13248_v37, %v5676_v58  ;;  %v5430_v55 = vpop.f32.mrb[196].mxu1  ;;  %v15087_v58 = vpack.c.bf16 %v15085_v43, %v15086_v29  ;;  %v15101_v43 = vld [vmem:[#allocation76_spill] sm:$0xff] }
 0x673   :  { %v5432_v35 = vpop.f32.mrb[197].mxu1  ;;  %v5841_v61 = vmax.bf16 %v14821_v33, %v5777_v36 }
 0x674   :  { %v5434_v39 = vpop.f32.mrb[198].mxu1  ;;  %v5842_v59 = vmax.bf16 %v14821_v33, %v5778_v4 }
 0x675   :  { %v5613_v21 = vpack.c.bf16 %v5434_v39, %v5430_v55  ;;  %v5436_v63 = vpop.f32.mrb[199].mxu1 }
 0x676   :  { %v5614_v16 = vpack.c.bf16 %v5436_v63, %v5432_v35  ;;  %6257 = vmatprep.mubr.bf16.mxu0 %v5842_v59 }
 0x677   :  { %v5677_v13 = vadd.bf16 %v5613_v21, %v15076_v2  ;;  %6258 = vmatmul.mubr.bf16.gmra.mrb[0].mxu0 %v5841_v61 }
 0x678   :  { %v5678_v15 = vadd.bf16 %v5614_v16, %v15077_v56  ;;  %v15088_v16 = vld [vmem:[#allocation70_spill] sm:$0xff]  ;;  %v15092_v56 = vld [vmem:[#allocation69_spill] sm:$0xff] }
 0x679   :  { %v5779_v47 = vadd.bf16 %v13245_v53, %v5677_v13  ;;  %v15090_v10 = vpack.c.bf16 %v15088_v16, %v15089_v45  ;;  %v15091_v13 = vld [vmem:[#allocation71_spill] sm:$0xff] }
 0x67a   :  { %v5780_v52 = vadd.bf16 %v13248_v37, %v5678_v15  ;;  %v5440_v27 = vpop.f32.mrb[200].mxu1  ;;  %v15093_v15 = vpack.c.bf16 %v15091_v13, %v15092_v56  ;;  %v15106_v56 = vld [vmem:[#allocation82_spill] sm:$0xff] }
 0x67b   :  { %v5442_v30 = vpop.f32.mrb[201].mxu1  ;;  %v5843_v17 = vmax.bf16 %v14821_v33, %v5779_v47 }
 0x67c   :  { %v5444_v60 = vpop.f32.mrb[202].mxu1  ;;  %v5844_v38 = vmax.bf16 %v14821_v33, %v5780_v52 }
 0x67d   :  { %v5615_v44 = vpack.c.bf16 %v5444_v60, %v5440_v27  ;;  %v5446_v20 = vpop.f32.mrb[203].mxu1 }
 0x67e   :  { %v5616_v28 = vpack.c.bf16 %v5446_v20, %v5442_v30  ;;  %6267 = vmatprep.mubr.bf16.mxu0 %v5844_v38  ;;  %v10420_v38 = vld [vmem:[#allocation12 + $0x60] ss:$8 sps:$4 sm:$0xff]  }
 0x67f   :  { %v5679_v62 = vadd.bf16 %v5615_v44, %v15079_v41  ;;  %6268 = vmatmul.mubr.bf16.gmra.mrb[4].mxu0 %v5843_v17  ;;  %v10422_v17 = vld [vmem:[#allocation12 + $0x64] ss:$8 sps:$4 sm:$0xff]  }
 0x680   :  { %v5680_v18 = vadd.bf16 %v5616_v28, %v15081_v48  ;;  %7639 = vmatprep.subr.bf16.mxu0 %v10422_v17  ;;  %v15095_v48 = vld [vmem:[#allocation72_spill] sm:$0xff] }
 0x681   :  { %v5781_v22 = vadd.bf16 %v13245_v53, %v5679_v62  ;;  %7640 = vmatpush1.bf16.msra.mxu0 %v10420_v38 }
 0x682   :  { %v5782_v8 = vadd.bf16 %v13248_v37, %v5680_v18  ;;  %v5450_v6 = vpop.f32.mrb[204].mxu1  ;;  %v15096_v18 = vpack.c.bf16 %v15094_v40, %v15095_v48 }
 0x683   :  { %v5452_v26 = vpop.f32.mrb[205].mxu1  ;;  %v5845_v31 = vmax.bf16 %v14821_v33, %v5781_v22 }
 0x684   :  { %v5454_v1 = vpop.f32.mrb[206].mxu1  ;;  %v5846_v12 = vmax.bf16 %v14821_v33, %v5782_v8  ;;  %v15097_v8 = vld [vmem:[#allocation75_spill] sm:$0xff] }
 0x685   :  { %v5617_v32 = vpack.c.bf16 %v5454_v1, %v5450_v6  ;;  %v5456_v9 = vpop.f32.mrb[207].mxu1  ;;  %v15098_v6 = vld [vmem:[#allocation73_spill] sm:$0xff] }
 0x686   :  { %v5618_v0 = vpack.c.bf16 %v5456_v9, %v5452_v26  ;;  %6277 = vmatprep.mubr.bf16.mxu0 %v5846_v12  ;;  %v15099_v26 = vpack.c.bf16 %v15097_v8, %v15098_v6  ;;  %v15113_v8 = vld [vmem:[#allocation84_spill] sm:$0xff] }
 0x687   :  { %v5681_v25 = vadd.bf16 %v5617_v32, %v15084_v3  ;;  %6278 = vmatmul.mubr.bf16.gmra.mrb[8].mxu0 %v5845_v31 }
 0x688   :  { %v5682_v36 = vadd.bf16 %v5618_v0, %v15087_v58 }
 0x689   :  { %v5783_v4 = vadd.bf16 %v13245_v53, %v5681_v25  ;;  %v15100_v25 = vld [vmem:[#allocation78_spill] sm:$0xff] }
 0x68a   :  { %v5784_v55 = vadd.bf16 %v13248_v37, %v5682_v36  ;;  %v5460_v35 = vpop.f32.mrb[208].mxu1  ;;  %v15102_v29 = vpack.c.bf16 %v15100_v25, %v15101_v43  ;;  %v15103_v36 = vld [vmem:[#allocation79_spill] sm:$0xff] }
 0x68b   :  { %v5462_v46 = vpop.f32.mrb[209].mxu1  ;;  %v5847_v59 = vmax.bf16 %v14821_v33, %v5783_v4  ;;  %v15104_v4 = vld [vmem:[#allocation77_spill] sm:$0xff] }
 0x68c   :  { %v5464_v49 = vpop.f32.mrb[210].mxu1  ;;  %v5848_v39 = vmax.bf16 %v14821_v33, %v5784_v55  ;;  %v15105_v55 = vpack.c.bf16 %v15103_v36, %v15104_v4  ;;  %v15118_v4 = vld [vmem:[#allocation90_spill] sm:$0xff] }
 0x68d   :  { %v5619_v61 = vpack.c.bf16 %v5464_v49, %v5460_v35  ;;  %v5466_v21 = vpop.f32.mrb[211].mxu1 }
 0x68e   :  { %v5620_v63 = vpack.c.bf16 %v5466_v21, %v5462_v46  ;;  %6287 = vmatprep.mubr.bf16.mxu0 %v5848_v39  ;;  %v10425_v21 = vld [vmem:[#allocation12 + $0x74] ss:$8 sps:$4 sm:$0xff]  }
 0x68f   :  { %v5683_v2 = vadd.bf16 %v5619_v61, %v15090_v10  ;;  %6288 = vmatmul.mubr.bf16.gmra.mrb[12].mxu0 %v5847_v59  ;;  %v10423_v61 = vld [vmem:[#allocation12 + $0x70] ss:$8 sps:$4 sm:$0xff]   ;;  %7641 = vmatprep.subr.bf16.mxu0 %v10425_v21 }
 0x690   :  { %v5684_v47 = vadd.bf16 %v5620_v63, %v15093_v15  ;;  %7642 = vmatpush1.bf16.msra.mxu0 %v10423_v61  ;;  %v15107_v15 = vld [vmem:[#allocation80_spill] sm:$0xff] }
 0x691   :  { %v5785_v52 = vadd.bf16 %v13245_v53, %v5683_v2 }
 0x692   :  { %v5786_v27 = vadd.bf16 %v13248_v37, %v5684_v47  ;;  %v5470_v30 = vpop.f32.mrb[212].mxu1  ;;  %v15108_v47 = vpack.c.bf16 %v15106_v56, %v15107_v15 }
 0x693   :  { %v5472_v60 = vpop.f32.mrb[213].mxu1  ;;  %v5849_v28 = vmax.bf16 %v14821_v33, %v5785_v52 }
 0x694   :  { %v5474_v44 = vpop.f32.mrb[214].mxu1  ;;  %v5850_v20 = vmax.bf16 %v14821_v33, %v5786_v27  ;;  %v15109_v27 = vld [vmem:[#allocation83_spill] sm:$0xff] }
 0x695   :  { %v5621_v34 = vpack.c.bf16 %v5474_v44, %v5470_v30  ;;  %v5476_v41 = vpop.f32.mrb[215].mxu1  ;;  %v15110_v30 = vld [vmem:[#allocation81_spill] sm:$0xff] }
 0x696   :  { %v5622_v62 = vpack.c.bf16 %v5476_v41, %v5472_v60  ;;  %6297 = vmatprep.mubr.bf16.mxu0 %v5850_v20  ;;  %v15111_v60 = vpack.c.bf16 %v15109_v27, %v15110_v30  ;;  %v15124_v27 = vld [vmem:[#allocation94_spill] sm:$0xff]  ;;  %v15125_v30 = vld [vmem:[#allocation92_spill] sm:$0xff] }
 0x697   :  { %v5685_v22 = vadd.bf16 %v5621_v34, %v15096_v18  ;;  %6298 = vmatmul.mubr.bf16.gmra.mrb[16].mxu0 %v5849_v28 }
 0x698   :  { %v5686_v23 = vadd.bf16 %v5622_v62, %v15099_v26 }
 0x699   :  { %v5787_v19 = vadd.bf16 %v13245_v53, %v5685_v22  ;;  %v15112_v22 = vld [vmem:[#allocation86_spill] sm:$0xff] }
 0x69a   :  { %v5788_v1 = vadd.bf16 %v13248_v37, %v5686_v23  ;;  %v5480_v12 = vpop.f32.mrb[216].mxu1  ;;  %v15114_v6 = vpack.c.bf16 %v15112_v22, %v15113_v8  ;;  %v15115_v23 = vld [vmem:[#allocation87_spill] sm:$0xff] }
 0x69b   :  { %v5482_v31 = vpop.f32.mrb[217].mxu1  ;;  %v5851_v0 = vmax.bf16 %v14821_v33, %v5787_v19  ;;  %v15116_v19 = vld [vmem:[#allocation85_spill] sm:$0xff]  ;;  %v10429_v22 = vld [vmem:[#allocation12 + $0x90] ss:$8 sps:$4 sm:$0xff]   ;;  %v10431_v8 = vld [vmem:[#allocation12 + $0x94] ss:$8 sps:$4 sm:$0xff]  }
 0x69c   :  { %v5484_v32 = vpop.f32.mrb[218].mxu1  ;;  %v5852_v9 = vmax.bf16 %v14821_v33, %v5788_v1  ;;  %v15117_v1 = vpack.c.bf16 %v15115_v23, %v15116_v19 }
 0x69d   :  { %v5623_v5 = vpack.c.bf16 %v5484_v32, %v5480_v12  ;;  %v5486_v51 = vpop.f32.mrb[219].mxu1 }
 0x69e   :  { %v5624_v3 = vpack.c.bf16 %v5486_v51, %v5482_v31  ;;  %6307 = vmatprep.mubr.bf16.mxu0 %v5852_v9  ;;  %v10428_v51 = vld [vmem:[#allocation12 + $0x84] ss:$8 sps:$4 sm:$0xff]  }
 0x69f   :  { %v5687_v58 = vadd.bf16 %v5623_v5, %v15102_v29  ;;  %6308 = vmatmul.mubr.bf16.gmra.mrb[20].mxu0 %v5851_v0  ;;  %v10426_v5 = vld [vmem:[#allocation12 + $0x80] ss:$8 sps:$4 sm:$0xff]   ;;  %7643 = vmatprep.subr.bf16.mxu0 %v10428_v51 }
 0x6a0   :  { %v5688_v35 = vadd.bf16 %v5624_v3, %v15105_v55  ;;  %7644 = vmatpush1.bf16.msra.mxu0 %v10426_v5  ;;  %v15119_v55 = vld [vmem:[#allocation88_spill] sm:$0xff] }
 0x6a1   :  { %v5789_v46 = vadd.bf16 %v13245_v53, %v5687_v58  ;;  %7645 = vmatprep.subr.bf16.mxu0 %v10431_v8 }
 0x6a2   :  { %v5790_v49 = vadd.bf16 %v13248_v37, %v5688_v35  ;;  %v5490_v39 = vpop.f32.mrb[220].mxu1  ;;  %v15120_v35 = vpack.c.bf16 %v15118_v4, %v15119_v55 }
 0x6a3   :  { %v5492_v59 = vpop.f32.mrb[221].mxu1  ;;  %v5853_v45 = vmax.bf16 %v14821_v33, %v5789_v46 }
 0x6a4   :  { %v5494_v63 = vpop.f32.mrb[222].mxu1  ;;  %v5854_v16 = vmax.bf16 %v14821_v33, %v5790_v49  ;;  %v15121_v49 = vld [vmem:[#allocation91_spill] sm:$0xff]  ;;  %7646 = vmatpush1.bf16.msra.mxu0 %v10429_v22 }
 0x6a5   :  { %v5625_v10 = vpack.c.bf16 %v5494_v63, %v5490_v39  ;;  %v5496_v2 = vpop.f32.mrb[223].mxu1  ;;  %v15122_v39 = vld [vmem:[#allocation89_spill] sm:$0xff] }
 0x6a6   :  { %v5626_v13 = vpack.c.bf16 %v5496_v2, %v5492_v59  ;;  %6317 = vmatprep.mubr.bf16.mxu0 %v5854_v16  ;;  %v15123_v59 = vpack.c.bf16 %v15121_v49, %v15122_v39 }
 0x6a7   :  { %v5689_v52 = vadd.bf16 %v5625_v10, %v15108_v47  ;;  %6318 = vmatmul.mubr.bf16.gmra.mrb[24].mxu0 %v5853_v45  ;;  %v9626_v47 = vld.sshfl [vmem:[%s14629_s14] sm:$0x11 pattern:$0x75316420] }
 0x6a8   :  { %v5690_v38 = vadd.bf16 %v5626_v13, %v15111_v60  ;;  %v15126_v60 = vpack.c.bf16 %v15124_v27, %v15125_v30 }
 0x6a9   :  { %v5791_v17 = vadd.bf16 %v13245_v53, %v5689_v52 }
 0x6aa   :  { %v5792_v44 = vadd.bf16 %v13248_v37, %v5690_v38  ;;  %v5500_v20 = vpop.f32.mrb[224].mxu1 }
 0x6ab   :  { %v5502_v28 = vpop.f32.mrb[225].mxu1  ;;  %v5855_v62 = vmax.bf16 %v14821_v33, %v5791_v17  ;;  %v15127_v17 = vld [vmem:[#allocation95_spill] sm:$0xff] }
 0x6ac   :  { %v5504_v34 = vpop.f32.mrb[226].mxu1  ;;  %v5856_v41 = vmax.bf16 %v14821_v33, %v5792_v44  ;;  %v15128_v44 = vld [vmem:[#allocation93_spill] sm:$0xff] }
 0x6ad   :  { %v5627_v40 = vpack.c.bf16 %v5504_v34, %v5500_v20  ;;  %v5506_v48 = vpop.f32.mrb[227].mxu1  ;;  %v15129_v20 = vpack.c.bf16 %v15127_v17, %v15128_v44  ;;  %v6491_v34 = vcombine.high %v9626_v47, %v9626_v47  ;;  %v15140_v17 = vld [vmem:[#allocation101_spill] sm:$0xff] }
 0x6ae   :  { %v5628_v18 = vpack.c.bf16 %v5506_v48, %v5502_v28  ;;  %6327 = vmatprep.mubr.bf16.mxu0 %v5856_v41 }
 0x6af   :  { %v5691_v26 = vadd.bf16 %v5627_v40, %v15114_v6  ;;  %6328 = vmatmul.mubr.bf16.gmra.mrb[28].mxu0 %v5855_v62  ;;  %v6505_v23 = vrot.slane %v6491_v34, %v11601_v42 }
 0x6b0   :  { %v5692_v12 = vadd.bf16 %v5628_v18, %v15117_v1  ;;  %v6498_v18 = vrot.slane %v9626_v47, %v11601_v42  ;;  %v15136_v47 = vld [vmem:[#allocation102_spill] sm:$0xff] }
 0x6b1   :  { %v5793_v31 = vadd.bf16 %v13245_v53, %v5691_v26 }
 0x6b2   :  { %v5794_v32 = vadd.bf16 %v13248_v37, %v5692_v12  ;;  %v5510_v9 = vpop.f32.mrb[228].mxu1  ;;  %v6507_v51 = vpack.i.b16 %v6498_v18, %v6498_v18 }
 0x6b3   :  { %v5512_v0 = vpop.f32.mrb[229].mxu1  ;;  %v5857_v43 = vmax.bf16 %v14821_v33, %v5793_v31 }
 0x6b4   :  { %v5514_v3 = vpop.f32.mrb[230].mxu1  ;;  %v5858_v25 = vmax.bf16 %v14821_v33, %v5794_v32  ;;  %v15130_v32 = vld [vmem:[#allocation98_spill] sm:$0xff]  ;;  %v13550_v39 = vrot.slane %v6507_v51, %v11632_v57 }
 0x6b5   :  { %v5629_v29 = vpack.c.bf16 %v5514_v3, %v5510_v9  ;;  %v5516_v58 = vpop.f32.mrb[231].mxu1  ;;  %v15131_v9 = vld [vmem:[#allocation96_spill] sm:$0xff]  ;;  %v15133_v3 = vld [vmem:[#allocation99_spill] sm:$0xff] }
 0x6b6   :  { %v5630_v36 = vpack.c.bf16 %v5516_v58, %v5512_v0  ;;  %6337 = vmatprep.mubr.bf16.mxu0 %v5858_v25  ;;  %v15132_v0 = vpack.c.bf16 %v15130_v32, %v15131_v9  ;;  %v15134_v25 = vld [vmem:[#allocation97_spill] sm:$0xff]  ;;  %v6514_v58 = vpack.i.b16 %v6505_v23, %v6505_v23 }
 0x6b7   :  { %v5693_v46 = vadd.bf16 %v5629_v29, %v15120_v35  ;;  %6338 = vmatmul.mubr.bf16.gmra.mrb[32].mxu0 %v5857_v43  ;;  %v15135_v43 = vpack.c.bf16 %v15133_v3, %v15134_v25  ;;  %v15142_v3 = vld [vmem:[#allocation106_spill] sm:$0xff]  ;;  %v15143_v25 = vld [vmem:[#allocation104_spill] sm:$0xff] }
 0x6b8   :  { %v5694_v61 = vadd.bf16 %v5630_v36, %v15123_v59 }
 0x6b9   :  { %v5795_v21 = vadd.bf16 %v13245_v53, %v5693_v46 }
 0x6ba   :  { %v5796_v63 = vadd.bf16 %v13248_v37, %v5694_v61  ;;  %v5520_v16 = vpop.f32.mrb[232].mxu1 }
 0x6bb   :  { %v5522_v45 = vpop.f32.mrb[233].mxu1  ;;  %v5859_v13 = vmax.bf16 %v14821_v33, %v5795_v21  ;;  %v13553_v21 = vrot.slane %v6514_v58, %v11632_v57 }
 0x6bc   :  { %v5524_v10 = vpop.f32.mrb[234].mxu1  ;;  %v5860_v2 = vmax.bf16 %v14821_v33, %v5796_v63 }
 0x6bd   :  { %v5631_v56 = vpack.c.bf16 %v5524_v10, %v5520_v16  ;;  %v5526_v15 = vpop.f32.mrb[235].mxu1 }
 0x6be   :  { %v5632_v52 = vpack.c.bf16 %v5526_v15, %v5522_v45  ;;  %6347 = vmatprep.mubr.bf16.mxu0 %v5860_v2 }
 0x6bf   :  { %v5695_v38 = vadd.bf16 %v5631_v56, %v15126_v60  ;;  %6348 = vmatmul.mubr.bf16.gmra.mrb[36].mxu0 %v5859_v13 }
 0x6c0   :  { %v5696_v28 = vadd.bf16 %v5632_v52, %v15129_v20  ;;  %v15137_v52 = vld [vmem:[#allocation100_spill] sm:$0xff] }
 0x6c1   :  { %v5797_v41 = vadd.bf16 %v13245_v53, %v5695_v38  ;;  %v15138_v27 = vpack.c.bf16 %v15136_v47, %v15137_v52  ;;  %v15139_v38 = vld [vmem:[#allocation103_spill] sm:$0xff] }
 0x6c2   :  { %v5798_v62 = vadd.bf16 %v13248_v37, %v5696_v28  ;;  %v5530_v40 = vpop.f32.mrb[236].mxu1  ;;  %v15141_v44 = vpack.c.bf16 %v15139_v38, %v15140_v17 }
 0x6c3   :  { %v5532_v48 = vpop.f32.mrb[237].mxu1  ;;  %v5861_v19 = vmax.bf16 %v14821_v33, %v5797_v41 }
 0x6c4   :  { %v5534_v6 = vpop.f32.mrb[238].mxu1  ;;  %v5862_v26 = vmax.bf16 %v14821_v33, %v5798_v62 }
 0x6c5   :  { %v5633_v1 = vpack.c.bf16 %v5534_v6, %v5530_v40  ;;  %v5536_v12 = vpop.f32.mrb[239].mxu1  ;;  %v10432_v6 = vld [vmem:[#allocation12 + $0xa0] ss:$8 sps:$4 sm:$0xff]  }
 0x6c6   :  { %v5634_v31 = vpack.c.bf16 %v5536_v12, %v5532_v48  ;;  %6357 = vmatprep.mubr.bf16.mxu0 %v5862_v26  ;;  %v10434_v26 = vld [vmem:[#allocation12 + $0xa4] ss:$8 sps:$4 sm:$0xff]  }
 0x6c7   :  { %v5697_v5 = vadd.bf16 %v5633_v1, %v15132_v0  ;;  %6358 = vmatmul.mubr.bf16.gmra.mrb[40].mxu0 %v5861_v19  ;;  %7647 = vmatprep.subr.bf16.mxu0 %v10434_v26 }
 0x6c8   :  { %v5698_v29 = vadd.bf16 %v5634_v31, %v15135_v43  ;;  %7648 = vmatpush1.bf16.msra.mxu0 %v10432_v6  ;;  %v15144_v43 = vpack.c.bf16 %v15142_v3, %v15143_v25 }
 0x6c9   :  { %v5799_v36 = vadd.bf16 %v13245_v53, %v5697_v5 }
 0x6ca   :  { %v5800_v4 = vadd.bf16 %v13248_v37, %v5698_v29  ;;  %v5540_v55 = vpop.f32.mrb[240].mxu1  ;;  %v6099_v35 = vpop.f32.mrb[192].mxu0 }
 0x6cb   :  { %v5542_v46 = vpop.f32.mrb[241].mxu1  ;;  %v6101_v49 = vpop.f32.mrb[193].mxu0  ;;  %v5863_v16 = vmax.bf16 %v14821_v33, %v5799_v36  ;;  %v15145_v36 = vld [vmem:[#allocation107_spill] sm:$0xff] }
 0x6cc   :  { %v5544_v59 = vpop.f32.mrb[242].mxu1  ;;  %v6103_v61 = vpop.f32.mrb[194].mxu0  ;;  %v5864_v63 = vmax.bf16 %v14821_v33, %v5800_v4  ;;  %v15146_v4 = vld [vmem:[#allocation105_spill] sm:$0xff] }
 0x6cd   :  { %v5635_v45 = vpack.c.bf16 %v5544_v59, %v5540_v55  ;;  %v6418_v10 = vpack.c.bf16 %v6103_v61, %v6099_v35  ;;  %v5546_v2 = vpop.f32.mrb[243].mxu1  ;;  %v6105_v13 = vpop.f32.mrb[195].mxu0  ;;  %v15147_v55 = vpack.c.bf16 %v15145_v36, %v15146_v4 }
 0x6ce   :  { %v5636_v56 = vpack.c.bf16 %v5546_v2, %v5542_v46  ;;  %v6419_v15 = vpack.c.bf16 %v6105_v13, %v6101_v49  ;;  %6367 = vmatprep.mubr.bf16.mxu0 %v5864_v63 }
 0x6cf   :  { %v5699_v30 = vadd.bf16 %v5635_v45, %v15138_v27  ;;  %v6520_v60 = vadd.bf16 %v13550_v39, %v6418_v10  ;;  %6368 = vmatmul.mubr.bf16.gmra.mrb[44].mxu0 %v5863_v16 }
 0x6d0   :  { %v5700_v20 = vadd.bf16 %v5636_v56, %v15141_v44  ;;  %v6521_v28 = vadd.bf16 %v13553_v21, %v6419_v15  ;;  %v15148_v44 = vld [vmem:[#allocation110_spill] sm:$0xff] }
 0x6d1   :  { %v5801_v34 = vadd.bf16 %v13245_v53, %v5699_v30  ;;  %v6584_v18 = vmax.bf16 %v14821_v33, %v6520_v60 }
 0x6d2   :  { %v5802_v41 = vadd.bf16 %v13248_v37, %v5700_v20  ;;  %v5550_v62 = vpop.f32.mrb[244].mxu1  ;;  %v6109_v40 = vpop.f32.mrb[196].mxu0  ;;  %v6585_v48 = vmax.bf16 %v14821_v33, %v6521_v28  ;;  %v15149_v20 = vld [vmem:[#allocation108_spill] sm:$0xff] }
 0x6d3   :  { %v5552_v22 = vpop.f32.mrb[245].mxu1  ;;  %v6111_v8 = vpop.f32.mrb[197].mxu0  ;;  %v5865_v12 = vmax.bf16 %v14821_v33, %v5801_v34  ;;  %v15150_v28 = vpack.c.bf16 %v15148_v44, %v15149_v20 }
 0x6d4   :  { %v5554_v23 = vpop.f32.mrb[246].mxu1  ;;  %v6113_v19 = vpop.f32.mrb[198].mxu0  ;;  %6872 = vmatprep.mubr.bf16.mxu1 %v6585_v48  ;;  %v5866_v1 = vmax.bf16 %v14821_v33, %v5802_v41 }
 0x6d5   :  { %v5637_v31 = vpack.c.bf16 %v5554_v23, %v5550_v62  ;;  %v6420_v32 = vpack.c.bf16 %v6113_v19, %v6109_v40  ;;  %v5556_v9 = vpop.f32.mrb[247].mxu1  ;;  %v6115_v0 = vpop.f32.mrb[199].mxu0  ;;  %6873 = vmatmul.mubr.bf16.vlgmr.msra.gmra.mrb[0].mxu1 %v6584_v18  ;;  %v15151_v62 = vld [vmem:[#allocation111_spill] sm:$0xff]  ;;  %v15152_v40 = vld [vmem:[#allocation109_spill] sm:$0xff] }
 0x6d6   :  { %v5638_v5 = vpack.c.bf16 %v5556_v9, %v5552_v22  ;;  %v6421_v51 = vpack.c.bf16 %v6115_v0, %v6111_v8  ;;  %6377 = vmatprep.mubr.bf16.mxu0 %v5866_v1  ;;  %v15153_v48 = vpack.c.bf16 %v15151_v62, %v15152_v40  ;;  %v10437_v9 = vld [vmem:[#allocation12 + $0xb4] ss:$8 sps:$4 sm:$0xff]   ;;  %v10438_v62 = vld [vmem:[#allocation12 + $0xc0] ss:$8 sps:$4 sm:$0xff]   ;;  %v10440_v40 = vld [vmem:[#allocation12 + $0xc4] ss:$8 sps:$4 sm:$0xff]  }
 0x6d7   :  { %v5701_v29 = vadd.bf16 %v5637_v31, %v15144_v43  ;;  %v6522_v58 = vadd.bf16 %v13550_v39, %v6420_v32  ;;  %6378 = vmatmul.mubr.bf16.gmra.mrb[48].mxu0 %v5865_v12  ;;  %v10435_v32 = vld [vmem:[#allocation12 + $0xb0] ss:$8 sps:$4 sm:$0xff]   ;;  %7649 = vmatprep.subr.bf16.mxu0 %v10437_v9 }
 0x6d8   :  { %v5702_v35 = vadd.bf16 %v5638_v5, %v15147_v55  ;;  %v6523_v46 = vadd.bf16 %v13553_v21, %v6421_v51  ;;  %7650 = vmatpush1.bf16.msra.mxu0 %v10435_v32  ;;  %v15154_v55 = vld [vmem:[#allocation114_spill] sm:$0xff] }
 0x6d9   :  { %v5803_v49 = vadd.bf16 %v13245_v53, %v5701_v29  ;;  %v6586_v45 = vmax.bf16 %v14821_v33, %v6522_v58  ;;  %7651 = vmatprep.subr.bf16.mxu0 %v10440_v40 }
 0x6da   :  { %v5804_v59 = vadd.bf16 %v13248_v37, %v5702_v35  ;;  %v5560_v61 = vpop.f32.mrb[248].mxu1  ;;  %v6119_v63 = vpop.f32.mrb[200].mxu0  ;;  %v6587_v16 = vmax.bf16 %v14821_v33, %v6523_v46  ;;  %v15155_v35 = vld [vmem:[#allocation112_spill] sm:$0xff] }
 0x6db   :  { %v5562_v10 = vpop.f32.mrb[249].mxu1  ;;  %v6121_v2 = vpop.f32.mrb[201].mxu0  ;;  %v5867_v47 = vmax.bf16 %v14821_v33, %v5803_v49  ;;  %v15156_v46 = vpack.c.bf16 %v15154_v55, %v15155_v35 }
 0x6dc   :  { %v5564_v13 = vpop.f32.mrb[250].mxu1  ;;  %v6123_v56 = vpop.f32.mrb[202].mxu0  ;;  %6882 = vmatprep.mubr.bf16.mxu1 %v6587_v16  ;;  %v5868_v15 = vmax.bf16 %v14821_v33, %v5804_v59  ;;  %7652 = vmatpush1.bf16.msra.mxu0 %v10438_v62 }
 0x6dd   :  { %v5639_v52 = vpack.c.bf16 %v5564_v13, %v5560_v61  ;;  %v6422_v27 = vpack.c.bf16 %v6123_v56, %v6119_v63  ;;  %v5566_v30 = vpop.f32.mrb[251].mxu1  ;;  %v6125_v60 = vpop.f32.mrb[203].mxu0  ;;  %6883 = vmatmul.mubr.bf16.gmra.mrb[4].mxu1 %v6586_v45  ;;  %v15157_v61 = vld [vmem:[#allocation115_spill] sm:$0xff]  ;;  %v15158_v63 = vld [vmem:[#allocation113_spill] sm:$0xff] }
 0x6de   :  { %v5640_v38 = vpack.c.bf16 %v5566_v30, %v5562_v10  ;;  %v6423_v17 = vpack.c.bf16 %v6125_v60, %v6121_v2  ;;  %6387 = vmatprep.mubr.bf16.mxu0 %v5868_v15  ;;  %v15159_v16 = vpack.c.bf16 %v15157_v61, %v15158_v63 }
 0x6df   :  { %v5703_v34 = vadd.bf16 %v5639_v52, %v15150_v28  ;;  %v6524_v41 = vadd.bf16 %v13550_v39, %v6422_v27  ;;  %6388 = vmatmul.mubr.bf16.gmra.mrb[52].mxu0 %v5867_v47 }
 0x6e0   :  { %v5704_v18 = vadd.bf16 %v5640_v38, %v15153_v48  ;;  %v6525_v22 = vadd.bf16 %v13553_v21, %v6423_v17 }
 0x6e1   :  { %v5805_v8 = vadd.bf16 %v13245_v53, %v5703_v34  ;;  %v6588_v1 = vmax.bf16 %v14821_v33, %v6524_v41 }
 0x6e2   :  { %v5806_v6 = vadd.bf16 %v13248_v37, %v5704_v18  ;;  %v5570_v26 = vpop.f32.mrb[252].mxu1  ;;  %v6129_v23 = vpop.f32.mrb[204].mxu0  ;;  %v6589_v19 = vmax.bf16 %v14821_v33, %v6525_v22 }
 0x6e3   :  { %v5572_v12 = vpop.f32.mrb[253].mxu1  ;;  %v6131_v31 = vpop.f32.mrb[205].mxu0  ;;  %v5869_v3 = vmax.bf16 %v14821_v33, %v5805_v8 }
 0x6e4   :  { %v5574_v0 = vpop.f32.mrb[254].mxu1  ;;  %v6133_v5 = vpop.f32.mrb[206].mxu0  ;;  %6892 = vmatprep.mubr.bf16.mxu1 %v6589_v19  ;;  %v5870_v51 = vmax.bf16 %v14821_v33, %v5806_v6 }
 0x6e5   :  { %v5641_v25 = vpack.c.bf16 %v5574_v0, %v5570_v26  ;;  %v6424_v43 = vpack.c.bf16 %v6133_v5, %v6129_v23  ;;  %v5576_v29 = vpop.f32.mrb[255].mxu1  ;;  %v6135_v58 = vpop.f32.mrb[207].mxu0  ;;  %6893 = vmatmul.mubr.bf16.gmra.mrb[8].mxu1 %v6588_v1 }
 0x6e6   :  { %v5642_v36 = vpack.c.bf16 %v5576_v29, %v5572_v12  ;;  %v6425_v4 = vpack.c.bf16 %v6135_v58, %v6131_v31  ;;  %6397 = vmatprep.mubr.bf16.mxu0 %v5870_v51  ;;  %v10441_v58 = vld [vmem:[#allocation12 + $0xd0] ss:$8 sps:$4 sm:$0xff]  }
 0x6e7   :  { %v5705_v49 = vadd.bf16 %v5641_v25, %v15156_v46  ;;  %v6526_v59 = vadd.bf16 %v13550_v39, %v6424_v43  ;;  %6398 = vmatmul.mubr.bf16.gmra.mrb[56].mxu0 %v5869_v3 }
 0x6e8   :  { %v5706_v45 = vadd.bf16 %v5642_v36, %v15159_v16  ;;  %v6527_v10 = vadd.bf16 %v13553_v21, %v6425_v4  ;;  %v10443_v36 = vld [vmem:[#allocation12 + $0xd4] ss:$8 sps:$4 sm:$0xff]  }
 0x6e9   :  { %v5807_v2 = vadd.bf16 %v13245_v53, %v5705_v49  ;;  %v6590_v47 = vmax.bf16 %v14821_v33, %v6526_v59  ;;  %7653 = vmatprep.subr.bf16.mxu0 %v10443_v36 }
 0x6ea   :  { %v5808_v13 = vadd.bf16 %v13248_v37, %v5706_v45  ;;  %v6139_v56 = vpop.f32.mrb[208].mxu0  ;;  %v6591_v15 = vmax.bf16 %v14821_v33, %v6527_v10  ;;  %7654 = vmatpush1.bf16.msra.mxu0 %v10441_v58 }
 0x6eb   :  { %v6141_v52 = vpop.f32.mrb[209].mxu0  ;;  %v5871_v60 = vmax.bf16 %v14821_v33, %v5807_v2 }
 0x6ec   :  { %v6143_v27 = vpop.f32.mrb[210].mxu0  ;;  %6902 = vmatprep.mubr.bf16.mxu1 %v6591_v15  ;;  %v5872_v30 = vmax.bf16 %v14821_v33, %v5808_v13 }
 0x6ed   :  { %v6426_v38 = vpack.c.bf16 %v6143_v27, %v6139_v56  ;;  %v6145_v17 = vpop.f32.mrb[211].mxu0  ;;  %6903 = vmatmul.mubr.bf16.gmra.mrb[12].mxu1 %v6590_v47 }
 0x6ee   :  { %v6427_v44 = vpack.c.bf16 %v6145_v17, %v6141_v52  ;;  %6407 = vmatprep.mubr.bf16.mxu0 %v5872_v30  ;;  %v10446_v17 = vld [vmem:[#allocation12 + $0xe4] ss:$8 sps:$4 sm:$0xff]  }
 0x6ef   :  { %v6528_v53 = vadd.bf16 %v13550_v39, %v6426_v38  ;;  %6408 = vmatmul.mubr.bf16.gmra.mrb[60].mxu0 %v5871_v60  ;;  %v10444_v38 = vld [vmem:[#allocation12 + $0xe0] ss:$8 sps:$4 sm:$0xff]   ;;  %7655 = vmatprep.subr.bf16.mxu0 %v10446_v17 }
 0x6f0   :  { %v6529_v37 = vadd.bf16 %v13553_v21, %v6427_v44  ;;  %7656 = vmatpush1.bf16.msra.mxu0 %v10444_v38 }
 0x6f1   :  { %v6592_v34 = vmax.bf16 %v14821_v33, %v6528_v53 }
 0x6f2   :  { %v6149_v20 = vpop.f32.mrb[212].mxu0  ;;  %v6593_v28 = vmax.bf16 %v14821_v33, %v6529_v37 }
 0x6f3   :  { %v6151_v41 = vpop.f32.mrb[213].mxu0 }
 0x6f4   :  { %v6153_v48 = vpop.f32.mrb[214].mxu0  ;;  %6912 = vmatprep.mubr.bf16.mxu1 %v6593_v28 }
 0x6f5   :  { %v6428_v18 = vpack.c.bf16 %v6153_v48, %v6149_v20  ;;  %v6155_v22 = vpop.f32.mrb[215].mxu0  ;;  %6913 = vmatmul.mubr.bf16.gmra.mrb[16].mxu1 %v6592_v34 }
 0x6f6   :  { %v6429_v8 = vpack.c.bf16 %v6155_v22, %v6151_v41 }
 0x6f7   :  { %v6530_v6 = vadd.bf16 %v13550_v39, %v6428_v18 }
 0x6f8   :  { %v6531_v26 = vadd.bf16 %v13553_v21, %v6429_v8 }
 0x6f9   :  { %v6594_v1 = vmax.bf16 %v14821_v33, %v6530_v6 }
 0x6fa   :  { %v6159_v23 = vpop.f32.mrb[216].mxu0  ;;  %v6595_v19 = vmax.bf16 %v14821_v33, %v6531_v26 }
 0x6fb   :  { %v6161_v12 = vpop.f32.mrb[217].mxu0 }
 0x6fc   :  { %v6163_v31 = vpop.f32.mrb[218].mxu0  ;;  %6922 = vmatprep.mubr.bf16.mxu1 %v6595_v19 }
 0x6fd   :  { %v6430_v32 = vpack.c.bf16 %v6163_v31, %v6159_v23  ;;  %v6165_v9 = vpop.f32.mrb[219].mxu0  ;;  %6923 = vmatmul.mubr.bf16.gmra.mrb[20].mxu1 %v6594_v1 }
 0x6fe   :  { %v6431_v0 = vpack.c.bf16 %v6165_v9, %v6161_v12  ;;  %v10449_v9 = vld [vmem:[#allocation12 + $0xf4] ss:$8 sps:$4 sm:$0xff]  }
 0x6ff   :  { %v6532_v5 = vadd.bf16 %v13550_v39, %v6430_v32  ;;  %v10447_v32 = vld [vmem:[#allocation12 + $0xf0] ss:$8 sps:$4 sm:$0xff]   ;;  %7657 = vmatprep.subr.bf16.mxu0 %v10449_v9 }
 0x700   :  { %v6533_v51 = vadd.bf16 %v13553_v21, %v6431_v0  ;;  %7658 = vmatpush1.bf16.msra.mxu0 %v10447_v32 }
 0x701   :  { %v6596_v43 = vmax.bf16 %v14821_v33, %v6532_v5 }
 0x702   :  { %v6169_v3 = vpop.f32.mrb[220].mxu0  ;;  %v6597_v25 = vmax.bf16 %v14821_v33, %v6533_v51 }
 0x703   :  { %v6171_v29 = vpop.f32.mrb[221].mxu0 }
 0x704   :  { %v6173_v4 = vpop.f32.mrb[222].mxu0  ;;  %6932 = vmatprep.mubr.bf16.mxu1 %v6597_v25 }
 0x705   :  { %v6432_v55 = vpack.c.bf16 %v6173_v4, %v6169_v3  ;;  %v6175_v35 = vpop.f32.mrb[223].mxu0  ;;  %6933 = vmatmul.mubr.bf16.gmra.mrb[24].mxu1 %v6596_v43 }
 0x706   :  { %v6433_v46 = vpack.c.bf16 %v6175_v35, %v6171_v29 }
 0x707   :  { %v6534_v49 = vadd.bf16 %v13550_v39, %v6432_v55 }
 0x708   :  { %v6535_v59 = vadd.bf16 %v13553_v21, %v6433_v46 }
 0x709   :  { %v6598_v16 = vmax.bf16 %v14821_v33, %v6534_v49 }
 0x70a   :  { %v6179_v61 = vpop.f32.mrb[224].mxu0  ;;  %v6599_v63 = vmax.bf16 %v14821_v33, %v6535_v59 }
 0x70b   :  { %v6181_v45 = vpop.f32.mrb[225].mxu0 }
 0x70c   :  { %v6183_v10 = vpop.f32.mrb[226].mxu0  ;;  %6942 = vmatprep.mubr.bf16.mxu1 %v6599_v63 }
 0x70d   :  { %v6434_v2 = vpack.c.bf16 %v6183_v10, %v6179_v61  ;;  %v6185_v13 = vpop.f32.mrb[227].mxu0  ;;  %6943 = vmatmul.mubr.bf16.gmra.mrb[28].mxu1 %v6598_v16 }
 0x70e   :  { %v6435_v56 = vpack.c.bf16 %v6185_v13, %v6181_v45 }
 0x70f   :  { %v6536_v15 = vadd.bf16 %v13550_v39, %v6434_v2 }
 0x710   :  { %v6537_v47 = vadd.bf16 %v13553_v21, %v6435_v56 }
 0x711   :  { %v6600_v30 = vmax.bf16 %v14821_v33, %v6536_v15 }
 0x712   :  { %v6189_v52 = vpop.f32.mrb[228].mxu0  ;;  %v6601_v27 = vmax.bf16 %v14821_v33, %v6537_v47 }
 0x713   :  { %v6191_v60 = vpop.f32.mrb[229].mxu0 }
 0x714   :  { %v6193_v44 = vpop.f32.mrb[230].mxu0  ;;  %6952 = vmatprep.mubr.bf16.mxu1 %v6601_v27 }
 0x715   :  { %v6436_v53 = vpack.c.bf16 %v6193_v44, %v6189_v52  ;;  %v6195_v37 = vpop.f32.mrb[231].mxu0  ;;  %6953 = vmatmul.mubr.bf16.gmra.mrb[32].mxu1 %v6600_v30 }
 0x716   :  { %v6437_v20 = vpack.c.bf16 %v6195_v37, %v6191_v60 }
 0x717   :  { %v6538_v28 = vadd.bf16 %v13550_v39, %v6436_v53 }
 0x718   :  { %v6539_v34 = vadd.bf16 %v13553_v21, %v6437_v20 }
 0x719   :  { %v6602_v40 = vmax.bf16 %v14821_v33, %v6538_v28 }
 0x71a   :  { %v6199_v41 = vpop.f32.mrb[232].mxu0  ;;  %v6603_v62 = vmax.bf16 %v14821_v33, %v6539_v34 }
 0x71b   :  { %v6201_v48 = vpop.f32.mrb[233].mxu0 }
 0x71c   :  { %v6203_v18 = vpop.f32.mrb[234].mxu0  ;;  %6962 = vmatprep.mubr.bf16.mxu1 %v6603_v62 }
 0x71d   :  { %v6438_v22 = vpack.c.bf16 %v6203_v18, %v6199_v41  ;;  %v6205_v8 = vpop.f32.mrb[235].mxu0  ;;  %6963 = vmatmul.mubr.bf16.gmra.mrb[36].mxu1 %v6602_v40 }
 0x71e   :  { %v6439_v6 = vpack.c.bf16 %v6205_v8, %v6201_v48 }
 0x71f   :  { %v6540_v26 = vadd.bf16 %v13550_v39, %v6438_v22 }
 0x720   :  { %v6541_v23 = vadd.bf16 %v13553_v21, %v6439_v6 }
 0x721   :  { %v6604_v12 = vmax.bf16 %v14821_v33, %v6540_v26 }
 0x722   :  { %v6209_v19 = vpop.f32.mrb[236].mxu0  ;;  %v6605_v1 = vmax.bf16 %v14821_v33, %v6541_v23 }
 0x723   :  { %v6211_v31 = vpop.f32.mrb[237].mxu0 }
 0x724   :  { %v6213_v0 = vpop.f32.mrb[238].mxu0  ;;  %6972 = vmatprep.mubr.bf16.mxu1 %v6605_v1 }
 0x725   :  { %v6440_v5 = vpack.c.bf16 %v6213_v0, %v6209_v19  ;;  %v6215_v51 = vpop.f32.mrb[239].mxu0  ;;  %6973 = vmatmul.mubr.bf16.gmra.mrb[40].mxu1 %v6604_v12 }
 0x726   :  { %v6441_v3 = vpack.c.bf16 %v6215_v51, %v6211_v31 }
 0x727   :  { %v6542_v25 = vadd.bf16 %v13550_v39, %v6440_v5 }
 0x728   :  { %v6543_v43 = vadd.bf16 %v13553_v21, %v6441_v3 }
 0x729   :  { %v6606_v36 = vmax.bf16 %v14821_v33, %v6542_v25 }
 0x72a   :  { %v6219_v29 = vpop.f32.mrb[240].mxu0  ;;  %v6607_v58 = vmax.bf16 %v14821_v33, %v6543_v43 }
 0x72b   :  { %v6221_v4 = vpop.f32.mrb[241].mxu0 }
 0x72c   :  { %v6223_v55 = vpop.f32.mrb[242].mxu0  ;;  %6982 = vmatprep.mubr.bf16.mxu1 %v6607_v58 }
 0x72d   :  { %v6442_v35 = vpack.c.bf16 %v6223_v55, %v6219_v29  ;;  %v6225_v46 = vpop.f32.mrb[243].mxu0  ;;  %6983 = vmatmul.mubr.bf16.gmra.mrb[44].mxu1 %v6606_v36 }
 0x72e   :  { %v6443_v49 = vpack.c.bf16 %v6225_v46, %v6221_v4 }
 0x72f   :  { %v6544_v59 = vadd.bf16 %v13550_v39, %v6442_v35 }
 0x730   :  { %v6545_v61 = vadd.bf16 %v13553_v21, %v6443_v49 }
 0x731   :  { %v6608_v45 = vmax.bf16 %v14821_v33, %v6544_v59 }
 0x732   :  { %v6229_v63 = vpop.f32.mrb[244].mxu0  ;;  %v6609_v16 = vmax.bf16 %v14821_v33, %v6545_v61 }
 0x733   :  { %v6231_v10 = vpop.f32.mrb[245].mxu0 }
 0x734   :  { %v6233_v2 = vpop.f32.mrb[246].mxu0  ;;  %6992 = vmatprep.mubr.bf16.mxu1 %v6609_v16 }
 0x735   :  { %v6444_v13 = vpack.c.bf16 %v6233_v2, %v6229_v63  ;;  %v6235_v56 = vpop.f32.mrb[247].mxu0  ;;  %6993 = vmatmul.mubr.bf16.gmra.mrb[48].mxu1 %v6608_v45 }
 0x736   :  { %v6445_v15 = vpack.c.bf16 %v6235_v56, %v6231_v10 }
 0x737   :  { %v6546_v47 = vadd.bf16 %v13550_v39, %v6444_v13 }
 0x738   :  { %v6547_v52 = vadd.bf16 %v13553_v21, %v6445_v15 }
 0x739   :  { %v6610_v60 = vmax.bf16 %v14821_v33, %v6546_v47 }
 0x73a   :  { %v6239_v27 = vpop.f32.mrb[248].mxu0  ;;  %v6611_v30 = vmax.bf16 %v14821_v33, %v6547_v52 }
 0x73b   :  { %v6241_v38 = vpop.f32.mrb[249].mxu0 }
 0x73c   :  { %v6243_v17 = vpop.f32.mrb[250].mxu0  ;;  %7002 = vmatprep.mubr.bf16.mxu1 %v6611_v30 }
 0x73d   :  { %v6446_v44 = vpack.c.bf16 %v6243_v17, %v6239_v27  ;;  %v6245_v53 = vpop.f32.mrb[251].mxu0  ;;  %7003 = vmatmul.mubr.bf16.gmra.mrb[52].mxu1 %v6610_v60 }
 0x73e   :  { %v6447_v37 = vpack.c.bf16 %v6245_v53, %v6241_v38 }
 0x73f   :  { %v6548_v20 = vadd.bf16 %v13550_v39, %v6446_v44 }
 0x740   :  { %v6549_v28 = vadd.bf16 %v13553_v21, %v6447_v37 }
 0x741   :  { %v6612_v62 = vmax.bf16 %v14821_v33, %v6548_v20 }
 0x742   :  { %v6249_v34 = vpop.f32.mrb[252].mxu0  ;;  %v6613_v41 = vmax.bf16 %v14821_v33, %v6549_v28 }
 0x743   :  { %v6251_v40 = vpop.f32.mrb[253].mxu0 }
 0x744   :  { %v6253_v48 = vpop.f32.mrb[254].mxu0  ;;  %7012 = vmatprep.mubr.bf16.mxu1 %v6613_v41 }
 0x745   :  { %v6448_v18 = vpack.c.bf16 %v6253_v48, %v6249_v34  ;;  %v6255_v22 = vpop.f32.mrb[255].mxu0  ;;  %7013 = vmatmul.mubr.bf16.gmra.mrb[56].mxu1 %v6612_v62 }
 0x746   :  { %v6449_v8 = vpack.c.bf16 %v6255_v22, %v6251_v40 }
 0x747   :  { %v6550_v6 = vadd.bf16 %v13550_v39, %v6448_v18 }
 0x748   :  { %v6551_v26 = vadd.bf16 %v13553_v21, %v6449_v8 }
 0x749   :  { %v6614_v1 = vmax.bf16 %v14821_v33, %v6550_v6 }
 0x74a   :  { %v6259_v23 = vpop.f32.mrb[0].mxu0  ;;  %v6615_v19 = vmax.bf16 %v14821_v33, %v6551_v26 }
 0x74b   :  { %v6261_v12 = vpop.f32.mrb[1].mxu0 }
 0x74c   :  { %v6263_v31 = vpop.f32.mrb[2].mxu0  ;;  %7022 = vmatprep.mubr.bf16.mxu1 %v6615_v19 }
 0x74d   :  { %v6450_v32 = vpack.c.bf16 %v6263_v31, %v6259_v23  ;;  %v6265_v9 = vpop.f32.mrb[3].mxu0  ;;  %7023 = vmatmul.mubr.bf16.gmra.mrb[60].mxu1 %v6614_v1 }
 0x74e   :  { %v6451_v0 = vpack.c.bf16 %v6265_v9, %v6261_v12 }
 0x74f   :  { %v6552_v5 = vadd.bf16 %v13550_v39, %v6450_v32 }
 0x750   :  { %v6553_v51 = vadd.bf16 %v13553_v21, %v6451_v0 }
 0x751   :  { %v6616_v43 = vmax.bf16 %v14821_v33, %v6552_v5 }
 0x752   :  { %v6269_v3 = vpop.f32.mrb[4].mxu0  ;;  %v6617_v25 = vmax.bf16 %v14821_v33, %v6553_v51 }
 0x753   :  { %v6271_v29 = vpop.f32.mrb[5].mxu0 }
 0x754   :  { %v6273_v58 = vpop.f32.mrb[6].mxu0  ;;  %7032 = vmatprep.mubr.bf16.mxu1 %v6617_v25 }
 0x755   :  { %v6452_v36 = vpack.c.bf16 %v6273_v58, %v6269_v3  ;;  %v6275_v4 = vpop.f32.mrb[7].mxu0  ;;  %7033 = vmatmul.mubr.bf16.gmra.mrb[64].mxu1 %v6616_v43 }
 0x756   :  { %v6453_v55 = vpack.c.bf16 %v6275_v4, %v6271_v29 }
 0x757   :  { %v6554_v35 = vadd.bf16 %v13550_v39, %v6452_v36 }
 0x758   :  { %v6555_v46 = vadd.bf16 %v13553_v21, %v6453_v55 }
 0x759   :  { %v6618_v61 = vmax.bf16 %v14821_v33, %v6554_v35 }
 0x75a   :  { %v6279_v49 = vpop.f32.mrb[8].mxu0  ;;  %v6619_v59 = vmax.bf16 %v14821_v33, %v6555_v46 }
 0x75b   :  { %v6281_v63 = vpop.f32.mrb[9].mxu0 }
 0x75c   :  { %v6283_v16 = vpop.f32.mrb[10].mxu0  ;;  %7042 = vmatprep.mubr.bf16.mxu1 %v6619_v59 }
 0x75d   :  { %v6454_v45 = vpack.c.bf16 %v6283_v16, %v6279_v49  ;;  %v6285_v10 = vpop.f32.mrb[11].mxu0  ;;  %7043 = vmatmul.mubr.bf16.gmra.mrb[68].mxu1 %v6618_v61 }
 0x75e   :  { %v6455_v2 = vpack.c.bf16 %v6285_v10, %v6281_v63 }
 0x75f   :  { %v6556_v13 = vadd.bf16 %v13550_v39, %v6454_v45 }
 0x760   :  { %v6557_v56 = vadd.bf16 %v13553_v21, %v6455_v2 }
 0x761   :  { %v6620_v52 = vmax.bf16 %v14821_v33, %v6556_v13 }
 0x762   :  { %v6289_v15 = vpop.f32.mrb[12].mxu0  ;;  %v6621_v47 = vmax.bf16 %v14821_v33, %v6557_v56 }
 0x763   :  { %v6291_v27 = vpop.f32.mrb[13].mxu0 }
 0x764   :  { %v6293_v30 = vpop.f32.mrb[14].mxu0  ;;  %7052 = vmatprep.mubr.bf16.mxu1 %v6621_v47 }
 0x765   :  { %v6456_v60 = vpack.c.bf16 %v6293_v30, %v6289_v15  ;;  %v6295_v38 = vpop.f32.mrb[15].mxu0  ;;  %7053 = vmatmul.mubr.bf16.gmra.mrb[72].mxu1 %v6620_v52 }
 0x766   :  { %v6457_v17 = vpack.c.bf16 %v6295_v38, %v6291_v27 }
 0x767   :  { %v6558_v44 = vadd.bf16 %v13550_v39, %v6456_v60 }
 0x768   :  { %v6559_v53 = vadd.bf16 %v13553_v21, %v6457_v17  ;;  %v10450_v17 = vld [vmem:[%s14634_s19] sm:$0xff]  }
 0x769   :  { %v6622_v28 = vmax.bf16 %v14821_v33, %v6558_v44  ;;  %9913 = vmatprep.subr.bf16.mxu1 %v10450_v17 }
 0x76a   :  { %v6299_v37 = vpop.f32.mrb[16].mxu0  ;;  %v6623_v20 = vmax.bf16 %v14821_v33, %v6559_v53  ;;  %9914 = vmatpush3.bf16.msra.mxu1 %v10450_v17 }
 0x76b   :  { %v6301_v34 = vpop.f32.mrb[17].mxu0 }
 0x76c   :  { %v6303_v41 = vpop.f32.mrb[18].mxu0  ;;  %7062 = vmatprep.mubr.bf16.mxu1 %v6623_v20 }
 0x76d   :  { %v6458_v62 = vpack.c.bf16 %v6303_v41, %v6299_v37  ;;  %v6305_v40 = vpop.f32.mrb[19].mxu0  ;;  %7063 = vmatmul.mubr.bf16.gmra.mrb[76].mxu1 %v6622_v28 }
 0x76e   :  { %v6459_v48 = vpack.c.bf16 %v6305_v40, %v6301_v34 }
 0x76f   :  { %v6560_v18 = vadd.bf16 %v13550_v39, %v6458_v62 }
 0x770   :  { %v6561_v22 = vadd.bf16 %v13553_v21, %v6459_v48 }
 0x771   :  { %v6624_v26 = vmax.bf16 %v14821_v33, %v6560_v18 }
 0x772   :  { %v6309_v8 = vpop.f32.mrb[20].mxu0  ;;  %v6625_v6 = vmax.bf16 %v14821_v33, %v6561_v22 }
 0x773   :  { %v6311_v23 = vpop.f32.mrb[21].mxu0 }
 0x774   :  { %v6313_v19 = vpop.f32.mrb[22].mxu0  ;;  %7072 = vmatprep.mubr.bf16.mxu1 %v6625_v6 }
 0x775   :  { %v6460_v1 = vpack.c.bf16 %v6313_v19, %v6309_v8  ;;  %v6315_v12 = vpop.f32.mrb[23].mxu0  ;;  %7073 = vmatmul.mubr.bf16.gmra.mrb[80].mxu1 %v6624_v26  ;;  %v9659_v26 = vld.sshfl [vmem:[%s14631_s16] sm:$0x11 pattern:$0x75316420] }
 0x776   :  { %v6461_v31 = vpack.c.bf16 %v6315_v12, %v6311_v23 }
 0x777   :  { %v6562_v32 = vadd.bf16 %v13550_v39, %v6460_v1 }
 0x778   :  { %v6563_v9 = vadd.bf16 %v13553_v21, %v6461_v31  ;;  %v7266_v31 = vcombine.high %v9659_v26, %v9659_v26 }
 0x779   :  { %v6626_v51 = vmax.bf16 %v14821_v33, %v6562_v32 }
 0x77a   :  { %v6319_v0 = vpop.f32.mrb[24].mxu0  ;;  %v6627_v5 = vmax.bf16 %v14821_v33, %v6563_v9 }
 0x77b   :  { %v6321_v3 = vpop.f32.mrb[25].mxu0 }
 0x77c   :  { %v6323_v25 = vpop.f32.mrb[26].mxu0  ;;  %7082 = vmatprep.mubr.bf16.mxu1 %v6627_v5 }
 0x77d   :  { %v6462_v43 = vpack.c.bf16 %v6323_v25, %v6319_v0  ;;  %v6325_v29 = vpop.f32.mrb[27].mxu0  ;;  %7083 = vmatmul.mubr.bf16.gmra.mrb[84].mxu1 %v6626_v51  ;;  %v7273_v0 = vrot.slane %v9659_v26, %v11601_v42 }
 0x77e   :  { %v6463_v58 = vpack.c.bf16 %v6325_v29, %v6321_v3  ;;  %v7280_v3 = vrot.slane %v7266_v31, %v11601_v42 }
 0x77f   :  { %v6564_v36 = vadd.bf16 %v13550_v39, %v6462_v43 }
 0x780   :  { %v6565_v4 = vadd.bf16 %v13553_v21, %v6463_v58 }
 0x781   :  { %v6628_v46 = vmax.bf16 %v14821_v33, %v6564_v36 }
 0x782   :  { %v6329_v55 = vpop.f32.mrb[28].mxu0  ;;  %v6629_v35 = vmax.bf16 %v14821_v33, %v6565_v4  ;;  %v7282_v4 = vpack.i.b16 %v7273_v0, %v7273_v0 }
 0x783   :  { %v6331_v49 = vpop.f32.mrb[29].mxu0 }
 0x784   :  { %v6333_v59 = vpop.f32.mrb[30].mxu0  ;;  %7092 = vmatprep.mubr.bf16.mxu1 %v6629_v35  ;;  %v7289_v35 = vpack.i.b16 %v7280_v3, %v7280_v3 }
 0x785   :  { %v6464_v61 = vpack.c.bf16 %v6333_v59, %v6329_v55  ;;  %v6335_v63 = vpop.f32.mrb[31].mxu0  ;;  %7093 = vmatmul.mubr.bf16.gmra.mrb[88].mxu1 %v6628_v46 }
 0x786   :  { %v6465_v16 = vpack.c.bf16 %v6335_v63, %v6331_v49  ;;  %v13716_v63 = vrot.slane %v7282_v4, %v11632_v57 }
 0x787   :  { %v6566_v45 = vadd.bf16 %v13550_v39, %v6464_v61 }
 0x788   :  { %v6567_v10 = vadd.bf16 %v13553_v21, %v6465_v16 }
 0x789   :  { %v6630_v56 = vmax.bf16 %v14821_v33, %v6566_v45  ;;  %v13719_v45 = vrot.slane %v7289_v35, %v11632_v57 }
 0x78a   :  { %v6339_v2 = vpop.f32.mrb[32].mxu0  ;;  %v6631_v13 = vmax.bf16 %v14821_v33, %v6567_v10 }
 0x78b   :  { %v6341_v15 = vpop.f32.mrb[33].mxu0 }
 0x78c   :  { %v6343_v47 = vpop.f32.mrb[34].mxu0  ;;  %7102 = vmatprep.mubr.bf16.mxu1 %v6631_v13 }
 0x78d   :  { %v6466_v52 = vpack.c.bf16 %v6343_v47, %v6339_v2  ;;  %v6345_v27 = vpop.f32.mrb[35].mxu0  ;;  %7103 = vmatmul.mubr.bf16.gmra.mrb[92].mxu1 %v6630_v56 }
 0x78e   :  { %v6467_v30 = vpack.c.bf16 %v6345_v27, %v6341_v15 }
 0x78f   :  { %v6568_v60 = vadd.bf16 %v13550_v39, %v6466_v52 }
 0x790   :  { %v6569_v38 = vadd.bf16 %v13553_v21, %v6467_v30 }
 0x791   :  { %v6632_v37 = vmax.bf16 %v14821_v33, %v6568_v60 }
 0x792   :  { %v6349_v44 = vpop.f32.mrb[36].mxu0  ;;  %v6633_v53 = vmax.bf16 %v14821_v33, %v6569_v38 }
 0x793   :  { %v6351_v20 = vpop.f32.mrb[37].mxu0 }
 0x794   :  { %v6353_v28 = vpop.f32.mrb[38].mxu0  ;;  %7112 = vmatprep.mubr.bf16.mxu1 %v6633_v53 }
 0x795   :  { %v6468_v34 = vpack.c.bf16 %v6353_v28, %v6349_v44  ;;  %v6355_v41 = vpop.f32.mrb[39].mxu0  ;;  %7113 = vmatmul.mubr.bf16.gmra.mrb[96].mxu1 %v6632_v37 }
 0x796   :  { %v6469_v62 = vpack.c.bf16 %v6355_v41, %v6351_v20  ;;  %v10451_v41 = vld [vmem:[%s14634_s19 + $0x8] sm:$0xff]  }
 0x797   :  { %v6570_v40 = vadd.bf16 %v13550_v39, %v6468_v34  ;;  %9915 = vmatprep.subr.bf16.mxu1 %v10451_v41 }
 0x798   :  { %v6571_v48 = vadd.bf16 %v13553_v21, %v6469_v62  ;;  %9916 = vmatpush3.bf16.msra.mxu1 %v10451_v41 }
 0x799   :  { %v6634_v8 = vmax.bf16 %v14821_v33, %v6570_v40 }
 0x79a   :  { %v6359_v18 = vpop.f32.mrb[40].mxu0  ;;  %v6635_v22 = vmax.bf16 %v14821_v33, %v6571_v48 }
 0x79b   :  { %v6361_v6 = vpop.f32.mrb[41].mxu0 }
 0x79c   :  { %v6363_v23 = vpop.f32.mrb[42].mxu0  ;;  %7122 = vmatprep.mubr.bf16.mxu1 %v6635_v22 }
 0x79d   :  { %v6470_v19 = vpack.c.bf16 %v6363_v23, %v6359_v18  ;;  %v6365_v1 = vpop.f32.mrb[43].mxu0  ;;  %7123 = vmatmul.mubr.bf16.gmra.mrb[100].mxu1 %v6634_v8 }
 0x79e   :  { %v6471_v12 = vpack.c.bf16 %v6365_v1, %v6361_v6 }
 0x79f   :  { %v6572_v32 = vadd.bf16 %v13550_v39, %v6470_v19 }
 0x7a0   :  { %v6573_v9 = vadd.bf16 %v13553_v21, %v6471_v12 }
 0x7a1   :  { %v6636_v25 = vmax.bf16 %v14821_v33, %v6572_v32 }
 0x7a2   :  { %v6369_v5 = vpop.f32.mrb[44].mxu0  ;;  %v6637_v51 = vmax.bf16 %v14821_v33, %v6573_v9 }
 0x7a3   :  { %v6371_v43 = vpop.f32.mrb[45].mxu0 }
 0x7a4   :  { %v6373_v29 = vpop.f32.mrb[46].mxu0  ;;  %7132 = vmatprep.mubr.bf16.mxu1 %v6637_v51 }
 0x7a5   :  { %v6472_v58 = vpack.c.bf16 %v6373_v29, %v6369_v5  ;;  %v6375_v36 = vpop.f32.mrb[47].mxu0  ;;  %7133 = vmatmul.mubr.bf16.gmra.mrb[104].mxu1 %v6636_v25 }
 0x7a6   :  { %v6473_v55 = vpack.c.bf16 %v6375_v36, %v6371_v43 }
 0x7a7   :  { %v6574_v46 = vadd.bf16 %v13550_v39, %v6472_v58 }
 0x7a8   :  { %v6575_v49 = vadd.bf16 %v13553_v21, %v6473_v55  ;;  %v6874_v59 = vpop.f32.mrb[0].mxu1 }
 0x7a9   :  { %v6876_v61 = vpop.f32.mrb[1].mxu1  ;;  %v6638_v2 = vmax.bf16 %v14821_v33, %v6574_v46 }
 0x7aa   :  { %v6379_v42 = vpop.f32.mrb[48].mxu0  ;;  %v6878_v16 = vpop.f32.mrb[2].mxu1  ;;  %v6639_v10 = vmax.bf16 %v14821_v33, %v6575_v49 }
 0x7ab   :  { %v7193_v13 = vpack.c.bf16 %v6878_v16, %v6874_v59  ;;  %v6381_v56 = vpop.f32.mrb[49].mxu0  ;;  %v6880_v15 = vpop.f32.mrb[3].mxu1 }
 0x7ac   :  { %v7194_v47 = vpack.c.bf16 %v6880_v15, %v6876_v61  ;;  %v6383_v52 = vpop.f32.mrb[50].mxu0  ;;  %7142 = vmatprep.mubr.bf16.mxu1 %v6639_v10 }
 0x7ad   :  { %v7295_v27 = vadd.bf16 %v13716_v63, %v7193_v13  ;;  %v6474_v30 = vpack.c.bf16 %v6383_v52, %v6379_v42  ;;  %v6385_v60 = vpop.f32.mrb[51].mxu0  ;;  %7143 = vmatmul.mubr.bf16.gmra.mrb[108].mxu1 %v6638_v2 }
 0x7ae   :  { %v7296_v38 = vadd.bf16 %v13719_v45, %v7194_v47  ;;  %v6475_v17 = vpack.c.bf16 %v6385_v60, %v6381_v56 }
 0x7af   :  { %v6576_v44 = vadd.bf16 %v13550_v39, %v6474_v30  ;;  %v7359_v28 = vmax.bf16 %v14821_v33, %v7295_v27 }
 0x7b0   :  { %v6577_v53 = vadd.bf16 %v13553_v21, %v6475_v17  ;;  %v6884_v37 = vpop.f32.mrb[4].mxu1  ;;  %v7360_v20 = vmax.bf16 %v14821_v33, %v7296_v38 }
 0x7b1   :  { %v6886_v34 = vpop.f32.mrb[5].mxu1  ;;  %v6640_v18 = vmax.bf16 %v14821_v33, %v6576_v44 }
 0x7b2   :  { %v6389_v62 = vpop.f32.mrb[52].mxu0  ;;  %v6888_v40 = vpop.f32.mrb[6].mxu1  ;;  %7659 = vmatprep.mubr.bf16.mxu0 %v7360_v20  ;;  %v6641_v48 = vmax.bf16 %v14821_v33, %v6577_v53 }
 0x7b3   :  { %v7195_v22 = vpack.c.bf16 %v6888_v40, %v6884_v37  ;;  %v6391_v8 = vpop.f32.mrb[53].mxu0  ;;  %v6890_v6 = vpop.f32.mrb[7].mxu1  ;;  %7660 = vmatmul.mubr.bf16.vlgmr.msra.gmra.mrb[64].mxu0 %v7359_v28 }
 0x7b4   :  { %v7196_v26 = vpack.c.bf16 %v6890_v6, %v6886_v34  ;;  %v6393_v23 = vpop.f32.mrb[54].mxu0  ;;  %7152 = vmatprep.mubr.bf16.mxu1 %v6641_v48 }
 0x7b5   :  { %v7297_v19 = vadd.bf16 %v13716_v63, %v7195_v22  ;;  %v6476_v1 = vpack.c.bf16 %v6393_v23, %v6389_v62  ;;  %v6395_v12 = vpop.f32.mrb[55].mxu0  ;;  %7153 = vmatmul.mubr.bf16.gmra.mrb[112].mxu1 %v6640_v18 }
 0x7b6   :  { %v7298_v31 = vadd.bf16 %v13719_v45, %v7196_v26  ;;  %v6477_v32 = vpack.c.bf16 %v6395_v12, %v6391_v8 }
 0x7b7   :  { %v6578_v9 = vadd.bf16 %v13550_v39, %v6476_v1  ;;  %v7361_v3 = vmax.bf16 %v14821_v33, %v7297_v19 }
 0x7b8   :  { %v6579_v0 = vadd.bf16 %v13553_v21, %v6477_v32  ;;  %v6894_v5 = vpop.f32.mrb[8].mxu1  ;;  %v7362_v51 = vmax.bf16 %v14821_v33, %v7298_v31 }
 0x7b9   :  { %v6896_v25 = vpop.f32.mrb[9].mxu1  ;;  %v6642_v36 = vmax.bf16 %v14821_v33, %v6578_v9 }
 0x7ba   :  { %v6399_v43 = vpop.f32.mrb[56].mxu0  ;;  %v6898_v29 = vpop.f32.mrb[10].mxu1  ;;  %7669 = vmatprep.mubr.bf16.mxu0 %v7362_v51  ;;  %v6643_v58 = vmax.bf16 %v14821_v33, %v6579_v0 }
 0x7bb   :  { %v7197_v4 = vpack.c.bf16 %v6898_v29, %v6894_v5  ;;  %v6401_v55 = vpop.f32.mrb[57].mxu0  ;;  %v6900_v35 = vpop.f32.mrb[11].mxu1  ;;  %7670 = vmatmul.mubr.bf16.gmra.mrb[68].mxu0 %v7361_v3  ;;  %v10452_v3 = vld [vmem:[%s14634_s19 + $0x10] sm:$0xff]  }
 0x7bc   :  { %v7198_v46 = vpack.c.bf16 %v6900_v35, %v6896_v25  ;;  %v6403_v49 = vpop.f32.mrb[58].mxu0  ;;  %7162 = vmatprep.mubr.bf16.mxu1 %v6643_v58  ;;  %9917 = vmatprep.subr.bf16.mxu1 %v10452_v3 }
 0x7bd   :  { %v7299_v59 = vadd.bf16 %v13716_v63, %v7197_v4  ;;  %v6478_v61 = vpack.c.bf16 %v6403_v49, %v6399_v43  ;;  %v6405_v42 = vpop.f32.mrb[59].mxu0  ;;  %7163 = vmatmul.mubr.bf16.gmra.mrb[116].mxu1 %v6642_v36 }
 0x7be   :  { %v7300_v16 = vadd.bf16 %v13719_v45, %v7198_v46  ;;  %v6479_v10 = vpack.c.bf16 %v6405_v42, %v6401_v55  ;;  %9918 = vmatpush3.bf16.msra.mxu1 %v10452_v3 }
 0x7bf   :  { %v6580_v2 = vadd.bf16 %v13550_v39, %v6478_v61  ;;  %v7363_v47 = vmax.bf16 %v14821_v33, %v7299_v59 }
 0x7c0   :  { %v6581_v13 = vadd.bf16 %v13553_v21, %v6479_v10  ;;  %v6904_v56 = vpop.f32.mrb[12].mxu1  ;;  %v7364_v15 = vmax.bf16 %v14821_v33, %v7300_v16 }
 0x7c1   :  { %v6906_v52 = vpop.f32.mrb[13].mxu1  ;;  %v6644_v38 = vmax.bf16 %v14821_v33, %v6580_v2 }
 0x7c2   :  { %v6409_v27 = vpop.f32.mrb[60].mxu0  ;;  %v6908_v30 = vpop.f32.mrb[14].mxu1  ;;  %7679 = vmatprep.mubr.bf16.mxu0 %v7364_v15  ;;  %v6645_v60 = vmax.bf16 %v14821_v33, %v6581_v13 }
 0x7c3   :  { %v7199_v17 = vpack.c.bf16 %v6908_v30, %v6904_v56  ;;  %v6411_v44 = vpop.f32.mrb[61].mxu0  ;;  %v6910_v53 = vpop.f32.mrb[15].mxu1  ;;  %7680 = vmatmul.mubr.bf16.gmra.mrb[72].mxu0 %v7363_v47 }
 0x7c4   :  { %v7200_v37 = vpack.c.bf16 %v6910_v53, %v6906_v52  ;;  %v6413_v20 = vpop.f32.mrb[62].mxu0  ;;  %7172 = vmatprep.mubr.bf16.mxu1 %v6645_v60 }
 0x7c5   :  { %v7301_v28 = vadd.bf16 %v13716_v63, %v7199_v17  ;;  %v6480_v34 = vpack.c.bf16 %v6413_v20, %v6409_v27  ;;  %v6415_v41 = vpop.f32.mrb[63].mxu0  ;;  %7173 = vmatmul.mubr.bf16.gmra.mrb[120].mxu1 %v6644_v38 }
 0x7c6   :  { %v7302_v62 = vadd.bf16 %v13719_v45, %v7200_v37  ;;  %v6481_v40 = vpack.c.bf16 %v6415_v41, %v6411_v44 }
 0x7c7   :  { %v6582_v48 = vadd.bf16 %v13550_v39, %v6480_v34  ;;  %v7365_v6 = vmax.bf16 %v14821_v33, %v7301_v28 }
 0x7c8   :  { %v6583_v18 = vadd.bf16 %v13553_v21, %v6481_v40  ;;  %v6914_v22 = vpop.f32.mrb[16].mxu1  ;;  %v7366_v8 = vmax.bf16 %v14821_v33, %v7302_v62 }
 0x7c9   :  { %v6916_v26 = vpop.f32.mrb[17].mxu1  ;;  %v6646_v1 = vmax.bf16 %v14821_v33, %v6582_v48 }
 0x7ca   :  { %v6918_v23 = vpop.f32.mrb[18].mxu1  ;;  %7689 = vmatprep.mubr.bf16.mxu0 %v7366_v8  ;;  %v6647_v19 = vmax.bf16 %v14821_v33, %v6583_v18 }
 0x7cb   :  { %v7201_v12 = vpack.c.bf16 %v6918_v23, %v6914_v22  ;;  %v6920_v31 = vpop.f32.mrb[19].mxu1  ;;  %7690 = vmatmul.mubr.bf16.gmra.mrb[76].mxu0 %v7365_v6 }
 0x7cc   :  { %v7202_v32 = vpack.c.bf16 %v6920_v31, %v6916_v26  ;;  %7182 = vmatprep.mubr.bf16.mxu1 %v6647_v19  ;;  %v10453_v26 = vld [vmem:[%s14634_s19 + $0x18] sm:$0xff]  }
 0x7cd   :  { %v7303_v39 = vadd.bf16 %v13716_v63, %v7201_v12  ;;  %7183 = vmatmul.mubr.bf16.gmra.mrb[124].mxu1 %v6646_v1  ;;  %9919 = vmatprep.subr.bf16.mxu1 %v10453_v26 }
 0x7ce   :  { %v7304_v21 = vadd.bf16 %v13719_v45, %v7202_v32  ;;  %9920 = vmatpush3.bf16.msra.mxu1 %v10453_v26 }
 0x7cf   :  { %v7367_v5 = vmax.bf16 %v14821_v33, %v7303_v39 }
 0x7d0   :  { %v6924_v9 = vpop.f32.mrb[20].mxu1  ;;  %v7368_v0 = vmax.bf16 %v14821_v33, %v7304_v21 }
 0x7d1   :  { %v6926_v51 = vpop.f32.mrb[21].mxu1 }
 0x7d2   :  { %v6928_v25 = vpop.f32.mrb[22].mxu1  ;;  %7699 = vmatprep.mubr.bf16.mxu0 %v7368_v0 }
 0x7d3   :  { %v7203_v43 = vpack.c.bf16 %v6928_v25, %v6924_v9  ;;  %v6930_v29 = vpop.f32.mrb[23].mxu1  ;;  %7700 = vmatmul.mubr.bf16.gmra.mrb[80].mxu0 %v7367_v5 }
 0x7d4   :  { %v7204_v58 = vpack.c.bf16 %v6930_v29, %v6926_v51 }
 0x7d5   :  { %v7305_v36 = vadd.bf16 %v13716_v63, %v7203_v43 }
 0x7d6   :  { %v7306_v4 = vadd.bf16 %v13719_v45, %v7204_v58 }
 0x7d7   :  { %v7369_v46 = vmax.bf16 %v14821_v33, %v7305_v36 }
 0x7d8   :  { %v6934_v55 = vpop.f32.mrb[24].mxu1  ;;  %v7370_v35 = vmax.bf16 %v14821_v33, %v7306_v4 }
 0x7d9   :  { %v6936_v49 = vpop.f32.mrb[25].mxu1 }
 0x7da   :  { %v6938_v59 = vpop.f32.mrb[26].mxu1  ;;  %7709 = vmatprep.mubr.bf16.mxu0 %v7370_v35 }
 0x7db   :  { %v7205_v61 = vpack.c.bf16 %v6938_v59, %v6934_v55  ;;  %v6940_v42 = vpop.f32.mrb[27].mxu1  ;;  %7710 = vmatmul.mubr.bf16.gmra.mrb[84].mxu0 %v7369_v46 }
 0x7dc   :  { %v7206_v16 = vpack.c.bf16 %v6940_v42, %v6936_v49 }
 0x7dd   :  { %v7307_v10 = vadd.bf16 %v13716_v63, %v7205_v61 }
 0x7de   :  { %v7308_v2 = vadd.bf16 %v13719_v45, %v7206_v16  ;;  %v10454_v16 = vld [vmem:[%s14634_s19 + $0x20] sm:$0xff]  }
 0x7df   :  { %v7371_v15 = vmax.bf16 %v14821_v33, %v7307_v10  ;;  %9921 = vmatprep.subr.bf16.mxu1 %v10454_v16 }
 0x7e0   :  { %v6944_v13 = vpop.f32.mrb[28].mxu1  ;;  %v7372_v56 = vmax.bf16 %v14821_v33, %v7308_v2  ;;  %9922 = vmatpush3.bf16.msra.mxu1 %v10454_v16 }
 0x7e1   :  { %v6946_v47 = vpop.f32.mrb[29].mxu1 }
 0x7e2   :  { %v6948_v52 = vpop.f32.mrb[30].mxu1  ;;  %7719 = vmatprep.mubr.bf16.mxu0 %v7372_v56 }
 0x7e3   :  { %v7207_v27 = vpack.c.bf16 %v6948_v52, %v6944_v13  ;;  %v6950_v30 = vpop.f32.mrb[31].mxu1  ;;  %7720 = vmatmul.mubr.bf16.gmra.mrb[88].mxu0 %v7371_v15 }
 0x7e4   :  { %v7208_v60 = vpack.c.bf16 %v6950_v30, %v6946_v47 }
 0x7e5   :  { %v7309_v38 = vadd.bf16 %v13716_v63, %v7207_v27  ;;  %v10455_v27 = vld [vmem:[%s14634_s19 + $0x28] sm:$0xff]  }
 0x7e6   :  { %v7310_v17 = vadd.bf16 %v13719_v45, %v7208_v60  ;;  %9923 = vmatprep.subr.bf16.mxu1 %v10455_v27 }
 0x7e7   :  { %v7373_v37 = vmax.bf16 %v14821_v33, %v7309_v38  ;;  %9924 = vmatpush3.bf16.msra.mxu1 %v10455_v27 }
 0x7e8   :  { %v6954_v44 = vpop.f32.mrb[32].mxu1  ;;  %v7374_v53 = vmax.bf16 %v14821_v33, %v7310_v17  ;;  %v10456_v17 = vld [vmem:[%s14634_s19 + $0x30] sm:$0xff]  }
 0x7e9   :  { %v6956_v20 = vpop.f32.mrb[33].mxu1  ;;  %9925 = vmatprep.subr.bf16.mxu1 %v10456_v17 }
 0x7ea   :  { %v6958_v28 = vpop.f32.mrb[34].mxu1  ;;  %7729 = vmatprep.mubr.bf16.mxu0 %v7374_v53 }
 0x7eb   :  { %v7209_v34 = vpack.c.bf16 %v6958_v28, %v6954_v44  ;;  %v6960_v41 = vpop.f32.mrb[35].mxu1  ;;  %7730 = vmatmul.mubr.bf16.gmra.mrb[92].mxu0 %v7373_v37  ;;  %9926 = vmatpush3.bf16.msra.mxu1 %v10456_v17 }
 0x7ec   :  { %v7210_v62 = vpack.c.bf16 %v6960_v41, %v6956_v20 }
 0x7ed   :  { %v7311_v40 = vadd.bf16 %v13716_v63, %v7209_v34 }
 0x7ee   :  { %v7312_v48 = vadd.bf16 %v13719_v45, %v7210_v62  ;;  %v10457_v62 = vld [vmem:[%s14634_s19 + $0x38] sm:$0xff]  }
 0x7ef   :  { %v7375_v8 = vmax.bf16 %v14821_v33, %v7311_v40  ;;  %9927 = vmatprep.subr.bf16.mxu1 %v10457_v62 }
 0x7f0   :  { %v6964_v18 = vpop.f32.mrb[36].mxu1  ;;  %v7376_v22 = vmax.bf16 %v14821_v33, %v7312_v48  ;;  %9928 = vmatpush3.bf16.msra.mxu1 %v10457_v62 }
 0x7f1   :  { %v6966_v6 = vpop.f32.mrb[37].mxu1 }
 0x7f2   :  { %v6968_v23 = vpop.f32.mrb[38].mxu1  ;;  %7739 = vmatprep.mubr.bf16.mxu0 %v7376_v22 }
 0x7f3   :  { %v7211_v19 = vpack.c.bf16 %v6968_v23, %v6964_v18  ;;  %v6970_v1 = vpop.f32.mrb[39].mxu1  ;;  %7740 = vmatmul.mubr.bf16.gmra.mrb[96].mxu0 %v7375_v8 }
 0x7f4   :  { %v7212_v12 = vpack.c.bf16 %v6970_v1, %v6966_v6 }
 0x7f5   :  { %v7313_v31 = vadd.bf16 %v13716_v63, %v7211_v19 }
 0x7f6   :  { %v7314_v32 = vadd.bf16 %v13719_v45, %v7212_v12 }
 0x7f7   :  { %v7377_v9 = vmax.bf16 %v14821_v33, %v7313_v31 }
 0x7f8   :  { %v6974_v39 = vpop.f32.mrb[40].mxu1  ;;  %v7378_v21 = vmax.bf16 %v14821_v33, %v7314_v32 }
 0x7f9   :  { %v6976_v0 = vpop.f32.mrb[41].mxu1 }
 0x7fa   :  { %v6978_v5 = vpop.f32.mrb[42].mxu1  ;;  %7749 = vmatprep.mubr.bf16.mxu0 %v7378_v21 }
 0x7fb   :  { %v7213_v51 = vpack.c.bf16 %v6978_v5, %v6974_v39  ;;  %v6980_v3 = vpop.f32.mrb[43].mxu1  ;;  %7750 = vmatmul.mubr.bf16.gmra.mrb[100].mxu0 %v7377_v9 }
 0x7fc   :  { %v7214_v25 = vpack.c.bf16 %v6980_v3, %v6976_v0 }
 0x7fd   :  { %v7315_v43 = vadd.bf16 %v13716_v63, %v7213_v51 }
 0x7fe   :  { %v7316_v29 = vadd.bf16 %v13719_v45, %v7214_v25 }
 0x7ff   :  { %v7379_v4 = vmax.bf16 %v14821_v33, %v7315_v43 }
 0x800   :  { %v6984_v58 = vpop.f32.mrb[44].mxu1  ;;  %v7380_v36 = vmax.bf16 %v14821_v33, %v7316_v29 }
 0x801   :  { %v6986_v55 = vpop.f32.mrb[45].mxu1 }
 0x802   :  { %v6988_v35 = vpop.f32.mrb[46].mxu1  ;;  %7759 = vmatprep.mubr.bf16.mxu0 %v7380_v36 }
 0x803   :  { %v7215_v46 = vpack.c.bf16 %v6988_v35, %v6984_v58  ;;  %v6990_v49 = vpop.f32.mrb[47].mxu1  ;;  %7760 = vmatmul.mubr.bf16.gmra.mrb[104].mxu0 %v7379_v4 }
 0x804   :  { %v7216_v59 = vpack.c.bf16 %v6990_v49, %v6986_v55 }
 0x805   :  { %v7317_v61 = vadd.bf16 %v13716_v63, %v7215_v46 }
 0x806   :  { %v7318_v42 = vadd.bf16 %v13719_v45, %v7216_v59 }
 0x807   :  { %v7381_v13 = vmax.bf16 %v14821_v33, %v7317_v61 }
 0x808   :  { %v6994_v10 = vpop.f32.mrb[48].mxu1  ;;  %v7382_v2 = vmax.bf16 %v14821_v33, %v7318_v42 }
 0x809   :  { %v6996_v56 = vpop.f32.mrb[49].mxu1 }
 0x80a   :  { %v6998_v15 = vpop.f32.mrb[50].mxu1  ;;  %7769 = vmatprep.mubr.bf16.mxu0 %v7382_v2 }
 0x80b   :  { %v7217_v47 = vpack.c.bf16 %v6998_v15, %v6994_v10  ;;  %v7000_v52 = vpop.f32.mrb[51].mxu1  ;;  %7770 = vmatmul.mubr.bf16.gmra.mrb[108].mxu0 %v7381_v13 }
 0x80c   :  { %v7218_v30 = vpack.c.bf16 %v7000_v52, %v6996_v56 }
 0x80d   :  { %v7319_v60 = vadd.bf16 %v13716_v63, %v7217_v47 }
 0x80e   :  { %v7320_v38 = vadd.bf16 %v13719_v45, %v7218_v30 }
 0x80f   :  { %v7383_v37 = vmax.bf16 %v14821_v33, %v7319_v60 }
 0x810   :  { %v7004_v44 = vpop.f32.mrb[52].mxu1  ;;  %v7384_v53 = vmax.bf16 %v14821_v33, %v7320_v38 }
 0x811   :  { %v7006_v20 = vpop.f32.mrb[53].mxu1 }
 0x812   :  { %v7008_v28 = vpop.f32.mrb[54].mxu1  ;;  %7779 = vmatprep.mubr.bf16.mxu0 %v7384_v53 }
 0x813   :  { %v7219_v34 = vpack.c.bf16 %v7008_v28, %v7004_v44  ;;  %v7010_v41 = vpop.f32.mrb[55].mxu1  ;;  %7780 = vmatmul.mubr.bf16.gmra.mrb[112].mxu0 %v7383_v37 }
 0x814   :  { %v7220_v40 = vpack.c.bf16 %v7010_v41, %v7006_v20 }
 0x815   :  { %v7321_v48 = vadd.bf16 %v13716_v63, %v7219_v34 }
 0x816   :  { %v7322_v18 = vadd.bf16 %v13719_v45, %v7220_v40 }
 0x817   :  { %v7385_v6 = vmax.bf16 %v14821_v33, %v7321_v48 }
 0x818   :  { %v7014_v22 = vpop.f32.mrb[56].mxu1  ;;  %v7386_v8 = vmax.bf16 %v14821_v33, %v7322_v18 }
 0x819   :  { %v7016_v26 = vpop.f32.mrb[57].mxu1 }
 0x81a   :  { %v7018_v23 = vpop.f32.mrb[58].mxu1  ;;  %7789 = vmatprep.mubr.bf16.mxu0 %v7386_v8 }
 0x81b   :  { %v7221_v19 = vpack.c.bf16 %v7018_v23, %v7014_v22  ;;  %v7020_v1 = vpop.f32.mrb[59].mxu1  ;;  %7790 = vmatmul.mubr.bf16.gmra.mrb[116].mxu0 %v7385_v6 }
 0x81c   :  { %v7222_v12 = vpack.c.bf16 %v7020_v1, %v7016_v26 }
 0x81d   :  { %v7323_v31 = vadd.bf16 %v13716_v63, %v7221_v19 }
 0x81e   :  { %v7324_v32 = vadd.bf16 %v13719_v45, %v7222_v12 }
 0x81f   :  { %v7387_v9 = vmax.bf16 %v14821_v33, %v7323_v31 }
 0x820   :  { %v7024_v39 = vpop.f32.mrb[60].mxu1  ;;  %v7388_v21 = vmax.bf16 %v14821_v33, %v7324_v32 }
 0x821   :  { %v7026_v0 = vpop.f32.mrb[61].mxu1 }
 0x822   :  { %v7028_v5 = vpop.f32.mrb[62].mxu1  ;;  %7799 = vmatprep.mubr.bf16.mxu0 %v7388_v21 }
 0x823   :  { %v7223_v51 = vpack.c.bf16 %v7028_v5, %v7024_v39  ;;  %v7030_v3 = vpop.f32.mrb[63].mxu1  ;;  %7800 = vmatmul.mubr.bf16.gmra.mrb[120].mxu0 %v7387_v9 }
 0x824   :  { %v7224_v25 = vpack.c.bf16 %v7030_v3, %v7026_v0 }
 0x825   :  { %v7325_v43 = vadd.bf16 %v13716_v63, %v7223_v51 }
 0x826   :  { %v7326_v29 = vadd.bf16 %v13719_v45, %v7224_v25 }
 0x827   :  { %v7389_v4 = vmax.bf16 %v14821_v33, %v7325_v43 }
 0x828   :  { %v7034_v58 = vpop.f32.mrb[64].mxu1  ;;  %v7390_v36 = vmax.bf16 %v14821_v33, %v7326_v29 }
 0x829   :  { %v7036_v55 = vpop.f32.mrb[65].mxu1 }
 0x82a   :  { %v7038_v35 = vpop.f32.mrb[66].mxu1  ;;  %7809 = vmatprep.mubr.bf16.mxu0 %v7390_v36 }
 0x82b   :  { %v7225_v46 = vpack.c.bf16 %v7038_v35, %v7034_v58  ;;  %v7040_v49 = vpop.f32.mrb[67].mxu1  ;;  %7810 = vmatmul.mubr.bf16.gmra.mrb[124].mxu0 %v7389_v4 }
 0x82c   :  { %v7226_v59 = vpack.c.bf16 %v7040_v49, %v7036_v55 }
 0x82d   :  { %v7327_v61 = vadd.bf16 %v13716_v63, %v7225_v46 }
 0x82e   :  { %v7328_v42 = vadd.bf16 %v13719_v45, %v7226_v59 }
 0x82f   :  { %v7391_v2 = vmax.bf16 %v14821_v33, %v7327_v61 }
 0x830   :  { %v7044_v16 = vpop.f32.mrb[68].mxu1  ;;  %v7392_v10 = vmax.bf16 %v14821_v33, %v7328_v42 }
 0x831   :  { %v7046_v13 = vpop.f32.mrb[69].mxu1 }
 0x832   :  { %v7048_v56 = vpop.f32.mrb[70].mxu1  ;;  %7819 = vmatprep.mubr.bf16.mxu0 %v7392_v10 }
 0x833   :  { %v7227_v15 = vpack.c.bf16 %v7048_v56, %v7044_v16  ;;  %v7050_v47 = vpop.f32.mrb[71].mxu1  ;;  %7820 = vmatmul.mubr.bf16.gmra.mrb[128].mxu0 %v7391_v2 }
 0x834   :  { %v7228_v52 = vpack.c.bf16 %v7050_v47, %v7046_v13 }
 0x835   :  { %v7329_v27 = vadd.bf16 %v13716_v63, %v7227_v15 }
 0x836   :  { %v7330_v30 = vadd.bf16 %v13719_v45, %v7228_v52 }
 0x837   :  { %v7393_v17 = vmax.bf16 %v14821_v33, %v7329_v27 }
 0x838   :  { %v7054_v60 = vpop.f32.mrb[72].mxu1  ;;  %v7394_v38 = vmax.bf16 %v14821_v33, %v7330_v30 }
 0x839   :  { %v7056_v44 = vpop.f32.mrb[73].mxu1 }
 0x83a   :  { %v7058_v53 = vpop.f32.mrb[74].mxu1  ;;  %7829 = vmatprep.mubr.bf16.mxu0 %v7394_v38 }
 0x83b   :  { %v7229_v37 = vpack.c.bf16 %v7058_v53, %v7054_v60  ;;  %v7060_v20 = vpop.f32.mrb[75].mxu1  ;;  %7830 = vmatmul.mubr.bf16.gmra.mrb[132].mxu0 %v7393_v17 }
 0x83c   :  { %v7230_v28 = vpack.c.bf16 %v7060_v20, %v7056_v44 }
 0x83d   :  { %v7331_v34 = vadd.bf16 %v13716_v63, %v7229_v37 }
 0x83e   :  { %v7332_v41 = vadd.bf16 %v13719_v45, %v7230_v28 }
 0x83f   :  { %v7395_v48 = vmax.bf16 %v14821_v33, %v7331_v34 }
 0x840   :  { %v7064_v62 = vpop.f32.mrb[76].mxu1  ;;  %v7396_v40 = vmax.bf16 %v14821_v33, %v7332_v41 }
 0x841   :  { %v7066_v18 = vpop.f32.mrb[77].mxu1 }
 0x842   :  { %v7068_v22 = vpop.f32.mrb[78].mxu1  ;;  %7839 = vmatprep.mubr.bf16.mxu0 %v7396_v40 }
 0x843   :  { %v7231_v8 = vpack.c.bf16 %v7068_v22, %v7064_v62  ;;  %v7070_v6 = vpop.f32.mrb[79].mxu1  ;;  %7840 = vmatmul.mubr.bf16.gmra.mrb[136].mxu0 %v7395_v48 }
 0x844   :  { %v7232_v26 = vpack.c.bf16 %v7070_v6, %v7066_v18 }
 0x845   :  { %v7333_v23 = vadd.bf16 %v13716_v63, %v7231_v8 }
 0x846   :  { %v7334_v19 = vadd.bf16 %v13719_v45, %v7232_v26 }
 0x847   :  { %v7397_v31 = vmax.bf16 %v14821_v33, %v7333_v23 }
 0x848   :  { %v7074_v1 = vpop.f32.mrb[80].mxu1  ;;  %v7398_v12 = vmax.bf16 %v14821_v33, %v7334_v19 }
 0x849   :  { %v7076_v32 = vpop.f32.mrb[81].mxu1 }
 0x84a   :  { %v7078_v39 = vpop.f32.mrb[82].mxu1  ;;  %7849 = vmatprep.mubr.bf16.mxu0 %v7398_v12 }
 0x84b   :  { %v7233_v21 = vpack.c.bf16 %v7078_v39, %v7074_v1  ;;  %v7080_v9 = vpop.f32.mrb[83].mxu1  ;;  %7850 = vmatmul.mubr.bf16.gmra.mrb[140].mxu0 %v7397_v31 }
 0x84c   :  { %v7234_v0 = vpack.c.bf16 %v7080_v9, %v7076_v32 }
 0x84d   :  { %v7335_v5 = vadd.bf16 %v13716_v63, %v7233_v21 }
 0x84e   :  { %v7336_v51 = vadd.bf16 %v13719_v45, %v7234_v0 }
 0x84f   :  { %v7399_v43 = vmax.bf16 %v14821_v33, %v7335_v5 }
 0x850   :  { %v7084_v3 = vpop.f32.mrb[84].mxu1  ;;  %v7400_v25 = vmax.bf16 %v14821_v33, %v7336_v51 }
 0x851   :  { %v7086_v29 = vpop.f32.mrb[85].mxu1 }
 0x852   :  { %v7088_v58 = vpop.f32.mrb[86].mxu1  ;;  %7859 = vmatprep.mubr.bf16.mxu0 %v7400_v25 }
 0x853   :  { %v7235_v36 = vpack.c.bf16 %v7088_v58, %v7084_v3  ;;  %v7090_v4 = vpop.f32.mrb[87].mxu1  ;;  %7860 = vmatmul.mubr.bf16.gmra.mrb[144].mxu0 %v7399_v43 }
 0x854   :  { %v7236_v55 = vpack.c.bf16 %v7090_v4, %v7086_v29  ;;  %v15160_v4 = vld [vmem:[#allocation17_spill] sm:$0xff] }
 0x855   :  { %v7337_v35 = vadd.bf16 %v13716_v63, %v7235_v36 }
 0x856   :  { %v7338_v46 = vadd.bf16 %v13719_v45, %v7236_v55  ;;  %v7463_v55 = vsub.s32 1, %v15160_v4 }
 0x857   :  { %v7401_v61 = vmax.bf16 %v14821_v33, %v7337_v35 }
 0x858   :  { %v7094_v49 = vpop.f32.mrb[88].mxu1  ;;  %v7402_v59 = vmax.bf16 %v14821_v33, %v7338_v46 }
 0x859   :  { %v7096_v42 = vpop.f32.mrb[89].mxu1 }
 0x85a   :  { %v7098_v16 = vpop.f32.mrb[90].mxu1  ;;  %7869 = vmatprep.mubr.bf16.mxu0 %v7402_v59 }
 0x85b   :  { %v7237_v10 = vpack.c.bf16 %v7098_v16, %v7094_v49  ;;  %v7100_v2 = vpop.f32.mrb[91].mxu1  ;;  %7870 = vmatmul.mubr.bf16.gmra.mrb[148].mxu0 %v7401_v61  ;;  %v7455_v49 = vld [vmem:[%s14633_s18] sm:$0x3] }
 0x85c   :  { %v7238_v13 = vpack.c.bf16 %v7100_v2, %v7096_v42  ;;  %v13872_v2 = vrot.slane %v7455_v49, %v7463_v55 }
 0x85d   :  { %v7339_v56 = vadd.bf16 %v13716_v63, %v7237_v10 }
 0x85e   :  { %v7340_v15 = vadd.bf16 %v13719_v45, %v7238_v13 }
 0x85f   :  { %v7403_v27 = vmax.bf16 %v14821_v33, %v7339_v56  ;;  %v13875_v56 = vrot.slane %v7455_v49, %v11632_v57 }
 0x860   :  { %v7104_v47 = vpop.f32.mrb[92].mxu1  ;;  %v7404_v52 = vmax.bf16 %v14821_v33, %v7340_v15 }
 0x861   :  { %v7106_v30 = vpop.f32.mrb[93].mxu1 }
 0x862   :  { %v7108_v60 = vpop.f32.mrb[94].mxu1  ;;  %7879 = vmatprep.mubr.bf16.mxu0 %v7404_v52 }
 0x863   :  { %v7239_v38 = vpack.c.bf16 %v7108_v60, %v7104_v47  ;;  %v7110_v17 = vpop.f32.mrb[95].mxu1  ;;  %7880 = vmatmul.mubr.bf16.gmra.mrb[152].mxu0 %v7403_v27 }
 0x864   :  { %v7240_v44 = vpack.c.bf16 %v7110_v17, %v7106_v30 }
 0x865   :  { %v7341_v53 = vadd.bf16 %v13716_v63, %v7239_v38 }
 0x866   :  { %v7342_v37 = vadd.bf16 %v13719_v45, %v7240_v44 }
 0x867   :  { %v7405_v34 = vmax.bf16 %v14821_v33, %v7341_v53 }
 0x868   :  { %v7114_v20 = vpop.f32.mrb[96].mxu1  ;;  %v7406_v28 = vmax.bf16 %v14821_v33, %v7342_v37 }
 0x869   :  { %v7116_v41 = vpop.f32.mrb[97].mxu1 }
 0x86a   :  { %v7118_v62 = vpop.f32.mrb[98].mxu1  ;;  %7889 = vmatprep.mubr.bf16.mxu0 %v7406_v28 }
 0x86b   :  { %v7241_v40 = vpack.c.bf16 %v7118_v62, %v7114_v20  ;;  %v7120_v48 = vpop.f32.mrb[99].mxu1  ;;  %7890 = vmatmul.mubr.bf16.gmra.mrb[156].mxu0 %v7405_v34 }
 0x86c   :  { %v7242_v18 = vpack.c.bf16 %v7120_v48, %v7116_v41 }
 0x86d   :  { %v7343_v22 = vadd.bf16 %v13716_v63, %v7241_v40 }
 0x86e   :  { %v7344_v8 = vadd.bf16 %v13719_v45, %v7242_v18  ;;  %v15161_v18 = vpack.c.bf16 %v12514_v24, %v12505_v11 }
 0x86f   :  { %v7407_v23 = vmax.bf16 %v14821_v33, %v7343_v22 }
 0x870   :  { %v7124_v6 = vpop.f32.mrb[100].mxu1  ;;  %v7408_v26 = vmax.bf16 %v14821_v33, %v7344_v8 }
 0x871   :  { %v7126_v19 = vpop.f32.mrb[101].mxu1 }
 0x872   :  { %v7128_v1 = vpop.f32.mrb[102].mxu1  ;;  %7899 = vmatprep.mubr.bf16.mxu0 %v7408_v26 }
 0x873   :  { %v7243_v12 = vpack.c.bf16 %v7128_v1, %v7124_v6  ;;  %v7130_v31 = vpop.f32.mrb[103].mxu1  ;;  %7900 = vmatmul.mubr.bf16.gmra.mrb[160].mxu0 %v7407_v23 }
 0x874   :  { %v7244_v32 = vpack.c.bf16 %v7130_v31, %v7126_v19 }
 0x875   :  { %v7345_v39 = vadd.bf16 %v13716_v63, %v7243_v12 }
 0x876   :  { %v7346_v21 = vadd.bf16 %v13719_v45, %v7244_v32 }
 0x877   :  { %v7409_v5 = vmax.bf16 %v14821_v33, %v7345_v39 }
 0x878   :  { %v7134_v9 = vpop.f32.mrb[104].mxu1  ;;  %v7410_v0 = vmax.bf16 %v14821_v33, %v7346_v21 }
 0x879   :  { %v7136_v51 = vpop.f32.mrb[105].mxu1 }
 0x87a   :  { %v7138_v3 = vpop.f32.mrb[106].mxu1  ;;  %7909 = vmatprep.mubr.bf16.mxu0 %v7410_v0 }
 0x87b   :  { %v7245_v25 = vpack.c.bf16 %v7138_v3, %v7134_v9  ;;  %v7140_v43 = vpop.f32.mrb[107].mxu1  ;;  %7910 = vmatmul.mubr.bf16.gmra.mrb[164].mxu0 %v7409_v5 }
 0x87c   :  { %v7246_v29 = vpack.c.bf16 %v7140_v43, %v7136_v51 }
 0x87d   :  { %v7347_v58 = vadd.bf16 %v13716_v63, %v7245_v25 }
 0x87e   :  { %v7348_v36 = vadd.bf16 %v13719_v45, %v7246_v29  ;;  %v15162_v29 = vpack.c.bf16 %v12508_v50, %v12503_v7 }
 0x87f   :  { %v7411_v59 = vmax.bf16 %v14821_v33, %v7347_v58 }
 0x880   :  { %v7144_v35 = vpop.f32.mrb[108].mxu1  ;;  %v7412_v46 = vmax.bf16 %v14821_v33, %v7348_v36 }
 0x881   :  { %v7146_v61 = vpop.f32.mrb[109].mxu1 }
 0x882   :  { %v7148_v42 = vpop.f32.mrb[110].mxu1  ;;  %7919 = vmatprep.mubr.bf16.mxu0 %v7412_v46 }
 0x883   :  { %v7247_v16 = vpack.c.bf16 %v7148_v42, %v7144_v35  ;;  %v7150_v10 = vpop.f32.mrb[111].mxu1  ;;  %7920 = vmatmul.mubr.bf16.gmra.mrb[168].mxu0 %v7411_v59 }
 0x884   :  { %v7248_v13 = vpack.c.bf16 %v7150_v10, %v7146_v61 }
 0x885   :  { %v7349_v15 = vadd.bf16 %v13716_v63, %v7247_v16 }
 0x886   :  { %v7350_v47 = vadd.bf16 %v13719_v45, %v7248_v13  ;;  %v7661_v52 = vpop.f32.mrb[64].mxu0 }
 0x887   :  { %v7663_v27 = vpop.f32.mrb[65].mxu0  ;;  %v7413_v44 = vmax.bf16 %v14821_v33, %v7349_v15  ;;  %v7662_v53 = vadd.f32 %v7661_v52, %v13875_v56 }
 0x888   :  { %v7664_v30 = vadd.f32 %v7663_v27, %v13872_v2  ;;  %v7154_v60 = vpop.f32.mrb[112].mxu1  ;;  %v7665_v38 = vpop.f32.mrb[66].mxu0  ;;  %v7414_v17 = vmax.bf16 %v14821_v33, %v7350_v47 }
 0x889   :  { %v7666_v37 = vadd.f32 %v7665_v38, %v13875_v56  ;;  %v7156_v57 = vpop.f32.mrb[113].mxu1  ;;  %v7667_v20 = vpop.f32.mrb[67].mxu0  ;;  %v15163_v38 = vpack.c.bf16 %v12537_v14, %v12528_v54 }
 0x88a   :  { %v7158_v28 = vpop.f32.mrb[114].mxu1  ;;  %7929 = vmatprep.mubr.bf16.mxu0 %v7414_v17  ;;  %8825 = vperm.xlu0 %10004, %v7664_v30   ;;  %v7668_v40 = vadd.f32 %v7667_v20, %v13872_v2 }
 0x88b   :  { %v7980_v34 = vpack.c.bf16 %v7666_v37, %v7662_v53  ;;  %v7249_v41 = vpack.c.bf16 %v7158_v28, %v7154_v60  ;;  %v7160_v62 = vpop.f32.mrb[115].mxu1  ;;  %7930 = vmatmul.mubr.bf16.gmra.mrb[172].mxu0 %v7413_v44 }
 0x88c   :  { %v7250_v48 = vpack.c.bf16 %v7160_v62, %v7156_v57 }
 0x88d   :  { %v8012_v22 = vadd.bf16 %v7980_v34, %v15161_v18  ;;  %v7351_v8 = vadd.bf16 %v13716_v63, %v7249_v41 }
 0x88e   :  { %v7352_v6 = vadd.bf16 %v13719_v45, %v7250_v48  ;;  %v7671_v26 = vpop.f32.mrb[68].mxu0  ;;  %8830 = vperm.xlu0 %10004, %v7668_v40  }
 0x88f   :  { %v7673_v23 = vpop.f32.mrb[69].mxu0  ;;  %v8044_v19 = vmax.bf16 %v14821_v33, %v8012_v22  ;;  %v7415_v39 = vmax.bf16 %v14821_v33, %v7351_v8  ;;  %v7672_v11 = vadd.f32 %v7671_v26, %v13875_v56 }
 0x890   :  { %v7674_v1 = vadd.f32 %v7673_v23, %v13872_v2  ;;  %v7164_v12 = vpop.f32.mrb[116].mxu1  ;;  %v7675_v31 = vpop.f32.mrb[70].mxu0  ;;  %v7416_v32 = vmax.bf16 %v14821_v33, %v7352_v6 }
 0x891   :  { %v7676_v24 = vadd.f32 %v7675_v31, %v13875_v56  ;;  %v7166_v21 = vpop.f32.mrb[117].mxu1  ;;  %v7677_v9 = vpop.f32.mrb[71].mxu0  ;;  %9929 = vmatprep.mubr.bf16.mxu1 %v8044_v19 }
 0x892   :  { %v7168_v0 = vpop.f32.mrb[118].mxu1  ;;  %7939 = vmatprep.mubr.bf16.mxu0 %v7416_v32  ;;  %8835 = vperm.xlu1 %10005, %v7674_v1   ;;  %v7678_v25 = vadd.f32 %v7677_v9, %v13872_v2  ;;  %v15164_v1 = vld [vmem:[#allocation117_spill] sm:$0xff] }
 0x893   :  { %v7981_v5 = vpack.c.bf16 %v7676_v24, %v7672_v11  ;;  %v7251_v51 = vpack.c.bf16 %v7168_v0, %v7164_v12  ;;  %v7170_v3 = vpop.f32.mrb[119].mxu1  ;;  %7940 = vmatmul.mubr.bf16.gmra.mrb[176].mxu0 %v7415_v39  ;;  %v15165_v12 = vld [vmem:[#allocation116_spill] sm:$0xff] }
 0x894   :  { %v7252_v43 = vpack.c.bf16 %v7170_v3, %v7166_v21  ;;  %v15166_v31 = vpack.c.bf16 %v15164_v1, %v15165_v12  ;;  %v15177_v1 = vld [vmem:[#allocation122_spill] sm:$0xff] }
 0x895   :  { %v8013_v58 = vadd.bf16 %v7981_v5, %v15162_v29  ;;  %v7353_v36 = vadd.bf16 %v13716_v63, %v7251_v51 }
 0x896   :  { %v7354_v4 = vadd.bf16 %v13719_v45, %v7252_v43  ;;  %v7681_v55 = vpop.f32.mrb[72].mxu0  ;;  %8840 = vperm.xlu1 %10005, %v7678_v25  }
 0x897   :  { %v8045_v35 = vmax.bf16 %v14821_v33, %v8013_v58  ;;  %v7683_v46 = vpop.f32.mrb[73].mxu0  ;;  %v7417_v16 = vmax.bf16 %v14821_v33, %v7353_v36  ;;  %v7682_v7 = vadd.f32 %v7681_v55, %v13875_v56  ;;  %v15167_v58 = vld [vmem:[#allocation121_spill] sm:$0xff]  ;;  %v15168_v36 = vld [vmem:[#allocation119_spill] sm:$0xff] }
 0x898   :  { %v7684_v49 = vadd.f32 %v7683_v46, %v13872_v2  ;;  %v7174_v59 = vpop.f32.mrb[120].mxu1  ;;  %v7685_v61 = vpop.f32.mrb[74].mxu0  ;;  %v7418_v42 = vmax.bf16 %v14821_v33, %v7354_v4  ;;  %v15169_v4 = vpack.c.bf16 %v15167_v58, %v15168_v36 }
 0x899   :  { %v7686_v50 = vadd.f32 %v7685_v61, %v13875_v56  ;;  %v7176_v10 = vpop.f32.mrb[121].mxu1  ;;  %v7687_v13 = vpop.f32.mrb[75].mxu0  ;;  %9930 = vmatmul.mubr.bf16.vlgmr.msra.gmra.mrb[128].mxu1 %v8045_v35 }
 0x89a   :  { %v7688_v15 = vadd.f32 %v7687_v13, %v13872_v2  ;;  %v7178_v47 = vpop.f32.mrb[122].mxu1  ;;  %7949 = vmatprep.mubr.bf16.mxu0 %v7418_v42  ;;  %8845 = vperm.xlu0 %10004, %v7684_v49   ;;  %v15170_v13 = vld [vmem:[#allocation120_spill] sm:$0xff] }
 0x89b   :  { %v7982_v52 = vpack.c.bf16 %v7686_v50, %v7682_v7  ;;  %v7253_v27 = vpack.c.bf16 %v7178_v47, %v7174_v59  ;;  %v7180_v30 = vpop.f32.mrb[123].mxu1  ;;  %7950 = vmatmul.mubr.bf16.gmra.mrb[180].mxu0 %v7417_v16 }
 0x89c   :  { %v7254_v60 = vpack.c.bf16 %v7180_v30, %v7176_v10  ;;  %8850 = vperm.xlu1 %10005, %v7688_v15   ;;  %v15171_v15 = vld [vmem:[#allocation118_spill] sm:$0xff] }
 0x89d   :  { %v8014_v17 = vadd.bf16 %v7982_v52, %v15163_v38  ;;  %v7355_v44 = vadd.bf16 %v13716_v63, %v7253_v27  ;;  %v15172_v47 = vpack.c.bf16 %v15170_v13, %v15171_v15 }
 0x89e   :  { %v7356_v53 = vadd.bf16 %v13719_v45, %v7254_v60  ;;  %v7691_v37 = vpop.f32.mrb[76].mxu0 }
 0x89f   :  { %v7693_v57 = vpop.f32.mrb[77].mxu0  ;;  %v8046_v20 = vmax.bf16 %v14821_v33, %v8014_v17  ;;  %v7419_v40 = vmax.bf16 %v14821_v33, %v7355_v44  ;;  %v7692_v48 = vadd.f32 %v7691_v37, %v13875_v56 }
 0x8a0   :  { %v7694_v28 = vadd.f32 %v7693_v57, %v13872_v2  ;;  %v7184_v34 = vpop.f32.mrb[124].mxu1  ;;  %v7695_v41 = vpop.f32.mrb[78].mxu0  ;;  %v7420_v62 = vmax.bf16 %v14821_v33, %v7356_v53 }
 0x8a1   :  { %v7696_v54 = vadd.f32 %v7695_v41, %v13875_v56  ;;  %v7186_v14 = vpop.f32.mrb[125].mxu1  ;;  %v7697_v18 = vpop.f32.mrb[79].mxu0  ;;  %9933 = vmatprep.mubr.bf16.mxu1 %v8046_v20 }
 0x8a2   :  { %v7698_v22 = vadd.f32 %v7697_v18, %v13872_v2  ;;  %7959 = vmatprep.mubr.bf16.mxu0 %v7420_v62  ;;  %8855 = vperm.xlu0 %10004, %v7694_v28   ;;  %v7188_v8 = vpop.f32.mrb[126].mxu1  ;;  %v15173_v28 = vld [vmem:[#allocation125_spill] sm:$0xff] }
 0x8a3   :  { %v7983_v6 = vpack.c.bf16 %v7696_v54, %v7692_v48  ;;  %v7255_v26 = vpack.c.bf16 %v7188_v8, %v7184_v34  ;;  %v7190_v23 = vpop.f32.mrb[127].mxu1  ;;  %7960 = vmatmul.mubr.bf16.gmra.mrb[184].mxu0 %v7419_v40  ;;  %v15174_v34 = vld [vmem:[#allocation123_spill] sm:$0xff] }
 0x8a4   :  { %v7256_v19 = vpack.c.bf16 %v7190_v23, %v7186_v14  ;;  %8860 = vperm.xlu1 %10005, %v7698_v22   ;;  %v15175_v41 = vpack.c.bf16 %v15173_v28, %v15174_v34 }
 0x8a5   :  { %v8015_v32 = vadd.bf16 %v7983_v6, %v15166_v31  ;;  %v7357_v39 = vadd.bf16 %v13716_v63, %v7255_v26 }
 0x8a6   :  { %v7358_v11 = vadd.bf16 %v13719_v45, %v7256_v19  ;;  %v7701_v24 = vpop.f32.mrb[80].mxu0  ;;  %v15176_v19 = vld [vmem:[#allocation124_spill] sm:$0xff] }
 0x8a7   :  { %v8047_v21 = vmax.bf16 %v14821_v33, %v8015_v32  ;;  %v7703_v9 = vpop.f32.mrb[81].mxu0  ;;  %v7421_v3 = vmax.bf16 %v14821_v33, %v7357_v39  ;;  %v7702_v25 = vadd.f32 %v7701_v24, %v13875_v56  ;;  %v15178_v12 = vpack.c.bf16 %v15176_v19, %v15177_v1 }
 0x8a8   :  { %v7704_v0 = vadd.f32 %v7703_v9, %v13872_v2  ;;  %v7705_v5 = vpop.f32.mrb[82].mxu0  ;;  %v7422_v51 = vmax.bf16 %v14821_v33, %v7358_v11 }
 0x8a9   :  { %v7706_v43 = vadd.f32 %v7705_v5, %v13875_v56  ;;  %v7707_v29 = vpop.f32.mrb[83].mxu0  ;;  %9934 = vmatmul.mubr.bf16.gmra.mrb[132].mxu1 %v8047_v21 }
 0x8aa   :  { %v7708_v63 = vadd.f32 %v7707_v29, %v13872_v2  ;;  %8865 = vperm.xlu0 %10004, %v7704_v0   ;;  %7969 = vmatprep.mubr.bf16.mxu0 %v7422_v51 }
 0x8ab   :  { %v7984_v45 = vpack.c.bf16 %v7706_v43, %v7702_v25  ;;  %7970 = vmatmul.mubr.bf16.gmra.mrb[188].mxu0 %v7421_v3  ;;  %v15179_v25 = vld [vmem:[#allocation129_spill] sm:$0xff]  ;;  %v15180_v43 = vld [vmem:[#allocation127_spill] sm:$0xff] }
 0x8ac   :  { %8870 = vperm.xlu1 %10005, %v7708_v63   ;;  %v15181_v29 = vpack.c.bf16 %v15179_v25, %v15180_v43 }
 0x8ad   :  { %v8016_v55 = vadd.bf16 %v7984_v45, %v15169_v4 }
 0x8ae   :  { %v7711_v35 = vpop.f32.mrb[84].mxu0 }
 0x8af   :  { %v7713_v46 = vpop.f32.mrb[85].mxu0  ;;  %v8048_v49 = vmax.bf16 %v14821_v33, %v8016_v55  ;;  %v7712_v42 = vadd.f32 %v7711_v35, %v13875_v56 }
 0x8b0   :  { %v7714_v59 = vadd.f32 %v7713_v46, %v13872_v2  ;;  %v7715_v61 = vpop.f32.mrb[86].mxu0 }
 0x8b1   :  { %v7716_v16 = vadd.f32 %v7715_v61, %v13875_v56  ;;  %v7717_v7 = vpop.f32.mrb[87].mxu0  ;;  %9937 = vmatprep.mubr.bf16.mxu1 %v8048_v49 }
 0x8b2   :  { %v7718_v50 = vadd.f32 %v7717_v7, %v13872_v2  ;;  %8875 = vperm.xlu0 %10004, %v7714_v59  }
 0x8b3   :  { %v7985_v10 = vpack.c.bf16 %v7716_v16, %v7712_v42  ;;  %v15182_v42 = vld [vmem:[#allocation128_spill] sm:$0xff]  ;;  %v15183_v16 = vld [vmem:[#allocation126_spill] sm:$0xff] }
 0x8b4   :  { %8880 = vperm.xlu1 %10005, %v7718_v50   ;;  %v15184_v7 = vpack.c.bf16 %v15182_v42, %v15183_v16 }
 0x8b5   :  { %v8017_v52 = vadd.bf16 %v7985_v10, %v15172_v47 }
 0x8b6   :  { %v7721_v27 = vpop.f32.mrb[88].mxu0 }
 0x8b7   :  { %v8049_v30 = vmax.bf16 %v14821_v33, %v8017_v52  ;;  %v7723_v60 = vpop.f32.mrb[89].mxu0  ;;  %v7722_v44 = vadd.f32 %v7721_v27, %v13875_v56 }
 0x8b8   :  { %v7724_v38 = vadd.f32 %v7723_v60, %v13872_v2  ;;  %v7725_v17 = vpop.f32.mrb[90].mxu0 }
 0x8b9   :  { %v7726_v53 = vadd.f32 %v7725_v17, %v13875_v56  ;;  %v7727_v37 = vpop.f32.mrb[91].mxu0  ;;  %9938 = vmatmul.mubr.bf16.gmra.mrb[136].mxu1 %v8049_v30 }
 0x8ba   :  { %v7728_v57 = vadd.f32 %v7727_v37, %v13872_v2  ;;  %8885 = vperm.xlu0 %10004, %v7724_v38  }
 0x8bb   :  { %v7986_v20 = vpack.c.bf16 %v7726_v53, %v7722_v44  ;;  %v15185_v44 = vld [vmem:[#allocation133_spill] sm:$0xff]  ;;  %v15186_v53 = vld [vmem:[#allocation131_spill] sm:$0xff] }
 0x8bc   :  { %8890 = vperm.xlu1 %10005, %v7728_v57   ;;  %v15187_v37 = vpack.c.bf16 %v15185_v44, %v15186_v53 }
 0x8bd   :  { %v8018_v62 = vadd.bf16 %v7986_v20, %v15175_v41 }
 0x8be   :  { %v7731_v40 = vpop.f32.mrb[92].mxu0 }
 0x8bf   :  { %v7733_v48 = vpop.f32.mrb[93].mxu0  ;;  %v8050_v54 = vmax.bf16 %v14821_v33, %v8018_v62  ;;  %v7732_v22 = vadd.f32 %v7731_v40, %v13875_v56 }
 0x8c0   :  { %v7734_v14 = vadd.f32 %v7733_v48, %v13872_v2  ;;  %v7735_v18 = vpop.f32.mrb[94].mxu0 }
 0x8c1   :  { %v7736_v8 = vadd.f32 %v7735_v18, %v13875_v56  ;;  %v7737_v6 = vpop.f32.mrb[95].mxu0  ;;  %9941 = vmatprep.mubr.bf16.mxu1 %v8050_v54 }
 0x8c2   :  { %v7738_v26 = vadd.f32 %v7737_v6, %v13872_v2  ;;  %8895 = vperm.xlu0 %10004, %v7734_v14  }
 0x8c3   :  { %v7987_v23 = vpack.c.bf16 %v7736_v8, %v7732_v22  ;;  %v15188_v22 = vld [vmem:[#allocation132_spill] sm:$0xff]  ;;  %v15189_v8 = vld [vmem:[#allocation130_spill] sm:$0xff] }
 0x8c4   :  { %8900 = vperm.xlu1 %10005, %v7738_v26   ;;  %v15190_v6 = vpack.c.bf16 %v15188_v22, %v15189_v8 }
 0x8c5   :  { %v8019_v31 = vadd.bf16 %v7987_v23, %v15178_v12 }
 0x8c6   :  { %v7741_v32 = vpop.f32.mrb[96].mxu0 }
 0x8c7   :  { %v8051_v39 = vmax.bf16 %v14821_v33, %v8019_v31  ;;  %v7743_v11 = vpop.f32.mrb[97].mxu0  ;;  %v7742_v9 = vadd.f32 %v7741_v32, %v13875_v56 }
 0x8c8   :  { %v7744_v24 = vadd.f32 %v7743_v11, %v13872_v2  ;;  %v7745_v21 = vpop.f32.mrb[98].mxu0 }
 0x8c9   :  { %v7746_v0 = vadd.f32 %v7745_v21, %v13875_v56  ;;  %v7747_v5 = vpop.f32.mrb[99].mxu0  ;;  %9942 = vmatmul.mubr.bf16.gmra.mrb[140].mxu1 %v8051_v39 }
 0x8ca   :  { %v7748_v51 = vadd.f32 %v7747_v5, %v13872_v2  ;;  %8905 = vperm.xlu0 %10004, %v7744_v24  }
 0x8cb   :  { %v7988_v3 = vpack.c.bf16 %v7746_v0, %v7742_v9  ;;  %v15191_v9 = vld [vmem:[#allocation137_spill] sm:$0xff]  ;;  %v15192_v0 = vld [vmem:[#allocation135_spill] sm:$0xff] }
 0x8cc   :  { %8910 = vperm.xlu1 %10005, %v7748_v51   ;;  %v15193_v5 = vpack.c.bf16 %v15191_v9, %v15192_v0 }
 0x8cd   :  { %v8020_v63 = vadd.bf16 %v7988_v3, %v15181_v29 }
 0x8ce   :  { %v7751_v45 = vpop.f32.mrb[100].mxu0 }
 0x8cf   :  { %v7753_v58 = vpop.f32.mrb[101].mxu0  ;;  %v8052_v36 = vmax.bf16 %v14821_v33, %v8020_v63  ;;  %v7752_v35 = vadd.f32 %v7751_v45, %v13875_v56 }
 0x8d0   :  { %v7754_v4 = vadd.f32 %v7753_v58, %v13872_v2  ;;  %v7755_v55 = vpop.f32.mrb[102].mxu0 }
 0x8d1   :  { %v7756_v46 = vadd.f32 %v7755_v55, %v13875_v56  ;;  %v7757_v49 = vpop.f32.mrb[103].mxu0  ;;  %9945 = vmatprep.mubr.bf16.mxu1 %v8052_v36 }
 0x8d2   :  { %v7758_v59 = vadd.f32 %v7757_v49, %v13872_v2  ;;  %8915 = vperm.xlu0 %10004, %v7754_v4  }
 0x8d3   :  { %v7989_v61 = vpack.c.bf16 %v7756_v46, %v7752_v35  ;;  %v15194_v35 = vld [vmem:[#allocation136_spill] sm:$0xff]  ;;  %v15195_v46 = vld [vmem:[#allocation134_spill] sm:$0xff] }
 0x8d4   :  { %8920 = vperm.xlu1 %10005, %v7758_v59   ;;  %v15196_v49 = vpack.c.bf16 %v15194_v35, %v15195_v46 }
 0x8d5   :  { %v8021_v50 = vadd.bf16 %v7989_v61, %v15184_v7 }
 0x8d6   :  { %v7761_v10 = vpop.f32.mrb[104].mxu0 }
 0x8d7   :  { %v8053_v13 = vmax.bf16 %v14821_v33, %v8021_v50  ;;  %v7763_v15 = vpop.f32.mrb[105].mxu0  ;;  %v7762_v27 = vadd.f32 %v7761_v10, %v13875_v56 }
 0x8d8   :  { %v7764_v47 = vadd.f32 %v7763_v15, %v13872_v2  ;;  %v7765_v52 = vpop.f32.mrb[106].mxu0 }
 0x8d9   :  { %v7766_v30 = vadd.f32 %v7765_v52, %v13875_v56  ;;  %v7767_v60 = vpop.f32.mrb[107].mxu0  ;;  %9946 = vmatmul.mubr.bf16.gmra.mrb[144].mxu1 %v8053_v13 }
 0x8da   :  { %v7768_v38 = vadd.f32 %v7767_v60, %v13872_v2  ;;  %8925 = vperm.xlu0 %10004, %v7764_v47  }
 0x8db   :  { %v7990_v17 = vpack.c.bf16 %v7766_v30, %v7762_v27  ;;  %v15197_v27 = vld [vmem:[#allocation141_spill] sm:$0xff]  ;;  %v15198_v30 = vld [vmem:[#allocation139_spill] sm:$0xff] }
 0x8dc   :  { %8930 = vperm.xlu1 %10005, %v7768_v38   ;;  %v15199_v60 = vpack.c.bf16 %v15197_v27, %v15198_v30 }
 0x8dd   :  { %v8022_v57 = vadd.bf16 %v7990_v17, %v15187_v37 }
 0x8de   :  { %v7771_v20 = vpop.f32.mrb[108].mxu0 }
 0x8df   :  { %v7773_v28 = vpop.f32.mrb[109].mxu0  ;;  %v8054_v34 = vmax.bf16 %v14821_v33, %v8022_v57  ;;  %v7772_v40 = vadd.f32 %v7771_v20, %v13875_v56 }
 0x8e0   :  { %v7774_v41 = vadd.f32 %v7773_v28, %v13872_v2  ;;  %v7775_v62 = vpop.f32.mrb[110].mxu0 }
 0x8e1   :  { %v7776_v48 = vadd.f32 %v7775_v62, %v13875_v56  ;;  %v7777_v54 = vpop.f32.mrb[111].mxu0  ;;  %9949 = vmatprep.mubr.bf16.mxu1 %v8054_v34 }
 0x8e2   :  { %v7778_v14 = vadd.f32 %v7777_v54, %v13872_v2  ;;  %8935 = vperm.xlu0 %10004, %v7774_v41  }
 0x8e3   :  { %v7991_v18 = vpack.c.bf16 %v7776_v48, %v7772_v40  ;;  %v15200_v40 = vld [vmem:[#allocation140_spill] sm:$0xff]  ;;  %v15201_v48 = vld [vmem:[#allocation138_spill] sm:$0xff] }
 0x8e4   :  { %8940 = vperm.xlu1 %10005, %v7778_v14   ;;  %v15202_v54 = vpack.c.bf16 %v15200_v40, %v15201_v48 }
 0x8e5   :  { %v8023_v26 = vadd.bf16 %v7991_v18, %v15190_v6 }
 0x8e6   :  { %v7781_v23 = vpop.f32.mrb[112].mxu0 }
 0x8e7   :  { %v8055_v19 = vmax.bf16 %v14821_v33, %v8023_v26  ;;  %v7783_v1 = vpop.f32.mrb[113].mxu0  ;;  %v7782_v32 = vadd.f32 %v7781_v23, %v13875_v56 }
 0x8e8   :  { %v7784_v12 = vadd.f32 %v7783_v1, %v13872_v2  ;;  %v7785_v31 = vpop.f32.mrb[114].mxu0 }
 0x8e9   :  { %v7786_v39 = vadd.f32 %v7785_v31, %v13875_v56  ;;  %v7787_v11 = vpop.f32.mrb[115].mxu0  ;;  %9950 = vmatmul.mubr.bf16.gmra.mrb[148].mxu1 %v8055_v19 }
 0x8ea   :  { %v7788_v24 = vadd.f32 %v7787_v11, %v13872_v2  ;;  %8945 = vperm.xlu0 %10004, %v7784_v12  }
 0x8eb   :  { %v7992_v21 = vpack.c.bf16 %v7786_v39, %v7782_v32  ;;  %v15203_v32 = vld [vmem:[#allocation145_spill] sm:$0xff]  ;;  %v15204_v39 = vld [vmem:[#allocation143_spill] sm:$0xff] }
 0x8ec   :  { %8950 = vperm.xlu1 %10005, %v7788_v24   ;;  %v15205_v11 = vpack.c.bf16 %v15203_v32, %v15204_v39 }
 0x8ed   :  { %v8024_v51 = vadd.bf16 %v7992_v21, %v15193_v5 }
 0x8ee   :  { %v7791_v3 = vpop.f32.mrb[116].mxu0 }
 0x8ef   :  { %v7793_v25 = vpop.f32.mrb[117].mxu0  ;;  %v8056_v43 = vmax.bf16 %v14821_v33, %v8024_v51  ;;  %v7792_v45 = vadd.f32 %v7791_v3, %v13875_v56 }
 0x8f0   :  { %v7794_v29 = vadd.f32 %v7793_v25, %v13872_v2  ;;  %v7795_v63 = vpop.f32.mrb[118].mxu0 }
 0x8f1   :  { %v7796_v58 = vadd.f32 %v7795_v63, %v13875_v56  ;;  %v7797_v36 = vpop.f32.mrb[119].mxu0  ;;  %9953 = vmatprep.mubr.bf16.mxu1 %v8056_v43 }
 0x8f2   :  { %v7798_v4 = vadd.f32 %v7797_v36, %v13872_v2  ;;  %8955 = vperm.xlu0 %10004, %v7794_v29  }
 0x8f3   :  { %v7993_v55 = vpack.c.bf16 %v7796_v58, %v7792_v45  ;;  %v15206_v45 = vld [vmem:[#allocation144_spill] sm:$0xff]  ;;  %v15207_v58 = vld [vmem:[#allocation142_spill] sm:$0xff] }
 0x8f4   :  { %8960 = vperm.xlu1 %10005, %v7798_v4   ;;  %v15208_v36 = vpack.c.bf16 %v15206_v45, %v15207_v58 }
 0x8f5   :  { %v8025_v59 = vadd.bf16 %v7993_v55, %v15196_v49 }
 0x8f6   :  { %v7801_v61 = vpop.f32.mrb[120].mxu0 }
 0x8f7   :  { %v8057_v42 = vmax.bf16 %v14821_v33, %v8025_v59  ;;  %v7803_v16 = vpop.f32.mrb[121].mxu0  ;;  %v7802_v10 = vadd.f32 %v7801_v61, %v13875_v56 }
 0x8f8   :  { %v7804_v7 = vadd.f32 %v7803_v16, %v13872_v2  ;;  %v7805_v50 = vpop.f32.mrb[122].mxu0 }
 0x8f9   :  { %v7806_v13 = vadd.f32 %v7805_v50, %v13875_v56  ;;  %v7807_v15 = vpop.f32.mrb[123].mxu0  ;;  %9954 = vmatmul.mubr.bf16.gmra.mrb[152].mxu1 %v8057_v42 }
 0x8fa   :  { %v7808_v47 = vadd.f32 %v7807_v15, %v13872_v2  ;;  %8965 = vperm.xlu0 %10004, %v7804_v7  }
 0x8fb   :  { %v7994_v52 = vpack.c.bf16 %v7806_v13, %v7802_v10  ;;  %v15209_v10 = vld [vmem:[#allocation149_spill] sm:$0xff]  ;;  %v15210_v13 = vld [vmem:[#allocation147_spill] sm:$0xff] }
 0x8fc   :  { %8970 = vperm.xlu1 %10005, %v7808_v47   ;;  %v15211_v15 = vpack.c.bf16 %v15209_v10, %v15210_v13 }
 0x8fd   :  { %v8026_v38 = vadd.bf16 %v7994_v52, %v15199_v60 }
 0x8fe   :  { %v7811_v17 = vpop.f32.mrb[124].mxu0 }
 0x8ff   :  { %v7813_v44 = vpop.f32.mrb[125].mxu0  ;;  %v8058_v53 = vmax.bf16 %v14821_v33, %v8026_v38  ;;  %v7812_v20 = vadd.f32 %v7811_v17, %v13875_v56 }
 0x900   :  { %v7814_v37 = vadd.f32 %v7813_v44, %v13872_v2  ;;  %v7815_v57 = vpop.f32.mrb[126].mxu0 }
 0x901   :  { %v7816_v28 = vadd.f32 %v7815_v57, %v13875_v56  ;;  %v7817_v34 = vpop.f32.mrb[127].mxu0  ;;  %9957 = vmatprep.mubr.bf16.mxu1 %v8058_v53 }
 0x902   :  { %v7818_v41 = vadd.f32 %v7817_v34, %v13872_v2  ;;  %8975 = vperm.xlu0 %10004, %v7814_v37  }
 0x903   :  { %v7995_v62 = vpack.c.bf16 %v7816_v28, %v7812_v20  ;;  %v15212_v20 = vld [vmem:[#allocation148_spill] sm:$0xff]  ;;  %v15213_v28 = vld [vmem:[#allocation146_spill] sm:$0xff] }
 0x904   :  { %8980 = vperm.xlu1 %10005, %v7818_v41   ;;  %v15214_v34 = vpack.c.bf16 %v15212_v20, %v15213_v28 }
 0x905   :  { %v8027_v14 = vadd.bf16 %v7995_v62, %v15202_v54 }
 0x906   :  { %v7821_v18 = vpop.f32.mrb[128].mxu0 }
 0x907   :  { %v8059_v22 = vmax.bf16 %v14821_v33, %v8027_v14  ;;  %v7823_v8 = vpop.f32.mrb[129].mxu0  ;;  %v7822_v23 = vadd.f32 %v7821_v18, %v13875_v56 }
 0x908   :  { %v7824_v6 = vadd.f32 %v7823_v8, %v13872_v2  ;;  %v7825_v26 = vpop.f32.mrb[130].mxu0 }
 0x909   :  { %v7826_v19 = vadd.f32 %v7825_v26, %v13875_v56  ;;  %v7827_v1 = vpop.f32.mrb[131].mxu0  ;;  %9958 = vmatmul.mubr.bf16.gmra.mrb[156].mxu1 %v8059_v22 }
 0x90a   :  { %v7828_v12 = vadd.f32 %v7827_v1, %v13872_v2  ;;  %8985 = vperm.xlu0 %10004, %v7824_v6  }
 0x90b   :  { %v7996_v31 = vpack.c.bf16 %v7826_v19, %v7822_v23  ;;  %v15215_v23 = vld [vmem:[#allocation153_spill] sm:$0xff]  ;;  %v15216_v19 = vld [vmem:[#allocation151_spill] sm:$0xff] }
 0x90c   :  { %8990 = vperm.xlu1 %10005, %v7828_v12   ;;  %v15217_v1 = vpack.c.bf16 %v15215_v23, %v15216_v19 }
 0x90d   :  { %v8028_v24 = vadd.bf16 %v7996_v31, %v15205_v11 }
 0x90e   :  { %v7831_v21 = vpop.f32.mrb[132].mxu0 }
 0x90f   :  { %v7833_v9 = vpop.f32.mrb[133].mxu0  ;;  %v8060_v0 = vmax.bf16 %v14821_v33, %v8028_v24  ;;  %v7832_v3 = vadd.f32 %v7831_v21, %v13875_v56 }
 0x910   :  { %v7834_v5 = vadd.f32 %v7833_v9, %v13872_v2  ;;  %v7835_v51 = vpop.f32.mrb[134].mxu0 }
 0x911   :  { %v7836_v25 = vadd.f32 %v7835_v51, %v13875_v56  ;;  %v7837_v43 = vpop.f32.mrb[135].mxu0  ;;  %9961 = vmatprep.mubr.bf16.mxu1 %v8060_v0 }
 0x912   :  { %v7838_v29 = vadd.f32 %v7837_v43, %v13872_v2  ;;  %8995 = vperm.xlu0 %10004, %v7834_v5  }
 0x913   :  { %v7997_v63 = vpack.c.bf16 %v7836_v25, %v7832_v3  ;;  %v15218_v3 = vld [vmem:[#allocation152_spill] sm:$0xff]  ;;  %v15219_v25 = vld [vmem:[#allocation150_spill] sm:$0xff] }
 0x914   :  { %9000 = vperm.xlu1 %10005, %v7838_v29   ;;  %v15220_v43 = vpack.c.bf16 %v15218_v3, %v15219_v25 }
 0x915   :  { %v8029_v4 = vadd.bf16 %v7997_v63, %v15208_v36 }
 0x916   :  { %v7841_v55 = vpop.f32.mrb[136].mxu0 }
 0x917   :  { %v8061_v35 = vmax.bf16 %v14821_v33, %v8029_v4  ;;  %v7843_v46 = vpop.f32.mrb[137].mxu0  ;;  %v7842_v61 = vadd.f32 %v7841_v55, %v13875_v56 }
 0x918   :  { %v7844_v49 = vadd.f32 %v7843_v46, %v13872_v2  ;;  %v7845_v59 = vpop.f32.mrb[138].mxu0 }
 0x919   :  { %v7846_v42 = vadd.f32 %v7845_v59, %v13875_v56  ;;  %v7847_v16 = vpop.f32.mrb[139].mxu0  ;;  %9962 = vmatmul.mubr.bf16.gmra.mrb[160].mxu1 %v8061_v35 }
 0x91a   :  { %v7848_v7 = vadd.f32 %v7847_v16, %v13872_v2  ;;  %9005 = vperm.xlu0 %10004, %v7844_v49  }
 0x91b   :  { %v7998_v50 = vpack.c.bf16 %v7846_v42, %v7842_v61  ;;  %v15221_v61 = vld [vmem:[#allocation157_spill] sm:$0xff]  ;;  %v15222_v42 = vld [vmem:[#allocation155_spill] sm:$0xff] }
 0x91c   :  { %9010 = vperm.xlu1 %10005, %v7848_v7   ;;  %v15223_v16 = vpack.c.bf16 %v15221_v61, %v15222_v42 }
 0x91d   :  { %v8030_v47 = vadd.bf16 %v7998_v50, %v15211_v15 }
 0x91e   :  { %v7851_v52 = vpop.f32.mrb[140].mxu0 }
 0x91f   :  { %v7853_v27 = vpop.f32.mrb[141].mxu0  ;;  %v8062_v30 = vmax.bf16 %v14821_v33, %v8030_v47  ;;  %v7852_v17 = vadd.f32 %v7851_v52, %v13875_v56 }
 0x920   :  { %v7854_v60 = vadd.f32 %v7853_v27, %v13872_v2  ;;  %v7855_v38 = vpop.f32.mrb[142].mxu0 }
 0x921   :  { %v7856_v44 = vadd.f32 %v7855_v38, %v13875_v56  ;;  %v7857_v53 = vpop.f32.mrb[143].mxu0  ;;  %9965 = vmatprep.mubr.bf16.mxu1 %v8062_v30 }
 0x922   :  { %v7858_v37 = vadd.f32 %v7857_v53, %v13872_v2  ;;  %9015 = vperm.xlu0 %10004, %v7854_v60  }
 0x923   :  { %v7999_v57 = vpack.c.bf16 %v7856_v44, %v7852_v17  ;;  %v15224_v17 = vld [vmem:[#allocation156_spill] sm:$0xff]  ;;  %v15225_v44 = vld [vmem:[#allocation154_spill] sm:$0xff] }
 0x924   :  { %9020 = vperm.xlu1 %10005, %v7858_v37   ;;  %v15226_v53 = vpack.c.bf16 %v15224_v17, %v15225_v44 }
 0x925   :  { %v8031_v41 = vadd.bf16 %v7999_v57, %v15214_v34 }
 0x926   :  { %v7861_v62 = vpop.f32.mrb[144].mxu0 }
 0x927   :  { %v8063_v40 = vmax.bf16 %v14821_v33, %v8031_v41  ;;  %v7863_v48 = vpop.f32.mrb[145].mxu0  ;;  %v7862_v18 = vadd.f32 %v7861_v62, %v13875_v56 }
 0x928   :  { %v7864_v54 = vadd.f32 %v7863_v48, %v13872_v2  ;;  %v7865_v14 = vpop.f32.mrb[146].mxu0 }
 0x929   :  { %v7866_v22 = vadd.f32 %v7865_v14, %v13875_v56  ;;  %v7867_v8 = vpop.f32.mrb[147].mxu0  ;;  %9966 = vmatmul.mubr.bf16.gmra.mrb[164].mxu1 %v8063_v40 }
 0x92a   :  { %v7868_v6 = vadd.f32 %v7867_v8, %v13872_v2  ;;  %9025 = vperm.xlu0 %10004, %v7864_v54  }
 0x92b   :  { %v8000_v26 = vpack.c.bf16 %v7866_v22, %v7862_v18  ;;  %v15227_v18 = vld [vmem:[#allocation161_spill] sm:$0xff]  ;;  %v15228_v22 = vld [vmem:[#allocation159_spill] sm:$0xff] }
 0x92c   :  { %9030 = vperm.xlu1 %10005, %v7868_v6   ;;  %v15229_v8 = vpack.c.bf16 %v15227_v18, %v15228_v22 }
 0x92d   :  { %v8032_v12 = vadd.bf16 %v8000_v26, %v15217_v1 }
 0x92e   :  { %v7871_v31 = vpop.f32.mrb[148].mxu0 }
 0x92f   :  { %v7873_v32 = vpop.f32.mrb[149].mxu0  ;;  %v8064_v39 = vmax.bf16 %v14821_v33, %v8032_v12  ;;  %v7872_v21 = vadd.f32 %v7871_v31, %v13875_v56 }
 0x930   :  { %v7874_v11 = vadd.f32 %v7873_v32, %v13872_v2  ;;  %v7875_v24 = vpop.f32.mrb[150].mxu0 }
 0x931   :  { %v7876_v9 = vadd.f32 %v7875_v24, %v13875_v56  ;;  %v7877_v0 = vpop.f32.mrb[151].mxu0  ;;  %9969 = vmatprep.mubr.bf16.mxu1 %v8064_v39 }
 0x932   :  { %v7878_v5 = vadd.f32 %v7877_v0, %v13872_v2  ;;  %9035 = vperm.xlu0 %10004, %v7874_v11  }
 0x933   :  { %v8001_v51 = vpack.c.bf16 %v7876_v9, %v7872_v21  ;;  %v15230_v21 = vld [vmem:[#allocation160_spill] sm:$0xff]  ;;  %v15231_v9 = vld [vmem:[#allocation158_spill] sm:$0xff] }
 0x934   :  { %9040 = vperm.xlu1 %10005, %v7878_v5   ;;  %v15232_v0 = vpack.c.bf16 %v15230_v21, %v15231_v9 }
 0x935   :  { %v8033_v29 = vadd.bf16 %v8001_v51, %v15220_v43 }
 0x936   :  { %v7881_v63 = vpop.f32.mrb[152].mxu0 }
 0x937   :  { %v8065_v45 = vmax.bf16 %v14821_v33, %v8033_v29  ;;  %v7883_v58 = vpop.f32.mrb[153].mxu0  ;;  %v7882_v55 = vadd.f32 %v7881_v63, %v13875_v56 }
 0x938   :  { %v7884_v36 = vadd.f32 %v7883_v58, %v13872_v2  ;;  %v7885_v4 = vpop.f32.mrb[154].mxu0 }
 0x939   :  { %v7886_v35 = vadd.f32 %v7885_v4, %v13875_v56  ;;  %v7887_v46 = vpop.f32.mrb[155].mxu0  ;;  %9970 = vmatmul.mubr.bf16.gmra.mrb[168].mxu1 %v8065_v45 }
 0x93a   :  { %v7888_v49 = vadd.f32 %v7887_v46, %v13872_v2  ;;  %9045 = vperm.xlu0 %10004, %v7884_v36  }
 0x93b   :  { %v8002_v59 = vpack.c.bf16 %v7886_v35, %v7882_v55  ;;  %v15233_v55 = vld [vmem:[#allocation165_spill] sm:$0xff]  ;;  %v15234_v35 = vld [vmem:[#allocation163_spill] sm:$0xff] }
 0x93c   :  { %9050 = vperm.xlu1 %10005, %v7888_v49   ;;  %v15235_v46 = vpack.c.bf16 %v15233_v55, %v15234_v35 }
 0x93d   :  { %v8034_v7 = vadd.bf16 %v8002_v59, %v15223_v16 }
 0x93e   :  { %v7891_v50 = vpop.f32.mrb[156].mxu0 }
 0x93f   :  { %v7893_v10 = vpop.f32.mrb[157].mxu0  ;;  %v8066_v13 = vmax.bf16 %v14821_v33, %v8034_v7  ;;  %v7892_v52 = vadd.f32 %v7891_v50, %v13875_v56 }
 0x940   :  { %v7894_v15 = vadd.f32 %v7893_v10, %v13872_v2  ;;  %v7895_v47 = vpop.f32.mrb[158].mxu0 }
 0x941   :  { %v7896_v27 = vadd.f32 %v7895_v47, %v13875_v56  ;;  %v7897_v30 = vpop.f32.mrb[159].mxu0  ;;  %9973 = vmatprep.mubr.bf16.mxu1 %v8066_v13 }
 0x942   :  { %v7898_v60 = vadd.f32 %v7897_v30, %v13872_v2  ;;  %9055 = vperm.xlu0 %10004, %v7894_v15  }
 0x943   :  { %v8003_v38 = vpack.c.bf16 %v7896_v27, %v7892_v52  ;;  %v15236_v52 = vld [vmem:[#allocation164_spill] sm:$0xff]  ;;  %v15237_v27 = vld [vmem:[#allocation162_spill] sm:$0xff] }
 0x944   :  { %9060 = vperm.xlu1 %10005, %v7898_v60   ;;  %v15238_v30 = vpack.c.bf16 %v15236_v52, %v15237_v27  ;;  %v15245_v52 = vld [vmem:[#allocation173_spill] sm:$0xff]  ;;  %v15246_v27 = vld [vmem:[#allocation171_spill] sm:$0xff] }
 0x945   :  { %v8035_v37 = vadd.bf16 %v8003_v38, %v15226_v53 }
 0x946   :  { %v7901_v57 = vpop.f32.mrb[160].mxu0 }
 0x947   :  { %v8067_v20 = vmax.bf16 %v14821_v33, %v8035_v37  ;;  %v7903_v28 = vpop.f32.mrb[161].mxu0  ;;  %v7902_v62 = vadd.f32 %v7901_v57, %v13875_v56 }
 0x948   :  { %v7904_v34 = vadd.f32 %v7903_v28, %v13872_v2  ;;  %v7905_v41 = vpop.f32.mrb[162].mxu0 }
 0x949   :  { %v7906_v40 = vadd.f32 %v7905_v41, %v13875_v56  ;;  %v7907_v48 = vpop.f32.mrb[163].mxu0  ;;  %9974 = vmatmul.mubr.bf16.gmra.mrb[172].mxu1 %v8067_v20  ;;  %v14128_v41 = vld [vmem:[%s14635_s20] ss:$0 sm:$0xff] }
 0x94a   :  { %v7908_v54 = vadd.f32 %v7907_v48, %v13872_v2  ;;  %9065 = vperm.xlu0 %10004, %v7904_v34   ;;  %v15239_v48 = vld [vmem:[#allocation169_spill] sm:$0xff] }
 0x94b   :  { %v8004_v14 = vpack.c.bf16 %v7906_v40, %v7902_v62 }
 0x94c   :  { %9070 = vperm.xlu1 %10005, %v7908_v54   ;;  %v15240_v54 = vld [vmem:[#allocation167_spill] sm:$0xff] }
 0x94d   :  { %v8036_v6 = vadd.bf16 %v8004_v14, %v15229_v8  ;;  %v15241_v14 = vpack.c.bf16 %v15239_v48, %v15240_v54 }
 0x94e   :  { %v7911_v26 = vpop.f32.mrb[164].mxu0 }
 0x94f   :  { %v7913_v23 = vpop.f32.mrb[165].mxu0  ;;  %v8068_v19 = vmax.bf16 %v14821_v33, %v8036_v6  ;;  %v7912_v31 = vadd.f32 %v7911_v26, %v13875_v56 }
 0x950   :  { %v7914_v1 = vadd.f32 %v7913_v23, %v13872_v2  ;;  %v7915_v12 = vpop.f32.mrb[166].mxu0 }
 0x951   :  { %v7916_v32 = vadd.f32 %v7915_v12, %v13875_v56  ;;  %v7917_v39 = vpop.f32.mrb[167].mxu0  ;;  %9977 = vmatprep.mubr.bf16.mxu1 %v8068_v19 }
 0x952   :  { %v7918_v11 = vadd.f32 %v7917_v39, %v13872_v2  ;;  %9075 = vperm.xlu0 %10004, %v7914_v1  }
 0x953   :  { %v8005_v24 = vpack.c.bf16 %v7916_v32, %v7912_v31 }
 0x954   :  { %9080 = vperm.xlu1 %10005, %v7918_v11  }
 0x955   :  { %v8037_v5 = vadd.bf16 %v8005_v24, %v15232_v0 }
 0x956   :  { %v7921_v51 = vpop.f32.mrb[168].mxu0 }
 0x957   :  { %v8069_v3 = vmax.bf16 %v14821_v33, %v8037_v5  ;;  %v7923_v25 = vpop.f32.mrb[169].mxu0  ;;  %v7922_v63 = vadd.f32 %v7921_v51, %v13875_v56 }
 0x958   :  { %v7924_v43 = vadd.f32 %v7923_v25, %v13872_v2  ;;  %v7925_v29 = vpop.f32.mrb[170].mxu0 }
 0x959   :  { %v7926_v45 = vadd.f32 %v7925_v29, %v13875_v56  ;;  %v7927_v58 = vpop.f32.mrb[171].mxu0  ;;  %9978 = vmatmul.mubr.bf16.gmra.mrb[176].mxu1 %v8069_v3  ;;  %v15242_v29 = vld [vmem:[#allocation168_spill] sm:$0xff] }
 0x95a   :  { %v7928_v36 = vadd.f32 %v7927_v58, %v13872_v2  ;;  %9085 = vperm.xlu0 %10004, %v7924_v43  }
 0x95b   :  { %v8006_v4 = vpack.c.bf16 %v7926_v45, %v7922_v63  ;;  %v15243_v63 = vld [vmem:[#allocation166_spill] sm:$0xff] }
 0x95c   :  { %9090 = vperm.xlu1 %10005, %v7928_v36   ;;  %v15244_v45 = vpack.c.bf16 %v15242_v29, %v15243_v63 }
 0x95d   :  { %v8038_v49 = vadd.bf16 %v8006_v4, %v15235_v46 }
 0x95e   :  { %v7931_v59 = vpop.f32.mrb[172].mxu0 }
 0x95f   :  { %v7933_v61 = vpop.f32.mrb[173].mxu0  ;;  %v8070_v42 = vmax.bf16 %v14821_v33, %v8038_v49  ;;  %v7932_v50 = vadd.f32 %v7931_v59, %v13875_v56 }
 0x960   :  { %v7934_v16 = vadd.f32 %v7933_v61, %v13872_v2  ;;  %v7935_v7 = vpop.f32.mrb[174].mxu0 }
 0x961   :  { %v7936_v10 = vadd.f32 %v7935_v7, %v13875_v56  ;;  %v7937_v13 = vpop.f32.mrb[175].mxu0  ;;  %9981 = vmatprep.mubr.bf16.mxu1 %v8070_v42 }
 0x962   :  { %v7938_v15 = vadd.f32 %v7937_v13, %v13872_v2  ;;  %9095 = vperm.xlu0 %10004, %v7934_v16  }
 0x963   :  { %v8007_v47 = vpack.c.bf16 %v7936_v10, %v7932_v50 }
 0x964   :  { %9100 = vperm.xlu1 %10005, %v7938_v15  }
 0x965   :  { %v8039_v60 = vadd.bf16 %v8007_v47, %v15238_v30  ;;  %v15247_v30 = vpack.c.bf16 %v15245_v52, %v15246_v27 }
 0x966   :  { %v7941_v38 = vpop.f32.mrb[176].mxu0 }
 0x967   :  { %v8071_v17 = vmax.bf16 %v14821_v33, %v8039_v60  ;;  %v7943_v44 = vpop.f32.mrb[177].mxu0  ;;  %v7942_v57 = vadd.f32 %v7941_v38, %v13875_v56 }
 0x968   :  { %v7944_v53 = vadd.f32 %v7943_v44, %v13872_v2  ;;  %v7945_v37 = vpop.f32.mrb[178].mxu0 }
 0x969   :  { %v7946_v20 = vadd.f32 %v7945_v37, %v13875_v56  ;;  %v7947_v28 = vpop.f32.mrb[179].mxu0  ;;  %9982 = vmatmul.mubr.bf16.gmra.mrb[180].mxu1 %v8071_v17 }
 0x96a   :  { %v7948_v34 = vadd.f32 %v7947_v28, %v13872_v2  ;;  %9105 = vperm.xlu0 %10004, %v7944_v53  }
 0x96b   :  { %v8008_v62 = vpack.c.bf16 %v7946_v20, %v7942_v57 }
 0x96c   :  { %9110 = vperm.xlu1 %10005, %v7948_v34   ;;  %v9931_v40 = vpop.f32.mrb[128].mxu1 }
 0x96d   :  { %v8040_v18 = vadd.bf16 %v8008_v62, %v15241_v14  ;;  %v8190_v22 = vadd.f32 %v9931_v40, %v14128_v41  ;;  %v8181_v8 = vpop.f32.mrb[129].mxu1 }
 0x96e   :  { %v8182_v6 = vadd.f32 %v14128_v41, %v8181_v8  ;;  %v7951_v26 = vpop.f32.mrb[180].mxu0  ;;  %v9932_v23 = vpop.f32.mrb[130].mxu1 }
 0x96f   :  { %v9703_v19 = vmul.f32 -1.442695, %v8190_v22  ;;  %v8193_v1 = vadd.f32 %v9932_v23, %v14128_v41  ;;  %v7953_v12 = vpop.f32.mrb[181].mxu0  ;;  %v8184_v31 = vpop.f32.mrb[131].mxu1  ;;  %v8072_v32 = vmax.bf16 %v14821_v33, %v8040_v18  ;;  %v7952_v9 = vadd.f32 %v7951_v26, %v13875_v56 }
 0x970   :  { %v9701_v39 = vmul.f32 -1.442695, %v8182_v6  ;;  %v7954_v11 = vadd.f32 %v7953_v12, %v13872_v2  ;;  %v8185_v24 = vadd.f32 %v14128_v41, %v8184_v31  ;;  %v7955_v21 = vpop.f32.mrb[182].mxu0 }
 0x971   :  { %10458 = vpow2.f32 %v9703_v19  ;;  %v9704_v0 = vmul.f32 -1.442695, %v8193_v1  ;;  %v7956_v5 = vadd.f32 %v7955_v21, %v13875_v56  ;;  %v7957_v51 = vpop.f32.mrb[183].mxu0  ;;  %9985 = vmatprep.mubr.bf16.mxu1 %v8072_v32  ;;  %v15248_v19 = vlaneseq  ;;  %v15250_v21 = vld [vmem:[#allocation170_spill] sm:$0xff] }
 0x972   :  { %10460 = vpow2.f32 %v9701_v39  ;;  %v9702_v3 = vmul.f32 -1.442695, %v8185_v24  ;;  %v7958_v25 = vadd.f32 %v7957_v51, %v13872_v2  ;;  %9115 = vperm.xlu0 %10004, %v7954_v11   ;;  %v8836_v11 = vpop.permute.xlu1 %8835  ;;  %v8826_v24 = vpop.permute.xlu0 %8825 }
 0x973   :  { %10462 = vpow2.f32 %v9704_v0  ;;  %v8009_v43 = vpack.c.bf16 %v7956_v5, %v7952_v9  ;;  %v14162_v1 = vand.u32 127, %v15248_v19 }
 0x974   :  { %10464 = vpow2.f32 %v9702_v3  ;;  %9120 = vperm.xlu1 %10005, %v7958_v25  }
 0x975   :  { %v8041_v58 = vadd.bf16 %v8009_v43, %v15244_v45  ;;  %vm8822_vm1 = vcmp.lt.s32.totalorder %v14162_v1, 3 }
 0x976   :  { %v7961_v36 = vpop.f32.mrb[184].mxu0  ;;  %v8841_v43 = vpop.permute.xlu1 %8840 }
 0x977   :  { %v8073_v4 = vmax.bf16 %v14821_v33, %v8041_v58  ;;  %v7963_v55 = vpop.f32.mrb[185].mxu0  ;;  %v7962_v49 = vadd.f32 %v7961_v36, %v13875_v56  ;;  %v8831_v45 = vpop.permute.xlu0 %8830 }
 0x978   :  { %v7964_v35 = vadd.f32 %v7963_v55, %v13872_v2  ;;  %v7965_v46 = vpop.f32.mrb[186].mxu0 }
 0x979   :  { %v7966_v59 = vadd.f32 %v7965_v46, %v13875_v56  ;;  %v7967_v61 = vpop.f32.mrb[187].mxu0  ;;  %9986 = vmatmul.mubr.bf16.gmra.mrb[184].mxu1 %v8073_v4 }
 0x97a   :  { %v7968_v42 = vadd.f32 %v7967_v61, %v13872_v2  ;;  %9125 = vperm.xlu0 %10004, %v7964_v35  }
 0x97b   :  { %v10459_v16 = vpop.eup %10458  ;;  %v8010_v7 = vpack.c.bf16 %v7966_v59, %v7962_v49 }
 0x97c   :  { %v10461_v50 = vpop.eup %10460  ;;  %v8630_v10 = vadd.f32 1.0, %v10459_v16  ;;  %9130 = vperm.xlu1 %10005, %v7968_v42   ;;  %v9935_v13 = vpop.f32.mrb[132].mxu1 }
 0x97d   :  { %v10463_v15 = vpop.eup %10462  ;;  %v8628_v47 = vadd.f32 1.0, %v10461_v50  ;;  %v8042_v60 = vadd.bf16 %v8010_v7, %v15247_v30  ;;  %v8206_v38 = vadd.f32 %v9935_v13, %v14128_v41  ;;  %v8197_v17 = vpop.f32.mrb[133].mxu1 }
 0x97e   :  { %v10465_v44 = vpop.eup %10464  ;;  %10466 = vrcp.f32 %v8630_v10  ;;  %v8631_v53 = vadd.f32 1.0, %v10463_v15  ;;  %v8198_v37 = vadd.f32 %v14128_v41, %v8197_v17  ;;  %v7971_v57 = vpop.f32.mrb[188].mxu0 }
 0x97f   :  { %v9936_v20 = vpop.f32.mrb[134].mxu1  ;;  %10468 = vrcp.f32 %v8628_v47  ;;  %v8629_v28 = vadd.f32 1.0, %v10465_v44  ;;  %v9707_v34 = vmul.f32 -1.442695, %v8206_v38  ;;  %v7972_v62 = vadd.f32 %v7971_v57, %v13875_v56  ;;  %v7973_v40 = vpop.f32.mrb[189].mxu0 }
 0x980   :  { %v8200_v48 = vpop.f32.mrb[135].mxu1  ;;  %10470 = vrcp.f32 %v8631_v53  ;;  %v9705_v54 = vmul.f32 -1.442695, %v8198_v37  ;;  %v8209_v14 = vadd.f32 %v9936_v20, %v14128_v41  ;;  %v7974_v18 = vadd.f32 %v7973_v40, %v13872_v2  ;;  %v7975_v22 = vpop.f32.mrb[190].mxu0 }
 0x981   :  { %10472 = vrcp.f32 %v8629_v28  ;;  %v8201_v8 = vadd.f32 %v14128_v41, %v8200_v48  ;;  %v7976_v6 = vadd.f32 %v7975_v22, %v13875_v56  ;;  %v7977_v26 = vpop.f32.mrb[191].mxu0  ;;  %v8074_v23 = vmax.bf16 %v14821_v33, %v8042_v60  ;;  %v15249_v56 = vld [vmem:[#allocation172_spill] sm:$0xff]  ;;  %v8846_v38 = vpop.permute.xlu0 %8845 }
 0x982   :  { %10474 = vpow2.f32 %v9707_v34  ;;  %v9708_v12 = vmul.f32 -1.442695, %v8209_v14  ;;  %v7978_v31 = vadd.f32 %v7977_v26, %v13872_v2  ;;  %9135 = vperm.xlu0 %10004, %v7974_v18   ;;  %v15251_v9 = vpack.c.bf16 %v15249_v56, %v15250_v21  ;;  %v8851_v17 = vpop.permute.xlu1 %8850 }
 0x983   :  { %10476 = vpow2.f32 %v9705_v54  ;;  %v9706_v32 = vmul.f32 -1.442695, %v8201_v8  ;;  %v8011_v39 = vpack.c.bf16 %v7976_v6, %v7972_v62  ;;  %9989 = vmatprep.mubr.bf16.mxu1 %v8074_v23 }
 0x984   :  { %10478 = vpow2.f32 %v9708_v12  ;;  %9140 = vperm.xlu1 %10005, %v7978_v31  }
 0x985   :  { %10480 = vpow2.f32 %v9706_v32  ;;  %v8043_v0 = vadd.bf16 %v8011_v39, %v15251_v9  ;;  %v8856_v53 = vpop.permute.xlu0 %8855 }
 0x986   :  { %v8861_v28 = vpop.permute.xlu1 %8860 }
 0x987   :  { %v8075_v5 = vmax.bf16 %v14821_v33, %v8043_v0 }
 0x988   :  { %v10467_v2 = vpop.eup %10466 }
 0x989   :  { %v10469_v51 = vpop.eup %10468  ;;  %v9145_v3 = vsel %vm8822_vm1, %v10467_v2, %v8836_v11  ;;  %9990 = vmatmul.mubr.bf16.gmra.mrb[188].mxu1 %v8075_v5  ;;  %v8866_v2 = vpop.permute.xlu0 %8865 }
 0x98a   :  { %v10471_v25 = vpop.eup %10470  ;;  %9210 = vst.msk [vmem:[%s14636_s21 + $0x10] sm:$0xff] %vm9207_vm2, %v9145_v3  ;;  %v9143_v29 = vsel %vm8822_vm1, %v10469_v51, %v8826_v24  ;;  %v8871_v51 = vpop.permute.xlu1 %8870 }
 0x98b   :  { %v10473_v63 = vpop.eup %10472  ;;  %9208 = vst.msk [vmem:[%s14636_s21] sm:$0xff] %vm9207_vm2, %v9143_v29  ;;  %v9146_v33 = vsel %vm8822_vm1, %v10471_v25, %v8841_v43 }
 0x98c   :  { %v10475_v58 = vpop.eup %10474  ;;  %9211 = vst.msk [vmem:[%s14636_s21 + $0x18] sm:$0xff] %vm9207_vm2, %v9146_v33  ;;  %v9144_v36 = vsel %vm8822_vm1, %v10473_v63, %v8831_v45  ;;  %v9939_v4 = vpop.f32.mrb[136].mxu1 }
 0x98d   :  { %v10477_v55 = vpop.eup %10476  ;;  %9209 = vst.msk [vmem:[%s14636_s21 + $0x8] sm:$0xff] %vm9207_vm2, %v9144_v36  ;;  %v8634_v35 = vadd.f32 1.0, %v10475_v58  ;;  %v8222_v46 = vadd.f32 %v9939_v4, %v14128_v41  ;;  %v8213_v49 = vpop.f32.mrb[137].mxu1 }
 0x98e   :  { %v10479_v59 = vpop.eup %10478  ;;  %v8632_v61 = vadd.f32 1.0, %v10477_v55  ;;  %v8214_v42 = vadd.f32 %v14128_v41, %v8213_v49  ;;  %v9940_v16 = vpop.f32.mrb[138].mxu1 }
 0x98f   :  { %v10481_v7 = vpop.eup %10480  ;;  %10482 = vrcp.f32 %v8634_v35  ;;  %v8635_v50 = vadd.f32 1.0, %v10479_v59  ;;  %v9711_v10 = vmul.f32 -1.442695, %v8222_v46  ;;  %v8225_v13 = vadd.f32 %v9940_v16, %v14128_v41  ;;  %v8216_v15 = vpop.f32.mrb[139].mxu1 }
 0x990   :  { %10484 = vrcp.f32 %v8632_v61  ;;  %v8633_v47 = vadd.f32 1.0, %v10481_v7  ;;  %v9709_v52 = vmul.f32 -1.442695, %v8214_v42  ;;  %v8217_v27 = vadd.f32 %v14128_v41, %v8216_v15  ;;  %v8876_v25 = vpop.permute.xlu0 %8875  ;;  %v8881_v45 = vpop.permute.xlu1 %8880 }
 0x991   :  { %10486 = vrcp.f32 %v8635_v50  ;;  %v9712_v30 = vmul.f32 -1.442695, %v8225_v13 }
 0x992   :  { %10488 = vrcp.f32 %v8633_v47  ;;  %v9710_v60 = vmul.f32 -1.442695, %v8217_v27 }
 0x993   :  { %10490 = vpow2.f32 %v9711_v10 }
 0x994   :  { %10492 = vpow2.f32 %v9709_v52 }
 0x995   :  { %10494 = vpow2.f32 %v9712_v30 }
 0x996   :  { %10496 = vpow2.f32 %v9710_v60 }
 0x999   :  { %v10483_v44 = vpop.eup %10482 }
 0x99a   :  { %v10485_v37 = vpop.eup %10484  ;;  %v9149_v57 = vsel %vm8822_vm1, %v10483_v44, %v8856_v53  ;;  %v8886_v44 = vpop.permute.xlu0 %8885 }
 0x99b   :  { %v10487_v20 = vpop.eup %10486  ;;  %9214 = vst.msk [vmem:[%s14636_s21 + $0x30] sm:$0xff] %vm9207_vm2, %v9149_v57  ;;  %v9147_v34 = vsel %vm8822_vm1, %v10485_v37, %v8846_v38  ;;  %v8891_v53 = vpop.permute.xlu1 %8890 }
 0x99c   :  { %v10489_v62 = vpop.eup %10488  ;;  %9212 = vst.msk [vmem:[%s14636_s21 + $0x20] sm:$0xff] %vm9207_vm2, %v9147_v34  ;;  %v9150_v40 = vsel %vm8822_vm1, %v10487_v20, %v8861_v28  ;;  %v9943_v48 = vpop.f32.mrb[140].mxu1 }
 0x99d   :  { %v10491_v54 = vpop.eup %10490  ;;  %9215 = vst.msk [vmem:[%s14636_s21 + $0x38] sm:$0xff] %vm9207_vm2, %v9150_v40  ;;  %v9148_v14 = vsel %vm8822_vm1, %v10489_v62, %v8851_v17  ;;  %v8238_v18 = vadd.f32 %v9943_v48, %v14128_v41  ;;  %v8229_v22 = vpop.f32.mrb[141].mxu1 }
 0x99e   :  { %v10493_v8 = vpop.eup %10492  ;;  %9213 = vst.msk [vmem:[%s14636_s21 + $0x28] sm:$0xff] %vm9207_vm2, %v9148_v14  ;;  %v8638_v6 = vadd.f32 1.0, %v10491_v54  ;;  %v8230_v26 = vadd.f32 %v14128_v41, %v8229_v22  ;;  %v9944_v23 = vpop.f32.mrb[142].mxu1 }
 0x99f   :  { %v10495_v19 = vpop.eup %10494  ;;  %v8636_v12 = vadd.f32 1.0, %v10493_v8  ;;  %v8241_v31 = vadd.f32 %v9944_v23, %v14128_v41  ;;  %v8232_v32 = vpop.f32.mrb[143].mxu1  ;;  %v9715_v24 = vmul.f32 -1.442695, %v8238_v18 }
 0x9a0   :  { %v10497_v39 = vpop.eup %10496  ;;  %10498 = vrcp.f32 %v8638_v6  ;;  %v8639_v11 = vadd.f32 1.0, %v10495_v19  ;;  %v8233_v56 = vadd.f32 %v14128_v41, %v8232_v32  ;;  %v9713_v9 = vmul.f32 -1.442695, %v8230_v26  ;;  %v8896_v57 = vpop.permute.xlu0 %8895 }
 0x9a1   :  { %10500 = vrcp.f32 %v8636_v12  ;;  %v8637_v21 = vadd.f32 1.0, %v10497_v39  ;;  %v9716_v0 = vmul.f32 -1.442695, %v8241_v31  ;;  %v8901_v40 = vpop.permute.xlu1 %8900 }
 0x9a2   :  { %10502 = vrcp.f32 %v8639_v11  ;;  %v9714_v5 = vmul.f32 -1.442695, %v8233_v56 }
 0x9a3   :  { %10504 = vrcp.f32 %v8637_v21 }
 0x9a4   :  { %10506 = vpow2.f32 %v9715_v24 }
 0x9a5   :  { %10508 = vpow2.f32 %v9713_v9 }
 0x9a6   :  { %10510 = vpow2.f32 %v9716_v0 }
 0x9a7   :  { %10512 = vpow2.f32 %v9714_v5 }
 0x9aa   :  { %v10499_v3 = vpop.eup %10498 }
 0x9ab   :  { %v10501_v43 = vpop.eup %10500  ;;  %v9153_v29 = vsel %vm8822_vm1, %v10499_v3, %v8876_v25  ;;  %v8906_v3 = vpop.permute.xlu0 %8905 }
 0x9ac   :  { %v10503_v63 = vpop.eup %10502  ;;  %9218 = vst.msk [vmem:[%s14636_s21 + $0x50] sm:$0xff] %vm9207_vm2, %v9153_v29  ;;  %v9151_v33 = vsel %vm8822_vm1, %v10501_v43, %v8866_v2  ;;  %v9947_v58 = vpop.f32.mrb[144].mxu1 }
 0x9ad   :  { %v10505_v36 = vpop.eup %10504  ;;  %9216 = vst.msk [vmem:[%s14636_s21 + $0x40] sm:$0xff] %vm9207_vm2, %v9151_v33  ;;  %v9154_v4 = vsel %vm8822_vm1, %v10503_v63, %v8881_v45  ;;  %v8254_v55 = vadd.f32 %v9947_v58, %v14128_v41  ;;  %v8245_v35 = vpop.f32.mrb[145].mxu1 }
 0x9ae   :  { %v10507_v46 = vpop.eup %10506  ;;  %9219 = vst.msk [vmem:[%s14636_s21 + $0x58] sm:$0xff] %vm9207_vm2, %v9154_v4  ;;  %v9152_v49 = vsel %vm8822_vm1, %v10505_v36, %v8871_v51  ;;  %v8246_v59 = vadd.f32 %v14128_v41, %v8245_v35  ;;  %v9948_v61 = vpop.f32.mrb[146].mxu1 }
 0x9af   :  { %v10509_v42 = vpop.eup %10508  ;;  %9217 = vst.msk [vmem:[%s14636_s21 + $0x48] sm:$0xff] %vm9207_vm2, %v9152_v49  ;;  %v8642_v16 = vadd.f32 1.0, %v10507_v46  ;;  %v8257_v7 = vadd.f32 %v9948_v61, %v14128_v41  ;;  %v8248_v50 = vpop.f32.mrb[147].mxu1  ;;  %v9719_v27 = vmul.f32 -1.442695, %v8254_v55 }
 0x9b0   :  { %v10511_v10 = vpop.eup %10510  ;;  %v8640_v13 = vadd.f32 1.0, %v10509_v42  ;;  %v8249_v15 = vadd.f32 %v14128_v41, %v8248_v50  ;;  %v9717_v60 = vmul.f32 -1.442695, %v8246_v59  ;;  %v8911_v25 = vpop.permute.xlu1 %8910 }
 0x9b1   :  { %v10513_v47 = vpop.eup %10512  ;;  %10514 = vrcp.f32 %v8642_v16  ;;  %v8643_v52 = vadd.f32 1.0, %v10511_v10  ;;  %v9720_v38 = vmul.f32 -1.442695, %v8257_v7  ;;  %v8916_v63 = vpop.permute.xlu0 %8915 }
 0x9b2   :  { %10516 = vrcp.f32 %v8640_v13  ;;  %v8641_v30 = vadd.f32 1.0, %v10513_v47  ;;  %v9718_v17 = vmul.f32 -1.442695, %v8249_v15 }
 0x9b3   :  { %10518 = vrcp.f32 %v8643_v52 }
 0x9b4   :  { %10520 = vrcp.f32 %v8641_v30  ;;  %v8921_v46 = vpop.permute.xlu1 %8920 }
 0x9b5   :  { %10522 = vpow2.f32 %v9719_v27 }
 0x9b6   :  { %10524 = vpow2.f32 %v9717_v60 }
 0x9b7   :  { %10526 = vpow2.f32 %v9720_v38 }
 0x9b8   :  { %10528 = vpow2.f32 %v9718_v17 }
 0x9bb   :  { %v10515_v37 = vpop.eup %10514 }
 0x9bc   :  { %v10517_v20 = vpop.eup %10516  ;;  %v9157_v28 = vsel %vm8822_vm1, %v10515_v37, %v8896_v57  ;;  %v9951_v34 = vpop.f32.mrb[148].mxu1 }
 0x9bd   :  { %v10519_v62 = vpop.eup %10518  ;;  %9222 = vst.msk [vmem:[%s14636_s21 + $0x70] sm:$0xff] %vm9207_vm2, %v9157_v28  ;;  %v9155_v48 = vsel %vm8822_vm1, %v10517_v20, %v8886_v44  ;;  %v8270_v54 = vadd.f32 %v9951_v34, %v14128_v41  ;;  %v8261_v14 = vpop.f32.mrb[149].mxu1 }
 0x9be   :  { %v10521_v18 = vpop.eup %10520  ;;  %9220 = vst.msk [vmem:[%s14636_s21 + $0x60] sm:$0xff] %vm9207_vm2, %v9155_v48  ;;  %v9158_v22 = vsel %vm8822_vm1, %v10519_v62, %v8901_v40  ;;  %v8262_v8 = vadd.f32 %v14128_v41, %v8261_v14  ;;  %v9952_v6 = vpop.f32.mrb[150].mxu1 }
 0x9bf   :  { %v10523_v26 = vpop.eup %10522  ;;  %9223 = vst.msk [vmem:[%s14636_s21 + $0x78] sm:$0xff] %vm9207_vm2, %v9158_v22  ;;  %v9156_v23 = vsel %vm8822_vm1, %v10521_v18, %v8891_v53  ;;  %v9723_v19 = vmul.f32 -1.442695, %v8270_v54  ;;  %v8273_v12 = vadd.f32 %v9952_v6, %v14128_v41  ;;  %v8264_v31 = vpop.f32.mrb[151].mxu1 }
 0x9c0   :  { %v10525_v32 = vpop.eup %10524  ;;  %9221 = vst.msk [vmem:[%s14636_s21 + $0x68] sm:$0xff] %vm9207_vm2, %v9156_v23  ;;  %v8646_v39 = vadd.f32 1.0, %v10523_v26  ;;  %v8265_v11 = vadd.f32 %v14128_v41, %v8264_v31  ;;  %v9721_v0 = vmul.f32 -1.442695, %v8262_v8  ;;  %v8926_v37 = vpop.permute.xlu0 %8925 }
 0x9c1   :  { %v10527_v24 = vpop.eup %10526  ;;  %v8644_v56 = vadd.f32 1.0, %v10525_v32  ;;  %10530 = vpow2.f32 %v9723_v19  ;;  %v9724_v2 = vmul.f32 -1.442695, %v8273_v12  ;;  %v8931_v34 = vpop.permute.xlu1 %8930 }
 0x9c2   :  { %v10529_v21 = vpop.eup %10528  ;;  %10532 = vrcp.f32 %v8646_v39  ;;  %v8647_v9 = vadd.f32 1.0, %v10527_v24  ;;  %v9722_v51 = vmul.f32 -1.442695, %v8265_v11 }
 0x9c3   :  { %10534 = vrcp.f32 %v8644_v56  ;;  %v8645_v5 = vadd.f32 1.0, %v10529_v21 }
 0x9c4   :  { %10536 = vrcp.f32 %v8647_v9  ;;  %v8936_v20 = vpop.permute.xlu0 %8935 }
 0x9c5   :  { %10538 = vrcp.f32 %v8645_v5  ;;  %v8941_v26 = vpop.permute.xlu1 %8940 }
 0x9c6   :  { %10540 = vpow2.f32 %v9721_v0 }
 0x9c7   :  { %10542 = vpow2.f32 %v9724_v2 }
 0x9c8   :  { %10544 = vpow2.f32 %v9722_v51 }
 0x9cb   :  { %v10531_v43 = vpop.eup %10530 }
 0x9cc   :  { %v10533_v29 = vpop.eup %10532  ;;  %v8650_v45 = vadd.f32 1.0, %v10531_v43  ;;  %v9955_v33 = vpop.f32.mrb[152].mxu1 }
 0x9cd   :  { %v10535_v58 = vpop.eup %10534  ;;  %v9161_v36 = vsel %vm8822_vm1, %v10533_v29, %v8916_v63  ;;  %v8286_v4 = vadd.f32 %v9955_v33, %v14128_v41  ;;  %v8277_v55 = vpop.f32.mrb[153].mxu1 }
 0x9ce   :  { %v10537_v35 = vpop.eup %10536  ;;  %9226 = vst.msk [vmem:[%s14636_s21 + $0x90] sm:$0xff] %vm9207_vm2, %v9161_v36  ;;  %v9159_v49 = vsel %vm8822_vm1, %v10535_v58, %v8906_v3  ;;  %10546 = vrcp.f32 %v8650_v45  ;;  %v8278_v59 = vadd.f32 %v14128_v41, %v8277_v55  ;;  %v9956_v61 = vpop.f32.mrb[154].mxu1 }
 0x9cf   :  { %v10539_v42 = vpop.eup %10538  ;;  %9224 = vst.msk [vmem:[%s14636_s21 + $0x80] sm:$0xff] %vm9207_vm2, %v9159_v49  ;;  %v9162_v16 = vsel %vm8822_vm1, %v10537_v35, %v8921_v46  ;;  %v9727_v7 = vmul.f32 -1.442695, %v8286_v4  ;;  %v8289_v50 = vadd.f32 %v9956_v61, %v14128_v41  ;;  %v8280_v10 = vpop.f32.mrb[155].mxu1 }
 0x9d0   :  { %v10541_v13 = vpop.eup %10540  ;;  %9227 = vst.msk [vmem:[%s14636_s21 + $0x98] sm:$0xff] %vm9207_vm2, %v9162_v16  ;;  %v9160_v15 = vsel %vm8822_vm1, %v10539_v42, %v8911_v25  ;;  %v9725_v47 = vmul.f32 -1.442695, %v8278_v59  ;;  %v8281_v52 = vadd.f32 %v14128_v41, %v8280_v10  ;;  %v8946_v43 = vpop.permute.xlu0 %8945 }
 0x9d1   :  { %v10543_v27 = vpop.eup %10542  ;;  %9225 = vst.msk [vmem:[%s14636_s21 + $0x88] sm:$0xff] %vm9207_vm2, %v9160_v15  ;;  %v8648_v30 = vadd.f32 1.0, %v10541_v13  ;;  %10548 = vpow2.f32 %v9727_v7  ;;  %v9728_v17 = vmul.f32 -1.442695, %v8289_v50  ;;  %v8951_v33 = vpop.permute.xlu1 %8950 }
 0x9d2   :  { %v10545_v60 = vpop.eup %10544  ;;  %v8651_v38 = vadd.f32 1.0, %v10543_v27  ;;  %10550 = vpow2.f32 %v9725_v47  ;;  %v9726_v53 = vmul.f32 -1.442695, %v8281_v52 }
 0x9d3   :  { %10552 = vrcp.f32 %v8648_v30  ;;  %v8649_v44 = vadd.f32 1.0, %v10545_v60 }
 0x9d4   :  { %10554 = vrcp.f32 %v8651_v38  ;;  %v8956_v63 = vpop.permute.xlu0 %8955 }
 0x9d5   :  { %10556 = vrcp.f32 %v8649_v44  ;;  %v8961_v59 = vpop.permute.xlu1 %8960 }
 0x9d6   :  { %10558 = vpow2.f32 %v9728_v17 }
 0x9d7   :  { %10560 = vpow2.f32 %v9726_v53 }
 0x9d8   :  { %v10547_v57 = vpop.eup %10546 }
 0x9d9   :  { %v9165_v28 = vsel %vm8822_vm1, %v10547_v57, %v8936_v20  ;;  %v8966_v20 = vpop.permute.xlu0 %8965 }
 0x9da   :  { %9230 = vst.msk [vmem:[%s14636_s21 + $0xb0] sm:$0xff] %vm9207_vm2, %v9165_v28 }
 0x9db   :  { %v10549_v62 = vpop.eup %10548 }
 0x9dc   :  { %v10551_v40 = vpop.eup %10550  ;;  %v8654_v48 = vadd.f32 1.0, %v10549_v62  ;;  %v9959_v54 = vpop.f32.mrb[156].mxu1 }
 0x9dd   :  { %v10553_v14 = vpop.eup %10552  ;;  %v8652_v18 = vadd.f32 1.0, %v10551_v40  ;;  %v8302_v22 = vadd.f32 %v9959_v54, %v14128_v41  ;;  %v8293_v8 = vpop.f32.mrb[157].mxu1 }
 0x9de   :  { %v10555_v6 = vpop.eup %10554  ;;  %v9163_v23 = vsel %vm8822_vm1, %v10553_v14, %v8926_v37  ;;  %10562 = vrcp.f32 %v8654_v48  ;;  %v8294_v19 = vadd.f32 %v14128_v41, %v8293_v8  ;;  %v9960_v12 = vpop.f32.mrb[158].mxu1 }
 0x9df   :  { %v10557_v31 = vpop.eup %10556  ;;  %9228 = vst.msk [vmem:[%s14636_s21 + $0xa0] sm:$0xff] %vm9207_vm2, %v9163_v23  ;;  %v9166_v32 = vsel %vm8822_vm1, %v10555_v6, %v8941_v26  ;;  %10564 = vrcp.f32 %v8652_v18  ;;  %v9731_v39 = vmul.f32 -1.442695, %v8302_v22  ;;  %v8305_v11 = vadd.f32 %v9960_v12, %v14128_v41  ;;  %v8296_v24 = vpop.f32.mrb[159].mxu1 }
 0x9e0   :  { %v10559_v56 = vpop.eup %10558  ;;  %9231 = vst.msk [vmem:[%s14636_s21 + $0xb8] sm:$0xff] %vm9207_vm2, %v9166_v32  ;;  %v9164_v21 = vsel %vm8822_vm1, %v10557_v31, %v8931_v34  ;;  %v9729_v9 = vmul.f32 -1.442695, %v8294_v19  ;;  %v8297_v0 = vadd.f32 %v14128_v41, %v8296_v24  ;;  %v8971_v34 = vpop.permute.xlu1 %8970 }
 0x9e1   :  { %v10561_v5 = vpop.eup %10560  ;;  %9229 = vst.msk [vmem:[%s14636_s21 + $0xa8] sm:$0xff] %vm9207_vm2, %v9164_v21  ;;  %v8655_v2 = vadd.f32 1.0, %v10559_v56  ;;  %10566 = vpow2.f32 %v9731_v39  ;;  %v9732_v51 = vmul.f32 -1.442695, %v8305_v11  ;;  %v8976_v62 = vpop.permute.xlu0 %8975 }
 0x9e2   :  { %v8653_v3 = vadd.f32 1.0, %v10561_v5  ;;  %10568 = vpow2.f32 %v9729_v9  ;;  %v9730_v25 = vmul.f32 -1.442695, %v8297_v0 }
 0x9e3   :  { %10570 = vrcp.f32 %v8655_v2 }
 0x9e4   :  { %10572 = vrcp.f32 %v8653_v3  ;;  %v8981_v22 = vpop.permute.xlu1 %8980 }
 0x9e5   :  { %10574 = vpow2.f32 %v9732_v51 }
 0x9e6   :  { %10576 = vpow2.f32 %v9730_v25 }
 0x9e8   :  { %v10563_v29 = vpop.eup %10562 }
 0x9e9   :  { %v10565_v45 = vpop.eup %10564  ;;  %v9169_v58 = vsel %vm8822_vm1, %v10563_v29, %v8956_v63  ;;  %v8986_v63 = vpop.permute.xlu0 %8985 }
 0x9ea   :  { %9234 = vst.msk [vmem:[%s14636_s21 + $0xd0] sm:$0xff] %vm9207_vm2, %v9169_v58  ;;  %v9167_v36 = vsel %vm8822_vm1, %v10565_v45, %v8946_v43 }
 0x9eb   :  { %v10567_v4 = vpop.eup %10566  ;;  %9232 = vst.msk [vmem:[%s14636_s21 + $0xc0] sm:$0xff] %vm9207_vm2, %v9167_v36 }
 0x9ec   :  { %v10569_v55 = vpop.eup %10568  ;;  %v8658_v35 = vadd.f32 1.0, %v10567_v4  ;;  %v9963_v46 = vpop.f32.mrb[160].mxu1 }
 0x9ed   :  { %v10571_v49 = vpop.eup %10570  ;;  %v8656_v61 = vadd.f32 1.0, %v10569_v55  ;;  %v8318_v42 = vadd.f32 %v9963_v46, %v14128_v41  ;;  %v8309_v16 = vpop.f32.mrb[161].mxu1 }
 0x9ee   :  { %v10573_v7 = vpop.eup %10572  ;;  %v9170_v50 = vsel %vm8822_vm1, %v10571_v49, %v8961_v59  ;;  %10578 = vrcp.f32 %v8658_v35  ;;  %v8310_v10 = vadd.f32 %v14128_v41, %v8309_v16  ;;  %v9964_v13 = vpop.f32.mrb[162].mxu1 }
 0x9ef   :  { %v10575_v15 = vpop.eup %10574  ;;  %9235 = vst.msk [vmem:[%s14636_s21 + $0xd8] sm:$0xff] %vm9207_vm2, %v9170_v50  ;;  %v9168_v47 = vsel %vm8822_vm1, %v10573_v7, %v8951_v33  ;;  %10580 = vrcp.f32 %v8656_v61  ;;  %v9735_v52 = vmul.f32 -1.442695, %v8318_v42  ;;  %v8321_v27 = vadd.f32 %v9964_v13, %v14128_v41  ;;  %v8312_v30 = vpop.f32.mrb[163].mxu1 }
 0x9f0   :  { %v10577_v60 = vpop.eup %10576  ;;  %9233 = vst.msk [vmem:[%s14636_s21 + $0xc8] sm:$0xff] %vm9207_vm2, %v9168_v47  ;;  %v8659_v38 = vadd.f32 1.0, %v10575_v15  ;;  %v9733_v17 = vmul.f32 -1.442695, %v8310_v10  ;;  %v8313_v44 = vadd.f32 %v14128_v41, %v8312_v30  ;;  %v8991_v33 = vpop.permute.xlu1 %8990 }
 0x9f1   :  { %v8657_v53 = vadd.f32 1.0, %v10577_v60  ;;  %10582 = vpow2.f32 %v9735_v52  ;;  %v9736_v37 = vmul.f32 -1.442695, %v8321_v27  ;;  %v8996_v58 = vpop.permute.xlu0 %8995 }
 0x9f2   :  { %10584 = vrcp.f32 %v8659_v38  ;;  %v9734_v57 = vmul.f32 -1.442695, %v8313_v44 }
 0x9f3   :  { %10586 = vrcp.f32 %v8657_v53 }
 0x9f4   :  { %10588 = vpow2.f32 %v9733_v17  ;;  %v9001_v35 = vpop.permute.xlu1 %9000 }
 0x9f5   :  { %10590 = vpow2.f32 %v9736_v37 }
 0x9f6   :  { %10592 = vpow2.f32 %v9734_v57 }
 0x9f8   :  { %v10579_v28 = vpop.eup %10578 }
 0x9f9   :  { %v10581_v40 = vpop.eup %10580  ;;  %v9173_v48 = vsel %vm8822_vm1, %v10579_v28, %v8976_v62  ;;  %v9011_v62 = vpop.permute.xlu1 %9010 }
 0x9fa   :  { %9238 = vst.msk [vmem:[%s14636_s21 + $0xf0] sm:$0xff] %vm9207_vm2, %v9173_v48  ;;  %v9171_v54 = vsel %vm8822_vm1, %v10581_v40, %v8966_v20 }
 0x9fb   :  { %v10583_v14 = vpop.eup %10582  ;;  %9236 = vst.msk [vmem:[%s14636_s21 + $0xe0] sm:$0xff] %vm9207_vm2, %v9171_v54 }
 0x9fc   :  { %v10585_v18 = vpop.eup %10584  ;;  %v8662_v8 = vadd.f32 1.0, %v10583_v14  ;;  %v9967_v6 = vpop.f32.mrb[164].mxu1 }
 0x9fd   :  { %v10587_v26 = vpop.eup %10586  ;;  %v9174_v23 = vsel %vm8822_vm1, %v10585_v18, %v8981_v22  ;;  %v8334_v19 = vadd.f32 %v9967_v6, %v14128_v41  ;;  %v8325_v12 = vpop.f32.mrb[165].mxu1 }
 0x9fe   :  { %v10589_v31 = vpop.eup %10588  ;;  %9239 = vst.msk [vmem:[%s14636_s21 + $0xf8] sm:$0xff] %vm9207_vm2, %v9174_v23  ;;  %v9172_v32 = vsel %vm8822_vm1, %v10587_v26, %v8971_v34  ;;  %10594 = vrcp.f32 %v8662_v8  ;;  %v8326_v39 = vadd.f32 %v14128_v41, %v8325_v12  ;;  %v9968_v11 = vpop.f32.mrb[166].mxu1 }
 0x9ff   :  { %v10591_v24 = vpop.eup %10590  ;;  %9237 = vst.msk [vmem:[%s14636_s21 + $0xe8] sm:$0xff] %vm9207_vm2, %v9172_v32  ;;  %v8660_v56 = vadd.f32 1.0, %v10589_v31  ;;  %v8337_v21 = vadd.f32 %v9968_v11, %v14128_v41  ;;  %v8328_v9 = vpop.f32.mrb[167].mxu1  ;;  %v9739_v2 = vmul.f32 -1.442695, %v8334_v19 }
 0xa00   :  { %v10593_v0 = vpop.eup %10592  ;;  %v8663_v5 = vadd.f32 1.0, %v10591_v24  ;;  %v8329_v51 = vadd.f32 %v14128_v41, %v8328_v9  ;;  %v9737_v25 = vmul.f32 -1.442695, %v8326_v39  ;;  %v9006_v34 = vpop.permute.xlu0 %9005 }
 0xa01   :  { %10596 = vrcp.f32 %v8660_v56  ;;  %v8661_v3 = vadd.f32 1.0, %v10593_v0  ;;  %v9740_v43 = vmul.f32 -1.442695, %v8337_v21  ;;  %v9021_v8 = vpop.permute.xlu1 %9020  ;;  %v14447_v56 = vld [vmem:[%s14635_s20] ss:$0 sm:$0xff] }
 0xa02   :  { %10598 = vrcp.f32 %v8663_v5  ;;  %v9738_v29 = vmul.f32 -1.442695, %v8329_v51 }
 0xa03   :  { %10600 = vrcp.f32 %v8661_v3 }
 0xa04   :  { %10602 = vpow2.f32 %v9739_v2  ;;  %v9016_v48 = vpop.permute.xlu0 %9015 }
 0xa05   :  { %10604 = vpow2.f32 %v9737_v25 }
 0xa06   :  { %10606 = vpow2.f32 %v9740_v43 }
 0xa07   :  { %10608 = vpow2.f32 %v9738_v29 }
 0xa08   :  { %v10595_v45 = vpop.eup %10594 }
 0xa09   :  { %v9177_v36 = vsel %vm8822_vm1, %v10595_v45, %v8996_v58  ;;  %v9031_v58 = vpop.permute.xlu1 %9030 }
 0xa0a   :  { %9242 = vst.msk [vmem:[%s14636_s21 + $0x110] sm:$0xff] %vm9207_vm2, %v9177_v36 }
 0xa0b   :  { %v10597_v4 = vpop.eup %10596 }
 0xa0c   :  { %v10599_v55 = vpop.eup %10598  ;;  %v9175_v46 = vsel %vm8822_vm1, %v10597_v4, %v8986_v63  ;;  %v9971_v49 = vpop.f32.mrb[168].mxu1 }
 0xa0d   :  { %v10601_v59 = vpop.eup %10600  ;;  %9240 = vst.msk [vmem:[%s14636_s21 + $0x100] sm:$0xff] %vm9207_vm2, %v9175_v46  ;;  %v9178_v61 = vsel %vm8822_vm1, %v10599_v55, %v9001_v35  ;;  %v8350_v42 = vadd.f32 %v9971_v49, %v14128_v41  ;;  %v8341_v16 = vpop.f32.mrb[169].mxu1 }
 0xa0e   :  { %v10603_v7 = vpop.eup %10602  ;;  %9243 = vst.msk [vmem:[%s14636_s21 + $0x118] sm:$0xff] %vm9207_vm2, %v9178_v61  ;;  %v9176_v50 = vsel %vm8822_vm1, %v10601_v59, %v8991_v33  ;;  %v8342_v10 = vadd.f32 %v14128_v41, %v8341_v16  ;;  %v9972_v13 = vpop.f32.mrb[170].mxu1 }
 0xa0f   :  { %v10605_v15 = vpop.eup %10604  ;;  %9241 = vst.msk [vmem:[%s14636_s21 + $0x108] sm:$0xff] %vm9207_vm2, %v9176_v50  ;;  %v8666_v47 = vadd.f32 1.0, %v10603_v7  ;;  %v8353_v52 = vadd.f32 %v9972_v13, %v14128_v41  ;;  %v8344_v27 = vpop.f32.mrb[171].mxu1  ;;  %v9743_v53 = vmul.f32 -1.442695, %v8350_v42 }
 0xa10   :  { %v10607_v30 = vpop.eup %10606  ;;  %v8664_v60 = vadd.f32 1.0, %v10605_v15  ;;  %v8345_v38 = vadd.f32 %v14128_v41, %v8344_v27  ;;  %v9741_v57 = vmul.f32 -1.442695, %v8342_v10  ;;  %v9026_v33 = vpop.permute.xlu0 %9025 }
 0xa11   :  { %v10609_v17 = vpop.eup %10608  ;;  %10610 = vrcp.f32 %v8666_v47  ;;  %v8667_v44 = vadd.f32 1.0, %v10607_v30  ;;  %v9744_v20 = vmul.f32 -1.442695, %v8353_v52  ;;  %v9041_v7 = vpop.permute.xlu1 %9040 }
 0xa12   :  { %10612 = vrcp.f32 %v8664_v60  ;;  %v8665_v37 = vadd.f32 1.0, %v10609_v17  ;;  %v9742_v28 = vmul.f32 -1.442695, %v8345_v38 }
 0xa13   :  { %10614 = vrcp.f32 %v8667_v44 }
 0xa14   :  { %10616 = vrcp.f32 %v8665_v37  ;;  %v9036_v55 = vpop.permute.xlu0 %9035 }
 0xa15   :  { %10618 = vpow2.f32 %v9743_v53 }
 0xa16   :  { %10620 = vpow2.f32 %v9741_v57 }
 0xa17   :  { %10622 = vpow2.f32 %v9744_v20 }
 0xa18   :  { %10624 = vpow2.f32 %v9742_v28 }
 0xa1b   :  { %v10611_v40 = vpop.eup %10610 }
 0xa1c   :  { %v10613_v54 = vpop.eup %10612  ;;  %v9181_v14 = vsel %vm8822_vm1, %v10611_v40, %v9016_v48  ;;  %v9975_v18 = vpop.f32.mrb[172].mxu1 }
 0xa1d   :  { %v10615_v22 = vpop.eup %10614  ;;  %9246 = vst.msk [vmem:[%s14636_s21 + $0x130] sm:$0xff] %vm9207_vm2, %v9181_v14  ;;  %v9179_v6 = vsel %vm8822_vm1, %v10613_v54, %v9006_v34  ;;  %v8366_v26 = vadd.f32 %v9975_v18, %v14128_v41  ;;  %v8357_v23 = vpop.f32.mrb[173].mxu1 }
 0xa1e   :  { %v10617_v19 = vpop.eup %10616  ;;  %9244 = vst.msk [vmem:[%s14636_s21 + $0x120] sm:$0xff] %vm9207_vm2, %v9179_v6  ;;  %v9182_v12 = vsel %vm8822_vm1, %v10615_v22, %v9021_v8  ;;  %v8358_v31 = vadd.f32 %v14128_v41, %v8357_v23  ;;  %v9976_v32 = vpop.f32.mrb[174].mxu1 }
 0xa1f   :  { %v10619_v39 = vpop.eup %10618  ;;  %9247 = vst.msk [vmem:[%s14636_s21 + $0x138] sm:$0xff] %vm9207_vm2, %v9182_v12  ;;  %v9180_v11 = vsel %vm8822_vm1, %v10617_v19, %v9011_v62  ;;  %v9747_v24 = vmul.f32 -1.442695, %v8366_v26  ;;  %v8369_v21 = vadd.f32 %v14447_v56, %v9976_v32  ;;  %v8360_v9 = vpop.f32.mrb[175].mxu1 }
 0xa20   :  { %v10621_v41 = vpop.eup %10620  ;;  %9245 = vst.msk [vmem:[%s14636_s21 + $0x128] sm:$0xff] %vm9207_vm2, %v9180_v11  ;;  %v8670_v0 = vadd.f32 1.0, %v10619_v39  ;;  %v8361_v5 = vadd.f32 %v14447_v56, %v8360_v9  ;;  %v9745_v43 = vmul.f32 -1.442695, %v8358_v31  ;;  %v9046_v40 = vpop.permute.xlu0 %9045 }
 0xa21   :  { %v10623_v2 = vpop.eup %10622  ;;  %v8668_v51 = vadd.f32 1.0, %v10621_v41  ;;  %10626 = vpow2.f32 %v9747_v24  ;;  %v9748_v63 = vmul.f32 -1.442695, %v8369_v21  ;;  %v9051_v18 = vpop.permute.xlu1 %9050 }
 0xa22   :  { %v10625_v3 = vpop.eup %10624  ;;  %10628 = vrcp.f32 %v8670_v0  ;;  %v8671_v25 = vadd.f32 1.0, %v10623_v2  ;;  %v9746_v45 = vmul.f32 -1.442695, %v8361_v5 }
 0xa23   :  { %10630 = vrcp.f32 %v8668_v51  ;;  %v8669_v29 = vadd.f32 1.0, %v10625_v3 }
 0xa24   :  { %10632 = vrcp.f32 %v8671_v25  ;;  %v9056_v54 = vpop.permute.xlu0 %9055 }
 0xa25   :  { %10634 = vrcp.f32 %v8669_v29  ;;  %v9061_v39 = vpop.permute.xlu1 %9060 }
 0xa26   :  { %10636 = vpow2.f32 %v9745_v43 }
 0xa27   :  { %10638 = vpow2.f32 %v9748_v63 }
 0xa28   :  { %10640 = vpow2.f32 %v9746_v45 }
 0xa2b   :  { %v10627_v36 = vpop.eup %10626 }
 0xa2c   :  { %v10629_v4 = vpop.eup %10628  ;;  %v8674_v35 = vadd.f32 1.0, %v10627_v36  ;;  %v9979_v46 = vpop.f32.mrb[176].mxu1 }
 0xa2d   :  { %v10631_v49 = vpop.eup %10630  ;;  %v9185_v59 = vsel %vm8822_vm1, %v10629_v4, %v9036_v55  ;;  %v8382_v61 = vadd.f32 %v14447_v56, %v9979_v46  ;;  %v8373_v42 = vpop.f32.mrb[177].mxu1 }
 0xa2e   :  { %v10633_v16 = vpop.eup %10632  ;;  %9250 = vst.msk [vmem:[%s14636_s21 + $0x150] sm:$0xff] %vm9207_vm2, %v9185_v59  ;;  %v9183_v50 = vsel %vm8822_vm1, %v10631_v49, %v9026_v33  ;;  %10642 = vrcp.f32 %v8674_v35  ;;  %v8374_v10 = vadd.f32 %v14447_v56, %v8373_v42  ;;  %v9980_v13 = vpop.f32.mrb[178].mxu1 }
 0xa2f   :  { %v10635_v15 = vpop.eup %10634  ;;  %9248 = vst.msk [vmem:[%s14636_s21 + $0x140] sm:$0xff] %vm9207_vm2, %v9183_v50  ;;  %v9186_v47 = vsel %vm8822_vm1, %v10633_v16, %v9041_v7  ;;  %v9751_v52 = vmul.f32 -1.442695, %v8382_v61  ;;  %v8385_v27 = vadd.f32 %v14447_v56, %v9980_v13  ;;  %v8376_v30 = vpop.f32.mrb[179].mxu1 }
 0xa30   :  { %v10637_v60 = vpop.eup %10636  ;;  %9251 = vst.msk [vmem:[%s14636_s21 + $0x158] sm:$0xff] %vm9207_vm2, %v9186_v47  ;;  %v9184_v38 = vsel %vm8822_vm1, %v10635_v15, %v9031_v58  ;;  %v9749_v17 = vmul.f32 -1.442695, %v8374_v10  ;;  %v8377_v44 = vadd.f32 %v14447_v56, %v8376_v30  ;;  %v9066_v36 = vpop.permute.xlu0 %9065 }
 0xa31   :  { %v10639_v53 = vpop.eup %10638  ;;  %9249 = vst.msk [vmem:[%s14636_s21 + $0x148] sm:$0xff] %vm9207_vm2, %v9184_v38  ;;  %v8672_v37 = vadd.f32 1.0, %v10637_v60  ;;  %10644 = vpow2.f32 %v9751_v52  ;;  %v9752_v28 = vmul.f32 -1.442695, %v8385_v27  ;;  %v9071_v46 = vpop.permute.xlu1 %9070 }
 0xa32   :  { %v10641_v57 = vpop.eup %10640  ;;  %v8675_v20 = vadd.f32 1.0, %v10639_v53  ;;  %10646 = vpow2.f32 %v9749_v17  ;;  %v9750_v62 = vmul.f32 -1.442695, %v8377_v44 }
 0xa33   :  { %10648 = vrcp.f32 %v8672_v37  ;;  %v8673_v34 = vadd.f32 1.0, %v10641_v57 }
 0xa34   :  { %10650 = vrcp.f32 %v8675_v20  ;;  %v9076_v55 = vpop.permute.xlu0 %9075 }
 0xa35   :  { %10652 = vrcp.f32 %v8673_v34  ;;  %v9081_v10 = vpop.permute.xlu1 %9080 }
 0xa36   :  { %10654 = vpow2.f32 %v9752_v28 }
 0xa37   :  { %10656 = vpow2.f32 %v9750_v62 }
 0xa38   :  { %v10643_v48 = vpop.eup %10642 }
 0xa39   :  { %v9189_v14 = vsel %vm8822_vm1, %v10643_v48, %v9056_v54  ;;  %v9086_v54 = vpop.permute.xlu0 %9085 }
 0xa3a   :  { %9254 = vst.msk [vmem:[%s14636_s21 + $0x170] sm:$0xff] %vm9207_vm2, %v9189_v14 }
 0xa3b   :  { %v10645_v22 = vpop.eup %10644 }
 0xa3c   :  { %v10647_v8 = vpop.eup %10646  ;;  %v8678_v6 = vadd.f32 1.0, %v10645_v22  ;;  %v9983_v26 = vpop.f32.mrb[180].mxu1 }
 0xa3d   :  { %v10649_v23 = vpop.eup %10648  ;;  %v8676_v19 = vadd.f32 1.0, %v10647_v8  ;;  %v8398_v12 = vadd.f32 %v14447_v56, %v9983_v26  ;;  %v8389_v31 = vpop.f32.mrb[181].mxu1 }
 0xa3e   :  { %v10651_v32 = vpop.eup %10650  ;;  %v9187_v11 = vsel %vm8822_vm1, %v10649_v23, %v9046_v40  ;;  %10658 = vrcp.f32 %v8678_v6  ;;  %v8390_v24 = vadd.f32 %v14447_v56, %v8389_v31  ;;  %v9984_v21 = vpop.f32.mrb[182].mxu1 }
 0xa3f   :  { %v10653_v9 = vpop.eup %10652  ;;  %9252 = vst.msk [vmem:[%s14636_s21 + $0x160] sm:$0xff] %vm9207_vm2, %v9187_v11  ;;  %v9190_v41 = vsel %vm8822_vm1, %v10651_v32, %v9061_v39  ;;  %10660 = vrcp.f32 %v8676_v19  ;;  %v9755_v0 = vmul.f32 -1.442695, %v8398_v12  ;;  %v8401_v5 = vadd.f32 %v14447_v56, %v9984_v21  ;;  %v8392_v2 = vpop.f32.mrb[183].mxu1 }
 0xa40   :  { %v10655_v51 = vpop.eup %10654  ;;  %9255 = vst.msk [vmem:[%s14636_s21 + $0x178] sm:$0xff] %vm9207_vm2, %v9190_v41  ;;  %v9188_v3 = vsel %vm8822_vm1, %v10653_v9, %v9051_v18  ;;  %v9753_v25 = vmul.f32 -1.442695, %v8390_v24  ;;  %v8393_v43 = vadd.f32 %v14447_v56, %v8392_v2  ;;  %v9091_v18 = vpop.permute.xlu1 %9090 }
 0xa41   :  { %v10657_v29 = vpop.eup %10656  ;;  %9253 = vst.msk [vmem:[%s14636_s21 + $0x168] sm:$0xff] %vm9207_vm2, %v9188_v3  ;;  %v8679_v63 = vadd.f32 1.0, %v10655_v51  ;;  %10662 = vpow2.f32 %v9755_v0  ;;  %v9756_v45 = vmul.f32 -1.442695, %v8401_v5  ;;  %v9096_v22 = vpop.permute.xlu0 %9095 }
 0xa42   :  { %v8677_v33 = vadd.f32 1.0, %v10657_v29  ;;  %10664 = vpow2.f32 %v9753_v25  ;;  %v9754_v58 = vmul.f32 -1.442695, %v8393_v43 }
 0xa43   :  { %10666 = vrcp.f32 %v8679_v63 }
 0xa44   :  { %10668 = vrcp.f32 %v8677_v33  ;;  %v9101_v12 = vpop.permute.xlu1 %9100 }
 0xa45   :  { %10670 = vpow2.f32 %v9756_v45 }
 0xa46   :  { %10672 = vpow2.f32 %v9754_v58 }
 0xa48   :  { %v10659_v4 = vpop.eup %10658 }
 0xa49   :  { %v10661_v35 = vpop.eup %10660  ;;  %v9193_v49 = vsel %vm8822_vm1, %v10659_v4, %v9076_v55  ;;  %v9106_v55 = vpop.permute.xlu0 %9105 }
 0xa4a   :  { %9258 = vst.msk [vmem:[%s14636_s21 + $0x190] sm:$0xff] %vm9207_vm2, %v9193_v49  ;;  %v9191_v59 = vsel %vm8822_vm1, %v10661_v35, %v9066_v36 }
 0xa4b   :  { %v10663_v61 = vpop.eup %10662  ;;  %9256 = vst.msk [vmem:[%s14636_s21 + $0x180] sm:$0xff] %vm9207_vm2, %v9191_v59 }
 0xa4c   :  { %v10665_v42 = vpop.eup %10664  ;;  %v8682_v16 = vadd.f32 1.0, %v10663_v61  ;;  %v9987_v7 = vpop.f32.mrb[184].mxu1 }
 0xa4d   :  { %v10667_v50 = vpop.eup %10666  ;;  %v8680_v13 = vadd.f32 1.0, %v10665_v42  ;;  %v8414_v15 = vadd.f32 %v14447_v56, %v9987_v7  ;;  %v8405_v47 = vpop.f32.mrb[185].mxu1 }
 0xa4e   :  { %v10669_v52 = vpop.eup %10668  ;;  %v9194_v27 = vsel %vm8822_vm1, %v10667_v50, %v9081_v10  ;;  %10674 = vrcp.f32 %v8682_v16  ;;  %v8406_v30 = vadd.f32 %v14447_v56, %v8405_v47  ;;  %v9988_v60 = vpop.f32.mrb[186].mxu1 }
 0xa4f   :  { %v10671_v38 = vpop.eup %10670  ;;  %9259 = vst.msk [vmem:[%s14636_s21 + $0x198] sm:$0xff] %vm9207_vm2, %v9194_v27  ;;  %v9192_v17 = vsel %vm8822_vm1, %v10669_v52, %v9071_v46  ;;  %10676 = vrcp.f32 %v8680_v13  ;;  %v9759_v44 = vmul.f32 -1.442695, %v8414_v15  ;;  %v8417_v53 = vadd.f32 %v14447_v56, %v9988_v60  ;;  %v8408_v37 = vpop.f32.mrb[187].mxu1 }
 0xa50   :  { %v10673_v57 = vpop.eup %10672  ;;  %9257 = vst.msk [vmem:[%s14636_s21 + $0x188] sm:$0xff] %vm9207_vm2, %v9192_v17  ;;  %v8683_v20 = vadd.f32 1.0, %v10671_v38  ;;  %v9757_v28 = vmul.f32 -1.442695, %v8406_v30  ;;  %v8409_v34 = vadd.f32 %v14447_v56, %v8408_v37  ;;  %v9111_v46 = vpop.permute.xlu1 %9110 }
 0xa51   :  { %v8681_v62 = vadd.f32 1.0, %v10673_v57  ;;  %10678 = vpow2.f32 %v9759_v44  ;;  %v9760_v40 = vmul.f32 -1.442695, %v8417_v53  ;;  %v9116_v49 = vpop.permute.xlu0 %9115 }
 0xa52   :  { %10680 = vrcp.f32 %v8683_v20  ;;  %v9758_v48 = vmul.f32 -1.442695, %v8409_v34 }
 0xa53   :  { %10682 = vrcp.f32 %v8681_v62 }
 0xa54   :  { %10684 = vpow2.f32 %v9757_v28  ;;  %v9121_v42 = vpop.permute.xlu1 %9120 }
 0xa55   :  { %10686 = vpow2.f32 %v9760_v40  ;;  %v9126_v17 = vpop.permute.xlu0 %9125 }
 0xa56   :  { %10688 = vpow2.f32 %v9758_v48 }
 0xa58   :  { %v10675_v14 = vpop.eup %10674  ;;  %v9131_v44 = vpop.permute.xlu1 %9130 }
 0xa59   :  { %v10677_v8 = vpop.eup %10676  ;;  %v9197_v6 = vsel %vm8822_vm1, %v10675_v14, %v9096_v22  ;;  %v9136_v37 = vpop.permute.xlu0 %9135 }
 0xa5a   :  { %9262 = vst.msk [vmem:[%s14636_s21 + $0x1b0] sm:$0xff] %vm9207_vm2, %v9197_v6  ;;  %v9195_v26 = vsel %vm8822_vm1, %v10677_v8, %v9086_v54 }
 0xa5b   :  { %v10679_v23 = vpop.eup %10678  ;;  %9260 = vst.msk [vmem:[%s14636_s21 + $0x1a0] sm:$0xff] %vm9207_vm2, %v9195_v26 }
 0xa5c   :  { %v10681_v19 = vpop.eup %10680  ;;  %v8686_v31 = vadd.f32 1.0, %v10679_v23  ;;  %v9991_v32 = vpop.f32.mrb[188].mxu1 }
 0xa5d   :  { %v10683_v39 = vpop.eup %10682  ;;  %v9198_v11 = vsel %vm8822_vm1, %v10681_v19, %v9101_v12  ;;  %v8430_v24 = vadd.f32 %v14447_v56, %v9991_v32  ;;  %v8421_v21 = vpop.f32.mrb[189].mxu1 }
 0xa5e   :  { %v10685_v9 = vpop.eup %10684  ;;  %9263 = vst.msk [vmem:[%s14636_s21 + $0x1b8] sm:$0xff] %vm9207_vm2, %v9198_v11  ;;  %v9196_v41 = vsel %vm8822_vm1, %v10683_v39, %v9091_v18  ;;  %10690 = vrcp.f32 %v8686_v31  ;;  %v8422_v0 = vadd.f32 %v14447_v56, %v8421_v21  ;;  %v9992_v5 = vpop.f32.mrb[190].mxu1 }
 0xa5f   :  { %v10687_v2 = vpop.eup %10686  ;;  %9261 = vst.msk [vmem:[%s14636_s21 + $0x1a8] sm:$0xff] %vm9207_vm2, %v9196_v41  ;;  %v8684_v51 = vadd.f32 1.0, %v10685_v9  ;;  %v8433_v3 = vadd.f32 %v14447_v56, %v9992_v5  ;;  %v8424_v25 = vpop.f32.mrb[191].mxu1  ;;  %v9763_v63 = vmul.f32 -1.442695, %v8430_v24 }
 0xa60   :  { %v10689_v43 = vpop.eup %10688  ;;  %v8687_v29 = vadd.f32 1.0, %v10687_v2  ;;  %v8425_v45 = vadd.f32 %v14447_v56, %v8424_v25  ;;  %v9761_v58 = vmul.f32 -1.442695, %v8422_v0  ;;  %v9141_v34 = vpop.permute.xlu1 %9140 }
 0xa61   :  { %10692 = vrcp.f32 %v8684_v51  ;;  %v8685_v33 = vadd.f32 1.0, %v10689_v43  ;;  %v9764_v36 = vmul.f32 -1.442695, %v8433_v3 }
 0xa62   :  { %10694 = vrcp.f32 %v8687_v29  ;;  %v9762_v4 = vmul.f32 -1.442695, %v8425_v45 }
 0xa63   :  { %10696 = vrcp.f32 %v8685_v33 }
 0xa64   :  { %10698 = vpow2.f32 %v9763_v63 }
 0xa65   :  { %10700 = vpow2.f32 %v9761_v58 }
 0xa66   :  { %10702 = vpow2.f32 %v9764_v36 }
 0xa67   :  { %10704 = vpow2.f32 %v9762_v4 }
 0xa68   :  { %v10691_v35 = vpop.eup %10690 }
 0xa69   :  { %v9201_v59 = vsel %vm8822_vm1, %v10691_v35, %v9116_v49 }
 0xa6a   :  { %9266 = vst.msk [vmem:[%s14636_s21 + $0x1d0] sm:$0xff] %vm9207_vm2, %v9201_v59 }
 0xa6b   :  { %v10693_v56 = vpop.eup %10692 }
 0xa6c   :  { %v10695_v61 = vpop.eup %10694  ;;  %v9199_v16 = vsel %vm8822_vm1, %v10693_v56, %v9106_v55 }
 0xa6d   :  { %v10697_v7 = vpop.eup %10696  ;;  %9264 = vst.msk [vmem:[%s14636_s21 + $0x1c0] sm:$0xff] %vm9207_vm2, %v9199_v16  ;;  %v9202_v50 = vsel %vm8822_vm1, %v10695_v61, %v9121_v42 }
 0xa6e   :  { %v10699_v10 = vpop.eup %10698  ;;  %9267 = vst.msk [vmem:[%s14636_s21 + $0x1d8] sm:$0xff] %vm9207_vm2, %v9202_v50  ;;  %v9200_v13 = vsel %vm8822_vm1, %v10697_v7, %v9111_v46 }
 0xa6f   :  { %v10701_v15 = vpop.eup %10700  ;;  %9265 = vst.msk [vmem:[%s14636_s21 + $0x1c8] sm:$0xff] %vm9207_vm2, %v9200_v13  ;;  %v8690_v47 = vadd.f32 1.0, %v10699_v10 }
 0xa70   :  { %v10703_v52 = vpop.eup %10702  ;;  %v8688_v27 = vadd.f32 1.0, %v10701_v15 }
 0xa71   :  { %v10705_v30 = vpop.eup %10704  ;;  %10706 = vrcp.f32 %v8690_v47  ;;  %v8691_v60 = vadd.f32 1.0, %v10703_v52 }
 0xa72   :  { %10708 = vrcp.f32 %v8688_v27  ;;  %v8689_v38 = vadd.f32 1.0, %v10705_v30 }
 0xa73   :  { %10710 = vrcp.f32 %v8691_v60 }
 0xa74   :  { %10712 = vrcp.f32 %v8689_v38 }
 0xa7b   :  { %v10707_v53 = vpop.eup %10706 }
 0xa7c   :  { %v10709_v57 = vpop.eup %10708  ;;  %v9205_v20 = vsel %vm8822_vm1, %v10707_v53, %v9136_v37 }
 0xa7d   :  { %v10711_v28 = vpop.eup %10710  ;;  %9270 = vst.msk [vmem:[%s14636_s21 + $0x1f0] sm:$0xff] %vm9207_vm2, %v9205_v20  ;;  %v9203_v62 = vsel %vm8822_vm1, %v10709_v57, %v9126_v17 }
 0xa7e   :  { %v10713_v40 = vpop.eup %10712  ;;  %9268 = vst.msk [vmem:[%s14636_s21 + $0x1e0] sm:$0xff] %vm9207_vm2, %v9203_v62  ;;  %v9206_v48 = vsel %vm8822_vm1, %v10711_v28, %v9141_v34 }
 0xa7f   :  { %9271 = vst.msk [vmem:[%s14636_s21 + $0x1f8] sm:$0xff] %vm9207_vm2, %v9206_v48  ;;  %v9204_v54 = vsel %vm8822_vm1, %v10713_v40, %v9131_v44 }
 0xa80   :  { %9269 = vst.msk [vmem:[%s14636_s21 + $0x1e8] sm:$0xff] %vm9207_vm2, %v9204_v54 }
 0xa81   :  { %9276 = vsyncpa [#allocation3], 1 }
 0xa82   :  { %9277 = vsyncpa [#allocation5], 1 }
 0xa83   :  { %9278 = vsyncpa [#allocation8], 1 }
 0xa84   :  { %9279 = vsyncpa [#allocation11], 1 }

</bundles_post_ra>
